<compile_context>
chip_gen: v7x
topology: tpu7x:2x2x1
jax: 0.10.0
libtpu: 0.0.40
codegen_flags: <defaults>
</compile_context>

<pallas_src>
import jax
import jax.numpy as jnp
from jax.experimental import pallas as pl
from jax.experimental.pallas import tpu as pltpu

_EPS = 1e-5
_LANE = 128


def _fused_basic_block_kernel(x_ref, w1_ref, g1_ref, b1_ref,
                              w2_ref, g2_ref, b2_ref, out_ref, xpad_ref):
    """Fused BasicBlock: relu(bn2(conv2(relu(bn1(conv1(x))))) + x).

    x_ref   : (N, H, W, C)      NHWC input, C already a multiple of 128
    w*_ref  : (9*C, C)          im2col-reshaped 3x3 conv weights (kh,kw,cin major)
    g*/b*   : (1, C)            BN gamma / beta
    out_ref : (N, H, W, C)
    xpad_ref: (N, H+2, W+2, C)  f32 VMEM scratch reused by both stages
    """
    N, H, W, C = x_ref.shape
    M = N * H * W
    inv_m = 1.0 / float(M)

    def conv_bn(w_ref, g_ref, b_ref):
        # im2col: build one lane-dense (M, 9C) patch -> single K=9C MXU matmul.
        cols = []
        for kh in range(3):
            for kw in range(3):
                win = xpad_ref[:, pl.ds(kh, H), pl.ds(kw, W), :]
                cols.append(win.reshape(M, C))
        patch = jnp.concatenate(cols, axis=-1)                        # (M, 9C)
        acc = jnp.dot(patch, w_ref[...],
                      preferred_element_type=jnp.float32)             # (M, C)
        # Single-pass batch statistics per channel over N*H*W (f32).
        s1 = jnp.sum(acc, axis=0, keepdims=True)
        s2 = jnp.sum(acc * acc, axis=0, keepdims=True)
        mean = s1 * inv_m
        var = s2 * inv_m - mean * mean
        # Fold normalize + affine into one per-channel scale/shift FMA.
        scale = jax.lax.rsqrt(var + _EPS) * g_ref[...]                # (1, C)
        shift = b_ref[...] - mean * scale                             # (1, C)
        return acc * scale + shift

    # f32 view of the input, reused for padding write and residual add.
    x_f32 = x_ref[...].astype(jnp.float32)

    # Zero the padded scratch once; the halo stays zero for BOTH stages.
    xpad_ref[...] = jnp.zeros_like(xpad_ref)
    xpad_ref[:, pl.ds(1, H), pl.ds(1, W), :] = x_f32

    # Stage 1: h = relu(bn1(conv1(x)))
    h = jnp.maximum(conv_bn(w1_ref, g1_ref, b1_ref), 0.0)             # (M, C)

    # Stage 2 input: write h into the (still zero-haloed) scratch interior.
    xpad_ref[:, pl.ds(1, H), pl.ds(1, W), :] = h.reshape(N, H, W, C)

    # Stage 2: out = relu(bn2(conv2(h)) + x)
    y = conv_bn(w2_ref, g2_ref, b2_ref) + x_f32.reshape(M, C)
    out_ref[...] = jnp.maximum(y, 0.0).reshape(N, H, W, C).astype(out_ref.dtype)


def _round_up(c, m):
    return ((c + m - 1) // m) * m


def basic_block_forward(x_nhwc, w1, g1, b1, w2, g2, b2):
    """BasicBlock forward (stride=1, dilation=1, downsample=None) in NHWC."""
    N, H, W, C = x_nhwc.shape
    planes = w1.shape[-1]
    assert C == planes, "identity residual requires inplanes == planes"

    Cp = _round_up(C, _LANE)
    pc = Cp - C

    # Lane-dense channel padding (a no-op for real ResNet channel counts).
    xp = jnp.pad(x_nhwc, ((0, 0), (0, 0), (0, 0), (0, pc))) if pc else x_nhwc

    def prep_w(w):  # (3,3,Cin,Cout) -> im2col (9*Cp, Cp), f32
        wp = jnp.pad(w, ((0, 0), (0, 0), (0, pc), (0, pc))) if pc else w
        return wp.reshape(9 * Cp, Cp).astype(jnp.float32)

    def prep_g(g):  # gamma, padded channels -> 1 (keeps rsqrt finite on pad lanes)
        gp = jnp.pad(g.astype(jnp.float32), (0, pc), constant_values=1.0) if pc \
            else g.astype(jnp.float32)
        return gp.reshape(1, Cp)

    def prep_b(b):  # beta, padded channels -> 0
        bp = jnp.pad(b.astype(jnp.float32), (0, pc)) if pc else b.astype(jnp.float32)
        return bp.reshape(1, Cp)

    vmem = pl.BlockSpec(memory_space=pltpu.MemorySpace.VMEM)
    out = pl.pallas_call(
        _fused_basic_block_kernel,
        out_shape=jax.ShapeDtypeStruct((N, H, W, Cp), x_nhwc.dtype),
        in_specs=[vmem] * 7,
        out_specs=vmem,
        scratch_shapes=[pltpu.VMEM((N, H + 2, W + 2, Cp), jnp.float32)],
    )(xp, prep_w(w1), prep_g(g1), prep_b(b1), prep_w(w2), prep_g(g2), prep_b(b2))
    return out[..., :C] if pc else out


def _reference_forward(x_nhwc, w1, g1, b1, w2, g2, b2):
    """Plain-JAX reference for the correctness check."""
    def conv(x, w):
        return jax.lax.conv_general_dilated(
            x, w, window_strides=(1, 1), padding=((1, 1), (1, 1)),
            dimension_numbers=("NHWC", "HWIO", "NHWC"))

    def bn(y, g, b):
        mean = y.mean(axis=(0, 1, 2), keepdims=True)
        var = ((y - mean) ** 2).mean(axis=(0, 1, 2), keepdims=True)
        return (y - mean) * jax.lax.rsqrt(var + _EPS) * g + b

    out = jnp.maximum(bn(conv(x_nhwc, w1), g1, b1), 0.0)
    out = bn(conv(out, w2), g2, b2)
    return jnp.maximum(out + x_nhwc, 0.0)


if __name__ == "__main__":
    key = jax.random.PRNGKey(0)
    kx, k1, k2, k3, k4, k5, k6 = jax.random.split(key, 7)

    # Small shapes consistent with BasicBlock(inplanes=4, planes=4, stride=1).
    N, C, H, W = 2, 4, 16, 16
    planes = 4

    x_nchw = jax.random.normal(kx, (N, C, H, W), jnp.float32)   # PyTorch NCHW view
    x = jnp.transpose(x_nchw, (0, 2, 3, 1))                     # -> NHWC for kernel

    # Deterministic parameter init (conv weights HWIO; BN affine params).
    w1 = 0.1 * jax.random.normal(k1, (3, 3, C, planes), jnp.float32)
    w2 = 0.1 * jax.random.normal(k2, (3, 3, planes, planes), jnp.float32)
    g1 = 1.0 + 0.1 * jax.random.normal(k3, (planes,), jnp.float32)
    b1 = 0.1 * jax.random.normal(k4, (planes,), jnp.float32)
    g2 = 1.0 + 0.1 * jax.random.normal(k5, (planes,), jnp.float32)
    b2 = 0.1 * jax.random.normal(k6, (planes,), jnp.float32)

    out = basic_block_forward(x, w1, g1, b1, w2, g2, b2)
    out = jax.block_until_ready(out)

    ref = _reference_forward(x, w1, g1, b1, w2, g2, b2)
    assert out.shape == (N, H, W, planes)
    assert jnp.allclose(out, ref, atol=5e-4, rtol=5e-4), "mismatch vs reference"

    print("KERNEL_OK")
</pallas_src>

<mosaic_0001>
module attributes {stable_mosaic.version = 11 : i64} {
  func.func @_fused_basic_block_kernel(%arg0: memref<2x16x16x128xf32, #tpu.memory_space<vmem>>, %arg1: memref<1152x128xf32, #tpu.memory_space<vmem>>, %arg2: memref<1x128xf32, #tpu.memory_space<vmem>>, %arg3: memref<1x128xf32, #tpu.memory_space<vmem>>, %arg4: memref<1152x128xf32, #tpu.memory_space<vmem>>, %arg5: memref<1x128xf32, #tpu.memory_space<vmem>>, %arg6: memref<1x128xf32, #tpu.memory_space<vmem>>, %arg7: memref<2x16x16x128xf32, #tpu.memory_space<vmem>>, %arg8: memref<2x18x18x128xf32, #tpu.memory_space<vmem>>) attributes {dimension_semantics = [], scalar_prefetch = 0 : i64, scratch_operands = 1 : i64, tpu.core_type = #tpu.core_type<tc>} {
    %c0 = arith.constant 0 : index
    %c0_0 = arith.constant 0 : index
    %c0_1 = arith.constant 0 : index
    %c0_2 = arith.constant 0 : index
    %0 = vector.load %arg0[%c0, %c0_0, %c0_1, %c0_2] : memref<2x16x16x128xf32, #tpu.memory_space<vmem>>, vector<2x16x16x128xf32>
    %cst = arith.constant 0.000000e+00 : f32
    %1 = vector.broadcast %cst : f32 to vector<2x18x18x128xf32>
    %c0_3 = arith.constant 0 : index
    %c0_4 = arith.constant 0 : index
    %c0_5 = arith.constant 0 : index
    %c0_6 = arith.constant 0 : index
    %2 = vector.load %arg8[%c0_3, %c0_4, %c0_5, %c0_6] : memref<2x18x18x128xf32, #tpu.memory_space<vmem>>, vector<2x18x18x128xf32>
    tpu.vector_store %arg8[%c0_3, %c0_4, %c0_5, %c0_6], %1 {strides = array<i32>} : memref<2x18x18x128xf32, #tpu.memory_space<vmem>>, vector<2x18x18x128xf32>,
    %c0_7 = arith.constant 0 : index
    %c1 = arith.constant 1 : index
    %c1_8 = arith.constant 1 : index
    %c0_9 = arith.constant 0 : index
    %3 = vector.load %arg8[%c0_7, %c1, %c1_8, %c0_9] : memref<2x18x18x128xf32, #tpu.memory_space<vmem>>, vector<2x16x16x128xf32>
    tpu.vector_store %arg8[%c0_7, %c1, %c1_8, %c0_9], %0 {strides = array<i32>} : memref<2x18x18x128xf32, #tpu.memory_space<vmem>>, vector<2x16x16x128xf32>,
    %c0_10 = arith.constant 0 : index
    %c0_11 = arith.constant 0 : index
    %c0_12 = arith.constant 0 : index
    %c0_13 = arith.constant 0 : index
    %4 = vector.load %arg8[%c0_10, %c0_11, %c0_12, %c0_13] : memref<2x18x18x128xf32, #tpu.memory_space<vmem>>, vector<2x16x16x128xf32>
    %5 = vector.shape_cast %4 : vector<2x16x16x128xf32> to vector<512x128xf32>
    %c0_14 = arith.constant 0 : index
    %c0_15 = arith.constant 0 : index
    %c1_16 = arith.constant 1 : index
    %c0_17 = arith.constant 0 : index
    %6 = vector.load %arg8[%c0_14, %c0_15, %c1_16, %c0_17] : memref<2x18x18x128xf32, #tpu.memory_space<vmem>>, vector<2x16x16x128xf32>
    %7 = vector.shape_cast %6 : vector<2x16x16x128xf32> to vector<512x128xf32>
    %c0_18 = arith.constant 0 : index
    %c0_19 = arith.constant 0 : index
    %c2 = arith.constant 2 : index
    %c0_20 = arith.constant 0 : index
    %8 = vector.load %arg8[%c0_18, %c0_19, %c2, %c0_20] : memref<2x18x18x128xf32, #tpu.memory_space<vmem>>, vector<2x16x16x128xf32>
    %9 = vector.shape_cast %8 : vector<2x16x16x128xf32> to vector<512x128xf32>
    %c0_21 = arith.constant 0 : index
    %c1_22 = arith.constant 1 : index
    %c0_23 = arith.constant 0 : index
    %c0_24 = arith.constant 0 : index
    %10 = vector.load %arg8[%c0_21, %c1_22, %c0_23, %c0_24] : memref<2x18x18x128xf32, #tpu.memory_space<vmem>>, vector<2x16x16x128xf32>
    %11 = vector.shape_cast %10 : vector<2x16x16x128xf32> to vector<512x128xf32>
    %c0_25 = arith.constant 0 : index
    %c1_26 = arith.constant 1 : index
    %c1_27 = arith.constant 1 : index
    %c0_28 = arith.constant 0 : index
    %12 = vector.load %arg8[%c0_25, %c1_26, %c1_27, %c0_28] : memref<2x18x18x128xf32, #tpu.memory_space<vmem>>, vector<2x16x16x128xf32>
    %13 = vector.shape_cast %12 : vector<2x16x16x128xf32> to vector<512x128xf32>
    %c0_29 = arith.constant 0 : index
    %c1_30 = arith.constant 1 : index
    %c2_31 = arith.constant 2 : index
    %c0_32 = arith.constant 0 : index
    %14 = vector.load %arg8[%c0_29, %c1_30, %c2_31, %c0_32] : memref<2x18x18x128xf32, #tpu.memory_space<vmem>>, vector<2x16x16x128xf32>
    %15 = vector.shape_cast %14 : vector<2x16x16x128xf32> to vector<512x128xf32>
    %c0_33 = arith.constant 0 : index
    %c2_34 = arith.constant 2 : index
    %c0_35 = arith.constant 0 : index
    %c0_36 = arith.constant 0 : index
    %16 = vector.load %arg8[%c0_33, %c2_34, %c0_35, %c0_36] : memref<2x18x18x128xf32, #tpu.memory_space<vmem>>, vector<2x16x16x128xf32>
    %17 = vector.shape_cast %16 : vector<2x16x16x128xf32> to vector<512x128xf32>
    %c0_37 = arith.constant 0 : index
    %c2_38 = arith.constant 2 : index
    %c1_39 = arith.constant 1 : index
    %c0_40 = arith.constant 0 : index
    %18 = vector.load %arg8[%c0_37, %c2_38, %c1_39, %c0_40] : memref<2x18x18x128xf32, #tpu.memory_space<vmem>>, vector<2x16x16x128xf32>
    %19 = vector.shape_cast %18 : vector<2x16x16x128xf32> to vector<512x128xf32>
    %c0_41 = arith.constant 0 : index
    %c2_42 = arith.constant 2 : index
    %c2_43 = arith.constant 2 : index
    %c0_44 = arith.constant 0 : index
    %20 = vector.load %arg8[%c0_41, %c2_42, %c2_43, %c0_44] : memref<2x18x18x128xf32, #tpu.memory_space<vmem>>, vector<2x16x16x128xf32>
    %21 = vector.shape_cast %20 : vector<2x16x16x128xf32> to vector<512x128xf32>
    %22 = tpu.concatenate %5, %7, %9, %11, %13, %15, %17, %19, %21 in 1 : vector<512x128xf32>, vector<512x128xf32>, vector<512x128xf32>, vector<512x128xf32>, vector<512x128xf32>, vector<512x128xf32>, vector<512x128xf32>, vector<512x128xf32>, vector<512x128xf32> -> vector<512x1152xf32>
    %c0_45 = arith.constant 0 : index
    %c0_46 = arith.constant 0 : index
    %23 = vector.load %arg1[%c0_45, %c0_46] : memref<1152x128xf32, #tpu.memory_space<vmem>>, vector<1152x128xf32>
    %cst_47 = arith.constant dense<0.000000e+00> : vector<512x128xf32>
    %24 = tpu.matmul %22, %23, %cst_47 {dimension_numbers = #tpu.dot_dimension_numbers<[1], [0], [0], [1], [0, 0, 1, 1], [], []>} : vector<512x1152xf32>, vector<1152x128xf32>, vector<512x128xf32> -> vector<512x128xf32>
    %cst_48 = arith.constant dense<0.000000e+00> : vector<128xf32>
    %25 = vector.multi_reduction <add>, %24, %cst_48 [0] : vector<512x128xf32> to vector<128xf32>
    %26 = vector.shape_cast %25 : vector<128xf32> to vector<1x128xf32>
    %27 = arith.mulf %24, %24 : vector<512x128xf32>
    %cst_49 = arith.constant dense<0.000000e+00> : vector<128xf32>
    %28 = vector.multi_reduction <add>, %27, %cst_49 [0] : vector<512x128xf32> to vector<128xf32>
    %29 = vector.shape_cast %28 : vector<128xf32> to vector<1x128xf32>
    %cst_50 = arith.constant 0.001953125 : f32
    %30 = vector.broadcast %cst_50 : f32 to vector<1x128xf32>
    %31 = arith.mulf %26, %30 : vector<1x128xf32>
    %cst_51 = arith.constant 0.001953125 : f32
    %32 = vector.broadcast %cst_51 : f32 to vector<1x128xf32>
    %33 = arith.mulf %29, %32 : vector<1x128xf32>
    %34 = arith.mulf %31, %31 : vector<1x128xf32>
    %35 = arith.subf %33, %34 : vector<1x128xf32>
    %cst_52 = arith.constant 9.99999974E-6 : f32
    %36 = vector.broadcast %cst_52 : f32 to vector<1x128xf32>
    %37 = arith.addf %35, %36 : vector<1x128xf32>
    %38 = math.rsqrt %37 : vector<1x128xf32>
    %c0_53 = arith.constant 0 : index
    %c0_54 = arith.constant 0 : index
    %39 = vector.load %arg2[%c0_53, %c0_54] : memref<1x128xf32, #tpu.memory_space<vmem>>, vector<1x128xf32>
    %40 = arith.mulf %38, %39 : vector<1x128xf32>
    %c0_55 = arith.constant 0 : index
    %c0_56 = arith.constant 0 : index
    %41 = vector.load %arg3[%c0_55, %c0_56] : memref<1x128xf32, #tpu.memory_space<vmem>>, vector<1x128xf32>
    %42 = arith.mulf %31, %40 : vector<1x128xf32>
    %43 = arith.subf %41, %42 : vector<1x128xf32>
    %44 = vector.broadcast %40 : vector<1x128xf32> to vector<512x128xf32>
    %45 = arith.mulf %24, %44 : vector<512x128xf32>
    %46 = vector.broadcast %43 : vector<1x128xf32> to vector<512x128xf32>
    %47 = arith.addf %45, %46 : vector<512x128xf32>
    %cst_57 = arith.constant 0.000000e+00 : f32
    %48 = vector.broadcast %cst_57 : f32 to vector<512x128xf32>
    %49 = arith.maximumf %47, %48 : vector<512x128xf32>
    %50 = vector.shape_cast %49 : vector<512x128xf32> to vector<2x16x16x128xf32>
    %c0_58 = arith.constant 0 : index
    %c1_59 = arith.constant 1 : index
    %c1_60 = arith.constant 1 : index
    %c0_61 = arith.constant 0 : index
    %51 = vector.load %arg8[%c0_58, %c1_59, %c1_60, %c0_61] : memref<2x18x18x128xf32, #tpu.memory_space<vmem>>, vector<2x16x16x128xf32>
    tpu.vector_store %arg8[%c0_58, %c1_59, %c1_60, %c0_61], %50 {strides = array<i32>} : memref<2x18x18x128xf32, #tpu.memory_space<vmem>>, vector<2x16x16x128xf32>,
    %c0_62 = arith.constant 0 : index
    %c0_63 = arith.constant 0 : index
    %c0_64 = arith.constant 0 : index
    %c0_65 = arith.constant 0 : index
    %52 = vector.load %arg8[%c0_62, %c0_63, %c0_64, %c0_65] : memref<2x18x18x128xf32, #tpu.memory_space<vmem>>, vector<2x16x16x128xf32>
    %53 = vector.shape_cast %52 : vector<2x16x16x128xf32> to vector<512x128xf32>
    %c0_66 = arith.constant 0 : index
    %c0_67 = arith.constant 0 : index
    %c1_68 = arith.constant 1 : index
    %c0_69 = arith.constant 0 : index
    %54 = vector.load %arg8[%c0_66, %c0_67, %c1_68, %c0_69] : memref<2x18x18x128xf32, #tpu.memory_space<vmem>>, vector<2x16x16x128xf32>
    %55 = vector.shape_cast %54 : vector<2x16x16x128xf32> to vector<512x128xf32>
    %c0_70 = arith.constant 0 : index
    %c0_71 = arith.constant 0 : index
    %c2_72 = arith.constant 2 : index
    %c0_73 = arith.constant 0 : index
    %56 = vector.load %arg8[%c0_70, %c0_71, %c2_72, %c0_73] : memref<2x18x18x128xf32, #tpu.memory_space<vmem>>, vector<2x16x16x128xf32>
    %57 = vector.shape_cast %56 : vector<2x16x16x128xf32> to vector<512x128xf32>
    %c0_74 = arith.constant 0 : index
    %c1_75 = arith.constant 1 : index
    %c0_76 = arith.constant 0 : index
    %c0_77 = arith.constant 0 : index
    %58 = vector.load %arg8[%c0_74, %c1_75, %c0_76, %c0_77] : memref<2x18x18x128xf32, #tpu.memory_space<vmem>>, vector<2x16x16x128xf32>
    %59 = vector.shape_cast %58 : vector<2x16x16x128xf32> to vector<512x128xf32>
    %c0_78 = arith.constant 0 : index
    %c1_79 = arith.constant 1 : index
    %c1_80 = arith.constant 1 : index
    %c0_81 = arith.constant 0 : index
    %60 = vector.load %arg8[%c0_78, %c1_79, %c1_80, %c0_81] : memref<2x18x18x128xf32, #tpu.memory_space<vmem>>, vector<2x16x16x128xf32>
    %61 = vector.shape_cast %60 : vector<2x16x16x128xf32> to vector<512x128xf32>
    %c0_82 = arith.constant 0 : index
    %c1_83 = arith.constant 1 : index
    %c2_84 = arith.constant 2 : index
    %c0_85 = arith.constant 0 : index
    %62 = vector.load %arg8[%c0_82, %c1_83, %c2_84, %c0_85] : memref<2x18x18x128xf32, #tpu.memory_space<vmem>>, vector<2x16x16x128xf32>
    %63 = vector.shape_cast %62 : vector<2x16x16x128xf32> to vector<512x128xf32>
    %c0_86 = arith.constant 0 : index
    %c2_87 = arith.constant 2 : index
    %c0_88 = arith.constant 0 : index
    %c0_89 = arith.constant 0 : index
    %64 = vector.load %arg8[%c0_86, %c2_87, %c0_88, %c0_89] : memref<2x18x18x128xf32, #tpu.memory_space<vmem>>, vector<2x16x16x128xf32>
    %65 = vector.shape_cast %64 : vector<2x16x16x128xf32> to vector<512x128xf32>
    %c0_90 = arith.constant 0 : index
    %c2_91 = arith.constant 2 : index
    %c1_92 = arith.constant 1 : index
    %c0_93 = arith.constant 0 : index
    %66 = vector.load %arg8[%c0_90, %c2_91, %c1_92, %c0_93] : memref<2x18x18x128xf32, #tpu.memory_space<vmem>>, vector<2x16x16x128xf32>
    %67 = vector.shape_cast %66 : vector<2x16x16x128xf32> to vector<512x128xf32>
    %c0_94 = arith.constant 0 : index
    %c2_95 = arith.constant 2 : index
    %c2_96 = arith.constant 2 : index
    %c0_97 = arith.constant 0 : index
    %68 = vector.load %arg8[%c0_94, %c2_95, %c2_96, %c0_97] : memref<2x18x18x128xf32, #tpu.memory_space<vmem>>, vector<2x16x16x128xf32>
    %69 = vector.shape_cast %68 : vector<2x16x16x128xf32> to vector<512x128xf32>
    %70 = tpu.concatenate %53, %55, %57, %59, %61, %63, %65, %67, %69 in 1 : vector<512x128xf32>, vector<512x128xf32>, vector<512x128xf32>, vector<512x128xf32>, vector<512x128xf32>, vector<512x128xf32>, vector<512x128xf32>, vector<512x128xf32>, vector<512x128xf32> -> vector<512x1152xf32>
    %c0_98 = arith.constant 0 : index
    %c0_99 = arith.constant 0 : index
    %71 = vector.load %arg4[%c0_98, %c0_99] : memref<1152x128xf32, #tpu.memory_space<vmem>>, vector<1152x128xf32>
    %cst_100 = arith.constant dense<0.000000e+00> : vector<512x128xf32>
    %72 = tpu.matmul %70, %71, %cst_100 {dimension_numbers = #tpu.dot_dimension_numbers<[1], [0], [0], [1], [0, 0, 1, 1], [], []>} : vector<512x1152xf32>, vector<1152x128xf32>, vector<512x128xf32> -> vector<512x128xf32>
    %cst_101 = arith.constant dense<0.000000e+00> : vector<128xf32>
    %73 = vector.multi_reduction <add>, %72, %cst_101 [0] : vector<512x128xf32> to vector<128xf32>
    %74 = vector.shape_cast %73 : vector<128xf32> to vector<1x128xf32>
    %75 = arith.mulf %72, %72 : vector<512x128xf32>
    %cst_102 = arith.constant dense<0.000000e+00> : vector<128xf32>
    %76 = vector.multi_reduction <add>, %75, %cst_102 [0] : vector<512x128xf32> to vector<128xf32>
    %77 = vector.shape_cast %76 : vector<128xf32> to vector<1x128xf32>
    %cst_103 = arith.constant 0.001953125 : f32
    %78 = vector.broadcast %cst_103 : f32 to vector<1x128xf32>
    %79 = arith.mulf %74, %78 : vector<1x128xf32>
    %cst_104 = arith.constant 0.001953125 : f32
    %80 = vector.broadcast %cst_104 : f32 to vector<1x128xf32>
    %81 = arith.mulf %77, %80 : vector<1x128xf32>
    %82 = arith.mulf %79, %79 : vector<1x128xf32>
    %83 = arith.subf %81, %82 : vector<1x128xf32>
    %cst_105 = arith.constant 9.99999974E-6 : f32
    %84 = vector.broadcast %cst_105 : f32 to vector<1x128xf32>
    %85 = arith.addf %83, %84 : vector<1x128xf32>
    %86 = math.rsqrt %85 : vector<1x128xf32>
    %c0_106 = arith.constant 0 : index
    %c0_107 = arith.constant 0 : index
    %87 = vector.load %arg5[%c0_106, %c0_107] : memref<1x128xf32, #tpu.memory_space<vmem>>, vector<1x128xf32>
    %88 = arith.mulf %86, %87 : vector<1x128xf32>
    %c0_108 = arith.constant 0 : index
    %c0_109 = arith.constant 0 : index
    %89 = vector.load %arg6[%c0_108, %c0_109] : memref<1x128xf32, #tpu.memory_space<vmem>>, vector<1x128xf32>
    %90 = arith.mulf %79, %88 : vector<1x128xf32>
    %91 = arith.subf %89, %90 : vector<1x128xf32>
    %92 = vector.broadcast %88 : vector<1x128xf32> to vector<512x128xf32>
    %93 = arith.mulf %72, %92 : vector<512x128xf32>
    %94 = vector.broadcast %91 : vector<1x128xf32> to vector<512x128xf32>
    %95 = arith.addf %93, %94 : vector<512x128xf32>
    %96 = vector.shape_cast %0 : vector<2x16x16x128xf32> to vector<512x128xf32>
    %97 = arith.addf %95, %96 : vector<512x128xf32>
    %cst_110 = arith.constant 0.000000e+00 : f32
    %98 = vector.broadcast %cst_110 : f32 to vector<512x128xf32>
    %99 = arith.maximumf %97, %98 : vector<512x128xf32>
    %100 = vector.shape_cast %99 : vector<512x128xf32> to vector<2x16x16x128xf32>
    %c0_111 = arith.constant 0 : index
    %c0_112 = arith.constant 0 : index
    %c0_113 = arith.constant 0 : index
    %c0_114 = arith.constant 0 : index
    %101 = vector.load %arg7[%c0_111, %c0_112, %c0_113, %c0_114] : memref<2x16x16x128xf32, #tpu.memory_space<vmem>>, vector<2x16x16x128xf32>
    tpu.vector_store %arg7[%c0_111, %c0_112, %c0_113, %c0_114], %100 {strides = array<i32>} : memref<2x16x16x128xf32, #tpu.memory_space<vmem>>, vector<2x16x16x128xf32>,
    return
  }
}

</mosaic_0001>

<bundles_post_ra>
// kernel: tpu_custom_call.1
= control target key start
LH: loop header
LB: loop body
LE: loop exit
PB: predicated region body
PF: predicated region fallthrough
CT: control target
= control target key end

     0   :  { %12 = vsyncpa [#allocation4], 0  ;;  %s13147_s0 = inlined_call_operand.hbm [shape: f32[2,16,16,128], index: 0, kind: input, shape index: {}]   ;;  %s13148_s1 = inlined_call_operand.hbm [shape: f32[1152,128], index: 1, kind: input, shape index: {}]   ;;  %s13149_s2 = inlined_call_operand.vmem [shape: f32[1,128], index: 2, kind: input, shape index: {}]   ;;  %s13150_s3 = inlined_call_operand.vmem [shape: f32[1,128], index: 3, kind: input, shape index: {}]   ;;  %s13151_s4 = inlined_call_operand.hbm [shape: f32[1152,128], index: 4, kind: input, shape index: {}]   ;;  %s13152_s5 = inlined_call_operand.vmem [shape: f32[1,128], index: 5, kind: input, shape index: {}]   ;;  %s13153_s6 = inlined_call_operand.vmem [shape: f32[1,128], index: 6, kind: input, shape index: {}]   ;;  %s13154_s7 = inlined_call_operand.hbm [shape: f32[2,16,16,128], index: 7, kind: output, shape index: {}]  }
   0x1   :  { %13 = vsyncpa [#allocation7], 0 }
   0x2   :  { %14 = vsyncpa [#allocation5], 0  ;;  %s8394_s24 = smov [#allocation6]   ;;  %s8395_s26 = smov [#allocation3]  }
   0x3   :  { %s32_s25 = sshll.u32 %s8394_s24, 4  ;;  %s20_s27 = sshll.u32 %s8395_s26, 4  ;;  %s33_s25 = int_to_ptr.vmem [resolvable:$true] %s32_s25  ;;  %s8442_s27 = int_to_ptr.vmem [resolvable:$true] %s20_s27 }
   0x4   :  { %s8300_s30 = scalar_lea.hbm %s13148_s1, 18432 }
   0x5   :  { %p8301_p0 = scmp.ne.s32.totalorder %s13148_s1, %s8300_s30  ;;  %p8304_p1 = scmp.lt.u32.totalorder %s8300_s30, %s13148_s1 }
   0x7   :  { %p8306_p2 = pnand %p8304_p1, %p8301_p0 }
   0x9   :  { %8309 = shalt.err (!%p8306_p2)
}
   0xa   :  { %s8310_s12 = scalar_lea.vmem %s33_s25, 18432  ;;  %p8315_p4 = scmp.lt.s32.totalorder %s33_s25, %s33_s25 }
   0xb   :  { %p8311_p3 = scmp.ne.s32.totalorder %s33_s25, %s8310_s12  ;;  %p8316_p5 = scmp.lt.s32.totalorder %s8310_s12, %s8310_s12 }
   0xd   :  { %p8317_p6 = por %p8316_p5, %p8315_p4 }
   0xf   :  { %p8318_p7 = pnand %p8317_p6, %p8311_p3 }
  0x11   :  { %8321 = shalt.err (!%p8318_p7)
}
  0x12   :  { %s8396_s13 = smov 128   ;;  %s8397_s14 = smov 8  }
  0x13   :  { %38 = dma.hbm_to_vmem [thread:$0]  %s13148_s1, 18432, %s33_s25, [#allocation7], %s8396_s13, %s8396_s13, %s8397_s14  }
  0x14   :  { %s8322_s19 = scalar_lea.hbm %s13147_s0, 8192 }
  0x15   :  { %p8323_p8 = scmp.ne.s32.totalorder %s13147_s0, %s8322_s19  ;;  %p8326_p9 = scmp.lt.u32.totalorder %s8322_s19, %s13147_s0 }
  0x17   :  { %p8328_p10 = pnand %p8326_p9, %p8323_p8 }
  0x19   :  { %8331 = shalt.err (!%p8328_p10)
}
  0x1a   :  { %s8332_s24 = scalar_lea.vmem %s8442_s27, 8192  ;;  %p8337_p12 = scmp.lt.s32.totalorder %s8442_s27, %s8442_s27 }
  0x1b   :  { %p8333_p11 = scmp.ne.s32.totalorder %s8442_s27, %s8332_s24  ;;  %p8338_p13 = scmp.lt.s32.totalorder %s8332_s24, %s8332_s24 }
  0x1d   :  { %p8339_p0 = por %p8338_p13, %p8337_p12 }
  0x1f   :  { %p8340_p1 = pnand %p8339_p0, %p8333_p11 }
  0x21   :  { %8343 = shalt.err (!%p8340_p1)
}
  0x22   :  { %26 = dma.hbm_to_vmem [thread:$0]  %s13147_s0, 8192, %s8442_s27, [#allocation4], %s8396_s13, %s8396_s13, %s8397_s14  }
  0x23   :  { %s8398_s26 = smov [#allocation8]   ;;  %s8344_s8 = scalar_lea.hbm %s13151_s4, 18432 }
  0x24   :  { %s48_s28 = sshll.u32 %s8398_s26, 4  ;;  %p8345_p2 = scmp.ne.s32.totalorder %s13151_s4, %s8344_s8  ;;  %s49_s28 = int_to_ptr.vmem [resolvable:$true] %s48_s28 }
  0x25   :  { %p8348_p3 = scmp.lt.u32.totalorder %s8344_s8, %s13151_s4 }
  0x27   :  { %p8350_p4 = pnand %p8348_p3, %p8345_p2 }
  0x29   :  { %8353 = shalt.err (!%p8350_p4)
}
  0x2a   :  { %s8354_s15 = scalar_lea.vmem %s49_s28, 18432  ;;  %p8359_p6 = scmp.lt.s32.totalorder %s49_s28, %s49_s28 }
  0x2b   :  { %p8355_p5 = scmp.ne.s32.totalorder %s49_s28, %s8354_s15  ;;  %p8360_p7 = scmp.lt.s32.totalorder %s8354_s15, %s8354_s15 }
  0x2d   :  { %p8361_p8 = por %p8360_p7, %p8359_p6 }
  0x2f   :  { %p8362_p9 = pnand %p8361_p8, %p8355_p5 }
  0x31   :  { %8365 = shalt.err (!%p8362_p9)
}
  0x32   :  { %54 = dma.hbm_to_vmem [thread:$0]  %s13151_s4, 18432, %s49_s28, [#allocation7], %s8396_s13, %s8396_s13, %s8397_s14  }
  0x33   :  { %8388 = dma.done.wait [#allocation4], 8192  }
  0x34   :  { %8389 = vsyncadd [#allocation4], 4294959104 }
  0x35   :  { %8390 = dma.done.wait [#allocation7], 36864  }
  0x36   :  { %8391 = vsyncadd [#allocation7], 4294930432  ;;  %v13157_v0 = vmov 0.0|0.0   ;;  %v13155_v1 = vmov 0.0   ;;  %v882_v2 = vld [vmem:[#allocation6] sm:$0xff]  ;;  %v883_v3 = vld [vmem:[#allocation6 + $0x8] sm:$0xff] }
  0x37   :  { %7052 = vmatprep.subr.bf16.mxu0 %v13157_v0  ;;  %132 = vst [vmem:[#allocation2] sm:$0xff] %v13155_v1  ;;  %133 = vst [vmem:[#allocation2 + $0x8] sm:$0xff] %v13155_v1  ;;  %v884_v4 = vld [vmem:[#allocation6 + $0x10] sm:$0xff]  ;;  %v7053_v5 = vpack.c.bf16 %v883_v3, %v882_v2  ;;  %v885_v6 = vld [vmem:[#allocation6 + $0x18] sm:$0xff] }
  0x38   :  { %134 = vst [vmem:[#allocation2 + $0x10] sm:$0x3] %v13155_v1  ;;  %135 = vst [vmem:[#allocation2 + $0x18] sm:$0xff] %v13155_v1  ;;  %v7056_v7 = vpack.c.bf16 %v885_v6, %v884_v4  ;;  %v886_v8 = vld [vmem:[#allocation6 + $0x20] sm:$0xff]  ;;  %v887_v9 = vld [vmem:[#allocation6 + $0x28] sm:$0xff] }
  0x39   :  { %136 = vst [vmem:[#allocation2 + $0x20] sm:$0xff] %v13155_v1  ;;  %137 = vst [vmem:[#allocation2 + $0x28] sm:$0x3] %v13155_v1  ;;  %7054 = vmatpush1.bf16.msra.mxu0 %v7053_v5  ;;  %v7059_v10 = vpack.c.bf16 %v887_v9, %v886_v8  ;;  %v888_v11 = vld [vmem:[#allocation6 + $0x30] sm:$0xff]  ;;  %v889_v12 = vld [vmem:[#allocation6 + $0x38] sm:$0xff] }
  0x3a   :  { %138 = vst [vmem:[#allocation2 + $0x30] sm:$0xff] %v13155_v1  ;;  %139 = vst [vmem:[#allocation2 + $0x38] sm:$0xff] %v13155_v1  ;;  %7055 = vmatprep.subr.bf16.mxu0 %v13157_v0  ;;  %v7062_v14 = vpack.c.bf16 %v889_v12, %v888_v11  ;;  %v890_v15 = vld [vmem:[#allocation6 + $0x40] sm:$0xff]  ;;  %v891_v16 = vld [vmem:[#allocation6 + $0x48] sm:$0xff] }
  0x3b   :  { %140 = vst [vmem:[#allocation2 + $0x40] sm:$0x3] %v13155_v1  ;;  %141 = vst [vmem:[#allocation2 + $0x48] sm:$0xff] %v13155_v1  ;;  %v8606_v17 = vld [vmem:[#allocation3] sm:$0xff]  ;;  %v8608_v18 = vld [vmem:[#allocation3 + $0x8] sm:$0xff]  ;;  %v7065_v24 = vpack.c.bf16 %v891_v16, %v890_v15 }
  0x3c   :  { %142 = vst [vmem:[#allocation2 + $0x50] sm:$0xff] %v13155_v1  ;;  %143 = vst [vmem:[#allocation2 + $0x58] sm:$0x3] %v13155_v1  ;;  %v8610_v19 = vld [vmem:[#allocation3 + $0x10] sm:$0xff]  ;;  %v8615_v20 = vld [vmem:[#allocation3 + $0x18] sm:$0xff] }
  0x3d   :  { %144 = vst [vmem:[#allocation2 + $0x60] sm:$0xff] %v13155_v1  ;;  %145 = vst [vmem:[#allocation2 + $0x68] sm:$0xff] %v13155_v1  ;;  %7057 = vmatpush1.bf16.msra.mxu0 %v7056_v7  ;;  %v8618_v21 = vld [vmem:[#allocation3 + $0x20] sm:$0xff]  ;;  %v8620_v22 = vld [vmem:[#allocation3 + $0x28] sm:$0xff] }
  0x3e   :  { %146 = vst [vmem:[#allocation2 + $0x70] sm:$0x3] %v13155_v1  ;;  %147 = vst [vmem:[#allocation2 + $0x78] sm:$0xff] %v13155_v1  ;;  %7058 = vmatprep.subr.bf16.mxu0 %v13157_v0  ;;  %v369_v13 = vld [vmem:[#allocation2 + $0x1] sm:$0xff]  ;;  %v8622_v23 = vld [vmem:[#allocation3 + $0x30] sm:$0xff] }
  0x3f   :  { %148 = vst [vmem:[#allocation2 + $0x80] sm:$0xff] %v13155_v1  ;;  %149 = vst [vmem:[#allocation2 + $0x88] sm:$0x3] %v13155_v1  ;;  %1090 = vmatprep.mubr.f32.mxu0 %v369_v13  ;;  %v892_v25 = vld [vmem:[#allocation6 + $0x50] sm:$0xff]  ;;  %v893_v26 = vld [vmem:[#allocation6 + $0x58] sm:$0xff] }
  0x40   :  { %150 = vst [vmem:[#allocation2 + $0x90] sm:$0xff] %v13155_v1  ;;  %151 = vst [vmem:[#allocation2 + $0x98] sm:$0xff] %v13155_v1  ;;  %v8627_v27 = vld [vmem:[#allocation3 + $0x38] sm:$0xff]  ;;  %v8631_v28 = vld [vmem:[#allocation3 + $0x40] sm:$0xff]  ;;  %v7068_v35 = vpack.c.bf16 %v893_v26, %v892_v25 }
  0x41   :  { %152 = vst [vmem:[#allocation2 + $0xa0] sm:$0x3] %v13155_v1  ;;  %153 = vst [vmem:[#allocation2 + $0xa8] sm:$0xff] %v13155_v1  ;;  %7060 = vmatpush1.bf16.msra.mxu0 %v7059_v10  ;;  %v8633_v29 = vld [vmem:[#allocation3 + $0x48] sm:$0xff]  ;;  %v8635_v30 = vld [vmem:[#allocation3 + $0x50] sm:$0xff] }
  0x42   :  { %154 = vst [vmem:[#allocation2 + $0xb0] sm:$0xff] %v13155_v1  ;;  %155 = vst [vmem:[#allocation2 + $0xb8] sm:$0x3] %v13155_v1  ;;  %7061 = vmatprep.subr.bf16.mxu0 %v13157_v0  ;;  %v8640_v31 = vld [vmem:[#allocation3 + $0x58] sm:$0xff]  ;;  %v8643_v32 = vld [vmem:[#allocation3 + $0x60] sm:$0xff] }
  0x43   :  { %156 = vst [vmem:[#allocation2 + $0xc0] sm:$0xff] %v13155_v1  ;;  %157 = vst [vmem:[#allocation2 + $0xc8] sm:$0xff] %v13155_v1  ;;  %v8645_v33 = vld [vmem:[#allocation3 + $0x68] sm:$0xff]  ;;  %v8647_v34 = vld [vmem:[#allocation3 + $0x70] sm:$0xff] }
  0x44   :  { %158 = vst [vmem:[#allocation2 + $0xd0] sm:$0x3] %v13155_v1  ;;  %159 = vst [vmem:[#allocation2 + $0xd8] sm:$0xff] %v13155_v1  ;;  %v8652_v36 = vld [vmem:[#allocation3 + $0x78] sm:$0xff]  ;;  %v894_v37 = vld [vmem:[#allocation6 + $0x60] sm:$0xff] }
  0x45   :  { %160 = vst [vmem:[#allocation2 + $0xe0] sm:$0xff] %v13155_v1  ;;  %161 = vst [vmem:[#allocation2 + $0xe8] sm:$0x3] %v13155_v1  ;;  %7063 = vmatpush1.bf16.msra.mxu0 %v7062_v14  ;;  %v895_v38 = vld [vmem:[#allocation6 + $0x68] sm:$0xff]  ;;  %v8656_v39 = vld [vmem:[#allocation3 + $0x80] sm:$0xff] }
  0x46   :  { %162 = vst [vmem:[#allocation2 + $0xf0] sm:$0xff] %v13155_v1  ;;  %163 = vst [vmem:[#allocation2 + $0xf8] sm:$0xff] %v13155_v1  ;;  %7064 = vmatprep.subr.bf16.mxu0 %v13157_v0  ;;  %v8658_v40 = vld [vmem:[#allocation3 + $0x88] sm:$0xff]  ;;  %v7071_v41 = vpack.c.bf16 %v895_v38, %v894_v37  ;;  %v8662_v42 = vld [vmem:[#allocation3 + $0x90] sm:$0xff] }
  0x47   :  { %164 = vst [vmem:[#allocation2 + $0x100] sm:$0x3] %v13155_v1  ;;  %165 = vst [vmem:[#allocation2 + $0x108] sm:$0xff] %v13155_v1  ;;  %v896_v43 = vld [vmem:[#allocation6 + $0x70] sm:$0xff]  ;;  %v897_v44 = vld [vmem:[#allocation6 + $0x78] sm:$0xff] }
  0x48   :  { %166 = vst [vmem:[#allocation2 + $0x110] sm:$0xff] %v13155_v1  ;;  %167 = vst [vmem:[#allocation2 + $0x118] sm:$0x3] %v13155_v1  ;;  %v8666_v45 = vld [vmem:[#allocation3 + $0x98] sm:$0xff]  ;;  %v7074_v46 = vpack.c.bf16 %v897_v44, %v896_v43  ;;  %v8669_v47 = vld [vmem:[#allocation3 + $0xa0] sm:$0xff] }
  0x49   :  { %168 = vst [vmem:[#allocation2 + $0x120] sm:$0xff] %v13155_v1  ;;  %169 = vst [vmem:[#allocation2 + $0x128] sm:$0xff] %v13155_v1  ;;  %7066 = vmatpush1.bf16.msra.mxu0 %v7065_v24  ;;  %v8671_v48 = vld [vmem:[#allocation3 + $0xa8] sm:$0xff]  ;;  %v898_v49 = vld [vmem:[#allocation6 + $0x80] sm:$0xff] }
  0x4a   :  { %170 = vst [vmem:[#allocation2 + $0x130] sm:$0x3] %v13155_v1  ;;  %171 = vst [vmem:[#allocation2 + $0x138] sm:$0xff] %v13155_v1  ;;  %7067 = vmatprep.subr.bf16.mxu0 %v13157_v0  ;;  %v899_v50 = vld [vmem:[#allocation6 + $0x88] sm:$0xff]  ;;  %v8676_v51 = vld [vmem:[#allocation3 + $0xb0] sm:$0xff] }
  0x4b   :  { %172 = vst [vmem:[#allocation2 + $0x140] sm:$0xff] %v13155_v1  ;;  %173 = vst [vmem:[#allocation2 + $0x148] sm:$0x3] %v13155_v1  ;;  %v8679_v52 = vld [vmem:[#allocation3 + $0xb8] sm:$0xff]  ;;  %v7077_v53 = vpack.c.bf16 %v899_v50, %v898_v49  ;;  %v900_v54 = vld [vmem:[#allocation6 + $0x90] sm:$0xff] }
  0x4c   :  { %174 = vst [vmem:[#allocation2 + $0x150] sm:$0xff] %v13155_v1  ;;  %175 = vst [vmem:[#allocation2 + $0x158] sm:$0xff] %v13155_v1  ;;  %v901_v55 = vld [vmem:[#allocation6 + $0x98] sm:$0xff]  ;;  %v8683_v56 = vld [vmem:[#allocation3 + $0xc0] sm:$0xff] }
  0x4d   :  { %176 = vst [vmem:[#allocation2 + $0x160] sm:$0x3] %v13155_v1  ;;  %177 = vst [vmem:[#allocation2 + $0x168] sm:$0xff] %v13155_v1  ;;  %7069 = vmatpush1.bf16.msra.mxu0 %v7068_v35  ;;  %v7080_v57 = vpack.c.bf16 %v901_v55, %v900_v54  ;;  %v902_v58 = vld [vmem:[#allocation6 + $0xa0] sm:$0xff]  ;;  %v903_v59 = vld [vmem:[#allocation6 + $0xa8] sm:$0xff] }
  0x4e   :  { %178 = vst [vmem:[#allocation2 + $0x170] sm:$0xff] %v13155_v1  ;;  %179 = vst [vmem:[#allocation2 + $0x178] sm:$0x3] %v13155_v1  ;;  %7070 = vmatprep.subr.bf16.mxu0 %v13157_v0  ;;  %v8687_v60 = vld [vmem:[#allocation3 + $0xc8] sm:$0xff]  ;;  %v7083_v61 = vpack.c.bf16 %v903_v59, %v902_v58  ;;  %v904_v62 = vld [vmem:[#allocation6 + $0xb0] sm:$0xff] }
  0x4f   :  { %180 = vst [vmem:[#allocation2 + $0x180] sm:$0xff] %v13155_v1  ;;  %181 = vst [vmem:[#allocation2 + $0x188] sm:$0xff] %v13155_v1  ;;  %v905_v63 = vld [vmem:[#allocation6 + $0xb8] sm:$0xff]  ;;  %v8691_v2 = vld [vmem:[#allocation3 + $0xd0] sm:$0xff] }
  0x50   :  { %182 = vst [vmem:[#allocation2 + $0x190] sm:$0x3] %v13155_v1  ;;  %183 = vst [vmem:[#allocation2 + $0x198] sm:$0xff] %v13155_v1  ;;  %v7086_v3 = vpack.c.bf16 %v905_v63, %v904_v62  ;;  %v906_v4 = vld [vmem:[#allocation6 + $0xc0] sm:$0xff]  ;;  %v907_v5 = vld [vmem:[#allocation6 + $0xc8] sm:$0xff] }
  0x51   :  { %184 = vst [vmem:[#allocation2 + $0x1a0] sm:$0xff] %v13155_v1  ;;  %185 = vst [vmem:[#allocation2 + $0x1a8] sm:$0x3] %v13155_v1  ;;  %7072 = vmatpush1.bf16.msra.mxu0 %v7071_v41  ;;  %v8695_v6 = vld [vmem:[#allocation3 + $0xd8] sm:$0xff]  ;;  %v7089_v7 = vpack.c.bf16 %v907_v5, %v906_v4  ;;  %v908_v8 = vld [vmem:[#allocation6 + $0xd0] sm:$0xff] }
  0x52   :  { %186 = vst [vmem:[#allocation2 + $0x1b0] sm:$0xff] %v13155_v1  ;;  %187 = vst [vmem:[#allocation2 + $0x1b8] sm:$0xff] %v13155_v1  ;;  %7073 = vmatprep.subr.bf16.mxu0 %v13157_v0  ;;  %v909_v9 = vld [vmem:[#allocation6 + $0xd8] sm:$0xff]  ;;  %v8699_v10 = vld [vmem:[#allocation3 + $0xe0] sm:$0xff] }
  0x53   :  { %188 = vst [vmem:[#allocation2 + $0x1c0] sm:$0x3] %v13155_v1  ;;  %189 = vst [vmem:[#allocation2 + $0x1c8] sm:$0xff] %v13155_v1  ;;  %v7092_v11 = vpack.c.bf16 %v909_v9, %v908_v8  ;;  %v910_v12 = vld [vmem:[#allocation6 + $0xe0] sm:$0xff]  ;;  %v911_v13 = vld [vmem:[#allocation6 + $0xe8] sm:$0xff] }
  0x54   :  { %190 = vst [vmem:[#allocation2 + $0x1d0] sm:$0xff] %v13155_v1  ;;  %191 = vst [vmem:[#allocation2 + $0x1d8] sm:$0x3] %v13155_v1  ;;  %v8703_v14 = vld [vmem:[#allocation3 + $0xe8] sm:$0xff]  ;;  %v7095_v15 = vpack.c.bf16 %v911_v13, %v910_v12  ;;  %v912_v16 = vld [vmem:[#allocation6 + $0xf0] sm:$0xff] }
  0x55   :  { %192 = vst [vmem:[#allocation2 + $0x1e0] sm:$0xff] %v13155_v1  ;;  %193 = vst [vmem:[#allocation2 + $0x1e8] sm:$0xff] %v13155_v1  ;;  %7075 = vmatpush1.bf16.msra.mxu0 %v7074_v46  ;;  %v913_v24 = vld [vmem:[#allocation6 + $0xf8] sm:$0xff]  ;;  %v914_v26 = vld [vmem:[#allocation6 + $0x100] sm:$0xff] }
  0x56   :  { %194 = vst [vmem:[#allocation2 + $0x1f0] sm:$0x3] %v13155_v1  ;;  %195 = vst [vmem:[#allocation2 + $0x1f8] sm:$0xff] %v13155_v1  ;;  %7076 = vmatprep.subr.bf16.mxu0 %v13157_v0  ;;  %v7098_v25 = vpack.c.bf16 %v913_v24, %v912_v16  ;;  %v915_v35 = vld [vmem:[#allocation6 + $0x108] sm:$0xff]  ;;  %v916_v41 = vld [vmem:[#allocation6 + $0x110] sm:$0xff] }
  0x57   :  { %196 = vst [vmem:[#allocation2 + $0x200] sm:$0xff] %v13155_v1  ;;  %197 = vst [vmem:[#allocation2 + $0x208] sm:$0x3] %v13155_v1  ;;  %v7101_v37 = vpack.c.bf16 %v915_v35, %v914_v26  ;;  %v370_v38 = vld [vmem:[#allocation2 + $0x9] sm:$0xff]  ;;  %v917_v43 = vld [vmem:[#allocation6 + $0x118] sm:$0xff] }
  0x58   :  { %198 = vst [vmem:[#allocation2 + $0x210] sm:$0xff] %v13155_v1  ;;  %199 = vst [vmem:[#allocation2 + $0x218] sm:$0xff] %v13155_v1  ;;  %v8709_v44 = vld [vmem:[#allocation3 + $0x100] sm:$0xff]  ;;  %v7104_v46 = vpack.c.bf16 %v917_v43, %v916_v41  ;;  %v919_v50 = vld [vmem:[#allocation6 + $0x128] sm:$0xff] }
  0x59   :  { %200 = vst [vmem:[#allocation2 + $0x220] sm:$0x3] %v13155_v1  ;;  %201 = vst [vmem:[#allocation2 + $0x228] sm:$0xff] %v13155_v1  ;;  %7078 = vmatpush1.bf16.msra.mxu0 %v7077_v53  ;;  %v918_v49 = vld [vmem:[#allocation6 + $0x120] sm:$0xff]  ;;  %v8714_v53 = vld [vmem:[#allocation3 + $0x108] sm:$0xff] }
  0x5a   :  { %202 = vst [vmem:[#allocation2 + $0x230] sm:$0xff] %v13155_v1  ;;  %203 = vst [vmem:[#allocation2 + $0x238] sm:$0x3] %v13155_v1  ;;  %7079 = vmatprep.subr.bf16.mxu0 %v13157_v0  ;;  %v7107_v55 = vpack.c.bf16 %v919_v50, %v918_v49  ;;  %v921_v58 = vld [vmem:[#allocation6 + $0x138] sm:$0xff]  ;;  %v8722_v59 = vld [vmem:[#allocation3 + $0x110] sm:$0xff] }
  0x5b   :  { %204 = vst [vmem:[#allocation2 + $0x240] sm:$0xff] %v13155_v1  ;;  %205 = vst [vmem:[#allocation2 + $0x248] sm:$0xff] %v13155_v1  ;;  %v922_v63 = vld [vmem:[#allocation6 + $0x140] sm:$0xff]  ;;  %v8730_v4 = vld [vmem:[#allocation3 + $0x118] sm:$0xff] }
  0x5c   :  { %206 = vst [vmem:[#allocation2 + $0x250] sm:$0x3] %v13155_v1  ;;  %207 = vst [vmem:[#allocation2 + $0x258] sm:$0xff] %v13155_v1  ;;  %v924_v8 = vld [vmem:[#allocation6 + $0x150] sm:$0xff]  ;;  %v925_v9 = vld [vmem:[#allocation6 + $0x158] sm:$0xff] }
  0x5d   :  { %208 = vst [vmem:[#allocation2 + $0x260] sm:$0xff] %v13155_v1  ;;  %209 = vst [vmem:[#allocation2 + $0x268] sm:$0x3] %v13155_v1  ;;  %7081 = vmatpush1.bf16.msra.mxu0 %v7080_v57  ;;  %v920_v57 = vld [vmem:[#allocation6 + $0x130] sm:$0xff]  ;;  %v7116_v13 = vpack.c.bf16 %v925_v9, %v924_v8  ;;  %v927_v16 = vld [vmem:[#allocation6 + $0x168] sm:$0xff] }
  0x5e   :  { %210 = vst [vmem:[#allocation2 + $0x270] sm:$0xff] %v13155_v1  ;;  %211 = vst [vmem:[#allocation2 + $0x278] sm:$0xff] %v13155_v1  ;;  %7082 = vmatprep.subr.bf16.mxu0 %v13157_v0  ;;  %v7110_v62 = vpack.c.bf16 %v921_v58, %v920_v57  ;;  %v8746_v24 = vld [vmem:[#allocation3 + $0x128] sm:$0xff]  ;;  %v928_v35 = vld [vmem:[#allocation6 + $0x170] sm:$0xff] }
  0x5f   :  { %212 = vst [vmem:[#allocation2 + $0x280] sm:$0x3] %v13155_v1  ;;  %213 = vst [vmem:[#allocation2 + $0x288] sm:$0xff] %v13155_v1  ;;  %v931_v49 = vld [vmem:[#allocation6 + $0x188] sm:$0xff]  ;;  %v8762_v50 = vld [vmem:[#allocation3 + $0x138] sm:$0xff] }
  0x60   :  { %214 = vst [vmem:[#allocation2 + $0x290] sm:$0xff] %v13155_v1  ;;  %215 = vst [vmem:[#allocation2 + $0x298] sm:$0x3] %v13155_v1  ;;  %v932_v58 = vld [vmem:[#allocation6 + $0x190] sm:$0xff]  ;;  %v934_v8 = vld [vmem:[#allocation6 + $0x1a0] sm:$0xff] }
  0x61   :  { %216 = vst [vmem:[#allocation2 + $0x2a0] sm:$0xff] %v13155_v1  ;;  %217 = vst [vmem:[#allocation2 + $0x2a8] sm:$0xff] %v13155_v1  ;;  %7084 = vmatpush1.bf16.msra.mxu0 %v7083_v61  ;;  %v935_v9 = vld [vmem:[#allocation6 + $0x1a8] sm:$0xff] }
  0x62   :  { %218 = vst [vmem:[#allocation2 + $0x2b0] sm:$0x3] %v13155_v1  ;;  %219 = vst [vmem:[#allocation2 + $0x2b8] sm:$0xff] %v13155_v1  ;;  %7085 = vmatprep.subr.bf16.mxu0 %v13157_v0 }
  0x63   :  { %220 = vst [vmem:[#allocation2 + $0x2c0] sm:$0xff] %v13155_v1  ;;  %221 = vst [vmem:[#allocation2 + $0x2c8] sm:$0x3] %v13155_v1 }
  0x64   :  { %222 = vst [vmem:[#allocation2 + $0x2d0] sm:$0xff] %v13155_v1  ;;  %223 = vst [vmem:[#allocation2 + $0x2d8] sm:$0xff] %v13155_v1 }
  0x65   :  { %224 = vst [vmem:[#allocation2 + $0x2e0] sm:$0x3] %v13155_v1  ;;  %225 = vst [vmem:[#allocation2 + $0x2e8] sm:$0xff] %v13155_v1  ;;  %7087 = vmatpush1.bf16.msra.mxu0 %v7086_v3  ;;  %v923_v3 = vld [vmem:[#allocation6 + $0x148] sm:$0xff] }
  0x66   :  { %226 = vst [vmem:[#allocation2 + $0x2f0] sm:$0xff] %v13155_v1  ;;  %227 = vst [vmem:[#allocation2 + $0x2f8] sm:$0x3] %v13155_v1  ;;  %7088 = vmatprep.subr.bf16.mxu0 %v13157_v0 }
  0x67   :  { %228 = vst [vmem:[#allocation2 + $0x300] sm:$0xff] %v13155_v1  ;;  %229 = vst [vmem:[#allocation2 + $0x308] sm:$0xff] %v13155_v1 }
  0x68   :  { %230 = vst [vmem:[#allocation2 + $0x310] sm:$0x3] %v13155_v1  ;;  %231 = vst [vmem:[#allocation2 + $0x318] sm:$0xff] %v13155_v1 }
  0x69   :  { %232 = vst [vmem:[#allocation2 + $0x320] sm:$0xff] %v13155_v1  ;;  %233 = vst [vmem:[#allocation2 + $0x328] sm:$0x3] %v13155_v1  ;;  %7090 = vmatpush1.bf16.msra.mxu0 %v7089_v7  ;;  %v7113_v7 = vpack.c.bf16 %v923_v3, %v922_v63  ;;  %v8770_v63 = vld [vmem:[#allocation3 + $0x140] sm:$0xff] }
  0x6a   :  { %234 = vst [vmem:[#allocation2 + $0x330] sm:$0xff] %v13155_v1  ;;  %235 = vst [vmem:[#allocation2 + $0x338] sm:$0xff] %v13155_v1  ;;  %7091 = vmatprep.subr.bf16.mxu0 %v13157_v0 }
  0x6b   :  { %236 = vst [vmem:[#allocation2 + $0x340] sm:$0x3] %v13155_v1  ;;  %237 = vst [vmem:[#allocation2 + $0x348] sm:$0xff] %v13155_v1 }
  0x6c   :  { %238 = vst [vmem:[#allocation2 + $0x350] sm:$0xff] %v13155_v1  ;;  %239 = vst [vmem:[#allocation2 + $0x358] sm:$0x3] %v13155_v1 }
  0x6d   :  { %13371 = vst [vmem:[#allocation13_spill] sm:$0xff] %v8606_v17  ;;  %13372 = vst [vmem:[#allocation14_spill] sm:$0xff] %v8608_v18  ;;  %7093 = vmatpush1.bf16.msra.mxu0 %v7092_v11  ;;  %v8738_v11 = vld [vmem:[#allocation3 + $0x120] sm:$0xff] }
  0x6e   :  { %13373 = vst [vmem:[#allocation15_spill] sm:$0xff] %v8610_v19  ;;  %241 = vst [vmem:[#allocation2 + $0x19] sm:$0xff] %v8606_v17  ;;  %7094 = vmatprep.subr.bf16.mxu0 %v13157_v0 }
  0x6f   :  { %242 = vst [vmem:[#allocation2 + $0x21] sm:$0xff] %v8608_v18  ;;  %243 = vst [vmem:[#allocation2 + $0x31] sm:$0xff] %v8610_v19 }
  0x70   :  { %13374 = vst [vmem:[#allocation16_spill] sm:$0xff] %v8615_v20  ;;  %244 = vst [vmem:[#allocation2 + $0x39] sm:$0xff] %v8615_v20 }
  0x71   :  { %13375 = vst [vmem:[#allocation17_spill] sm:$0xff] %v8618_v21  ;;  %13376 = vst [vmem:[#allocation18_spill] sm:$0xff] %v8620_v22  ;;  %7096 = vmatpush1.bf16.msra.mxu0 %v7095_v15  ;;  %v926_v15 = vld [vmem:[#allocation6 + $0x160] sm:$0xff] }
  0x72   :  { %13377 = vst [vmem:[#allocation19_spill] sm:$0xff] %v8622_v23  ;;  %245 = vst [vmem:[#allocation2 + $0x49] sm:$0xff] %v8618_v21  ;;  %7097 = vmatprep.subr.bf16.mxu0 %v13157_v0  ;;  %v7119_v26 = vpack.c.bf16 %v927_v16, %v926_v15  ;;  %v7131_v16 = vpack.c.bf16 %v935_v9, %v934_v8  ;;  %v8816_v9 = vld [vmem:[#allocation3 + $0x170] sm:$0xff] }
  0x73   :  { %246 = vst [vmem:[#allocation2 + $0x51] sm:$0xff] %v8620_v22  ;;  %247 = vst [vmem:[#allocation2 + $0x61] sm:$0xff] %v8622_v23 }
  0x74   :  { %13378 = vst [vmem:[#allocation20_spill] sm:$0xff] %v8627_v27  ;;  %248 = vst [vmem:[#allocation2 + $0x69] sm:$0xff] %v8627_v27 }
  0x75   :  { %13379 = vst [vmem:[#allocation21_spill] sm:$0xff] %v8631_v28  ;;  %13380 = vst [vmem:[#allocation22_spill] sm:$0xff] %v8633_v29  ;;  %7099 = vmatpush1.bf16.msra.mxu0 %v7098_v25  ;;  %v8719_v54 = vld [vmem:[#allocation2 + $0x18] sm:$0xff] }
  0x76   :  { %13381 = vst [vmem:[#allocation23_spill] sm:$0xff] %v8635_v30  ;;  %249 = vst [vmem:[#allocation2 + $0x79] sm:$0xff] %v8631_v28  ;;  %7100 = vmatprep.subr.bf16.mxu0 %v13157_v0  ;;  %v8727_v61 = vld [vmem:[#allocation2 + $0x20] sm:$0xff]  ;;  %v8735_v5 = vld [vmem:[#allocation2 + $0x30] sm:$0xff] }
  0x77   :  { %250 = vst [vmem:[#allocation2 + $0x81] sm:$0xff] %v8633_v29  ;;  %251 = vst [vmem:[#allocation2 + $0x91] sm:$0xff] %v8635_v30  ;;  %v8743_v12 = vld [vmem:[#allocation2 + $0x38] sm:$0xff] }
  0x78   :  { %13382 = vst [vmem:[#allocation24_spill] sm:$0xff] %v8640_v31  ;;  %252 = vst [vmem:[#allocation2 + $0x99] sm:$0xff] %v8640_v31  ;;  %1091 = vmatmul.mubr.f32.vlgmr.msra.gmra.mrb[0].mxu0 %v13155_v1 }
  0x79   :  { %13383 = vst [vmem:[#allocation25_spill] sm:$0xff] %v8643_v32  ;;  %13384 = vst [vmem:[#allocation26_spill] sm:$0xff] %v8645_v33  ;;  %7102 = vmatpush1.bf16.msra.mxu0 %v7101_v37  ;;  %1095 = vmatprep.mubr.f32.mxu0 %v370_v38  ;;  %v8751_v25 = vld [vmem:[#allocation2 + $0x48] sm:$0xff]  ;;  %v929_v37 = vld [vmem:[#allocation6 + $0x178] sm:$0xff] }
  0x7a   :  { %13385 = vst [vmem:[#allocation27_spill] sm:$0xff] %v8647_v34  ;;  %253 = vst [vmem:[#allocation2 + $0xa9] sm:$0xff] %v8643_v32  ;;  %7103 = vmatprep.subr.bf16.mxu0 %v13157_v0  ;;  %v8754_v38 = vld [vmem:[#allocation3 + $0x130] sm:$0xff]  ;;  %v7122_v43 = vpack.c.bf16 %v929_v37, %v928_v35  ;;  %v8794_v37 = vld [vmem:[#allocation3 + $0x158] sm:$0xff] }
  0x7b   :  { %254 = vst [vmem:[#allocation2 + $0xb1] sm:$0xff] %v8645_v33  ;;  %255 = vst [vmem:[#allocation2 + $0xc1] sm:$0xff] %v8647_v34  ;;  %v8759_v41 = vld [vmem:[#allocation2 + $0x50] sm:$0xff]  ;;  %v8775_v3 = vld [vmem:[#allocation2 + $0x68] sm:$0xff] }
  0x7c   :  { %13386 = vst [vmem:[#allocation28_spill] sm:$0xff] %v8652_v36  ;;  %256 = vst [vmem:[#allocation2 + $0xc9] sm:$0xff] %v8652_v36  ;;  %1096 = vmatmul.mubr.f32.gmra.mrb[2].mxu0 %v13155_v1  ;;  %v938_v1 = vld [vmem:[#allocation6 + $0x1c0] sm:$0xff] }
  0x7d   :  { %13387 = vst [vmem:[#allocation29_spill] sm:$0xff] %v8656_v39  ;;  %13388 = vst [vmem:[#allocation30_spill] sm:$0xff] %v8658_v40  ;;  %1100 = vmatprep.mubr.f32.mxu0 %v8606_v17  ;;  %7105 = vmatpush1.bf16.msra.mxu0 %v7104_v46  ;;  %v930_v46 = vld [vmem:[#allocation6 + $0x180] sm:$0xff]  ;;  %v8783_v15 = vld [vmem:[#allocation2 + $0x78] sm:$0xff] }
  0x7e   :  { %257 = vst [vmem:[#allocation2 + $0xd9] sm:$0xff] %v8656_v39  ;;  %258 = vst [vmem:[#allocation2 + $0xe1] sm:$0xff] %v8658_v40  ;;  %7106 = vmatprep.subr.bf16.mxu0 %v13157_v0  ;;  %v7125_v57 = vpack.c.bf16 %v931_v49, %v930_v46  ;;  %v8791_v35 = vld [vmem:[#allocation2 + $0x80] sm:$0xff]  ;;  %v936_v49 = vld [vmem:[#allocation6 + $0x1b0] sm:$0xff] }
  0x7f   :  { %13389 = vst [vmem:[#allocation31_spill] sm:$0xff] %v8662_v42  ;;  %259 = vst [vmem:[#allocation2 + $0xf1] sm:$0xff] %v8662_v42  ;;  %v8801_v46 = vld [vmem:[#allocation3 + $0x160] sm:$0xff]  ;;  %v945_v17 = vld [vmem:[#allocation6 + $0x1f8] sm:$0xff] }
  0x80   :  { %13390 = vst [vmem:[#allocation32_spill] sm:$0xff] %v8666_v45  ;;  %260 = vst [vmem:[#allocation2 + $0xf9] sm:$0xff] %v8666_v45  ;;  %1101 = vmatmul.mubr.f32.gmra.mrb[4].mxu0 %v8719_v54 }
  0x81   :  { %13391 = vst [vmem:[#allocation33_spill] sm:$0xff] %v8669_v47  ;;  %13392 = vst [vmem:[#allocation34_spill] sm:$0xff] %v8671_v48  ;;  %1105 = vmatprep.mubr.f32.mxu0 %v8608_v18  ;;  %7108 = vmatpush1.bf16.msra.mxu0 %v7107_v55  ;;  %v8767_v55 = vld [vmem:[#allocation2 + $0x60] sm:$0xff]  ;;  %v8814_v8 = vld [vmem:[#allocation2 + $0xa8] sm:$0xff] }
  0x82   :  { %261 = vst [vmem:[#allocation2 + $0x109] sm:$0xff] %v8669_v47  ;;  %262 = vst [vmem:[#allocation2 + $0x111] sm:$0xff] %v8671_v48  ;;  %7109 = vmatprep.subr.bf16.mxu0 %v13157_v0  ;;  %v8903_v18 = vld [vmem:[#allocation3 + $0x1d0] sm:$0xff] }
  0x83   :  { %13393 = vst [vmem:[#allocation35_spill] sm:$0xff] %v8676_v51  ;;  %263 = vst [vmem:[#allocation2 + $0x121] sm:$0xff] %v8676_v51 }
  0x84   :  { %13394 = vst [vmem:[#allocation36_spill] sm:$0xff] %v8679_v52  ;;  %264 = vst [vmem:[#allocation2 + $0x129] sm:$0xff] %v8679_v52  ;;  %1106 = vmatmul.mubr.f32.gmra.mrb[6].mxu0 %v8727_v61 }
  0x85   :  { %13395 = vst [vmem:[#allocation37_spill] sm:$0xff] %v8683_v56  ;;  %265 = vst [vmem:[#allocation2 + $0x139] sm:$0xff] %v8683_v56  ;;  %1110 = vmatprep.mubr.f32.mxu0 %v8610_v19  ;;  %7111 = vmatpush1.bf16.msra.mxu0 %v7110_v62  ;;  %v933_v62 = vld [vmem:[#allocation6 + $0x198] sm:$0xff]  ;;  %v8895_v19 = vld [vmem:[#allocation3 + $0x1c8] sm:$0xff] }
  0x86   :  { %13396 = vst [vmem:[#allocation38_spill] sm:$0xff] %v8687_v60  ;;  %266 = vst [vmem:[#allocation2 + $0x141] sm:$0xff] %v8687_v60  ;;  %7112 = vmatprep.subr.bf16.mxu0 %v13157_v0 }
  0x87   :  { %13397 = vst [vmem:[#allocation39_spill] sm:$0xff] %v8691_v2  ;;  %267 = vst [vmem:[#allocation2 + $0x151] sm:$0xff] %v8691_v2 }
  0x88   :  { %13398 = vst [vmem:[#allocation40_spill] sm:$0xff] %v8695_v6  ;;  %268 = vst [vmem:[#allocation2 + $0x159] sm:$0xff] %v8695_v6  ;;  %1111 = vmatmul.mubr.f32.gmra.mrb[8].mxu0 %v8735_v5 }
  0x89   :  { %13399 = vst [vmem:[#allocation41_spill] sm:$0xff] %v8699_v10  ;;  %269 = vst [vmem:[#allocation2 + $0x169] sm:$0xff] %v8699_v10  ;;  %1115 = vmatprep.mubr.f32.mxu0 %v8615_v20  ;;  %7114 = vmatpush1.bf16.msra.mxu0 %v7113_v7  ;;  %v7128_v7 = vpack.c.bf16 %v933_v62, %v932_v58  ;;  %v8806_v58 = vld [vmem:[#allocation2 + $0x98] sm:$0xff] }
  0x8a   :  { %13400 = vst [vmem:[#allocation42_spill] sm:$0xff] %v8703_v14  ;;  %270 = vst [vmem:[#allocation2 + $0x171] sm:$0xff] %v8703_v14  ;;  %7115 = vmatprep.subr.bf16.mxu0 %v13157_v0 }
  0x8b   :  { %13401 = vst [vmem:[#allocation43_spill] sm:$0xff] %v8709_v44  ;;  %273 = vst [vmem:[#allocation2 + $0x1c9] sm:$0xff] %v8709_v44 }
  0x8c   :  { %13402 = vst [vmem:[#allocation44_spill] sm:$0xff] %v8714_v53  ;;  %274 = vst [vmem:[#allocation2 + $0x1d1] sm:$0xff] %v8714_v53  ;;  %1116 = vmatmul.mubr.f32.gmra.mrb[10].mxu0 %v8743_v12 }
  0x8d   :  { %13403 = vst [vmem:[#allocation45_spill] sm:$0xff] %v8722_v59  ;;  %275 = vst [vmem:[#allocation2 + $0x1e1] sm:$0xff] %v8722_v59  ;;  %1120 = vmatprep.mubr.f32.mxu0 %v8618_v21  ;;  %7117 = vmatpush1.bf16.msra.mxu0 %v7116_v13  ;;  %v8778_v13 = vld [vmem:[#allocation3 + $0x148] sm:$0xff] }
  0x8e   :  { %13404 = vst [vmem:[#allocation46_spill] sm:$0xff] %v8730_v4  ;;  %276 = vst [vmem:[#allocation2 + $0x1e9] sm:$0xff] %v8730_v4  ;;  %7118 = vmatprep.subr.bf16.mxu0 %v13157_v0  ;;  %v943_v21 = vld [vmem:[#allocation6 + $0x1e8] sm:$0xff] }
  0x8f   :  { %13405 = vst [vmem:[#allocation47_spill] sm:$0xff] %v8738_v11  ;;  %277 = vst [vmem:[#allocation2 + $0x1f9] sm:$0xff] %v8738_v11 }
  0x90   :  { %13406 = vst [vmem:[#allocation48_spill] sm:$0xff] %v8746_v24  ;;  %278 = vst [vmem:[#allocation2 + $0x201] sm:$0xff] %v8746_v24  ;;  %1121 = vmatmul.mubr.f32.gmra.mrb[12].mxu0 %v8751_v25 }
  0x91   :  { %13407 = vst [vmem:[#allocation49_spill] sm:$0xff] %v8754_v38  ;;  %279 = vst [vmem:[#allocation2 + $0x211] sm:$0xff] %v8754_v38  ;;  %1125 = vmatprep.mubr.f32.mxu0 %v8620_v22  ;;  %7120 = vmatpush1.bf16.msra.mxu0 %v7119_v26  ;;  %v8786_v26 = vld [vmem:[#allocation3 + $0x150] sm:$0xff] }
  0x92   :  { %7121 = vmatprep.subr.bf16.mxu0 %v13157_v0  ;;  %13408 = vst [vmem:[#allocation50_spill] sm:$0xff] %v8762_v50  ;;  %280 = vst [vmem:[#allocation2 + $0x219] sm:$0xff] %v8762_v50  ;;  %v8874_v22 = vld [vmem:[#allocation3 + $0x1b0] sm:$0xff] }
  0x93   :  { %13409 = vst [vmem:[#allocation51_spill] sm:$0xff] %v8770_v63  ;;  %281 = vst [vmem:[#allocation2 + $0x229] sm:$0xff] %v8770_v63 }
  0x94   :  { %1126 = vmatmul.mubr.f32.gmra.mrb[14].mxu0 %v8759_v41  ;;  %13410 = vst [vmem:[#allocation52_spill] sm:$0xff] %v8778_v13  ;;  %282 = vst [vmem:[#allocation2 + $0x231] sm:$0xff] %v8778_v13 }
  0x95   :  { %1130 = vmatprep.mubr.f32.mxu0 %v8622_v23  ;;  %7123 = vmatpush1.bf16.msra.mxu0 %v7122_v43  ;;  %13411 = vst [vmem:[#allocation53_spill] sm:$0xff] %v8786_v26  ;;  %283 = vst [vmem:[#allocation2 + $0x241] sm:$0xff] %v8786_v26  ;;  %v8799_v43 = vld [vmem:[#allocation2 + $0x90] sm:$0xff]  ;;  %v8866_v23 = vld [vmem:[#allocation3 + $0x1a8] sm:$0xff] }
  0x96   :  { %7124 = vmatprep.subr.bf16.mxu0 %v13157_v0  ;;  %13412 = vst [vmem:[#allocation54_spill] sm:$0xff] %v8794_v37  ;;  %284 = vst [vmem:[#allocation2 + $0x249] sm:$0xff] %v8794_v37 }
  0x97   :  { %13413 = vst [vmem:[#allocation55_spill] sm:$0xff] %v8801_v46  ;;  %285 = vst [vmem:[#allocation2 + $0x259] sm:$0xff] %v8801_v46 }
  0x98   :  { %1131 = vmatmul.mubr.f32.gmra.mrb[16].mxu0 %v8767_v55  ;;  %13415 = vst [vmem:[#allocation57_spill] sm:$0xff] %v8816_v9  ;;  %287 = vst [vmem:[#allocation2 + $0x271] sm:$0xff] %v8816_v9 }
  0x99   :  { %1135 = vmatprep.mubr.f32.mxu0 %v8627_v27  ;;  %7126 = vmatpush1.bf16.msra.mxu0 %v7125_v57  ;;  %v937_v57 = vld [vmem:[#allocation6 + $0x1b8] sm:$0xff]  ;;  %13423 = vst [vmem:[#allocation64_spill] sm:$0xff] %v8866_v23  ;;  %294 = vst [vmem:[#allocation2 + $0x2c1] sm:$0xff] %v8866_v23 }
  0x9a   :  { %7127 = vmatprep.subr.bf16.mxu0 %v13157_v0  ;;  %v7134_v62 = vpack.c.bf16 %v937_v57, %v936_v49  ;;  %v8823_v49 = vld [vmem:[#allocation3 + $0x178] sm:$0xff]  ;;  %v8828_v57 = vld [vmem:[#allocation2 + $0xc0] sm:$0xff]  ;;  %13424 = vst [vmem:[#allocation65_spill] sm:$0xff] %v8874_v22  ;;  %295 = vst [vmem:[#allocation2 + $0x2d1] sm:$0xff] %v8874_v22 }
  0x9b   :  { %13416 = vst [vmem:[#allocation58_spill] sm:$0xff] %v8823_v49  ;;  %288 = vst [vmem:[#allocation2 + $0x279] sm:$0xff] %v8823_v49 }
  0x9c   :  { %1136 = vmatmul.mubr.f32.gmra.mrb[18].mxu0 %v8775_v3  ;;  %13427 = vst [vmem:[#allocation68_spill] sm:$0xff] %v8895_v19  ;;  %298 = vst [vmem:[#allocation2 + $0x2f1] sm:$0xff] %v8895_v19 }
  0x9d   :  { %1140 = vmatprep.mubr.f32.mxu0 %v8631_v28  ;;  %7129 = vmatpush1.bf16.msra.mxu0 %v7128_v7  ;;  %v8808_v7 = vld [vmem:[#allocation3 + $0x168] sm:$0xff]  ;;  %v941_v28 = vld [vmem:[#allocation6 + $0x1d8] sm:$0xff]  ;;  %13429 = vst [vmem:[#allocation70_spill] sm:$0xff] %v8903_v18  ;;  %299 = vst [vmem:[#allocation2 + $0x301] sm:$0xff] %v8903_v18 }
  0x9e   :  { %7130 = vmatprep.subr.bf16.mxu0 %v13157_v0  ;;  %13414 = vst [vmem:[#allocation56_spill] sm:$0xff] %v8808_v7  ;;  %286 = vst [vmem:[#allocation2 + $0x261] sm:$0xff] %v8808_v7 }
  0xa0   :  { %1141 = vmatmul.mubr.f32.gmra.mrb[20].mxu0 %v8783_v15 }
  0xa1   :  { %1145 = vmatprep.mubr.f32.mxu0 %v8633_v29  ;;  %7132 = vmatpush1.bf16.msra.mxu0 %v7131_v16  ;;  %v8821_v16 = vld [vmem:[#allocation2 + $0xb0] sm:$0xff] }
  0xa2   :  { %7133 = vmatprep.subr.bf16.mxu0 %v13157_v0  ;;  %v8845_v29 = vld [vmem:[#allocation3 + $0x190] sm:$0xff] }
  0xa3   :  { %13420 = vst [vmem:[#allocation61_spill] sm:$0xff] %v8845_v29  ;;  %291 = vst [vmem:[#allocation2 + $0x2a1] sm:$0xff] %v8845_v29 }
  0xa4   :  { %1146 = vmatmul.mubr.f32.gmra.mrb[22].mxu0 %v8791_v35 }
  0xa5   :  { %1150 = vmatprep.mubr.f32.mxu0 %v8635_v30  ;;  %7135 = vmatpush1.bf16.msra.mxu0 %v7134_v62  ;;  %v8830_v62 = vld [vmem:[#allocation3 + $0x180] sm:$0xff]  ;;  %v8843_v30 = vld [vmem:[#allocation2 + $0xd8] sm:$0xff] }
  0xa6   :  { %7136 = vmatprep.subr.bf16.mxu0 %v13157_v0  ;;  %13417 = vst [vmem:[#allocation59_spill] sm:$0xff] %v8830_v62  ;;  %v939_v0 = vld [vmem:[#allocation6 + $0x1c8] sm:$0xff]  ;;  %289 = vst [vmem:[#allocation2 + $0x289] sm:$0xff] %v8830_v62 }
  0xa8   :  { %1151 = vmatmul.mubr.f32.gmra.mrb[24].mxu0 %v8799_v43 }
  0xa9   :  { %1155 = vmatprep.mubr.f32.mxu0 %v8640_v31  ;;  %v8837_v31 = vld [vmem:[#allocation3 + $0x188] sm:$0xff] }
  0xaa   :  { %13418 = vst [vmem:[#allocation60_spill] sm:$0xff] %v8837_v31  ;;  %290 = vst [vmem:[#allocation2 + $0x291] sm:$0xff] %v8837_v31 }
  0xac   :  { %1156 = vmatmul.mubr.f32.gmra.mrb[26].mxu0 %v8806_v58 }
  0xad   :  { %1160 = vmatprep.mubr.f32.mxu0 %v8643_v32  ;;  %v7137_v32 = vpack.c.bf16 %v939_v0, %v938_v1  ;;  %v8850_v0 = vld [vmem:[#allocation2 + $0xe0] sm:$0xff]  ;;  %v8852_v1 = vld [vmem:[#allocation3 + $0x198] sm:$0xff] }
  0xae   :  { %13421 = vst [vmem:[#allocation62_spill] sm:$0xff] %v8852_v1  ;;  %292 = vst [vmem:[#allocation2 + $0x2a9] sm:$0xff] %v8852_v1 }
  0xaf   :  { %7138 = vmatpush1.bf16.msra.mxu0 %v7137_v32  ;;  %v8857_v32 = vld [vmem:[#allocation2 + $0xf0] sm:$0xff] }
  0xb0   :  { %1161 = vmatmul.mubr.f32.gmra.mrb[28].mxu0 %v8814_v8 }
  0xb1   :  { %1165 = vmatprep.mubr.f32.mxu0 %v8645_v33  ;;  %v8835_v33 = vld [vmem:[#allocation2 + $0xc8] sm:$0xff] }
  0xb4   :  { %1166 = vmatmul.mubr.f32.gmra.mrb[30].mxu0 %v8821_v16 }
  0xb5   :  { %1170 = vmatprep.mubr.f32.mxu0 %v8647_v34  ;;  %v13419_v34 = vmov 0.0|0.0  }
  0xb6   :  { %7139 = vmatprep.subr.bf16.mxu0 %v13419_v34 }
  0xb8   :  { %1171 = vmatmul.mubr.f32.gmra.mrb[32].mxu0 %v8828_v57 }
  0xb9   :  { %1175 = vmatprep.mubr.f32.mxu0 %v8652_v36  ;;  %v940_v36 = vld [vmem:[#allocation6 + $0x1d0] sm:$0xff] }
  0xba   :  { %v7140_v27 = vpack.c.bf16 %v941_v28, %v940_v36  ;;  %v8881_v28 = vld [vmem:[#allocation3 + $0x1b8] sm:$0xff]  ;;  %v8886_v36 = vld [vmem:[#allocation2 + $0x120] sm:$0xff] }
  0xbb   :  { %13425 = vst [vmem:[#allocation66_spill] sm:$0xff] %v8881_v28  ;;  %296 = vst [vmem:[#allocation2 + $0x2d9] sm:$0xff] %v8881_v28 }
  0xbc   :  { %1176 = vmatmul.mubr.f32.gmra.mrb[34].mxu0 %v8835_v33 }
  0xbd   :  { %1180 = vmatprep.mubr.f32.mxu0 %v8656_v39  ;;  %v8859_v39 = vld [vmem:[#allocation3 + $0x1a0] sm:$0xff]  ;;  %7141 = vmatpush1.bf16.msra.mxu0 %v7140_v27  ;;  %v8879_v27 = vld [vmem:[#allocation2 + $0x110] sm:$0xff] }
  0xbe   :  { %13422 = vst [vmem:[#allocation63_spill] sm:$0xff] %v8859_v39  ;;  %293 = vst [vmem:[#allocation2 + $0x2b9] sm:$0xff] %v8859_v39  ;;  %7142 = vmatprep.subr.bf16.mxu0 %v13419_v34 }
  0xc0   :  { %1181 = vmatmul.mubr.f32.gmra.mrb[36].mxu0 %v8843_v30 }
  0xc1   :  { %1185 = vmatprep.mubr.f32.mxu0 %v8658_v40  ;;  %v8864_v40 = vld [vmem:[#allocation2 + $0xf8] sm:$0xff] }
  0xc4   :  { %1186 = vmatmul.mubr.f32.gmra.mrb[38].mxu0 %v8850_v0 }
  0xc5   :  { %1190 = vmatprep.mubr.f32.mxu0 %v8662_v42  ;;  %v8872_v42 = vld [vmem:[#allocation2 + $0x108] sm:$0xff] }
  0xc8   :  { %1191 = vmatmul.mubr.f32.gmra.mrb[40].mxu0 %v8857_v32 }
  0xc9   :  { %1195 = vmatprep.mubr.f32.mxu0 %v8666_v45  ;;  %v942_v45 = vld [vmem:[#allocation6 + $0x1e0] sm:$0xff] }
  0xca   :  { %v7143_v20 = vpack.c.bf16 %v943_v21, %v942_v45  ;;  %v8910_v21 = vld [vmem:[#allocation3 + $0x1d8] sm:$0xff]  ;;  %v8915_v45 = vld [vmem:[#allocation2 + $0x150] sm:$0xff] }
  0xcb   :  { %13431 = vst [vmem:[#allocation72_spill] sm:$0xff] %v8910_v21  ;;  %300 = vst [vmem:[#allocation2 + $0x309] sm:$0xff] %v8910_v21 }
  0xcc   :  { %1196 = vmatmul.mubr.f32.gmra.mrb[42].mxu0 %v8864_v40 }
  0xcd   :  { %1200 = vmatprep.mubr.f32.mxu0 %v8669_v47  ;;  %v8888_v47 = vld [vmem:[#allocation3 + $0x1c0] sm:$0xff]  ;;  %7144 = vmatpush1.bf16.msra.mxu0 %v7143_v20 }
  0xce   :  { %13426 = vst [vmem:[#allocation67_spill] sm:$0xff] %v8888_v47  ;;  %297 = vst [vmem:[#allocation2 + $0x2e9] sm:$0xff] %v8888_v47  ;;  %7145 = vmatprep.subr.bf16.mxu0 %v13419_v34  ;;  %v8908_v20 = vld [vmem:[#allocation2 + $0x140] sm:$0xff] }
  0xcf   :  { %13430 = vst [vmem:[#allocation71_spill] sm:$0xff] %v8908_v20 }
  0xd0   :  { %1201 = vmatmul.mubr.f32.gmra.mrb[44].mxu0 %v8872_v42 }
  0xd1   :  { %1205 = vmatprep.mubr.f32.mxu0 %v8671_v48  ;;  %v8893_v48 = vld [vmem:[#allocation2 + $0x128] sm:$0xff] }
  0xd4   :  { %1206 = vmatmul.mubr.f32.gmra.mrb[46].mxu0 %v8879_v27 }
  0xd5   :  { %1210 = vmatprep.mubr.f32.mxu0 %v8676_v51  ;;  %v8901_v51 = vld [vmem:[#allocation2 + $0x138] sm:$0xff] }
  0xd6   :  { %13428 = vst [vmem:[#allocation69_spill] sm:$0xff] %v8901_v51 }
  0xd8   :  { %1211 = vmatmul.mubr.f32.gmra.mrb[48].mxu0 %v8886_v36 }
  0xd9   :  { %1215 = vmatprep.mubr.f32.mxu0 %v8679_v52  ;;  %v944_v52 = vld [vmem:[#allocation6 + $0x1f0] sm:$0xff] }
  0xdc   :  { %1216 = vmatmul.mubr.f32.gmra.mrb[50].mxu0 %v8893_v48 }
  0xdd   :  { %1220 = vmatprep.mubr.f32.mxu0 %v8683_v56  ;;  %v8917_v56 = vld [vmem:[#allocation3 + $0x1e0] sm:$0xff] }
  0xde   :  { %13432 = vst [vmem:[#allocation73_spill] sm:$0xff] %v8917_v56  ;;  %301 = vst [vmem:[#allocation2 + $0x319] sm:$0xff] %v8917_v56 }
  0xe0   :  { %1221 = vmatmul.mubr.f32.gmra.mrb[52].mxu0 %v8901_v51  ;;  %v7146_v51 = vpack.c.bf16 %v945_v17, %v944_v52  ;;  %v401_v17 = vld [vmem:[#allocation2 + $0x1b1] sm:$0xff]  ;;  %v13434_v52 = vmov 0.0  }
  0xe1   :  { %1225 = vmatprep.mubr.f32.mxu0 %v8687_v60  ;;  %v8922_v60 = vld [vmem:[#allocation2 + $0x158] sm:$0xff] }
  0xe2   :  { %7147 = vmatpush1.bf16.msra.mxu0 %v7146_v51  ;;  %v402_v51 = vld [vmem:[#allocation2 + $0x1b9] sm:$0xff] }
  0xe3   :  { %7148 = vmatprep.subr.bf16.mxu0 %v13419_v34 }
  0xe4   :  { %1226 = vmatmul.mubr.f32.gmra.mrb[54].mxu0 %v8908_v20  ;;  %v8924_v20 = vld [vmem:[#allocation3 + $0x1e8] sm:$0xff] }
  0xe5   :  { %1230 = vmatprep.mubr.f32.mxu0 %v8691_v2  ;;  %13433 = vst [vmem:[#allocation74_spill] sm:$0xff] %v8924_v20  ;;  %302 = vst [vmem:[#allocation2 + $0x321] sm:$0xff] %v8924_v20  ;;  %v8930_v2 = vld [vmem:[#allocation2 + $0x168] sm:$0xff] }
  0xe8   :  { %1231 = vmatmul.mubr.f32.gmra.mrb[56].mxu0 %v8915_v45 }
  0xe9   :  { %1235 = vmatprep.mubr.f32.mxu0 %v8695_v6  ;;  %v8934_v6 = vld [vmem:[#allocation2 + $0x170] sm:$0xff] }
  0xec   :  { %1236 = vmatmul.mubr.f32.gmra.mrb[58].mxu0 %v8922_v60 }
  0xed   :  { %1240 = vmatprep.mubr.f32.mxu0 %v8699_v10  ;;  %v8940_v10 = vld [vmem:[#allocation2 + $0x1c8] sm:$0xff] }
  0xf0   :  { %1241 = vmatmul.mubr.f32.gmra.mrb[60].mxu0 %v8930_v2 }
  0xf1   :  { %1245 = vmatprep.mubr.f32.mxu0 %v8703_v14  ;;  %v8944_v14 = vld [vmem:[#allocation2 + $0x1d0] sm:$0xff] }
  0xf4   :  { %1246 = vmatmul.mubr.f32.gmra.mrb[62].mxu0 %v8934_v6 }
  0xf5   :  { %1250 = vmatprep.mubr.f32.mxu0 %v401_v17  ;;  %v8948_v17 = vld [vmem:[#allocation2 + $0x1e0] sm:$0xff] }
  0xf8   :  { %1251 = vmatmul.mubr.f32.gmra.mrb[64].mxu0 %v13434_v52 }
  0xf9   :  { %1255 = vmatprep.mubr.f32.mxu0 %v402_v51  ;;  %v8952_v51 = vld [vmem:[#allocation2 + $0x1e8] sm:$0xff] }
  0xfc   :  { %1256 = vmatmul.mubr.f32.gmra.mrb[66].mxu0 %v13434_v52  ;;  %v8956_v52 = vld [vmem:[#allocation2 + $0x1f8] sm:$0xff] }
  0xfd   :  { %1260 = vmatprep.mubr.f32.mxu0 %v8709_v44  ;;  %v9053_v44 = vld [vmem:[#allocation3 + $0xf8] sm:$0xff] }
  0xfe   :  { %13440 = vst [vmem:[#allocation80_spill] sm:$0xff] %v9053_v44  ;;  %272 = vst [vmem:[#allocation2 + $0x189] sm:$0xff] %v9053_v44 }
 0x100   :  { %1261 = vmatmul.mubr.f32.gmra.mrb[68].mxu0 %v8940_v10 }
 0x101   :  { %1265 = vmatprep.mubr.f32.mxu0 %v8714_v53  ;;  %v8960_v53 = vld [vmem:[#allocation2 + $0x200] sm:$0xff] }
 0x104   :  { %1266 = vmatmul.mubr.f32.gmra.mrb[70].mxu0 %v8944_v14 }
 0x105   :  { %1270 = vmatprep.mubr.f32.mxu0 %v8722_v59  ;;  %v8964_v59 = vld [vmem:[#allocation2 + $0x210] sm:$0xff] }
 0x108   :  { %1271 = vmatmul.mubr.f32.gmra.mrb[72].mxu0 %v8948_v17 }
 0x109   :  { %1275 = vmatprep.mubr.f32.mxu0 %v8730_v4  ;;  %v8968_v4 = vld [vmem:[#allocation2 + $0x218] sm:$0xff] }
 0x10c   :  { %1276 = vmatmul.mubr.f32.gmra.mrb[74].mxu0 %v8952_v51 }
 0x10d   :  { %1280 = vmatprep.mubr.f32.mxu0 %v8738_v11  ;;  %v8972_v11 = vld [vmem:[#allocation2 + $0x228] sm:$0xff] }
 0x110   :  { %1281 = vmatmul.mubr.f32.gmra.mrb[76].mxu0 %v8956_v52 }
 0x111   :  { %1285 = vmatprep.mubr.f32.mxu0 %v8746_v24  ;;  %v8976_v24 = vld [vmem:[#allocation2 + $0x230] sm:$0xff] }
 0x114   :  { %1286 = vmatmul.mubr.f32.gmra.mrb[78].mxu0 %v8960_v53 }
 0x115   :  { %1290 = vmatprep.mubr.f32.mxu0 %v8754_v38  ;;  %v8980_v38 = vld [vmem:[#allocation2 + $0x240] sm:$0xff] }
 0x118   :  { %1291 = vmatmul.mubr.f32.gmra.mrb[80].mxu0 %v8964_v59 }
 0x119   :  { %1295 = vmatprep.mubr.f32.mxu0 %v8762_v50  ;;  %v8984_v50 = vld [vmem:[#allocation2 + $0x248] sm:$0xff] }
 0x11c   :  { %1296 = vmatmul.mubr.f32.gmra.mrb[82].mxu0 %v8968_v4 }
 0x11d   :  { %1300 = vmatprep.mubr.f32.mxu0 %v8770_v63  ;;  %v8988_v63 = vld [vmem:[#allocation2 + $0x258] sm:$0xff] }
 0x120   :  { %1301 = vmatmul.mubr.f32.gmra.mrb[84].mxu0 %v8972_v11 }
 0x121   :  { %1305 = vmatprep.mubr.f32.mxu0 %v8778_v13  ;;  %v8992_v13 = vld [vmem:[#allocation2 + $0x260] sm:$0xff] }
 0x124   :  { %1306 = vmatmul.mubr.f32.gmra.mrb[86].mxu0 %v8976_v24 }
 0x125   :  { %1310 = vmatprep.mubr.f32.mxu0 %v8786_v26  ;;  %v8996_v26 = vld [vmem:[#allocation2 + $0x270] sm:$0xff] }
 0x128   :  { %1311 = vmatmul.mubr.f32.gmra.mrb[88].mxu0 %v8980_v38 }
 0x129   :  { %1315 = vmatprep.mubr.f32.mxu0 %v8794_v37  ;;  %v9000_v37 = vld [vmem:[#allocation2 + $0x278] sm:$0xff] }
 0x12c   :  { %1316 = vmatmul.mubr.f32.gmra.mrb[90].mxu0 %v8984_v50 }
 0x12d   :  { %1320 = vmatprep.mubr.f32.mxu0 %v8801_v46  ;;  %v9004_v46 = vld [vmem:[#allocation2 + $0x288] sm:$0xff] }
 0x130   :  { %1321 = vmatmul.mubr.f32.gmra.mrb[92].mxu0 %v8988_v63 }
 0x131   :  { %1325 = vmatprep.mubr.f32.mxu0 %v8808_v7  ;;  %v9008_v7 = vld [vmem:[#allocation2 + $0x290] sm:$0xff] }
 0x134   :  { %1326 = vmatmul.mubr.f32.gmra.mrb[94].mxu0 %v8992_v13 }
 0x135   :  { %1330 = vmatprep.mubr.f32.mxu0 %v8816_v9  ;;  %v9012_v9 = vld [vmem:[#allocation2 + $0x2a0] sm:$0xff] }
 0x138   :  { %1331 = vmatmul.mubr.f32.gmra.mrb[96].mxu0 %v8996_v26 }
 0x139   :  { %1335 = vmatprep.mubr.f32.mxu0 %v8823_v49  ;;  %v9016_v49 = vld [vmem:[#allocation2 + $0x2a8] sm:$0xff] }
 0x13c   :  { %1336 = vmatmul.mubr.f32.gmra.mrb[98].mxu0 %v9000_v37 }
 0x13d   :  { %1340 = vmatprep.mubr.f32.mxu0 %v8830_v62  ;;  %v9020_v62 = vld [vmem:[#allocation2 + $0x2b8] sm:$0xff] }
 0x140   :  { %1341 = vmatmul.mubr.f32.gmra.mrb[100].mxu0 %v9004_v46 }
 0x141   :  { %1345 = vmatprep.mubr.f32.mxu0 %v8837_v31  ;;  %v9024_v31 = vld [vmem:[#allocation2 + $0x2c0] sm:$0xff] }
 0x144   :  { %1346 = vmatmul.mubr.f32.gmra.mrb[102].mxu0 %v9008_v7 }
 0x145   :  { %1350 = vmatprep.mubr.f32.mxu0 %v8845_v29  ;;  %v9028_v29 = vld [vmem:[#allocation2 + $0x2d0] sm:$0xff] }
 0x148   :  { %1351 = vmatmul.mubr.f32.gmra.mrb[104].mxu0 %v9012_v9 }
 0x149   :  { %1355 = vmatprep.mubr.f32.mxu0 %v8852_v1  ;;  %v9032_v1 = vld [vmem:[#allocation2 + $0x2d8] sm:$0xff] }
 0x14c   :  { %1356 = vmatmul.mubr.f32.gmra.mrb[106].mxu0 %v9016_v49 }
 0x14d   :  { %1360 = vmatprep.mubr.f32.mxu0 %v8859_v39  ;;  %v9036_v39 = vld [vmem:[#allocation2 + $0x2e8] sm:$0xff] }
 0x14e   :  { %13435 = vst [vmem:[#allocation75_spill] sm:$0xff] %v9036_v39 }
 0x150   :  { %1361 = vmatmul.mubr.f32.gmra.mrb[108].mxu0 %v9020_v62 }
 0x151   :  { %1365 = vmatprep.mubr.f32.mxu0 %v8866_v23  ;;  %v9040_v23 = vld [vmem:[#allocation2 + $0x2f0] sm:$0xff] }
 0x152   :  { %13436 = vst [vmem:[#allocation76_spill] sm:$0xff] %v9040_v23 }
 0x154   :  { %1366 = vmatmul.mubr.f32.gmra.mrb[110].mxu0 %v9024_v31 }
 0x155   :  { %1370 = vmatprep.mubr.f32.mxu0 %v8874_v22  ;;  %v9044_v22 = vld [vmem:[#allocation2 + $0x300] sm:$0xff] }
 0x156   :  { %13437 = vst [vmem:[#allocation77_spill] sm:$0xff] %v9044_v22 }
 0x158   :  { %1371 = vmatmul.mubr.f32.gmra.mrb[112].mxu0 %v9028_v29 }
 0x159   :  { %1375 = vmatprep.mubr.f32.mxu0 %v8881_v28  ;;  %v9046_v28 = vld [vmem:[#allocation3 + $0xf0] sm:$0xff] }
 0x15a   :  { %13438 = vst [vmem:[#allocation78_spill] sm:$0xff] %v9046_v28  ;;  %271 = vst [vmem:[#allocation2 + $0x181] sm:$0xff] %v9046_v28  ;;  %v946_v28 = vld [vmem:[#allocation6 + $0x200] sm:$0xff] }
 0x15c   :  { %1376 = vmatmul.mubr.f32.gmra.mrb[114].mxu0 %v9032_v1 }
 0x15d   :  { %1380 = vmatprep.mubr.f32.mxu0 %v8888_v47  ;;  %v9051_v47 = vld [vmem:[#allocation2 + $0x308] sm:$0xff] }
 0x15e   :  { %13439 = vst [vmem:[#allocation79_spill] sm:$0xff] %v9051_v47 }
 0x160   :  { %1381 = vmatmul.mubr.f32.gmra.mrb[116].mxu0 %v9036_v39  ;;  %v951_v39 = vld [vmem:[#allocation6 + $0x228] sm:$0xff] }
 0x161   :  { %1385 = vmatprep.mubr.f32.mxu0 %v8895_v19  ;;  %v9062_v19 = vld [vmem:[#allocation2 + $0x320] sm:$0xff] }
 0x162   :  { %13442 = vst [vmem:[#allocation82_spill] sm:$0xff] %v9062_v19 }
 0x164   :  { %1386 = vmatmul.mubr.f32.gmra.mrb[118].mxu0 %v9040_v23  ;;  %v948_v23 = vld [vmem:[#allocation6 + $0x210] sm:$0xff] }
 0x165   :  { %1390 = vmatprep.mubr.f32.mxu0 %v8903_v18  ;;  %v9058_v18 = vld [vmem:[#allocation2 + $0x318] sm:$0xff] }
 0x166   :  { %13441 = vst [vmem:[#allocation81_spill] sm:$0xff] %v9058_v18 }
 0x168   :  { %1391 = vmatmul.mubr.f32.gmra.mrb[120].mxu0 %v9044_v22  ;;  %v433_v22 = vld [vmem:[#allocation2 + $0x2] sm:$0xff] }
 0x169   :  { %1395 = vmatprep.mubr.f32.mxu0 %v8910_v21  ;;  %v947_v21 = vld [vmem:[#allocation6 + $0x208] sm:$0xff] }
 0x16a   :  { %v7149_v44 = vpack.c.bf16 %v947_v21, %v946_v28  ;;  %v952_v28 = vld [vmem:[#allocation6 + $0x230] sm:$0xff]  ;;  %v958_v21 = vld [vmem:[#allocation6 + $0x260] sm:$0xff] }
 0x16c   :  { %1396 = vmatmul.mubr.f32.gmra.mrb[122].mxu0 %v9051_v47  ;;  %v949_v47 = vld [vmem:[#allocation6 + $0x218] sm:$0xff] }
 0x16d   :  { %1400 = vmatprep.mubr.f32.mxu0 %v8917_v56  ;;  %v434_v56 = vld [vmem:[#allocation2 + $0xa] sm:$0xff] }
 0x170   :  { %1401 = vmatmul.mubr.f32.gmra.mrb[124].mxu0 %v9058_v18  ;;  %v7152_v18 = vpack.c.bf16 %v949_v47, %v948_v23  ;;  %v9074_v23 = vld [vmem:[#allocation2 + $0x22] sm:$0xff] }
 0x171   :  { %1405 = vmatprep.mubr.f32.mxu0 %v8924_v20  ;;  %v950_v20 = vld [vmem:[#allocation6 + $0x220] sm:$0xff] }
 0x174   :  { %1406 = vmatmul.mubr.f32.gmra.mrb[126].mxu0 %v9062_v19  ;;  %v9069_v19 = vld [vmem:[#allocation2 + $0x1a] sm:$0xff] }
 0x175   :  { %1475 = vmatprep.mubr.f32.mxu0 %v8719_v54  ;;  %v7155_v54 = vpack.c.bf16 %v951_v39, %v950_v20 }
 0x178   :  { %1476 = vmatmul.mubr.f32.vlgmr.msra.gmra.mrb[0].mxu0 %v433_v22  ;;  %v953_v22 = vld [vmem:[#allocation6 + $0x238] sm:$0xff] }
 0x179   :  { %7150 = vmatpush1.bf16.msra.mxu0 %v7149_v44  ;;  %1480 = vmatprep.mubr.f32.mxu0 %v8727_v61  ;;  %v7158_v47 = vpack.c.bf16 %v953_v22, %v952_v28  ;;  %v955_v44 = vld [vmem:[#allocation6 + $0x248] sm:$0xff]  ;;  %v956_v61 = vld [vmem:[#allocation6 + $0x250] sm:$0xff] }
 0x17a   :  { %7151 = vmatprep.subr.bf16.mxu0 %v13419_v34  ;;  %v960_v22 = vld [vmem:[#allocation6 + $0x270] sm:$0xff] }
 0x17c   :  { %1481 = vmatmul.mubr.f32.gmra.mrb[2].mxu0 %v434_v56  ;;  %v954_v56 = vld [vmem:[#allocation6 + $0x240] sm:$0xff] }
 0x17d   :  { %1485 = vmatprep.mubr.f32.mxu0 %v8735_v5  ;;  %7153 = vmatpush1.bf16.msra.mxu0 %v7152_v18  ;;  %v9079_v18 = vld [vmem:[#allocation2 + $0x32] sm:$0xff]  ;;  %v7161_v39 = vpack.c.bf16 %v955_v44, %v954_v56  ;;  %v962_v44 = vld [vmem:[#allocation6 + $0x280] sm:$0xff] }
 0x17e   :  { %7154 = vmatprep.subr.bf16.mxu0 %v13419_v34  ;;  %v957_v5 = vld [vmem:[#allocation6 + $0x258] sm:$0xff] }
 0x17f   :  { %v7164_v20 = vpack.c.bf16 %v957_v5, %v956_v61  ;;  %v964_v5 = vld [vmem:[#allocation6 + $0x290] sm:$0xff] }
 0x180   :  { %1486 = vmatmul.mubr.f32.gmra.mrb[4].mxu0 %v9069_v19 }
 0x181   :  { %1490 = vmatprep.mubr.f32.mxu0 %v8743_v12  ;;  %7156 = vmatpush1.bf16.msra.mxu0 %v7155_v54  ;;  %v9084_v12 = vld [vmem:[#allocation2 + $0x3a] sm:$0xff]  ;;  %v9089_v54 = vld [vmem:[#allocation2 + $0x4a] sm:$0xff] }
 0x182   :  { %7157 = vmatprep.subr.bf16.mxu0 %v13419_v34 }
 0x184   :  { %1491 = vmatmul.mubr.f32.gmra.mrb[6].mxu0 %v9074_v23 }
 0x185   :  { %1495 = vmatprep.mubr.f32.mxu0 %v8751_v25  ;;  %7159 = vmatpush1.bf16.msra.mxu0 %v7158_v47  ;;  %v959_v25 = vld [vmem:[#allocation6 + $0x268] sm:$0xff]  ;;  %v9094_v47 = vld [vmem:[#allocation2 + $0x52] sm:$0xff] }
 0x186   :  { %7160 = vmatprep.subr.bf16.mxu0 %v13419_v34  ;;  %v7167_v28 = vpack.c.bf16 %v959_v25, %v958_v21  ;;  %v966_v25 = vld [vmem:[#allocation6 + $0x2a0] sm:$0xff] }
 0x188   :  { %1496 = vmatmul.mubr.f32.gmra.mrb[8].mxu0 %v9079_v18 }
 0x189   :  { %1500 = vmatprep.mubr.f32.mxu0 %v8759_v41  ;;  %7162 = vmatpush1.bf16.msra.mxu0 %v7161_v39  ;;  %v961_v41 = vld [vmem:[#allocation6 + $0x278] sm:$0xff]  ;;  %v9099_v39 = vld [vmem:[#allocation2 + $0x62] sm:$0xff] }
 0x18a   :  { %7163 = vmatprep.subr.bf16.mxu0 %v13419_v34  ;;  %v7170_v56 = vpack.c.bf16 %v961_v41, %v960_v22  ;;  %v968_v41 = vld [vmem:[#allocation6 + $0x2b0] sm:$0xff] }
 0x18c   :  { %1501 = vmatmul.mubr.f32.gmra.mrb[10].mxu0 %v9084_v12 }
 0x18d   :  { %1505 = vmatprep.mubr.f32.mxu0 %v8767_v55  ;;  %7165 = vmatpush1.bf16.msra.mxu0 %v7164_v20  ;;  %v963_v55 = vld [vmem:[#allocation6 + $0x288] sm:$0xff] }
 0x18e   :  { %7166 = vmatprep.subr.bf16.mxu0 %v13419_v34  ;;  %v7173_v61 = vpack.c.bf16 %v963_v55, %v962_v44  ;;  %v9104_v20 = vld [vmem:[#allocation2 + $0x6a] sm:$0xff]  ;;  %v9123_v44 = vld [vmem:[#allocation2 + $0x9a] sm:$0xff] }
 0x18f   :  { %v9128_v55 = vld [vmem:[#allocation2 + $0xaa] sm:$0xff] }
 0x190   :  { %1506 = vmatmul.mubr.f32.gmra.mrb[12].mxu0 %v9089_v54 }
 0x191   :  { %1510 = vmatprep.mubr.f32.mxu0 %v8775_v3  ;;  %7168 = vmatpush1.bf16.msra.mxu0 %v7167_v28  ;;  %v965_v3 = vld [vmem:[#allocation6 + $0x298] sm:$0xff] }
 0x192   :  { %7169 = vmatprep.subr.bf16.mxu0 %v13419_v34  ;;  %v7176_v21 = vpack.c.bf16 %v965_v3, %v964_v5  ;;  %v9109_v28 = vld [vmem:[#allocation2 + $0x7a] sm:$0xff]  ;;  %v971_v5 = vld [vmem:[#allocation6 + $0x2c8] sm:$0xff] }
 0x194   :  { %1511 = vmatmul.mubr.f32.gmra.mrb[14].mxu0 %v9094_v47 }
 0x195   :  { %1515 = vmatprep.mubr.f32.mxu0 %v8783_v15  ;;  %7171 = vmatpush1.bf16.msra.mxu0 %v7170_v56  ;;  %v967_v15 = vld [vmem:[#allocation6 + $0x2a8] sm:$0xff]  ;;  %v969_v56 = vld [vmem:[#allocation6 + $0x2b8] sm:$0xff] }
 0x196   :  { %7172 = vmatprep.subr.bf16.mxu0 %v13419_v34  ;;  %v7179_v22 = vpack.c.bf16 %v967_v15, %v966_v25  ;;  %v973_v25 = vld [vmem:[#allocation6 + $0x2d8] sm:$0xff] }
 0x198   :  { %1516 = vmatmul.mubr.f32.gmra.mrb[16].mxu0 %v9099_v39 }
 0x199   :  { %1520 = vmatprep.mubr.f32.mxu0 %v8791_v35  ;;  %7174 = vmatpush1.bf16.msra.mxu0 %v7173_v61  ;;  %v9114_v35 = vld [vmem:[#allocation2 + $0x82] sm:$0xff] }
 0x19a   :  { %7175 = vmatprep.subr.bf16.mxu0 %v13419_v34  ;;  %v970_v61 = vld [vmem:[#allocation6 + $0x2c0] sm:$0xff] }
 0x19b   :  { %v7185_v3 = vpack.c.bf16 %v971_v5, %v970_v61  ;;  %v9183_v5 = vld [vmem:[#allocation2 + $0x142] sm:$0xff] }
 0x19c   :  { %1521 = vmatmul.mubr.f32.gmra.mrb[18].mxu0 %v9104_v20 }
 0x19d   :  { %1525 = vmatprep.mubr.f32.mxu0 %v8799_v43  ;;  %7177 = vmatpush1.bf16.msra.mxu0 %v7176_v21  ;;  %v9119_v43 = vld [vmem:[#allocation2 + $0x92] sm:$0xff] }
 0x19e   :  { %7178 = vmatprep.subr.bf16.mxu0 %v13419_v34  ;;  %v972_v21 = vld [vmem:[#allocation6 + $0x2d0] sm:$0xff] }
 0x19f   :  { %v7188_v15 = vpack.c.bf16 %v973_v25, %v972_v21  ;;  %v9189_v21 = vld [vmem:[#allocation3 + $0x1f0] sm:$0xff]  ;;  %v977_v25 = vld [vmem:[#allocation6 + $0x2f8] sm:$0xff] }
 0x1a0   :  { %1526 = vmatmul.mubr.f32.gmra.mrb[20].mxu0 %v9109_v28  ;;  %303 = vst [vmem:[#allocation2 + $0x331] sm:$0xff] %v9189_v21 }
 0x1a1   :  { %1530 = vmatprep.mubr.f32.mxu0 %v8806_v58  ;;  %7180 = vmatpush1.bf16.msra.mxu0 %v7179_v22  ;;  %v7182_v58 = vpack.c.bf16 %v969_v56, %v968_v41  ;;  %v9170_v22 = vld [vmem:[#allocation2 + $0x122] sm:$0xff] }
 0x1a2   :  { %7181 = vmatprep.subr.bf16.mxu0 %v13419_v34  ;;  %v974_v41 = vld [vmem:[#allocation6 + $0x2e0] sm:$0xff]  ;;  %v975_v56 = vld [vmem:[#allocation6 + $0x2e8] sm:$0xff] }
 0x1a3   :  { %v7191_v61 = vpack.c.bf16 %v975_v56, %v974_v41  ;;  %v9196_v41 = vld [vmem:[#allocation3 + $0x1f8] sm:$0xff]  ;;  %v528_v56 = vld [vmem:[#allocation2 + $0x188] sm:$0xff] }
 0x1a4   :  { %1531 = vmatmul.mubr.f32.gmra.mrb[22].mxu0 %v9114_v35  ;;  %304 = vst [vmem:[#allocation2 + $0x339] sm:$0xff] %v9196_v41 }
 0x1a5   :  { %1535 = vmatprep.mubr.f32.mxu0 %v8814_v8  ;;  %7183 = vmatpush1.bf16.msra.mxu0 %v7182_v58  ;;  %v9132_v8 = vld [vmem:[#allocation2 + $0xb2] sm:$0xff] }
 0x1a6   :  { %7184 = vmatprep.subr.bf16.mxu0 %v13419_v34  ;;  %v13444_v58 = vld [vmem:[#allocation71_spill] sm:$0xff] }
 0x1a7   :  { %13446 = vst [vmem:[#allocation71_spill] sm:$0xff] %v9196_v41  ;;  %v9318_v41 = vld [vmem:[#allocation2 + $0x30a] sm:$0xff] }
 0x1a8   :  { %1536 = vmatmul.mubr.f32.gmra.mrb[24].mxu0 %v9119_v43 }
 0x1a9   :  { %1540 = vmatprep.mubr.f32.mxu0 %v8821_v16  ;;  %v9136_v16 = vld [vmem:[#allocation2 + $0xc2] sm:$0xff]  ;;  %7186 = vmatpush1.bf16.msra.mxu0 %v7185_v3  ;;  %v9187_v3 = vld [vmem:[#allocation2 + $0x152] sm:$0xff] }
 0x1aa   :  { %7187 = vmatprep.subr.bf16.mxu0 %v13419_v34 }
 0x1ac   :  { %1541 = vmatmul.mubr.f32.gmra.mrb[26].mxu0 %v9123_v44 }
 0x1ad   :  { %1545 = vmatprep.mubr.f32.mxu0 %v8828_v57  ;;  %v9140_v57 = vld [vmem:[#allocation2 + $0xca] sm:$0xff]  ;;  %7189 = vmatpush1.bf16.msra.mxu0 %v7188_v15  ;;  %v9194_v15 = vld [vmem:[#allocation2 + $0x15a] sm:$0xff] }
 0x1ae   :  { %7190 = vmatprep.subr.bf16.mxu0 %v13419_v34 }
 0x1b0   :  { %1546 = vmatmul.mubr.f32.gmra.mrb[28].mxu0 %v9128_v55 }
 0x1b1   :  { %1550 = vmatprep.mubr.f32.mxu0 %v8835_v33  ;;  %v9145_v33 = vld [vmem:[#allocation2 + $0xda] sm:$0xff]  ;;  %7192 = vmatpush1.bf16.msra.mxu0 %v7191_v61 }
 0x1b2   :  { %7193 = vmatprep.subr.bf16.mxu0 %v13419_v34  ;;  %v466_v61 = vld [vmem:[#allocation2 + $0x1ba] sm:$0xff] }
 0x1b4   :  { %1551 = vmatmul.mubr.f32.gmra.mrb[30].mxu0 %v9132_v8 }
 0x1b5   :  { %1555 = vmatprep.mubr.f32.mxu0 %v8843_v30  ;;  %v9149_v30 = vld [vmem:[#allocation2 + $0xe2] sm:$0xff] }
 0x1b8   :  { %1556 = vmatmul.mubr.f32.gmra.mrb[32].mxu0 %v9136_v16 }
 0x1b9   :  { %1560 = vmatprep.mubr.f32.mxu0 %v8850_v0  ;;  %v9153_v0 = vld [vmem:[#allocation2 + $0xf2] sm:$0xff] }
 0x1bc   :  { %1561 = vmatmul.mubr.f32.gmra.mrb[34].mxu0 %v9140_v57 }
 0x1bd   :  { %1565 = vmatprep.mubr.f32.mxu0 %v8857_v32  ;;  %v9157_v32 = vld [vmem:[#allocation2 + $0xfa] sm:$0xff] }
 0x1c0   :  { %1566 = vmatmul.mubr.f32.gmra.mrb[36].mxu0 %v9145_v33 }
 0x1c1   :  { %1570 = vmatprep.mubr.f32.mxu0 %v8864_v40  ;;  %v9162_v40 = vld [vmem:[#allocation2 + $0x10a] sm:$0xff] }
 0x1c4   :  { %1571 = vmatmul.mubr.f32.gmra.mrb[38].mxu0 %v9149_v30 }
 0x1c5   :  { %1575 = vmatprep.mubr.f32.mxu0 %v8872_v42  ;;  %v9166_v42 = vld [vmem:[#allocation2 + $0x112] sm:$0xff] }
 0x1c8   :  { %1576 = vmatmul.mubr.f32.gmra.mrb[40].mxu0 %v9153_v0 }
 0x1c9   :  { %1580 = vmatprep.mubr.f32.mxu0 %v8879_v27  ;;  %v13443_v27 = vld [vmem:[#allocation69_spill] sm:$0xff] }
 0x1ca   :  { %13445 = vst [vmem:[#allocation69_spill] sm:$0xff] %v9189_v21  ;;  %v9321_v21 = vld [vmem:[#allocation2 + $0x31a] sm:$0xff] }
 0x1cb   :  { %13459 = vst [vmem:[#allocation83_spill] sm:$0xff] %v9321_v21 }
 0x1cc   :  { %1581 = vmatmul.mubr.f32.gmra.mrb[42].mxu0 %v9157_v32 }
 0x1cd   :  { %1585 = vmatprep.mubr.f32.mxu0 %v8886_v36  ;;  %v9174_v36 = vld [vmem:[#allocation2 + $0x12a] sm:$0xff] }
 0x1d0   :  { %1586 = vmatmul.mubr.f32.gmra.mrb[44].mxu0 %v9162_v40 }
 0x1d1   :  { %1590 = vmatprep.mubr.f32.mxu0 %v8893_v48  ;;  %v9179_v48 = vld [vmem:[#allocation2 + $0x13a] sm:$0xff] }
 0x1d4   :  { %1591 = vmatmul.mubr.f32.gmra.mrb[46].mxu0 %v9166_v42 }
 0x1d5   :  { %1595 = vmatprep.mubr.f32.mxu0 %v13443_v27  ;;  %v527_v27 = vld [vmem:[#allocation2 + $0x180] sm:$0xff] }
 0x1d8   :  { %1596 = vmatmul.mubr.f32.gmra.mrb[48].mxu0 %v9170_v22 }
 0x1d9   :  { %1600 = vmatprep.mubr.f32.mxu0 %v13444_v58  ;;  %v465_v58 = vld [vmem:[#allocation2 + $0x1b2] sm:$0xff] }
 0x1dc   :  { %1601 = vmatmul.mubr.f32.gmra.mrb[50].mxu0 %v9174_v36 }
 0x1dd   :  { %1605 = vmatprep.mubr.f32.mxu0 %v8915_v45  ;;  %v976_v45 = vld [vmem:[#allocation6 + $0x2f0] sm:$0xff] }
 0x1e0   :  { %1606 = vmatmul.mubr.f32.gmra.mrb[52].mxu0 %v9179_v48 }
 0x1e1   :  { %1610 = vmatprep.mubr.f32.mxu0 %v8922_v60  ;;  %v7194_v60 = vpack.c.bf16 %v977_v25, %v976_v45  ;;  %v9210_v45 = vld [vmem:[#allocation2 + $0x1ca] sm:$0xff]  ;;  %v9214_v25 = vld [vmem:[#allocation2 + $0x1d2] sm:$0xff] }
 0x1e3   :  { %7195 = vmatpush1.bf16.msra.mxu0 %v7194_v60  ;;  %v9298_v60 = vld [vmem:[#allocation2 + $0x2d2] sm:$0xff] }
 0x1e4   :  { %1611 = vmatmul.mubr.f32.gmra.mrb[54].mxu0 %v9183_v5  ;;  %7196 = vmatprep.subr.bf16.mxu0 %v13419_v34 }
 0x1e5   :  { %1615 = vmatprep.mubr.f32.mxu0 %v8930_v2  ;;  %v9201_v2 = vld [vmem:[#allocation2 + $0x16a] sm:$0xff] }
 0x1e8   :  { %1616 = vmatmul.mubr.f32.gmra.mrb[56].mxu0 %v9187_v3 }
 0x1e9   :  { %1620 = vmatprep.mubr.f32.mxu0 %v8934_v6  ;;  %v9204_v6 = vld [vmem:[#allocation2 + $0x172] sm:$0xff] }
 0x1ec   :  { %1621 = vmatmul.mubr.f32.gmra.mrb[58].mxu0 %v9194_v15 }
 0x1ed   :  { %1625 = vmatprep.mubr.f32.mxu0 %v527_v27  ;;  %v9302_v27 = vld [vmem:[#allocation2 + $0x2da] sm:$0xff] }
 0x1f0   :  { %1626 = vmatmul.mubr.f32.gmra.mrb[60].mxu0 %v9201_v2 }
 0x1f1   :  { %1630 = vmatprep.mubr.f32.mxu0 %v528_v56  ;;  %v9306_v56 = vld [vmem:[#allocation2 + $0x2ea] sm:$0xff] }
 0x1f4   :  { %1631 = vmatmul.mubr.f32.gmra.mrb[62].mxu0 %v9204_v6 }
 0x1f5   :  { %1635 = vmatprep.mubr.f32.mxu0 %v8940_v10  ;;  %v9218_v10 = vld [vmem:[#allocation2 + $0x1e2] sm:$0xff] }
 0x1f8   :  { %1636 = vmatmul.mubr.f32.gmra.mrb[64].mxu0 %v465_v58  ;;  %v9310_v58 = vld [vmem:[#allocation2 + $0x2f2] sm:$0xff] }
 0x1f9   :  { %1640 = vmatprep.mubr.f32.mxu0 %v8944_v14  ;;  %v9222_v14 = vld [vmem:[#allocation2 + $0x1ea] sm:$0xff] }
 0x1fc   :  { %1641 = vmatmul.mubr.f32.gmra.mrb[66].mxu0 %v466_v61  ;;  %v13455_v61 = vld [vmem:[#allocation81_spill] sm:$0xff] }
 0x1fd   :  { %1645 = vmatprep.mubr.f32.mxu0 %v8948_v17  ;;  %v9226_v17 = vld [vmem:[#allocation2 + $0x1fa] sm:$0xff] }
 0x200   :  { %1646 = vmatmul.mubr.f32.gmra.mrb[68].mxu0 %v9210_v45 }
 0x201   :  { %1650 = vmatprep.mubr.f32.mxu0 %v8952_v51  ;;  %v9230_v51 = vld [vmem:[#allocation2 + $0x202] sm:$0xff] }
 0x204   :  { %1651 = vmatmul.mubr.f32.gmra.mrb[70].mxu0 %v9214_v25 }
 0x205   :  { %1655 = vmatprep.mubr.f32.mxu0 %v8956_v52  ;;  %v9234_v52 = vld [vmem:[#allocation2 + $0x212] sm:$0xff] }
 0x208   :  { %1656 = vmatmul.mubr.f32.gmra.mrb[72].mxu0 %v9218_v10 }
 0x209   :  { %1660 = vmatprep.mubr.f32.mxu0 %v8960_v53  ;;  %v9238_v53 = vld [vmem:[#allocation2 + $0x21a] sm:$0xff] }
 0x20c   :  { %1661 = vmatmul.mubr.f32.gmra.mrb[74].mxu0 %v9222_v14 }
 0x20d   :  { %1665 = vmatprep.mubr.f32.mxu0 %v8964_v59  ;;  %v9242_v59 = vld [vmem:[#allocation2 + $0x22a] sm:$0xff] }
 0x210   :  { %1666 = vmatmul.mubr.f32.gmra.mrb[76].mxu0 %v9226_v17 }
 0x211   :  { %1670 = vmatprep.mubr.f32.mxu0 %v8968_v4  ;;  %v9246_v4 = vld [vmem:[#allocation2 + $0x232] sm:$0xff] }
 0x214   :  { %1671 = vmatmul.mubr.f32.gmra.mrb[78].mxu0 %v9230_v51 }
 0x215   :  { %1675 = vmatprep.mubr.f32.mxu0 %v8972_v11  ;;  %v9250_v11 = vld [vmem:[#allocation2 + $0x242] sm:$0xff] }
 0x218   :  { %1676 = vmatmul.mubr.f32.gmra.mrb[80].mxu0 %v9234_v52 }
 0x219   :  { %1680 = vmatprep.mubr.f32.mxu0 %v8976_v24  ;;  %v9254_v24 = vld [vmem:[#allocation2 + $0x24a] sm:$0xff] }
 0x21c   :  { %1681 = vmatmul.mubr.f32.gmra.mrb[82].mxu0 %v9238_v53 }
 0x21d   :  { %1685 = vmatprep.mubr.f32.mxu0 %v8980_v38  ;;  %v9258_v38 = vld [vmem:[#allocation2 + $0x25a] sm:$0xff] }
 0x220   :  { %1686 = vmatmul.mubr.f32.gmra.mrb[84].mxu0 %v9242_v59 }
 0x221   :  { %1690 = vmatprep.mubr.f32.mxu0 %v8984_v50  ;;  %v9262_v50 = vld [vmem:[#allocation2 + $0x262] sm:$0xff] }
 0x224   :  { %1691 = vmatmul.mubr.f32.gmra.mrb[86].mxu0 %v9246_v4 }
 0x225   :  { %1695 = vmatprep.mubr.f32.mxu0 %v8988_v63  ;;  %v9266_v63 = vld [vmem:[#allocation2 + $0x272] sm:$0xff] }
 0x228   :  { %1696 = vmatmul.mubr.f32.gmra.mrb[88].mxu0 %v9250_v11 }
 0x229   :  { %1700 = vmatprep.mubr.f32.mxu0 %v8992_v13  ;;  %v9270_v13 = vld [vmem:[#allocation2 + $0x27a] sm:$0xff] }
 0x22c   :  { %1701 = vmatmul.mubr.f32.gmra.mrb[90].mxu0 %v9254_v24 }
 0x22d   :  { %1705 = vmatprep.mubr.f32.mxu0 %v8996_v26  ;;  %v9274_v26 = vld [vmem:[#allocation2 + $0x28a] sm:$0xff] }
 0x230   :  { %1706 = vmatmul.mubr.f32.gmra.mrb[92].mxu0 %v9258_v38 }
 0x231   :  { %1710 = vmatprep.mubr.f32.mxu0 %v9000_v37  ;;  %v9278_v37 = vld [vmem:[#allocation2 + $0x292] sm:$0xff] }
 0x234   :  { %1711 = vmatmul.mubr.f32.gmra.mrb[94].mxu0 %v9262_v50 }
 0x235   :  { %1715 = vmatprep.mubr.f32.mxu0 %v9004_v46  ;;  %v9282_v46 = vld [vmem:[#allocation2 + $0x2a2] sm:$0xff] }
 0x238   :  { %1716 = vmatmul.mubr.f32.gmra.mrb[96].mxu0 %v9266_v63 }
 0x239   :  { %1720 = vmatprep.mubr.f32.mxu0 %v9008_v7  ;;  %v9286_v7 = vld [vmem:[#allocation2 + $0x2aa] sm:$0xff] }
 0x23c   :  { %1721 = vmatmul.mubr.f32.gmra.mrb[98].mxu0 %v9270_v13 }
 0x23d   :  { %1725 = vmatprep.mubr.f32.mxu0 %v9012_v9  ;;  %v9290_v9 = vld [vmem:[#allocation2 + $0x2ba] sm:$0xff] }
 0x240   :  { %1726 = vmatmul.mubr.f32.gmra.mrb[100].mxu0 %v9274_v26 }
 0x241   :  { %1730 = vmatprep.mubr.f32.mxu0 %v9016_v49  ;;  %v9294_v49 = vld [vmem:[#allocation2 + $0x2c2] sm:$0xff] }
 0x244   :  { %1731 = vmatmul.mubr.f32.gmra.mrb[102].mxu0 %v9278_v37 }
 0x245   :  { %1735 = vmatprep.mubr.f32.mxu0 %v9020_v62  ;;  %v13447_v62 = vld [vmem:[#allocation75_spill] sm:$0xff] }
 0x246   :  { %13448 = vst [vmem:[#allocation75_spill] sm:$0xff] %v9298_v60 }
 0x248   :  { %1736 = vmatmul.mubr.f32.gmra.mrb[104].mxu0 %v9282_v46 }
 0x249   :  { %1740 = vmatprep.mubr.f32.mxu0 %v9024_v31  ;;  %v13449_v31 = vld [vmem:[#allocation76_spill] sm:$0xff] }
 0x24a   :  { %13450 = vst [vmem:[#allocation76_spill] sm:$0xff] %v9302_v27 }
 0x24c   :  { %1741 = vmatmul.mubr.f32.gmra.mrb[106].mxu0 %v9286_v7 }
 0x24d   :  { %1745 = vmatprep.mubr.f32.mxu0 %v9028_v29  ;;  %v13451_v29 = vld [vmem:[#allocation77_spill] sm:$0xff] }
 0x24e   :  { %13452 = vst [vmem:[#allocation77_spill] sm:$0xff] %v9306_v56 }
 0x250   :  { %1746 = vmatmul.mubr.f32.gmra.mrb[108].mxu0 %v9290_v9 }
 0x251   :  { %1750 = vmatprep.mubr.f32.mxu0 %v9032_v1  ;;  %v13453_v1 = vld [vmem:[#allocation79_spill] sm:$0xff] }
 0x252   :  { %13454 = vst [vmem:[#allocation79_spill] sm:$0xff] %v9310_v58 }
 0x254   :  { %1751 = vmatmul.mubr.f32.gmra.mrb[110].mxu0 %v9294_v49 }
 0x255   :  { %1755 = vmatprep.mubr.f32.mxu0 %v13447_v62  ;;  %v9314_v62 = vld [vmem:[#allocation2 + $0x302] sm:$0xff] }
 0x256   :  { %13456 = vst [vmem:[#allocation81_spill] sm:$0xff] %v9314_v62 }
 0x258   :  { %1756 = vmatmul.mubr.f32.gmra.mrb[112].mxu0 %v9298_v60  ;;  %v981_v60 = vld [vmem:[#allocation6 + $0x318] sm:$0xff] }
 0x259   :  { %1760 = vmatprep.mubr.f32.mxu0 %v13449_v31  ;;  %v13457_v31 = vld [vmem:[#allocation82_spill] sm:$0xff] }
 0x25a   :  { %13458 = vst [vmem:[#allocation82_spill] sm:$0xff] %v9318_v41 }
 0x25c   :  { %1761 = vmatmul.mubr.f32.gmra.mrb[114].mxu0 %v9302_v27  ;;  %v980_v27 = vld [vmem:[#allocation6 + $0x310] sm:$0xff] }
 0x25d   :  { %1765 = vmatprep.mubr.f32.mxu0 %v13451_v29  ;;  %v559_v29 = vld [vmem:[#allocation2 + $0x330] sm:$0xff] }
 0x260   :  { %1766 = vmatmul.mubr.f32.gmra.mrb[116].mxu0 %v9306_v56  ;;  %v979_v56 = vld [vmem:[#allocation6 + $0x308] sm:$0xff] }
 0x261   :  { %1770 = vmatprep.mubr.f32.mxu0 %v13453_v1  ;;  %v560_v1 = vld [vmem:[#allocation2 + $0x338] sm:$0xff] }
 0x264   :  { %1771 = vmatmul.mubr.f32.gmra.mrb[118].mxu0 %v9310_v58  ;;  %v9324_v58 = vld [vmem:[#allocation2 + $0x322] sm:$0xff] }
 0x265   :  { %1775 = vmatprep.mubr.f32.mxu0 %v13455_v61  ;;  %13460 = vst [vmem:[#allocation84_spill] sm:$0xff] %v9324_v58  ;;  %v978_v61 = vld [vmem:[#allocation6 + $0x300] sm:$0xff] }
 0x268   :  { %1776 = vmatmul.mubr.f32.gmra.mrb[120].mxu0 %v9314_v62  ;;  %v7197_v62 = vpack.c.bf16 %v979_v56, %v978_v61  ;;  %v984_v56 = vld [vmem:[#allocation6 + $0x330] sm:$0xff]  ;;  %v985_v61 = vld [vmem:[#allocation6 + $0x338] sm:$0xff] }
 0x269   :  { %1780 = vmatprep.mubr.f32.mxu0 %v13457_v31  ;;  %v561_v31 = vld [vmem:[#allocation2 + $0x19] sm:$0xff] }
 0x26c   :  { %1781 = vmatmul.mubr.f32.gmra.mrb[122].mxu0 %v9318_v41  ;;  %v7200_v41 = vpack.c.bf16 %v981_v60, %v980_v27  ;;  %v7206_v60 = vpack.c.bf16 %v985_v61, %v984_v56  ;;  %v986_v27 = vld [vmem:[#allocation6 + $0x340] sm:$0xff]  ;;  %v992_v61 = vld [vmem:[#allocation6 + $0x370] sm:$0xff] }
 0x26d   :  { %1785 = vmatprep.mubr.f32.mxu0 %v559_v29  ;;  %v562_v29 = vld [vmem:[#allocation2 + $0x21] sm:$0xff] }
 0x270   :  { %1786 = vmatmul.mubr.f32.gmra.mrb[124].mxu0 %v9321_v21  ;;  %v983_v21 = vld [vmem:[#allocation6 + $0x328] sm:$0xff] }
 0x271   :  { %1790 = vmatprep.mubr.f32.mxu0 %v560_v1  ;;  %v982_v1 = vld [vmem:[#allocation6 + $0x320] sm:$0xff] }
 0x274   :  { %1791 = vmatmul.mubr.f32.gmra.mrb[126].mxu0 %v9324_v58  ;;  %v9331_v58 = vld [vmem:[#allocation2 + $0x31] sm:$0xff] }
 0x275   :  { %1860 = vmatprep.mubr.f32.mxu0 %v9069_v19  ;;  %v7203_v19 = vpack.c.bf16 %v983_v21, %v982_v1  ;;  %v9341_v21 = vld [vmem:[#allocation2 + $0x49] sm:$0xff]  ;;  %v990_v1 = vld [vmem:[#allocation6 + $0x360] sm:$0xff] }
 0x278   :  { %1861 = vmatmul.mubr.f32.vlgmr.msra.gmra.mrb[0].mxu0 %v561_v31  ;;  %v9346_v31 = vld [vmem:[#allocation2 + $0x51] sm:$0xff] }
 0x279   :  { %7198 = vmatpush1.bf16.msra.mxu0 %v7197_v62  ;;  %1865 = vmatprep.mubr.f32.mxu0 %v9074_v23  ;;  %v9336_v23 = vld [vmem:[#allocation2 + $0x39] sm:$0xff]  ;;  %v988_v62 = vld [vmem:[#allocation6 + $0x350] sm:$0xff] }
 0x27a   :  { %7199 = vmatprep.subr.bf16.mxu0 %v13419_v34 }
 0x27c   :  { %1866 = vmatmul.mubr.f32.gmra.mrb[2].mxu0 %v562_v29 }
 0x27d   :  { %1870 = vmatprep.mubr.f32.mxu0 %v9079_v18  ;;  %7201 = vmatpush1.bf16.msra.mxu0 %v7200_v41  ;;  %v987_v18 = vld [vmem:[#allocation6 + $0x348] sm:$0xff] }
 0x27e   :  { %7202 = vmatprep.subr.bf16.mxu0 %v13419_v34  ;;  %v7209_v41 = vpack.c.bf16 %v987_v18, %v986_v27  ;;  %v994_v18 = vld [vmem:[#allocation6 + $0x380] sm:$0xff] }
 0x280   :  { %1871 = vmatmul.mubr.f32.gmra.mrb[4].mxu0 %v9331_v58 }
 0x281   :  { %1875 = vmatprep.mubr.f32.mxu0 %v9084_v12  ;;  %7204 = vmatpush1.bf16.msra.mxu0 %v7203_v19  ;;  %v989_v12 = vld [vmem:[#allocation6 + $0x358] sm:$0xff]  ;;  %v9351_v19 = vld [vmem:[#allocation2 + $0x61] sm:$0xff] }
 0x282   :  { %7205 = vmatprep.subr.bf16.mxu0 %v13419_v34  ;;  %v7212_v29 = vpack.c.bf16 %v989_v12, %v988_v62  ;;  %v996_v12 = vld [vmem:[#allocation6 + $0x390] sm:$0xff] }
 0x284   :  { %1876 = vmatmul.mubr.f32.gmra.mrb[6].mxu0 %v9336_v23 }
 0x285   :  { %1880 = vmatprep.mubr.f32.mxu0 %v9089_v54  ;;  %7207 = vmatpush1.bf16.msra.mxu0 %v7206_v60  ;;  %v991_v54 = vld [vmem:[#allocation6 + $0x368] sm:$0xff] }
 0x286   :  { %7208 = vmatprep.subr.bf16.mxu0 %v13419_v34  ;;  %v7215_v56 = vpack.c.bf16 %v991_v54, %v990_v1  ;;  %v9356_v60 = vld [vmem:[#allocation2 + $0x69] sm:$0xff]  ;;  %v998_v54 = vld [vmem:[#allocation6 + $0x3a0] sm:$0xff] }
 0x288   :  { %1881 = vmatmul.mubr.f32.gmra.mrb[8].mxu0 %v9341_v21 }
 0x289   :  { %1885 = vmatprep.mubr.f32.mxu0 %v9094_v47  ;;  %7210 = vmatpush1.bf16.msra.mxu0 %v7209_v41  ;;  %v993_v47 = vld [vmem:[#allocation6 + $0x378] sm:$0xff] }
 0x28a   :  { %7211 = vmatprep.subr.bf16.mxu0 %v13419_v34  ;;  %v7218_v27 = vpack.c.bf16 %v993_v47, %v992_v61  ;;  %v9361_v41 = vld [vmem:[#allocation2 + $0x79] sm:$0xff]  ;;  %v1000_v47 = vld [vmem:[#allocation6 + $0x3b0] sm:$0xff] }
 0x28c   :  { %1886 = vmatmul.mubr.f32.gmra.mrb[10].mxu0 %v9346_v31 }
 0x28d   :  { %1890 = vmatprep.mubr.f32.mxu0 %v9099_v39  ;;  %7213 = vmatpush1.bf16.msra.mxu0 %v7212_v29  ;;  %v995_v39 = vld [vmem:[#allocation6 + $0x388] sm:$0xff] }
 0x28e   :  { %7214 = vmatprep.subr.bf16.mxu0 %v13419_v34  ;;  %v7221_v62 = vpack.c.bf16 %v995_v39, %v994_v18  ;;  %v9366_v29 = vld [vmem:[#allocation2 + $0x81] sm:$0xff]  ;;  %v9385_v18 = vld [vmem:[#allocation2 + $0xb1] sm:$0xff] }
 0x28f   :  { %v9390_v39 = vld [vmem:[#allocation2 + $0xc1] sm:$0xff] }
 0x290   :  { %1891 = vmatmul.mubr.f32.gmra.mrb[12].mxu0 %v9351_v19 }
 0x291   :  { %1895 = vmatprep.mubr.f32.mxu0 %v9104_v20  ;;  %7216 = vmatpush1.bf16.msra.mxu0 %v7215_v56  ;;  %v997_v20 = vld [vmem:[#allocation6 + $0x398] sm:$0xff] }
 0x292   :  { %7217 = vmatprep.subr.bf16.mxu0 %v13419_v34  ;;  %v7224_v1 = vpack.c.bf16 %v997_v20, %v996_v12  ;;  %v9371_v56 = vld [vmem:[#allocation2 + $0x91] sm:$0xff]  ;;  %v1003_v12 = vld [vmem:[#allocation6 + $0x3c8] sm:$0xff] }
 0x294   :  { %1896 = vmatmul.mubr.f32.gmra.mrb[14].mxu0 %v9356_v60 }
 0x295   :  { %1900 = vmatprep.mubr.f32.mxu0 %v9109_v28  ;;  %7219 = vmatpush1.bf16.msra.mxu0 %v7218_v27  ;;  %v999_v28 = vld [vmem:[#allocation6 + $0x3a8] sm:$0xff]  ;;  %v1001_v27 = vld [vmem:[#allocation6 + $0x3b8] sm:$0xff] }
 0x296   :  { %7220 = vmatprep.subr.bf16.mxu0 %v13419_v34  ;;  %v7227_v61 = vpack.c.bf16 %v999_v28, %v998_v54  ;;  %v1005_v54 = vld [vmem:[#allocation6 + $0x3d8] sm:$0xff] }
 0x298   :  { %1901 = vmatmul.mubr.f32.gmra.mrb[16].mxu0 %v9361_v41 }
 0x299   :  { %1905 = vmatprep.mubr.f32.mxu0 %v9114_v35  ;;  %7222 = vmatpush1.bf16.msra.mxu0 %v7221_v62  ;;  %v9376_v35 = vld [vmem:[#allocation2 + $0x99] sm:$0xff] }
 0x29a   :  { %7223 = vmatprep.subr.bf16.mxu0 %v13419_v34  ;;  %v1002_v62 = vld [vmem:[#allocation6 + $0x3c0] sm:$0xff] }
 0x29b   :  { %v7233_v20 = vpack.c.bf16 %v1003_v12, %v1002_v62  ;;  %v1012_v62 = vld [vmem:[#allocation6 + $0x410] sm:$0xff] }
 0x29c   :  { %1906 = vmatmul.mubr.f32.gmra.mrb[18].mxu0 %v9366_v29 }
 0x29d   :  { %1910 = vmatprep.mubr.f32.mxu0 %v9119_v43  ;;  %7225 = vmatpush1.bf16.msra.mxu0 %v7224_v1  ;;  %v9381_v43 = vld [vmem:[#allocation2 + $0xa9] sm:$0xff] }
 0x29e   :  { %7226 = vmatprep.subr.bf16.mxu0 %v13419_v34  ;;  %v1004_v1 = vld [vmem:[#allocation6 + $0x3d0] sm:$0xff] }
 0x29f   :  { %v7236_v28 = vpack.c.bf16 %v1005_v54, %v1004_v1  ;;  %v1015_v54 = vld [vmem:[#allocation6 + $0x428] sm:$0xff] }
 0x2a0   :  { %1911 = vmatmul.mubr.f32.gmra.mrb[20].mxu0 %v9371_v56 }
 0x2a1   :  { %1915 = vmatprep.mubr.f32.mxu0 %v9123_v44  ;;  %7228 = vmatpush1.bf16.msra.mxu0 %v7227_v61  ;;  %v7230_v44 = vpack.c.bf16 %v1001_v27, %v1000_v47  ;;  %v1011_v61 = vld [vmem:[#allocation6 + $0x408] sm:$0xff]  ;;  %v9432_v47 = vld [vmem:[#allocation2 + $0x139] sm:$0xff] }
 0x2a2   :  { %7229 = vmatprep.subr.bf16.mxu0 %v13419_v34 }
 0x2a4   :  { %1916 = vmatmul.mubr.f32.gmra.mrb[22].mxu0 %v9376_v35 }
 0x2a5   :  { %1920 = vmatprep.mubr.f32.mxu0 %v9128_v55  ;;  %7231 = vmatpush1.bf16.msra.mxu0 %v7230_v44  ;;  %v9394_v55 = vld [vmem:[#allocation2 + $0xc9] sm:$0xff] }
 0x2a6   :  { %7232 = vmatprep.subr.bf16.mxu0 %v13419_v34  ;;  %v1007_v44 = vld [vmem:[#allocation6 + $0x3e8] sm:$0xff] }
 0x2a8   :  { %1921 = vmatmul.mubr.f32.gmra.mrb[24].mxu0 %v9381_v43 }
 0x2a9   :  { %1925 = vmatprep.mubr.f32.mxu0 %v9132_v8  ;;  %v9398_v8 = vld [vmem:[#allocation2 + $0xd9] sm:$0xff]  ;;  %7234 = vmatpush1.bf16.msra.mxu0 %v7233_v20 }
 0x2aa   :  { %7235 = vmatprep.subr.bf16.mxu0 %v13419_v34  ;;  %v1013_v20 = vld [vmem:[#allocation6 + $0x418] sm:$0xff] }
 0x2ab   :  { %v7248_v1 = vpack.c.bf16 %v1013_v20, %v1012_v62  ;;  %v9449_v62 = vld [vmem:[#allocation2 + $0x169] sm:$0xff] }
 0x2ac   :  { %1926 = vmatmul.mubr.f32.gmra.mrb[26].mxu0 %v9385_v18  ;;  %v1008_v20 = vld [vmem:[#allocation6 + $0x3f0] sm:$0xff] }
 0x2ad   :  { %1930 = vmatprep.mubr.f32.mxu0 %v9136_v16  ;;  %v9402_v16 = vld [vmem:[#allocation2 + $0xe1] sm:$0xff]  ;;  %7237 = vmatpush1.bf16.msra.mxu0 %v7236_v28  ;;  %v9440_v28 = vld [vmem:[#allocation2 + $0x151] sm:$0xff] }
 0x2ae   :  { %7238 = vmatprep.subr.bf16.mxu0 %v13419_v34 }
 0x2b0   :  { %1931 = vmatmul.mubr.f32.gmra.mrb[28].mxu0 %v9390_v39 }
 0x2b1   :  { %1935 = vmatprep.mubr.f32.mxu0 %v9140_v57  ;;  %v9407_v57 = vld [vmem:[#allocation2 + $0xf1] sm:$0xff] }
 0x2b4   :  { %1936 = vmatmul.mubr.f32.gmra.mrb[30].mxu0 %v9394_v55 }
 0x2b5   :  { %1940 = vmatprep.mubr.f32.mxu0 %v9145_v33  ;;  %v9411_v33 = vld [vmem:[#allocation2 + $0xf9] sm:$0xff] }
 0x2b8   :  { %1941 = vmatmul.mubr.f32.gmra.mrb[32].mxu0 %v9398_v8 }
 0x2b9   :  { %1945 = vmatprep.mubr.f32.mxu0 %v9149_v30  ;;  %v9415_v30 = vld [vmem:[#allocation2 + $0x109] sm:$0xff] }
 0x2bc   :  { %1946 = vmatmul.mubr.f32.gmra.mrb[34].mxu0 %v9402_v16 }
 0x2bd   :  { %1950 = vmatprep.mubr.f32.mxu0 %v9153_v0  ;;  %v9419_v0 = vld [vmem:[#allocation2 + $0x111] sm:$0xff] }
 0x2c0   :  { %1951 = vmatmul.mubr.f32.gmra.mrb[36].mxu0 %v9407_v57 }
 0x2c1   :  { %1955 = vmatprep.mubr.f32.mxu0 %v9157_v32  ;;  %v9424_v32 = vld [vmem:[#allocation2 + $0x121] sm:$0xff] }
 0x2c4   :  { %1956 = vmatmul.mubr.f32.gmra.mrb[38].mxu0 %v9411_v33 }
 0x2c5   :  { %1960 = vmatprep.mubr.f32.mxu0 %v9162_v40  ;;  %v9428_v40 = vld [vmem:[#allocation2 + $0x129] sm:$0xff] }
 0x2c8   :  { %1961 = vmatmul.mubr.f32.gmra.mrb[40].mxu0 %v9415_v30 }
 0x2c9   :  { %1965 = vmatprep.mubr.f32.mxu0 %v9166_v42  ;;  %v1010_v42 = vld [vmem:[#allocation6 + $0x400] sm:$0xff] }
 0x2ca   :  { %v7244_v27 = vpack.c.bf16 %v1011_v61, %v1010_v42  ;;  %v1017_v61 = vld [vmem:[#allocation6 + $0x438] sm:$0xff] }
 0x2cc   :  { %1966 = vmatmul.mubr.f32.gmra.mrb[42].mxu0 %v9419_v0  ;;  %7245 = vmatprep.subr.bf16.mxu1 %v7244_v27 }
 0x2cd   :  { %1970 = vmatprep.mubr.f32.mxu0 %v9170_v22  ;;  %7247 = vmatpush3.bf16.msra.mxu1 %v7244_v27  ;;  %v1006_v22 = vld [vmem:[#allocation6 + $0x3e0] sm:$0xff] }
 0x2ce   :  { %v7239_v12 = vpack.c.bf16 %v1007_v44, %v1006_v22  ;;  %7249 = vmatprep.subr.bf16.mxu1 %v7248_v1  ;;  %v9445_v27 = vld [vmem:[#allocation2 + $0x159] sm:$0xff]  ;;  %v1019_v44 = vld [vmem:[#allocation6 + $0x448] sm:$0xff] }
 0x2d0   :  { %1971 = vmatmul.mubr.f32.gmra.mrb[44].mxu0 %v9424_v32 }
 0x2d1   :  { %1975 = vmatprep.mubr.f32.mxu0 %v9174_v36  ;;  %v9436_v36 = vld [vmem:[#allocation2 + $0x141] sm:$0xff]  ;;  %7240 = vmatpush1.bf16.msra.mxu0 %v7239_v12 }
 0x2d2   :  { %7251 = vmatpush3.bf16.msra.mxu1 %v7248_v1  ;;  %7241 = vmatprep.subr.bf16.mxu0 %v13419_v34  ;;  %v1020_v1 = vld [vmem:[#allocation6 + $0x450] sm:$0xff] }
 0x2d4   :  { %1976 = vmatmul.mubr.f32.gmra.mrb[46].mxu0 %v9428_v40 }
 0x2d5   :  { %1980 = vmatprep.mubr.f32.mxu0 %v9179_v48  ;;  %v1014_v48 = vld [vmem:[#allocation6 + $0x420] sm:$0xff] }
 0x2d6   :  { %v7252_v42 = vpack.c.bf16 %v1015_v54, %v1014_v48  ;;  %v9453_v48 = vld [vmem:[#allocation2 + $0x171] sm:$0xff] }
 0x2d8   :  { %1981 = vmatmul.mubr.f32.gmra.mrb[48].mxu0 %v9432_v47  ;;  %7253 = vmatprep.subr.bf16.mxu1 %v7252_v42 }
 0x2d9   :  { %1985 = vmatprep.mubr.f32.mxu0 %v9183_v5  ;;  %v1016_v5 = vld [vmem:[#allocation6 + $0x430] sm:$0xff]  ;;  %7255 = vmatpush3.bf16.msra.mxu1 %v7252_v42  ;;  %v1021_v42 = vld [vmem:[#allocation6 + $0x458] sm:$0xff] }
 0x2da   :  { %v7256_v22 = vpack.c.bf16 %v1017_v61, %v1016_v5  ;;  %v9455_v5 = vld [vmem:[#allocation2 + $0x182] sm:$0xff] }
 0x2db   :  { %v1022_v61 = vld [vmem:[#allocation6 + $0x460] sm:$0xff] }
 0x2dc   :  { %1986 = vmatmul.mubr.f32.gmra.mrb[50].mxu0 %v9436_v36  ;;  %7257 = vmatprep.subr.bf16.mxu1 %v7256_v22 }
 0x2dd   :  { %1990 = vmatprep.mubr.f32.mxu0 %v9187_v3  ;;  %v1018_v3 = vld [vmem:[#allocation6 + $0x440] sm:$0xff]  ;;  %7259 = vmatpush3.bf16.msra.mxu1 %v7256_v22  ;;  %v1023_v22 = vld [vmem:[#allocation6 + $0x468] sm:$0xff] }
 0x2de   :  { %v7260_v12 = vpack.c.bf16 %v1019_v44, %v1018_v3  ;;  %v7268_v3 = vpack.c.bf16 %v1023_v22, %v1022_v61  ;;  %v9459_v44 = vld [vmem:[#allocation2 + $0x18a] sm:$0xff] }
 0x2df   :  { %v594_v61 = vld [vmem:[#allocation2 + $0x1d1] sm:$0xff] }
 0x2e0   :  { %1991 = vmatmul.mubr.f32.gmra.mrb[52].mxu0 %v9440_v28  ;;  %7261 = vmatprep.subr.bf16.mxu1 %v7260_v12  ;;  %v820_v22 = vld [vmem:[#allocation2 + $0x4a] sm:$0xff] }
 0x2e1   :  { %1995 = vmatprep.mubr.f32.mxu0 %v9194_v15  ;;  %v1009_v15 = vld [vmem:[#allocation6 + $0x3f8] sm:$0xff]  ;;  %7263 = vmatpush3.bf16.msra.mxu1 %v7260_v12  ;;  %v1024_v12 = vld [vmem:[#allocation6 + $0x470] sm:$0xff] }
 0x2e2   :  { %v7242_v54 = vpack.c.bf16 %v1009_v15, %v1008_v20  ;;  %v1025_v20 = vld [vmem:[#allocation6 + $0x478] sm:$0xff] }
 0x2e3   :  { %v7272_v15 = vpack.c.bf16 %v1025_v20, %v1024_v12  ;;  %v821_v12 = vld [vmem:[#allocation2 + $0x52] sm:$0xff]  ;;  %v822_v20 = vld [vmem:[#allocation2 + $0x62] sm:$0xff] }
 0x2e4   :  { %1996 = vmatmul.mubr.f32.gmra.mrb[54].mxu0 %v9445_v27 }
 0x2e5   :  { %2000 = vmatprep.mubr.f32.mxu0 %v9201_v2  ;;  %v7264_v2 = vpack.c.bf16 %v1021_v42, %v1020_v1  ;;  %7243 = vmatpush1.bf16.msra.mxu0 %v7242_v54  ;;  %v13462_v1 = vld [vmem:[#allocation80_spill] sm:$0xff]  ;;  %v593_v42 = vld [vmem:[#allocation2 + $0x1c9] sm:$0xff] }
 0x2e6   :  { %v818_v54 = vld [vmem:[#allocation2 + $0x32] sm:$0xff] }
 0x2e7   :  { %7265 = vmatprep.subr.bf16.mxu1 %v7264_v2  ;;  %6828 = vmatprep.mubr.f32.mxu1 %v818_v54  ;;  %v9484_v54 = vld [vmem:[#allocation2 + $0x211] sm:$0xff] }
 0x2e8   :  { %2001 = vmatmul.mubr.f32.gmra.mrb[56].mxu0 %v9449_v62  ;;  %7267 = vmatpush3.bf16.msra.mxu1 %v7264_v2  ;;  %v819_v2 = vld [vmem:[#allocation2 + $0x3a] sm:$0xff] }
 0x2e9   :  { %2005 = vmatprep.mubr.f32.mxu0 %v9204_v6  ;;  %7269 = vmatprep.subr.bf16.mxu1 %v7268_v3  ;;  %v13461_v6 = vld [vmem:[#allocation78_spill] sm:$0xff] }
 0x2ec   :  { %2006 = vmatmul.mubr.f32.gmra.mrb[58].mxu0 %v9453_v48  ;;  %7271 = vmatpush3.bf16.msra.mxu1 %v7268_v3  ;;  %v9468_v3 = vld [vmem:[#allocation2 + $0x1e1] sm:$0xff] }
 0x2ed   :  { %2010 = vmatprep.mubr.f32.mxu0 %v9455_v5  ;;  %7273 = vmatprep.subr.bf16.mxu1 %v7272_v15 }
 0x2f0   :  { %2011 = vmatmul.mubr.f32.gmra.mrb[60].mxu0 %v13461_v6  ;;  %7275 = vmatpush3.bf16.msra.mxu1 %v7272_v15  ;;  %v9480_v15 = vld [vmem:[#allocation2 + $0x201] sm:$0xff]  ;;  %v13474_v6 = vld [vmem:[#allocation71_spill] sm:$0xff] }
 0x2f1   :  { %2015 = vmatprep.mubr.f32.mxu0 %v9459_v44  ;;  %7276 = vmatprep.subr.bf16.mxu1 %v13419_v34  ;;  %v690_v34 = vld [vmem:[#allocation2 + $0x30] sm:$0xff] }
 0x2f3   :  { %6829 = vmatmul.mubr.f32.vlgmr.msra.gmra.mrb[0].mxu1 %v819_v2  ;;  %v9492_v2 = vld [vmem:[#allocation2 + $0x229] sm:$0xff] }
 0x2f4   :  { %2016 = vmatmul.mubr.f32.gmra.mrb[62].mxu0 %v13462_v1  ;;  %6831 = vmatprep.mubr.f32.mxu1 %v820_v22  ;;  %v9500_v22 = vld [vmem:[#allocation2 + $0x241] sm:$0xff] }
 0x2f5   :  { %2020 = vmatprep.mubr.f32.mxu0 %v9210_v45  ;;  %v9472_v45 = vld [vmem:[#allocation2 + $0x1e9] sm:$0xff]  ;;  %v9584_v1 = vld [vmem:[#allocation2 + $0x33a] sm:$0xff] }
 0x2f7   :  { %6832 = vmatmul.mubr.f32.gmra.mrb[2].mxu1 %v821_v12  ;;  %v9504_v12 = vld [vmem:[#allocation2 + $0x249] sm:$0xff] }
 0x2f8   :  { %2021 = vmatmul.mubr.f32.gmra.mrb[64].mxu0 %v593_v42  ;;  %6834 = vmatprep.mubr.f32.mxu1 %v822_v20  ;;  %v9488_v42 = vld [vmem:[#allocation2 + $0x219] sm:$0xff] }
 0x2f9   :  { %2025 = vmatprep.mubr.f32.mxu0 %v9214_v25  ;;  %v9476_v25 = vld [vmem:[#allocation2 + $0x1f9] sm:$0xff] }
 0x2fa   :  { %v9508_v20 = vld [vmem:[#allocation2 + $0x259] sm:$0xff] }
 0x2fc   :  { %2026 = vmatmul.mubr.f32.gmra.mrb[66].mxu0 %v594_v61  ;;  %v9496_v61 = vld [vmem:[#allocation2 + $0x231] sm:$0xff] }
 0x2fd   :  { %2030 = vmatprep.mubr.f32.mxu0 %v9218_v10  ;;  %v823_v10 = vld [vmem:[#allocation2 + $0x6a] sm:$0xff] }
 0x2fe   :  { %6835 = vmatmul.mubr.f32.gmra.mrb[4].mxu1 %v823_v10  ;;  %v9512_v10 = vld [vmem:[#allocation2 + $0x261] sm:$0xff] }
 0x300   :  { %2031 = vmatmul.mubr.f32.gmra.mrb[68].mxu0 %v9468_v3 }
 0x301   :  { %2035 = vmatprep.mubr.f32.mxu0 %v9222_v14  ;;  %v824_v14 = vld [vmem:[#allocation2 + $0x7a] sm:$0xff] }
 0x302   :  { %6837 = vmatprep.mubr.f32.mxu1 %v824_v14  ;;  %v9516_v14 = vld [vmem:[#allocation2 + $0x271] sm:$0xff] }
 0x304   :  { %2036 = vmatmul.mubr.f32.gmra.mrb[70].mxu0 %v9472_v45 }
 0x305   :  { %2040 = vmatprep.mubr.f32.mxu0 %v9226_v17  ;;  %v825_v17 = vld [vmem:[#allocation2 + $0x82] sm:$0xff] }
 0x306   :  { %6838 = vmatmul.mubr.f32.gmra.mrb[6].mxu1 %v825_v17  ;;  %v9520_v17 = vld [vmem:[#allocation2 + $0x279] sm:$0xff] }
 0x308   :  { %2041 = vmatmul.mubr.f32.gmra.mrb[72].mxu0 %v9476_v25 }
 0x309   :  { %2045 = vmatprep.mubr.f32.mxu0 %v9230_v51  ;;  %v826_v51 = vld [vmem:[#allocation2 + $0x92] sm:$0xff] }
 0x30a   :  { %6840 = vmatprep.mubr.f32.mxu1 %v826_v51  ;;  %v9524_v51 = vld [vmem:[#allocation2 + $0x289] sm:$0xff] }
 0x30c   :  { %2046 = vmatmul.mubr.f32.gmra.mrb[74].mxu0 %v9480_v15 }
 0x30d   :  { %2050 = vmatprep.mubr.f32.mxu0 %v9234_v52  ;;  %v827_v52 = vld [vmem:[#allocation2 + $0x9a] sm:$0xff] }
 0x30e   :  { %6841 = vmatmul.mubr.f32.gmra.mrb[8].mxu1 %v827_v52  ;;  %v9528_v52 = vld [vmem:[#allocation2 + $0x291] sm:$0xff] }
 0x310   :  { %2051 = vmatmul.mubr.f32.gmra.mrb[76].mxu0 %v9484_v54 }
 0x311   :  { %2055 = vmatprep.mubr.f32.mxu0 %v9238_v53  ;;  %v828_v53 = vld [vmem:[#allocation2 + $0xaa] sm:$0xff] }
 0x312   :  { %6843 = vmatprep.mubr.f32.mxu1 %v828_v53  ;;  %v9532_v53 = vld [vmem:[#allocation2 + $0x2a1] sm:$0xff] }
 0x314   :  { %2056 = vmatmul.mubr.f32.gmra.mrb[78].mxu0 %v9488_v42 }
 0x315   :  { %2060 = vmatprep.mubr.f32.mxu0 %v9242_v59  ;;  %v829_v59 = vld [vmem:[#allocation2 + $0xb2] sm:$0xff] }
 0x316   :  { %6844 = vmatmul.mubr.f32.gmra.mrb[10].mxu1 %v829_v59  ;;  %v9536_v59 = vld [vmem:[#allocation2 + $0x2a9] sm:$0xff] }
 0x318   :  { %2061 = vmatmul.mubr.f32.gmra.mrb[80].mxu0 %v9492_v2 }
 0x319   :  { %2065 = vmatprep.mubr.f32.mxu0 %v9246_v4  ;;  %v830_v4 = vld [vmem:[#allocation2 + $0xc2] sm:$0xff] }
 0x31a   :  { %6846 = vmatprep.mubr.f32.mxu1 %v830_v4  ;;  %v9540_v4 = vld [vmem:[#allocation2 + $0x2b9] sm:$0xff] }
 0x31c   :  { %2066 = vmatmul.mubr.f32.gmra.mrb[82].mxu0 %v9496_v61 }
 0x31d   :  { %2070 = vmatprep.mubr.f32.mxu0 %v9250_v11  ;;  %v831_v11 = vld [vmem:[#allocation2 + $0xca] sm:$0xff] }
 0x31e   :  { %6847 = vmatmul.mubr.f32.gmra.mrb[12].mxu1 %v831_v11  ;;  %v9544_v11 = vld [vmem:[#allocation2 + $0x2c1] sm:$0xff] }
 0x320   :  { %2071 = vmatmul.mubr.f32.gmra.mrb[84].mxu0 %v9500_v22 }
 0x321   :  { %2075 = vmatprep.mubr.f32.mxu0 %v9254_v24  ;;  %v832_v24 = vld [vmem:[#allocation2 + $0xda] sm:$0xff] }
 0x322   :  { %6849 = vmatprep.mubr.f32.mxu1 %v832_v24  ;;  %v13463_v24 = vld [vmem:[#allocation75_spill] sm:$0xff] }
 0x324   :  { %2076 = vmatmul.mubr.f32.gmra.mrb[86].mxu0 %v9504_v12 }
 0x325   :  { %2080 = vmatprep.mubr.f32.mxu0 %v9258_v38  ;;  %v833_v38 = vld [vmem:[#allocation2 + $0xe2] sm:$0xff] }
 0x326   :  { %6850 = vmatmul.mubr.f32.gmra.mrb[14].mxu1 %v833_v38  ;;  %v9548_v38 = vld [vmem:[#allocation2 + $0x2d1] sm:$0xff] }
 0x328   :  { %2081 = vmatmul.mubr.f32.gmra.mrb[88].mxu0 %v9508_v20 }
 0x329   :  { %2085 = vmatprep.mubr.f32.mxu0 %v9262_v50  ;;  %v834_v50 = vld [vmem:[#allocation2 + $0xf2] sm:$0xff] }
 0x32a   :  { %6852 = vmatprep.mubr.f32.mxu1 %v834_v50  ;;  %v13464_v50 = vld [vmem:[#allocation76_spill] sm:$0xff] }
 0x32c   :  { %2086 = vmatmul.mubr.f32.gmra.mrb[90].mxu0 %v9512_v10 }
 0x32d   :  { %2090 = vmatprep.mubr.f32.mxu0 %v9266_v63  ;;  %v835_v63 = vld [vmem:[#allocation2 + $0xfa] sm:$0xff] }
 0x32e   :  { %6853 = vmatmul.mubr.f32.gmra.mrb[16].mxu1 %v835_v63  ;;  %v9552_v63 = vld [vmem:[#allocation2 + $0x2d9] sm:$0xff] }
 0x330   :  { %2091 = vmatmul.mubr.f32.gmra.mrb[92].mxu0 %v9516_v14 }
 0x331   :  { %2095 = vmatprep.mubr.f32.mxu0 %v9270_v13  ;;  %v836_v13 = vld [vmem:[#allocation2 + $0x10a] sm:$0xff] }
 0x332   :  { %6855 = vmatprep.mubr.f32.mxu1 %v836_v13  ;;  %v13465_v13 = vld [vmem:[#allocation77_spill] sm:$0xff] }
 0x334   :  { %2096 = vmatmul.mubr.f32.gmra.mrb[94].mxu0 %v9520_v17 }
 0x335   :  { %2100 = vmatprep.mubr.f32.mxu0 %v9274_v26  ;;  %v837_v26 = vld [vmem:[#allocation2 + $0x112] sm:$0xff] }
 0x336   :  { %6856 = vmatmul.mubr.f32.gmra.mrb[18].mxu1 %v837_v26  ;;  %v9556_v26 = vld [vmem:[#allocation2 + $0x2e9] sm:$0xff] }
 0x338   :  { %2101 = vmatmul.mubr.f32.gmra.mrb[96].mxu0 %v9524_v51 }
 0x339   :  { %2105 = vmatprep.mubr.f32.mxu0 %v9278_v37  ;;  %v838_v37 = vld [vmem:[#allocation2 + $0x122] sm:$0xff] }
 0x33a   :  { %6858 = vmatprep.mubr.f32.mxu1 %v838_v37  ;;  %v843_v37 = vld [vmem:[#allocation2 + $0x15a] sm:$0xff] }
 0x33c   :  { %2106 = vmatmul.mubr.f32.gmra.mrb[98].mxu0 %v9528_v52 }
 0x33d   :  { %2110 = vmatprep.mubr.f32.mxu0 %v9282_v46  ;;  %v839_v46 = vld [vmem:[#allocation2 + $0x12a] sm:$0xff] }
 0x33e   :  { %6859 = vmatmul.mubr.f32.gmra.mrb[20].mxu1 %v839_v46  ;;  %v13466_v46 = vld [vmem:[#allocation79_spill] sm:$0xff] }
 0x340   :  { %2111 = vmatmul.mubr.f32.gmra.mrb[100].mxu0 %v9532_v53 }
 0x341   :  { %2115 = vmatprep.mubr.f32.mxu0 %v9286_v7  ;;  %v840_v7 = vld [vmem:[#allocation2 + $0x13a] sm:$0xff] }
 0x342   :  { %6861 = vmatprep.mubr.f32.mxu1 %v840_v7  ;;  %v9560_v7 = vld [vmem:[#allocation2 + $0x2f1] sm:$0xff] }
 0x344   :  { %2116 = vmatmul.mubr.f32.gmra.mrb[102].mxu0 %v9536_v59 }
 0x345   :  { %2120 = vmatprep.mubr.f32.mxu0 %v9290_v9  ;;  %v841_v9 = vld [vmem:[#allocation2 + $0x142] sm:$0xff] }
 0x346   :  { %6862 = vmatmul.mubr.f32.gmra.mrb[22].mxu1 %v841_v9  ;;  %v13467_v9 = vld [vmem:[#allocation81_spill] sm:$0xff] }
 0x348   :  { %2121 = vmatmul.mubr.f32.gmra.mrb[104].mxu0 %v9540_v4 }
 0x349   :  { %2125 = vmatprep.mubr.f32.mxu0 %v9294_v49  ;;  %v842_v49 = vld [vmem:[#allocation2 + $0x152] sm:$0xff] }
 0x34a   :  { %6864 = vmatprep.mubr.f32.mxu1 %v842_v49  ;;  %v13468_v49 = vld [vmem:[#allocation82_spill] sm:$0xff] }
 0x34b   :  { %6865 = vmatmul.mubr.f32.gmra.mrb[24].mxu1 %v843_v37  ;;  %v9569_v37 = vld [vmem:[#allocation2 + $0x309] sm:$0xff] }
 0x34c   :  { %2126 = vmatmul.mubr.f32.gmra.mrb[106].mxu0 %v9544_v11 }
 0x34d   :  { %2130 = vmatprep.mubr.f32.mxu0 %v13463_v24  ;;  %v844_v24 = vld [vmem:[#allocation2 + $0x16a] sm:$0xff] }
 0x34e   :  { %6867 = vmatprep.mubr.f32.mxu1 %v844_v24  ;;  %v13471_v24 = vld [vmem:[#allocation84_spill] sm:$0xff] }
 0x350   :  { %2131 = vmatmul.mubr.f32.gmra.mrb[108].mxu0 %v9548_v38 }
 0x351   :  { %2135 = vmatprep.mubr.f32.mxu0 %v13464_v50  ;;  %v9564_v50 = vld [vmem:[#allocation2 + $0x301] sm:$0xff] }
 0x354   :  { %2136 = vmatmul.mubr.f32.gmra.mrb[110].mxu0 %v9552_v63 }
 0x355   :  { %2140 = vmatprep.mubr.f32.mxu0 %v13465_v13  ;;  %v845_v13 = vld [vmem:[#allocation2 + $0x172] sm:$0xff] }
 0x356   :  { %6868 = vmatmul.mubr.f32.gmra.mrb[26].mxu1 %v845_v13  ;;  %v9578_v13 = vld [vmem:[#allocation2 + $0x321] sm:$0xff] }
 0x357   :  { %6870 = vmatprep.mubr.f32.mxu1 %v9455_v5  ;;  %13472 = vst [vmem:[#allocation76_spill] sm:$0xff] %v9578_v13  ;;  %v9580_v5 = vld [vmem:[#allocation2 + $0x332] sm:$0xff] }
 0x358   :  { %2141 = vmatmul.mubr.f32.gmra.mrb[112].mxu0 %v9556_v26 }
 0x359   :  { %2145 = vmatprep.mubr.f32.mxu0 %v13466_v46  ;;  %v13469_v46 = vld [vmem:[#allocation83_spill] sm:$0xff] }
 0x35a   :  { %6871 = vmatmul.mubr.f32.gmra.mrb[28].mxu1 %v9459_v44  ;;  %v849_v44 = vld [vmem:[#allocation2 + $0x1a2] sm:$0xff] }
 0x35c   :  { %2146 = vmatmul.mubr.f32.gmra.mrb[114].mxu0 %v9560_v7 }
 0x35d   :  { %2150 = vmatprep.mubr.f32.mxu0 %v13467_v9  ;;  %v9574_v9 = vld [vmem:[#allocation2 + $0x319] sm:$0xff] }
 0x35e   :  { %13470 = vst [vmem:[#allocation75_spill] sm:$0xff] %v9574_v9 }
 0x360   :  { %2151 = vmatmul.mubr.f32.gmra.mrb[116].mxu0 %v9564_v50 }
 0x361   :  { %2155 = vmatprep.mubr.f32.mxu0 %v13468_v49  ;;  %v848_v49 = vld [vmem:[#allocation2 + $0x19a] sm:$0xff] }
 0x362   :  { %6873 = vmatprep.mubr.f32.mxu1 %v848_v49  ;;  %v691_v49 = vld [vmem:[#allocation2 + $0x38] sm:$0xff] }
 0x363   :  { %6874 = vmatmul.mubr.f32.gmra.mrb[30].mxu1 %v849_v44  ;;  %v692_v44 = vld [vmem:[#allocation2 + $0x48] sm:$0xff] }
 0x364   :  { %2156 = vmatmul.mubr.f32.gmra.mrb[118].mxu0 %v9569_v37 }
 0x365   :  { %2160 = vmatprep.mubr.f32.mxu0 %v13469_v46  ;;  %v13473_v46 = vld [vmem:[#allocation69_spill] sm:$0xff] }
 0x368   :  { %2161 = vmatmul.mubr.f32.gmra.mrb[120].mxu0 %v9574_v9  ;;  %v852_v9 = vld [vmem:[#allocation2 + $0x1fa] sm:$0xff] }
 0x369   :  { %2165 = vmatprep.mubr.f32.mxu0 %v13471_v24  ;;  %v850_v24 = vld [vmem:[#allocation2 + $0x1e2] sm:$0xff] }
 0x36a   :  { %6876 = vmatprep.mubr.f32.mxu1 %v850_v24  ;;  %v854_v24 = vld [vmem:[#allocation2 + $0x212] sm:$0xff] }
 0x36c   :  { %2166 = vmatmul.mubr.f32.gmra.mrb[122].mxu0 %v9578_v13  ;;  %v851_v13 = vld [vmem:[#allocation2 + $0x1ea] sm:$0xff] }
 0x36d   :  { %2170 = vmatprep.mubr.f32.mxu0 %v9580_v5  ;;  %6877 = vmatmul.mubr.f32.gmra.mrb[32].mxu1 %v851_v13  ;;  %v696_v13 = vld [vmem:[#allocation2 + $0x78] sm:$0xff] }
 0x36e   :  { %6879 = vmatprep.mubr.f32.mxu1 %v852_v9  ;;  %v856_v9 = vld [vmem:[#allocation2 + $0x22a] sm:$0xff] }
 0x370   :  { %2171 = vmatmul.mubr.f32.gmra.mrb[124].mxu0 %v13473_v46  ;;  %v853_v46 = vld [vmem:[#allocation2 + $0x202] sm:$0xff] }
 0x371   :  { %2175 = vmatprep.mubr.f32.mxu0 %v9584_v1  ;;  %6880 = vmatmul.mubr.f32.gmra.mrb[34].mxu1 %v853_v46  ;;  %v858_v46 = vld [vmem:[#allocation2 + $0x242] sm:$0xff] }
 0x372   :  { %6882 = vmatprep.mubr.f32.mxu1 %v854_v24  ;;  %v862_v24 = vld [vmem:[#allocation2 + $0x272] sm:$0xff] }
 0x374   :  { %2176 = vmatmul.mubr.f32.gmra.mrb[126].mxu0 %v13474_v6  ;;  %v4013_v6 = vld [vmem:[#allocation8 + $0x38] sm:$0xff] }
 0x375   :  { %2245 = vmatprep.mubr.f32.mxu0 %v9331_v58  ;;  %v693_v58 = vld [vmem:[#allocation2 + $0x50] sm:$0xff] }
 0x378   :  { %2246 = vmatmul.mubr.f32.vlgmr.msra.gmra.mrb[0].mxu0 %v690_v34  ;;  %v694_v34 = vld [vmem:[#allocation2 + $0x60] sm:$0xff] }
 0x379   :  { %2250 = vmatprep.mubr.f32.mxu0 %v9336_v23  ;;  %v855_v23 = vld [vmem:[#allocation2 + $0x21a] sm:$0xff] }
 0x37a   :  { %6883 = vmatmul.mubr.f32.gmra.mrb[36].mxu1 %v855_v23  ;;  %v864_v23 = vld [vmem:[#allocation2 + $0x28a] sm:$0xff] }
 0x37b   :  { %6885 = vmatprep.mubr.f32.mxu1 %v856_v9  ;;  %v866_v9 = vld [vmem:[#allocation2 + $0x2a2] sm:$0xff] }
 0x37c   :  { %2251 = vmatmul.mubr.f32.gmra.mrb[2].mxu0 %v691_v49  ;;  %v698_v49 = vld [vmem:[#allocation2 + $0x90] sm:$0xff] }
 0x37d   :  { %2255 = vmatprep.mubr.f32.mxu0 %v9341_v21  ;;  %v695_v21 = vld [vmem:[#allocation2 + $0x68] sm:$0xff] }
 0x380   :  { %2256 = vmatmul.mubr.f32.gmra.mrb[4].mxu0 %v692_v44  ;;  %v860_v44 = vld [vmem:[#allocation2 + $0x25a] sm:$0xff] }
 0x381   :  { %2260 = vmatprep.mubr.f32.mxu0 %v9346_v31  ;;  %v857_v31 = vld [vmem:[#allocation2 + $0x232] sm:$0xff] }
 0x382   :  { %6886 = vmatmul.mubr.f32.gmra.mrb[38].mxu1 %v857_v31  ;;  %v868_v31 = vld [vmem:[#allocation2 + $0x2ba] sm:$0xff] }
 0x383   :  { %6888 = vmatprep.mubr.f32.mxu1 %v858_v46  ;;  %v870_v46 = vld [vmem:[#allocation2 + $0x2d2] sm:$0xff] }
 0x384   :  { %2261 = vmatmul.mubr.f32.gmra.mrb[6].mxu0 %v693_v58  ;;  %v700_v58 = vld [vmem:[#allocation2 + $0xa8] sm:$0xff] }
 0x385   :  { %2265 = vmatprep.mubr.f32.mxu0 %v9351_v19  ;;  %v697_v19 = vld [vmem:[#allocation2 + $0x80] sm:$0xff] }
 0x388   :  { %2266 = vmatmul.mubr.f32.gmra.mrb[8].mxu0 %v694_v34  ;;  %v702_v34 = vld [vmem:[#allocation2 + $0xc0] sm:$0xff] }
 0x389   :  { %2270 = vmatprep.mubr.f32.mxu0 %v9356_v60  ;;  %v859_v60 = vld [vmem:[#allocation2 + $0x24a] sm:$0xff] }
 0x38a   :  { %6889 = vmatmul.mubr.f32.gmra.mrb[40].mxu1 %v859_v60 }
 0x38b   :  { %6891 = vmatprep.mubr.f32.mxu1 %v860_v44  ;;  %v872_v44 = vld [vmem:[#allocation2 + $0x2ea] sm:$0xff] }
 0x38c   :  { %2271 = vmatmul.mubr.f32.gmra.mrb[10].mxu0 %v695_v21  ;;  %v704_v21 = vld [vmem:[#allocation2 + $0xd8] sm:$0xff] }
 0x38d   :  { %2275 = vmatprep.mubr.f32.mxu0 %v9361_v41  ;;  %v699_v41 = vld [vmem:[#allocation2 + $0x98] sm:$0xff] }
 0x390   :  { %2276 = vmatmul.mubr.f32.gmra.mrb[12].mxu0 %v696_v13  ;;  %v706_v13 = vld [vmem:[#allocation2 + $0xf0] sm:$0xff] }
 0x391   :  { %2280 = vmatprep.mubr.f32.mxu0 %v9366_v29  ;;  %v861_v29 = vld [vmem:[#allocation2 + $0x262] sm:$0xff] }
 0x392   :  { %6892 = vmatmul.mubr.f32.gmra.mrb[42].mxu1 %v861_v29 }
 0x393   :  { %6894 = vmatprep.mubr.f32.mxu1 %v862_v24  ;;  %v874_v24 = vld [vmem:[#allocation2 + $0x302] sm:$0xff] }
 0x394   :  { %2281 = vmatmul.mubr.f32.gmra.mrb[14].mxu0 %v697_v19  ;;  %v708_v19 = vld [vmem:[#allocation2 + $0x108] sm:$0xff] }
 0x395   :  { %2285 = vmatprep.mubr.f32.mxu0 %v9371_v56  ;;  %v701_v56 = vld [vmem:[#allocation2 + $0xb0] sm:$0xff] }
 0x398   :  { %2286 = vmatmul.mubr.f32.gmra.mrb[16].mxu0 %v698_v49  ;;  %v710_v49 = vld [vmem:[#allocation2 + $0x120] sm:$0xff] }
 0x399   :  { %2290 = vmatprep.mubr.f32.mxu0 %v9376_v35  ;;  %v863_v35 = vld [vmem:[#allocation2 + $0x27a] sm:$0xff] }
 0x39a   :  { %6895 = vmatmul.mubr.f32.gmra.mrb[44].mxu1 %v863_v35 }
 0x39b   :  { %6897 = vmatprep.mubr.f32.mxu1 %v864_v23  ;;  %v876_v23 = vld [vmem:[#allocation2 + $0x31a] sm:$0xff] }
 0x39c   :  { %2291 = vmatmul.mubr.f32.gmra.mrb[18].mxu0 %v699_v41 }
 0x39d   :  { %2295 = vmatprep.mubr.f32.mxu0 %v9381_v43  ;;  %v703_v43 = vld [vmem:[#allocation2 + $0xc8] sm:$0xff] }
 0x3a0   :  { %2296 = vmatmul.mubr.f32.gmra.mrb[20].mxu0 %v700_v58  ;;  %v873_v58 = vld [vmem:[#allocation2 + $0x2f2] sm:$0xff] }
 0x3a1   :  { %2300 = vmatprep.mubr.f32.mxu0 %v9385_v18  ;;  %v865_v18 = vld [vmem:[#allocation2 + $0x292] sm:$0xff] }
 0x3a2   :  { %6898 = vmatmul.mubr.f32.gmra.mrb[46].mxu1 %v865_v18 }
 0x3a3   :  { %6900 = vmatprep.mubr.f32.mxu1 %v866_v9  ;;  %v783_v9 = vld [vmem:[#allocation2 + $0x189] sm:$0xff] }
 0x3a4   :  { %2301 = vmatmul.mubr.f32.gmra.mrb[22].mxu0 %v701_v56  ;;  %v714_v56 = vld [vmem:[#allocation2 + $0x150] sm:$0xff] }
 0x3a5   :  { %2305 = vmatprep.mubr.f32.mxu0 %v9390_v39  ;;  %v705_v39 = vld [vmem:[#allocation2 + $0xe0] sm:$0xff] }
 0x3a8   :  { %2306 = vmatmul.mubr.f32.gmra.mrb[24].mxu0 %v702_v34  ;;  %v715_v34 = vld [vmem:[#allocation2 + $0x158] sm:$0xff] }
 0x3a9   :  { %2310 = vmatprep.mubr.f32.mxu0 %v9394_v55  ;;  %v867_v55 = vld [vmem:[#allocation2 + $0x2aa] sm:$0xff] }
 0x3aa   :  { %6901 = vmatmul.mubr.f32.gmra.mrb[48].mxu1 %v867_v55  ;;  %v784_v55 = vld [vmem:[#allocation2 + $0x199] sm:$0xff] }
 0x3ab   :  { %6903 = vmatprep.mubr.f32.mxu1 %v868_v31  ;;  %v785_v31 = vld [vmem:[#allocation2 + $0x1a1] sm:$0xff] }
 0x3ac   :  { %2311 = vmatmul.mubr.f32.gmra.mrb[26].mxu0 %v703_v43  ;;  %v716_v43 = vld [vmem:[#allocation2 + $0x168] sm:$0xff] }
 0x3ad   :  { %2315 = vmatprep.mubr.f32.mxu0 %v9398_v8  ;;  %v707_v8 = vld [vmem:[#allocation2 + $0xf8] sm:$0xff] }
 0x3b0   :  { %2316 = vmatmul.mubr.f32.gmra.mrb[28].mxu0 %v704_v21  ;;  %v717_v21 = vld [vmem:[#allocation2 + $0x170] sm:$0xff] }
 0x3b1   :  { %2320 = vmatprep.mubr.f32.mxu0 %v9402_v16  ;;  %v869_v16 = vld [vmem:[#allocation2 + $0x2c2] sm:$0xff] }
 0x3b2   :  { %6904 = vmatmul.mubr.f32.gmra.mrb[50].mxu1 %v869_v16 }
 0x3b3   :  { %6906 = vmatprep.mubr.f32.mxu1 %v870_v46  ;;  %v722_v46 = vld [vmem:[#allocation2 + $0x1e0] sm:$0xff] }
 0x3b4   :  { %2321 = vmatmul.mubr.f32.gmra.mrb[30].mxu0 %v705_v39 }
 0x3b5   :  { %2325 = vmatprep.mubr.f32.mxu0 %v9407_v57  ;;  %v709_v57 = vld [vmem:[#allocation2 + $0x110] sm:$0xff] }
 0x3b8   :  { %2326 = vmatmul.mubr.f32.gmra.mrb[32].mxu0 %v706_v13  ;;  %v719_v13 = vld [vmem:[#allocation2 + $0x188] sm:$0xff] }
 0x3b9   :  { %2330 = vmatprep.mubr.f32.mxu0 %v9411_v33  ;;  %v871_v33 = vld [vmem:[#allocation2 + $0x2da] sm:$0xff] }
 0x3ba   :  { %6907 = vmatmul.mubr.f32.gmra.mrb[52].mxu1 %v871_v33 }
 0x3bb   :  { %6909 = vmatprep.mubr.f32.mxu1 %v872_v44  ;;  %v725_v44 = vld [vmem:[#allocation2 + $0x200] sm:$0xff] }
 0x3bc   :  { %2331 = vmatmul.mubr.f32.gmra.mrb[34].mxu0 %v707_v8 }
 0x3bd   :  { %2335 = vmatprep.mubr.f32.mxu0 %v9415_v30  ;;  %v711_v30 = vld [vmem:[#allocation2 + $0x128] sm:$0xff] }
 0x3be   :  { %6910 = vmatmul.mubr.f32.gmra.mrb[54].mxu1 %v873_v58 }
 0x3bf   :  { %6912 = vmatprep.mubr.f32.mxu1 %v874_v24  ;;  %v729_v24 = vld [vmem:[#allocation2 + $0x230] sm:$0xff] }
 0x3c0   :  { %2336 = vmatmul.mubr.f32.gmra.mrb[36].mxu0 %v708_v19  ;;  %v881_v19 = vld [vmem:[#allocation2 + $0x352] sm:$0xff] }
 0x3c1   :  { %2340 = vmatprep.mubr.f32.mxu0 %v9419_v0  ;;  %v712_v0 = vld [vmem:[#allocation2 + $0x138] sm:$0xff] }
 0x3c4   :  { %2341 = vmatmul.mubr.f32.gmra.mrb[38].mxu0 %v709_v57 }
 0x3c5   :  { %2345 = vmatprep.mubr.f32.mxu0 %v9424_v32  ;;  %v713_v32 = vld [vmem:[#allocation2 + $0x140] sm:$0xff] }
 0x3c6   :  { %v9611_v60 = vpop.f32.mrb[0].mxu1 }
 0x3c7   :  { %v9613_v41 = vpop.f32.mrb[1].mxu1 }
 0x3c8   :  { %2346 = vmatmul.mubr.f32.gmra.mrb[40].mxu0 %v710_v49  ;;  %v723_v49 = vld [vmem:[#allocation2 + $0x1e8] sm:$0xff] }
 0x3c9   :  { %2350 = vmatprep.mubr.f32.mxu0 %v9428_v40 }
 0x3ca   :  { %v9617_v29 = vpop.f32.mrb[2].mxu1 }
 0x3cb   :  { %v9619_v40 = vpop.f32.mrb[3].mxu1 }
 0x3cc   :  { %2351 = vmatmul.mubr.f32.gmra.mrb[42].mxu0 %v711_v30 }
 0x3cd   :  { %2355 = vmatprep.mubr.f32.mxu0 %v9432_v47  ;;  %v875_v47 = vld [vmem:[#allocation2 + $0x30a] sm:$0xff] }
 0x3ce   :  { %6913 = vmatmul.mubr.f32.gmra.mrb[56].mxu1 %v875_v47 }
 0x3cf   :  { %6915 = vmatprep.mubr.f32.mxu1 %v876_v23  ;;  %v733_v23 = vld [vmem:[#allocation2 + $0x260] sm:$0xff] }
 0x3d0   :  { %2356 = vmatmul.mubr.f32.gmra.mrb[44].mxu0 %v712_v0  ;;  %v724_v0 = vld [vmem:[#allocation2 + $0x1f8] sm:$0xff] }
 0x3d1   :  { %2360 = vmatprep.mubr.f32.mxu0 %v9436_v36  ;;  %v9623_v35 = vpop.f32.mrb[4].mxu1 }
 0x3d2   :  { %v9625_v36 = vpop.f32.mrb[5].mxu1 }
 0x3d4   :  { %2361 = vmatmul.mubr.f32.gmra.mrb[46].mxu0 %v713_v32  ;;  %v727_v32 = vld [vmem:[#allocation2 + $0x218] sm:$0xff] }
 0x3d5   :  { %2365 = vmatprep.mubr.f32.mxu0 %v9440_v28  ;;  %v877_v28 = vld [vmem:[#allocation2 + $0x322] sm:$0xff] }
 0x3d6   :  { %6916 = vmatmul.mubr.f32.gmra.mrb[58].mxu1 %v877_v28 }
 0x3d7   :  { %6918 = vmatprep.mubr.f32.mxu1 %v9580_v5 }
 0x3d8   :  { %2366 = vmatmul.mubr.f32.gmra.mrb[48].mxu0 %v714_v56 }
 0x3d9   :  { %2370 = vmatprep.mubr.f32.mxu0 %v9445_v27  ;;  %v782_v27 = vld [vmem:[#allocation2 + $0x181] sm:$0xff]  ;;  %v9630_v18 = vpop.f32.mrb[6].mxu1 }
 0x3da   :  { %v9632_v39 = vpop.f32.mrb[7].mxu1  ;;  %6919 = vmatmul.mubr.f32.gmra.mrb[60].mxu1 %v9584_v1  ;;  %v9639_v1 = vld [vmem:[#allocation2] sm:$0xff] }
 0x3dc   :  { %2371 = vmatmul.mubr.f32.gmra.mrb[50].mxu0 %v715_v34  ;;  %v731_v34 = vld [vmem:[#allocation2 + $0x248] sm:$0xff] }
 0x3dd   :  { %2375 = vmatprep.mubr.f32.mxu0 %v9449_v62  ;;  %v718_v62 = vld [vmem:[#allocation2 + $0x180] sm:$0xff] }
 0x3e0   :  { %2376 = vmatmul.mubr.f32.gmra.mrb[52].mxu0 %v716_v43 }
 0x3e1   :  { %2380 = vmatprep.mubr.f32.mxu0 %v9453_v48  ;;  %v9635_v8 = vpop.f32.mrb[8].mxu1  ;;  %v880_v48 = vld [vmem:[#allocation2 + $0x34a] sm:$0xff] }
 0x3e2   :  { %v9637_v5 = vpop.f32.mrb[9].mxu1  ;;  %6921 = vmatprep.mubr.f32.mxu1 %v880_v48  ;;  %v741_v48 = vld [vmem:[#allocation2 + $0x2c0] sm:$0xff] }
 0x3e3   :  { %6922 = vmatmul.mubr.f32.gmra.mrb[62].mxu1 %v881_v19  ;;  %v743_v19 = vld [vmem:[#allocation2 + $0x2d8] sm:$0xff] }
 0x3e4   :  { %2381 = vmatmul.mubr.f32.gmra.mrb[54].mxu0 %v717_v21  ;;  %v735_v21 = vld [vmem:[#allocation2 + $0x278] sm:$0xff] }
 0x3e5   :  { %2385 = vmatprep.mubr.f32.mxu0 %v782_v27 }
 0x3e8   :  { %2386 = vmatmul.mubr.f32.gmra.mrb[56].mxu0 %v718_v62  ;;  %v737_v62 = vld [vmem:[#allocation2 + $0x290] sm:$0xff] }
 0x3e9   :  { %2390 = vmatprep.mubr.f32.mxu0 %v783_v9  ;;  %v9642_v16 = vpop.f32.mrb[10].mxu1 }
 0x3ea   :  { %v9644_v57 = vpop.f32.mrb[11].mxu1 }
 0x3ec   :  { %2391 = vmatmul.mubr.f32.gmra.mrb[58].mxu0 %v719_v13  ;;  %v739_v13 = vld [vmem:[#allocation2 + $0x2a8] sm:$0xff] }
 0x3ed   :  { %2395 = vmatprep.mubr.f32.mxu0 %v784_v55 }
 0x3f0   :  { %2396 = vmatmul.mubr.f32.gmra.mrb[60].mxu0 %v9639_v1 }
 0x3f1   :  { %2400 = vmatprep.mubr.f32.mxu0 %v785_v31  ;;  %v9649_v33 = vpop.f32.mrb[12].mxu1 }
 0x3f2   :  { %v9651_v30 = vpop.f32.mrb[13].mxu1 }
 0x3f4   :  { %2401 = vmatmul.mubr.f32.gmra.mrb[62].mxu0 %v9639_v1 }
 0x3f5   :  { %2405 = vmatprep.mubr.f32.mxu0 %v9468_v3 }
 0x3f8   :  { %2406 = vmatmul.mubr.f32.gmra.mrb[64].mxu0 %v722_v46 }
 0x3f9   :  { %2410 = vmatprep.mubr.f32.mxu0 %v9472_v45  ;;  %v9655_v58 = vpop.f32.mrb[14].mxu1  ;;  %v726_v45 = vld [vmem:[#allocation2 + $0x210] sm:$0xff] }
 0x3fa   :  { %v9657_v3 = vpop.f32.mrb[15].mxu1 }
 0x3fc   :  { %2411 = vmatmul.mubr.f32.gmra.mrb[66].mxu0 %v723_v49 }
 0x3fd   :  { %2415 = vmatprep.mubr.f32.mxu0 %v9476_v25 }
 0x400   :  { %2416 = vmatmul.mubr.f32.gmra.mrb[68].mxu0 %v724_v0 }
 0x401   :  { %2420 = vmatprep.mubr.f32.mxu0 %v9480_v15  ;;  %v9661_v56 = vpop.f32.mrb[16].mxu1  ;;  %v728_v15 = vld [vmem:[#allocation2 + $0x228] sm:$0xff] }
 0x402   :  { %v9663_v25 = vpop.f32.mrb[17].mxu1 }
 0x404   :  { %2421 = vmatmul.mubr.f32.gmra.mrb[70].mxu0 %v725_v44  ;;  %v744_v44 = vld [vmem:[#allocation2 + $0x2e8] sm:$0xff] }
 0x405   :  { %2425 = vmatprep.mubr.f32.mxu0 %v9484_v54 }
 0x408   :  { %2426 = vmatmul.mubr.f32.gmra.mrb[72].mxu0 %v726_v45 }
 0x409   :  { %2430 = vmatprep.mubr.f32.mxu0 %v9488_v42  ;;  %v9667_v47 = vpop.f32.mrb[18].mxu1  ;;  %v730_v42 = vld [vmem:[#allocation2 + $0x240] sm:$0xff] }
 0x40a   :  { %v9669_v54 = vpop.f32.mrb[19].mxu1 }
 0x40c   :  { %2431 = vmatmul.mubr.f32.gmra.mrb[74].mxu0 %v727_v32 }
 0x40d   :  { %2435 = vmatprep.mubr.f32.mxu0 %v9492_v2 }
 0x410   :  { %2436 = vmatmul.mubr.f32.gmra.mrb[76].mxu0 %v728_v15 }
 0x411   :  { %2440 = vmatprep.mubr.f32.mxu0 %v9496_v61  ;;  %v9673_v43 = vpop.f32.mrb[20].mxu1  ;;  %v732_v61 = vld [vmem:[#allocation2 + $0x258] sm:$0xff] }
 0x412   :  { %v9675_v2 = vpop.f32.mrb[21].mxu1 }
 0x414   :  { %2441 = vmatmul.mubr.f32.gmra.mrb[78].mxu0 %v729_v24 }
 0x415   :  { %2445 = vmatprep.mubr.f32.mxu0 %v9500_v22 }
 0x418   :  { %2446 = vmatmul.mubr.f32.gmra.mrb[80].mxu0 %v730_v42 }
 0x419   :  { %2450 = vmatprep.mubr.f32.mxu0 %v9504_v12  ;;  %v9679_v28 = vpop.f32.mrb[22].mxu1  ;;  %v734_v12 = vld [vmem:[#allocation2 + $0x270] sm:$0xff] }
 0x41a   :  { %v9681_v22 = vpop.f32.mrb[23].mxu1 }
 0x41c   :  { %2451 = vmatmul.mubr.f32.gmra.mrb[82].mxu0 %v731_v34 }
 0x41d   :  { %2455 = vmatprep.mubr.f32.mxu0 %v9508_v20 }
 0x41e   :  { %v9685_v27 = vpop.f32.mrb[24].mxu1 }
 0x41f   :  { %v9687_v20 = vpop.f32.mrb[25].mxu1 }
 0x420   :  { %2456 = vmatmul.mubr.f32.gmra.mrb[84].mxu0 %v732_v61 }
 0x421   :  { %2460 = vmatprep.mubr.f32.mxu0 %v9512_v10  ;;  %v736_v10 = vld [vmem:[#allocation2 + $0x288] sm:$0xff] }
 0x424   :  { %2461 = vmatmul.mubr.f32.gmra.mrb[86].mxu0 %v733_v23 }
 0x425   :  { %2465 = vmatprep.mubr.f32.mxu0 %v9516_v14 }
 0x428   :  { %2466 = vmatmul.mubr.f32.gmra.mrb[88].mxu0 %v734_v12 }
 0x429   :  { %2470 = vmatprep.mubr.f32.mxu0 %v9520_v17  ;;  %v9691_v9 = vpop.f32.mrb[26].mxu1  ;;  %v738_v17 = vld [vmem:[#allocation2 + $0x2a0] sm:$0xff] }
 0x42a   :  { %v9693_v14 = vpop.f32.mrb[27].mxu1 }
 0x42c   :  { %2471 = vmatmul.mubr.f32.gmra.mrb[90].mxu0 %v735_v21 }
 0x42d   :  { %2475 = vmatprep.mubr.f32.mxu0 %v9524_v51  ;;  %v9697_v55 = vpop.f32.mrb[28].mxu1 }
 0x42e   :  { %v9699_v51 = vpop.f32.mrb[29].mxu1 }
 0x430   :  { %2476 = vmatmul.mubr.f32.gmra.mrb[92].mxu0 %v736_v10 }
 0x431   :  { %2480 = vmatprep.mubr.f32.mxu0 %v9528_v52  ;;  %v740_v52 = vld [vmem:[#allocation2 + $0x2b8] sm:$0xff] }
 0x434   :  { %2481 = vmatmul.mubr.f32.gmra.mrb[94].mxu0 %v737_v62 }
 0x435   :  { %2485 = vmatprep.mubr.f32.mxu0 %v9532_v53 }
 0x436   :  { %v9703_v31 = vpop.f32.mrb[30].mxu1 }
 0x437   :  { %v9705_v53 = vpop.f32.mrb[31].mxu1 }
 0x438   :  { %2486 = vmatmul.mubr.f32.gmra.mrb[96].mxu0 %v738_v17  ;;  %v748_v17 = vld [vmem:[#allocation2 + $0x318] sm:$0xff] }
 0x439   :  { %2490 = vmatprep.mubr.f32.mxu0 %v9536_v59  ;;  %v742_v59 = vld [vmem:[#allocation2 + $0x2d0] sm:$0xff] }
 0x43c   :  { %2491 = vmatmul.mubr.f32.gmra.mrb[98].mxu0 %v739_v13 }
 0x43d   :  { %2495 = vmatprep.mubr.f32.mxu0 %v9540_v4 }
 0x440   :  { %2496 = vmatmul.mubr.f32.gmra.mrb[100].mxu0 %v740_v52  ;;  %v9709_v46 = vpop.f32.mrb[32].mxu1 }
 0x441   :  { %2500 = vmatprep.mubr.f32.mxu0 %v9544_v11  ;;  %v9711_v49 = vpop.f32.mrb[33].mxu1 }
 0x444   :  { %2501 = vmatmul.mubr.f32.gmra.mrb[102].mxu0 %v741_v48  ;;  %v9721_v15 = vpop.f32.mrb[34].mxu1  ;;  %v749_v48 = vld [vmem:[#allocation2 + $0x320] sm:$0xff] }
 0x445   :  { %2505 = vmatprep.mubr.f32.mxu0 %v9548_v38  ;;  %v9723_v42 = vpop.f32.mrb[35].mxu1 }
 0x448   :  { %2506 = vmatmul.mubr.f32.gmra.mrb[104].mxu0 %v742_v59  ;;  %v814_v59 = vld [vmem:[#allocation2 + $0x331] sm:$0xff] }
 0x449   :  { %2510 = vmatprep.mubr.f32.mxu0 %v9552_v63  ;;  %v745_v63 = vld [vmem:[#allocation2 + $0x2f0] sm:$0xff] }
 0x44b   :  { %v2247_v4 = vpop.f32.mrb[0].mxu0 }
 0x44c   :  { %v9714_v11 = vadd.f32 %v9613_v41, %v2247_v4  ;;  %v2249_v0 = vpop.f32.mrb[1].mxu0  ;;  %2511 = vmatmul.mubr.f32.gmra.mrb[106].mxu0 %v743_v19 }
 0x44d   :  { %2515 = vmatprep.mubr.f32.mxu0 %v9556_v26  ;;  %v746_v26 = vld [vmem:[#allocation2 + $0x300] sm:$0xff]  ;;  %v9733_v12 = vpop.f32.mrb[36].mxu1 }
 0x44e   :  { %v9735_v10 = vpop.f32.mrb[37].mxu1 }
 0x44f   :  { %v2252_v45 = vpop.f32.mrb[2].mxu0 }
 0x450   :  { %v9718_v38 = vadd.f32 %v9611_v60, %v2252_v45  ;;  %v2254_v32 = vpop.f32.mrb[3].mxu0  ;;  %2516 = vmatmul.mubr.f32.gmra.mrb[108].mxu0 %v744_v44  ;;  %v750_v45 = vld [vmem:[#allocation2 + $0x330] sm:$0xff] }
 0x451   :  { %2520 = vmatprep.mubr.f32.mxu0 %v9560_v7  ;;  %v747_v7 = vld [vmem:[#allocation2 + $0x308] sm:$0xff] }
 0x452   :  { %13475 = vst [vmem:[#allocation77_spill] sm:$0xff] %v9718_v38 }
 0x453   :  { %v2257_v24 = vpop.f32.mrb[4].mxu0 }
 0x454   :  { %v9726_v41 = vadd.f32 %v9619_v40, %v2257_v24  ;;  %v2259_v34 = vpop.f32.mrb[5].mxu0  ;;  %2521 = vmatmul.mubr.f32.gmra.mrb[110].mxu0 %v745_v63 }
 0x455   :  { %2525 = vmatprep.mubr.f32.mxu0 %v9564_v50  ;;  %v13476_v50 = vld [vmem:[#allocation75_spill] sm:$0xff]  ;;  %v9745_v19 = vpop.f32.mrb[38].mxu1  ;;  %v751_v34 = vld [vmem:[#allocation2 + $0x338] sm:$0xff] }
 0x457   :  { %v2262_v60 = vpop.f32.mrb[6].mxu0 }
 0x458   :  { %v9730_v61 = vadd.f32 %v9617_v29, %v2262_v60  ;;  %v2264_v23 = vpop.f32.mrb[7].mxu0  ;;  %2526 = vmatmul.mubr.f32.gmra.mrb[112].mxu0 %v746_v26  ;;  %v816_v26 = vld [vmem:[#allocation2 + $0x349] sm:$0xff] }
 0x459   :  { %2530 = vmatprep.mubr.f32.mxu0 %v9569_v37  ;;  %v13477_v37 = vld [vmem:[#allocation76_spill] sm:$0xff] }
 0x45b   :  { %v2267_v21 = vpop.f32.mrb[8].mxu0 }
 0x45c   :  { %v9738_v40 = vadd.f32 %v9625_v36, %v2267_v21  ;;  %v2269_v62 = vpop.f32.mrb[9].mxu0  ;;  %2531 = vmatmul.mubr.f32.gmra.mrb[114].mxu0 %v747_v7  ;;  %v9747_v36 = vpop.f32.mrb[39].mxu1 }
 0x45d   :  { %2535 = vmatprep.mubr.f32.mxu0 %v13476_v50  ;;  %v9755_v60 = vpop.f32.mrb[40].mxu1  ;;  %v817_v62 = vld [vmem:[#allocation2 + $0x351] sm:$0xff] }
 0x45e   :  { %v9757_v7 = vpop.f32.mrb[41].mxu1 }
 0x45f   :  { %v2272_v29 = vpop.f32.mrb[10].mxu0 }
 0x460   :  { %v9742_v13 = vadd.f32 %v9623_v35, %v2272_v29  ;;  %v2274_v52 = vpop.f32.mrb[11].mxu0  ;;  %2536 = vmatmul.mubr.f32.gmra.mrb[116].mxu0 %v748_v17  ;;  %v815_v35 = vld [vmem:[#allocation2 + $0x339] sm:$0xff] }
 0x461   :  { %2540 = vmatprep.mubr.f32.mxu0 %v13477_v37 }
 0x463   :  { %v2277_v4 = vpop.f32.mrb[12].mxu0 }
 0x464   :  { %v9750_v0 = vadd.f32 %v9632_v39, %v2277_v4  ;;  %v2279_v44 = vpop.f32.mrb[13].mxu0  ;;  %2541 = vmatmul.mubr.f32.gmra.mrb[118].mxu0 %v749_v48 }
 0x465   :  { %2545 = vmatprep.mubr.f32.mxu0 %v814_v59  ;;  %v9766_v29 = vpop.f32.mrb[42].mxu1 }
 0x466   :  { %v9768_v37 = vpop.f32.mrb[43].mxu1 }
 0x467   :  { %v2282_v32 = vpop.f32.mrb[14].mxu0 }
 0x468   :  { %v9753_v63 = vadd.f32 %v9630_v18, %v2282_v32  ;;  %v2284_v24 = vpop.f32.mrb[15].mxu0  ;;  %2546 = vmatmul.mubr.f32.gmra.mrb[120].mxu0 %v750_v45 }
 0x469   :  { %2550 = vmatprep.mubr.f32.mxu0 %v815_v35 }
 0x46b   :  { %v2287_v23 = vpop.f32.mrb[16].mxu0 }
 0x46c   :  { %v9760_v39 = vadd.f32 %v9637_v5, %v2287_v23  ;;  %v2289_v21 = vpop.f32.mrb[17].mxu0  ;;  %2551 = vmatmul.mubr.f32.gmra.mrb[122].mxu0 %v751_v34  ;;  %v4006_v34 = vld [vmem:[#allocation8] sm:$0xff] }
 0x46d   :  { %2555 = vmatprep.mubr.f32.mxu0 %v816_v26  ;;  %v9777_v44 = vpop.f32.mrb[44].mxu1  ;;  %v13478_v21 = vmov 0.0|0.0  }
 0x46e   :  { %v9779_v35 = vpop.f32.mrb[45].mxu1 }
 0x46f   :  { %v2292_v50 = vpop.f32.mrb[18].mxu0 }
 0x470   :  { %v9763_v18 = vadd.f32 %v9635_v8, %v2292_v50  ;;  %v2294_v17 = vpop.f32.mrb[19].mxu0  ;;  %2556 = vmatmul.mubr.f32.gmra.mrb[124].mxu0 %v9639_v1 }
 0x471   :  { %2560 = vmatprep.mubr.f32.mxu0 %v817_v62 }
 0x473   :  { %v2297_v52 = vpop.f32.mrb[20].mxu0 }
 0x474   :  { %v9771_v5 = vadd.f32 %v9644_v57, %v2297_v52  ;;  %v2299_v48 = vpop.f32.mrb[21].mxu0  ;;  %2561 = vmatmul.mubr.f32.gmra.mrb[126].mxu0 %v9639_v1  ;;  %v4007_v57 = vld [vmem:[#allocation8 + $0x8] sm:$0xff] }
 0x475   :  { %v7277_v26 = vpack.c.bf16 %v4007_v57, %v4006_v34  ;;  %v9788_v62 = vpop.f32.mrb[46].mxu1  ;;  %v4008_v48 = vld [vmem:[#allocation8 + $0x10] sm:$0xff] }
 0x476   :  { %v9790_v17 = vpop.f32.mrb[47].mxu1 }
 0x477   :  { %v2302_v59 = vpop.f32.mrb[22].mxu0  ;;  %7278 = vmatpush1.bf16.msra.mxu1 %v7277_v26 }
 0x478   :  { %v9775_v4 = vadd.f32 %v9642_v16, %v2302_v59  ;;  %v2304_v8 = vpop.f32.mrb[23].mxu0  ;;  %7279 = vmatprep.subr.bf16.mxu1 %v13478_v21  ;;  %v4009_v59 = vld [vmem:[#allocation8 + $0x18] sm:$0xff] }
 0x479   :  { %v7280_v8 = vpack.c.bf16 %v4009_v59, %v4008_v48 }
 0x47b   :  { %v2307_v45 = vpop.f32.mrb[24].mxu0  ;;  %7281 = vmatpush1.bf16.msra.mxu1 %v7280_v8 }
 0x47c   :  { %v9782_v32 = vadd.f32 %v9651_v30, %v2307_v45  ;;  %v2309_v24 = vpop.f32.mrb[25].mxu0  ;;  %7282 = vmatprep.subr.bf16.mxu1 %v13478_v21 }
 0x47d   :  { %v9799_v34 = vpop.f32.mrb[48].mxu1 }
 0x47e   :  { %13479 = vst [vmem:[#allocation79_spill] sm:$0xff] %v9799_v34  ;;  %v9801_v26 = vpop.f32.mrb[49].mxu1 }
 0x47f   :  { %v2312_v23 = vpop.f32.mrb[26].mxu0  ;;  %13480 = vst [vmem:[#allocation81_spill] sm:$0xff] %v9801_v26 }
 0x480   :  { %v9785_v1 = vadd.f32 %v9649_v33, %v2312_v23  ;;  %v2314_v16 = vpop.f32.mrb[27].mxu0 }
 0x481   :  { %v4010_v16 = vld [vmem:[#allocation8 + $0x20] sm:$0xff] }
 0x483   :  { %v2317_v50 = vpop.f32.mrb[28].mxu0 }
 0x484   :  { %v9793_v30 = vadd.f32 %v9657_v3, %v2317_v50  ;;  %v2319_v52 = vpop.f32.mrb[29].mxu0  ;;  %v4011_v50 = vld [vmem:[#allocation8 + $0x28] sm:$0xff] }
 0x485   :  { %v7283_v52 = vpack.c.bf16 %v4011_v50, %v4010_v16  ;;  %v9810_v8 = vpop.f32.mrb[50].mxu1 }
 0x486   :  { %13481 = vst [vmem:[#allocation82_spill] sm:$0xff] %v9810_v8 }
 0x487   :  { %v2322_v45 = vpop.f32.mrb[30].mxu0  ;;  %7284 = vmatpush1.bf16.msra.mxu1 %v7283_v52 }
 0x488   :  { %v9796_v33 = vadd.f32 %v9655_v58, %v2322_v45  ;;  %v2324_v24 = vpop.f32.mrb[31].mxu0  ;;  %7285 = vmatprep.subr.bf16.mxu1 %v13478_v21 }
 0x489   :  { %v9812_v24 = vpop.f32.mrb[51].mxu1 }
 0x48a   :  { %13482 = vst [vmem:[#allocation83_spill] sm:$0xff] %v9812_v24  ;;  %v4015_v24 = vld [vmem:[#allocation8 + $0x48] sm:$0xff] }
 0x48b   :  { %v2327_v57 = vpop.f32.mrb[32].mxu0 }
 0x48c   :  { %v9804_v3 = vadd.f32 %v9663_v25, %v2327_v57  ;;  %v2329_v23 = vpop.f32.mrb[33].mxu0 }
 0x48d   :  { %v4012_v23 = vld [vmem:[#allocation8 + $0x30] sm:$0xff] }
 0x48e   :  { %v7286_v16 = vpack.c.bf16 %v4013_v6, %v4012_v23 }
 0x48f   :  { %v2332_v48 = vpop.f32.mrb[34].mxu0 }
 0x490   :  { %v9807_v58 = vadd.f32 %v9661_v56, %v2332_v48  ;;  %v2334_v59 = vpop.f32.mrb[35].mxu0  ;;  %7287 = vmatpush1.bf16.msra.mxu1 %v7286_v16  ;;  %v9821_v48 = vpop.f32.mrb[52].mxu1 }
 0x491   :  { %7288 = vmatprep.subr.bf16.mxu1 %v13478_v21  ;;  %13483 = vst [vmem:[#allocation84_spill] sm:$0xff] %v9821_v48  ;;  %v9823_v8 = vpop.f32.mrb[53].mxu1 }
 0x492   :  { %13484 = vst [vmem:[#allocation75_spill] sm:$0xff] %v9823_v8  ;;  %v4017_v8 = vld [vmem:[#allocation8 + $0x58] sm:$0xff] }
 0x493   :  { %v2337_v45 = vpop.f32.mrb[36].mxu0 }
 0x494   :  { %v9815_v25 = vadd.f32 %v9669_v54, %v2337_v45  ;;  %v2339_v57 = vpop.f32.mrb[37].mxu0 }
 0x495   :  { %v4014_v57 = vld [vmem:[#allocation8 + $0x40] sm:$0xff] }
 0x496   :  { %v7289_v6 = vpack.c.bf16 %v4015_v24, %v4014_v57 }
 0x497   :  { %v2342_v50 = vpop.f32.mrb[38].mxu0 }
 0x498   :  { %v9818_v56 = vadd.f32 %v9667_v47, %v2342_v50  ;;  %v2344_v52 = vpop.f32.mrb[39].mxu0  ;;  %7290 = vmatpush1.bf16.msra.mxu1 %v7289_v6  ;;  %v9832_v50 = vpop.f32.mrb[54].mxu1 }
 0x499   :  { %7291 = vmatprep.subr.bf16.mxu1 %v13478_v21  ;;  %13485 = vst [vmem:[#allocation76_spill] sm:$0xff] %v9832_v50  ;;  %v9834_v48 = vpop.f32.mrb[55].mxu1 }
 0x49a   :  { %13486 = vst [vmem:[#allocation85_spill] sm:$0xff] %v9834_v48  ;;  %v4019_v48 = vld [vmem:[#allocation8 + $0x68] sm:$0xff] }
 0x49b   :  { %v2347_v59 = vpop.f32.mrb[40].mxu0 }
 0x49c   :  { %v9826_v54 = vadd.f32 %v9675_v2, %v2347_v59  ;;  %v2349_v45 = vpop.f32.mrb[41].mxu0 }
 0x49d   :  { %v4016_v45 = vld [vmem:[#allocation8 + $0x50] sm:$0xff] }
 0x49e   :  { %v7292_v24 = vpack.c.bf16 %v4017_v8, %v4016_v45 }
 0x49f   :  { %v2352_v23 = vpop.f32.mrb[42].mxu0 }
 0x4a0   :  { %v9829_v47 = vadd.f32 %v9673_v43, %v2352_v23  ;;  %v2354_v16 = vpop.f32.mrb[43].mxu0  ;;  %7293 = vmatpush1.bf16.msra.mxu1 %v7292_v24 }
 0x4a1   :  { %7294 = vmatprep.subr.bf16.mxu1 %v13478_v21  ;;  %v9843_v23 = vpop.f32.mrb[56].mxu1 }
 0x4a2   :  { %13487 = vst [vmem:[#allocation86_spill] sm:$0xff] %v9843_v23  ;;  %v9845_v50 = vpop.f32.mrb[57].mxu1 }
 0x4a3   :  { %v2357_v52 = vpop.f32.mrb[44].mxu0  ;;  %13488 = vst [vmem:[#allocation87_spill] sm:$0xff] %v9845_v50  ;;  %v4021_v50 = vld [vmem:[#allocation8 + $0x78] sm:$0xff] }
 0x4a4   :  { %v9837_v2 = vadd.f32 %v9681_v22, %v2357_v52  ;;  %v2359_v59 = vpop.f32.mrb[45].mxu0 }
 0x4a5   :  { %v4018_v59 = vld [vmem:[#allocation8 + $0x60] sm:$0xff] }
 0x4a6   :  { %v7295_v8 = vpack.c.bf16 %v4019_v48, %v4018_v59 }
 0x4a7   :  { %v2362_v57 = vpop.f32.mrb[46].mxu0 }
 0x4a8   :  { %v9840_v43 = vadd.f32 %v9679_v28, %v2362_v57  ;;  %v2364_v6 = vpop.f32.mrb[47].mxu0  ;;  %7296 = vmatpush1.bf16.msra.mxu1 %v7295_v8 }
 0x4a9   :  { %7297 = vmatprep.subr.bf16.mxu1 %v13478_v21  ;;  %v9854_v57 = vpop.f32.mrb[58].mxu1 }
 0x4aa   :  { %13489 = vst [vmem:[#allocation88_spill] sm:$0xff] %v9854_v57  ;;  %v9856_v23 = vpop.f32.mrb[59].mxu1 }
 0x4ab   :  { %v2367_v16 = vpop.f32.mrb[48].mxu0  ;;  %13490 = vst [vmem:[#allocation89_spill] sm:$0xff] %v9856_v23  ;;  %v4023_v23 = vld [vmem:[#allocation8 + $0x88] sm:$0xff] }
 0x4ac   :  { %v9848_v22 = vadd.f32 %v9687_v20, %v2367_v16  ;;  %v2369_v52 = vpop.f32.mrb[49].mxu0 }
 0x4ad   :  { %v4020_v52 = vld [vmem:[#allocation8 + $0x70] sm:$0xff] }
 0x4ae   :  { %v7298_v48 = vpack.c.bf16 %v4021_v50, %v4020_v52 }
 0x4af   :  { %v2372_v45 = vpop.f32.mrb[50].mxu0 }
 0x4b0   :  { %v9851_v28 = vadd.f32 %v9685_v27, %v2372_v45  ;;  %v2374_v24 = vpop.f32.mrb[51].mxu0  ;;  %7299 = vmatpush1.bf16.msra.mxu1 %v7298_v48  ;;  %v9865_v45 = vpop.f32.mrb[60].mxu1 }
 0x4b1   :  { %7300 = vmatprep.subr.bf16.mxu1 %v13478_v21  ;;  %13492 = vst [vmem:[#allocation91_spill] sm:$0xff] %v9865_v45  ;;  %v9867_v57 = vpop.f32.mrb[61].mxu1 }
 0x4b2   :  { %13493 = vst [vmem:[#allocation92_spill] sm:$0xff] %v9867_v57  ;;  %v4025_v57 = vld [vmem:[#allocation8 + $0x98] sm:$0xff] }
 0x4b3   :  { %v2377_v6 = vpop.f32.mrb[52].mxu0 }
 0x4b4   :  { %v9859_v20 = vadd.f32 %v9693_v14, %v2377_v6  ;;  %v2379_v16 = vpop.f32.mrb[53].mxu0 }
 0x4b5   :  { %v4022_v16 = vld [vmem:[#allocation8 + $0x80] sm:$0xff] }
 0x4b6   :  { %13491 = vst [vmem:[#allocation90_spill] sm:$0xff] %v9859_v20  ;;  %v7301_v50 = vpack.c.bf16 %v4023_v23, %v4022_v16 }
 0x4b7   :  { %v2382_v59 = vpop.f32.mrb[54].mxu0 }
 0x4b8   :  { %v9862_v27 = vadd.f32 %v9691_v9, %v2382_v59  ;;  %v2384_v8 = vpop.f32.mrb[55].mxu0  ;;  %7302 = vmatpush1.bf16.msra.mxu1 %v7301_v50  ;;  %v9876_v59 = vpop.f32.mrb[62].mxu1 }
 0x4b9   :  { %7303 = vmatprep.subr.bf16.mxu1 %v13478_v21  ;;  %13494 = vst [vmem:[#allocation93_spill] sm:$0xff] %v9876_v59  ;;  %v9878_v45 = vpop.f32.mrb[63].mxu1  ;;  %v3024_v59 = vmul.f32 %v9738_v40, %v9738_v40 }
 0x4ba   :  { %13495 = vst [vmem:[#allocation94_spill] sm:$0xff] %v9878_v45 }
 0x4bb   :  { %v2387_v24 = vpop.f32.mrb[56].mxu0 }
 0x4bc   :  { %v9870_v14 = vadd.f32 %v9699_v51, %v2387_v24  ;;  %v2389_v6 = vpop.f32.mrb[57].mxu0 }
 0x4bd   :  { %v4024_v6 = vld [vmem:[#allocation8 + $0x90] sm:$0xff] }
 0x4be   :  { %v7304_v23 = vpack.c.bf16 %v4025_v57, %v4024_v6  ;;  %v2951_v57 = vadd.f32 %v9718_v38, %v9714_v11 }
 0x4bf   :  { %v2392_v52 = vpop.f32.mrb[58].mxu0 }
 0x4c0   :  { %v9873_v9 = vadd.f32 %v9697_v55, %v2392_v52  ;;  %v2394_v48 = vpop.f32.mrb[59].mxu0  ;;  %7305 = vmatpush1.bf16.msra.mxu1 %v7304_v23  ;;  %v3021_v52 = vmul.f32 %v9718_v38, %v9718_v38  ;;  %v3023_v23 = vmul.f32 %v9730_v61, %v9730_v61 }
 0x4c1   :  { %7306 = vmatprep.subr.bf16.mxu1 %v13478_v21  ;;  %v3020_v48 = vmul.f32 %v9714_v11, %v9714_v11 }
 0x4c3   :  { %v2397_v8 = vpop.f32.mrb[60].mxu0  ;;  %v3084_v6 = vadd.f32 %v3021_v52, %v3020_v48  ;;  %v3025_v52 = vmul.f32 %v9742_v13, %v9742_v13 }
 0x4c4   :  { %v9881_v51 = vadd.f32 %v9705_v53, %v2397_v8  ;;  %v2399_v24 = vpop.f32.mrb[61].mxu0  ;;  %v3022_v53 = vmul.f32 %v9726_v41, %v9726_v41 }
 0x4c6   :  { %13496 = vst [vmem:[#allocation95_spill] sm:$0xff] %v9881_v51 }
 0x4c7   :  { %v2402_v16 = vpop.f32.mrb[62].mxu0 }
 0x4c8   :  { %v9884_v55 = vadd.f32 %v9703_v31, %v2402_v16  ;;  %v2404_v50 = vpop.f32.mrb[63].mxu0  ;;  %v2952_v16 = vadd.f32 %v2951_v57, %v9726_v41 }
 0x4c9   :  { %v3085_v50 = vadd.f32 %v3084_v6, %v3022_v53  ;;  %v3026_v53 = vmul.f32 %v9750_v0, %v9750_v0 }
 0x4ca   :  { %v2953_v34 = vadd.f32 %v2952_v16, %v9730_v61 }
 0x4cb   :  { %v2407_v8 = vpop.f32.mrb[64].mxu0 }
 0x4cc   :  { %v9896_v24 = vadd.f32 %v9711_v49, %v2407_v8  ;;  %v2409_v31 = vpop.f32.mrb[65].mxu0  ;;  %v3086_v49 = vadd.f32 %v3085_v50, %v3023_v23  ;;  %v2954_v48 = vadd.f32 %v2953_v34, %v9738_v40  ;;  %v3028_v34 = vmul.f32 %v9760_v39, %v9760_v39 }
 0x4ce   :  { %13497 = vst [vmem:[#allocation96_spill] sm:$0xff] %v9896_v24  ;;  %v3087_v8 = vadd.f32 %v3086_v49, %v3024_v59  ;;  %v2955_v31 = vadd.f32 %v2954_v48, %v9742_v13 }
 0x4cf   :  { %v2412_v45 = vpop.f32.mrb[66].mxu0 }
 0x4d0   :  { %v9905_v26 = vadd.f32 %v9709_v46, %v2412_v45  ;;  %v2414_v38 = vpop.f32.mrb[67].mxu0  ;;  %v3088_v46 = vadd.f32 %v3087_v8, %v3025_v52  ;;  %v2956_v45 = vadd.f32 %v2955_v31, %v9750_v0  ;;  %v3029_v52 = vmul.f32 %v9763_v18, %v9763_v18 }
 0x4d1   :  { %v3027_v38 = vmul.f32 %v9753_v63, %v9753_v63 }
 0x4d2   :  { %v3089_v23 = vadd.f32 %v3088_v46, %v3026_v53  ;;  %v2957_v50 = vadd.f32 %v2956_v45, %v9753_v63  ;;  %v3030_v53 = vmul.f32 %v9771_v5, %v9771_v5 }
 0x4d3   :  { %v2417_v57 = vpop.f32.mrb[68].mxu0 }
 0x4d4   :  { %v9914_v6 = vadd.f32 %v9723_v42, %v2417_v57  ;;  %v2419_v16 = vpop.f32.mrb[69].mxu0  ;;  %v3090_v42 = vadd.f32 %v3089_v23, %v3027_v38  ;;  %v2958_v8 = vadd.f32 %v2957_v50, %v9760_v39  ;;  %v3031_v38 = vmul.f32 %v9775_v4, %v9775_v4 }
 0x4d6   :  { %13498 = vst [vmem:[#allocation97_spill] sm:$0xff] %v9914_v6  ;;  %v3091_v57 = vadd.f32 %v3090_v42, %v3028_v34  ;;  %v2959_v16 = vadd.f32 %v2958_v8, %v9763_v18  ;;  %v3032_v34 = vmul.f32 %v9782_v32, %v9782_v32 }
 0x4d7   :  { %v2422_v59 = vpop.f32.mrb[70].mxu0 }
 0x4d8   :  { %v9923_v49 = vadd.f32 %v9721_v15, %v2422_v59  ;;  %v2424_v48 = vpop.f32.mrb[71].mxu0  ;;  %v3092_v15 = vadd.f32 %v3091_v57, %v3029_v52  ;;  %v2960_v23 = vadd.f32 %v2959_v16, %v9771_v5  ;;  %v3033_v52 = vmul.f32 %v9785_v1, %v9785_v1 }
 0x4da   :  { %v3093_v59 = vadd.f32 %v3092_v15, %v3030_v53  ;;  %v2961_v48 = vadd.f32 %v2960_v23, %v9775_v4  ;;  %v3034_v53 = vmul.f32 %v9793_v30, %v9793_v30 }
 0x4db   :  { %v2427_v31 = vpop.f32.mrb[72].mxu0 }
 0x4dc   :  { %v9932_v46 = vadd.f32 %v9735_v10, %v2427_v31  ;;  %v2429_v45 = vpop.f32.mrb[73].mxu0  ;;  %v3094_v10 = vadd.f32 %v3093_v59, %v3031_v38  ;;  %v2962_v57 = vadd.f32 %v2961_v48, %v9782_v32  ;;  %v3035_v38 = vmul.f32 %v9796_v33, %v9796_v33 }
 0x4de   :  { %13499 = vst [vmem:[#allocation98_spill] sm:$0xff] %v9932_v46  ;;  %v3095_v31 = vadd.f32 %v3094_v10, %v3032_v34  ;;  %v2963_v45 = vadd.f32 %v2962_v57, %v9785_v1  ;;  %v3036_v34 = vmul.f32 %v9804_v3, %v9804_v3 }
 0x4df   :  { %v2432_v50 = vpop.f32.mrb[74].mxu0 }
 0x4e0   :  { %v9941_v42 = vadd.f32 %v9733_v12, %v2432_v50  ;;  %v2434_v8 = vpop.f32.mrb[75].mxu0  ;;  %v3096_v12 = vadd.f32 %v3095_v31, %v3033_v52  ;;  %v2964_v59 = vadd.f32 %v2963_v45, %v9793_v30  ;;  %v3037_v52 = vmul.f32 %v9807_v58, %v9807_v58 }
 0x4e2   :  { %v3097_v50 = vadd.f32 %v3096_v12, %v3034_v53  ;;  %v2965_v8 = vadd.f32 %v2964_v59, %v9796_v33  ;;  %v3038_v53 = vmul.f32 %v9815_v25, %v9815_v25 }
 0x4e3   :  { %v2437_v16 = vpop.f32.mrb[76].mxu0 }
 0x4e4   :  { %v9950_v15 = vadd.f32 %v9747_v36, %v2437_v16  ;;  %v2439_v23 = vpop.f32.mrb[77].mxu0  ;;  %v3098_v36 = vadd.f32 %v3097_v50, %v3035_v38  ;;  %v2966_v31 = vadd.f32 %v2965_v8, %v9804_v3  ;;  %v3039_v38 = vmul.f32 %v9818_v56, %v9818_v56 }
 0x4e6   :  { %13500 = vst [vmem:[#allocation99_spill] sm:$0xff] %v9950_v15  ;;  %v3099_v16 = vadd.f32 %v3098_v36, %v3036_v34  ;;  %v2967_v23 = vadd.f32 %v2966_v31, %v9807_v58  ;;  %v3040_v34 = vmul.f32 %v9826_v54, %v9826_v54 }
 0x4e7   :  { %v2442_v48 = vpop.f32.mrb[78].mxu0 }
 0x4e8   :  { %v9959_v10 = vadd.f32 %v9745_v19, %v2442_v48  ;;  %v2444_v57 = vpop.f32.mrb[79].mxu0  ;;  %v3100_v19 = vadd.f32 %v3099_v16, %v3037_v52  ;;  %v2968_v50 = vadd.f32 %v2967_v23, %v9815_v25  ;;  %v3041_v52 = vmul.f32 %v9829_v47, %v9829_v47 }
 0x4ea   :  { %v3101_v48 = vadd.f32 %v3100_v19, %v3038_v53  ;;  %v2969_v57 = vadd.f32 %v2968_v50, %v9818_v56  ;;  %v3042_v53 = vmul.f32 %v9837_v2, %v9837_v2 }
 0x4eb   :  { %v2447_v45 = vpop.f32.mrb[80].mxu0 }
 0x4ec   :  { %v9968_v12 = vadd.f32 %v9757_v7, %v2447_v45  ;;  %v2449_v59 = vpop.f32.mrb[81].mxu0  ;;  %v3102_v7 = vadd.f32 %v3101_v48, %v3039_v38  ;;  %v2970_v16 = vadd.f32 %v2969_v57, %v9826_v54  ;;  %v3043_v38 = vmul.f32 %v9840_v43, %v9840_v43 }
 0x4ee   :  { %13501 = vst [vmem:[#allocation100_spill] sm:$0xff] %v9968_v12  ;;  %v3103_v45 = vadd.f32 %v3102_v7, %v3040_v34  ;;  %v2971_v59 = vadd.f32 %v2970_v16, %v9829_v47  ;;  %v3044_v34 = vmul.f32 %v9848_v22, %v9848_v22 }
 0x4ef   :  { %v2452_v8 = vpop.f32.mrb[82].mxu0 }
 0x4f0   :  { %v9977_v36 = vadd.f32 %v9755_v60, %v2452_v8  ;;  %v2454_v31 = vpop.f32.mrb[83].mxu0  ;;  %v3104_v60 = vadd.f32 %v3103_v45, %v3041_v52  ;;  %v2972_v48 = vadd.f32 %v2971_v59, %v9837_v2  ;;  %v3045_v52 = vmul.f32 %v9851_v28, %v9851_v28 }
 0x4f2   :  { %13502 = vst [vmem:[#allocation101_spill] sm:$0xff] %v9977_v36  ;;  %v3105_v8 = vadd.f32 %v3104_v60, %v3042_v53  ;;  %v2973_v31 = vadd.f32 %v2972_v48, %v9840_v43  ;;  %v3046_v53 = vmul.f32 %v9859_v20, %v9859_v20 }
 0x4f3   :  { %v2457_v23 = vpop.f32.mrb[84].mxu0 }
 0x4f4   :  { %v9986_v19 = vadd.f32 %v9768_v37, %v2457_v23  ;;  %v2459_v50 = vpop.f32.mrb[85].mxu0  ;;  %v3106_v37 = vadd.f32 %v3105_v8, %v3043_v38  ;;  %v2974_v45 = vadd.f32 %v2973_v31, %v9848_v22  ;;  %v3047_v38 = vmul.f32 %v9862_v27, %v9862_v27 }
 0x4f6   :  { %13503 = vst [vmem:[#allocation102_spill] sm:$0xff] %v9986_v19  ;;  %v3107_v23 = vadd.f32 %v3106_v37, %v3044_v34  ;;  %v2975_v50 = vadd.f32 %v2974_v45, %v9851_v28  ;;  %v3048_v34 = vmul.f32 %v9870_v14, %v9870_v14 }
 0x4f7   :  { %v2462_v57 = vpop.f32.mrb[86].mxu0 }
 0x4f8   :  { %v9995_v7 = vadd.f32 %v9766_v29, %v2462_v57  ;;  %v2464_v16 = vpop.f32.mrb[87].mxu0  ;;  %v3108_v29 = vadd.f32 %v3107_v23, %v3045_v52  ;;  %v2976_v8 = vadd.f32 %v2975_v50, %v9859_v20  ;;  %v3049_v52 = vmul.f32 %v9873_v9, %v9873_v9 }
 0x4fa   :  { %13504 = vst [vmem:[#allocation103_spill] sm:$0xff] %v9995_v7  ;;  %v3109_v57 = vadd.f32 %v3108_v29, %v3046_v53  ;;  %v2977_v16 = vadd.f32 %v2976_v8, %v9862_v27  ;;  %v3050_v53 = vmul.f32 %v9881_v51, %v9881_v51 }
 0x4fb   :  { %v2467_v59 = vpop.f32.mrb[88].mxu0 }
 0x4fc   :  { %v10004_v60 = vadd.f32 %v9779_v35, %v2467_v59  ;;  %v2469_v48 = vpop.f32.mrb[89].mxu0  ;;  %v3110_v35 = vadd.f32 %v3109_v57, %v3047_v38  ;;  %v2978_v23 = vadd.f32 %v2977_v16, %v9870_v14  ;;  %v4026_v59 = vld [vmem:[#allocation8 + $0xa0] sm:$0xff]  ;;  %v3051_v57 = vmul.f32 %v9884_v55, %v9884_v55 }
 0x4fd   :  { %v4027_v48 = vld [vmem:[#allocation8 + $0xa8] sm:$0xff] }
 0x4fe   :  { %v3111_v50 = vadd.f32 %v3110_v35, %v3048_v34  ;;  %v7307_v20 = vpack.c.bf16 %v4027_v48, %v4026_v59  ;;  %v2979_v8 = vadd.f32 %v2978_v23, %v9873_v9  ;;  %v4028_v34 = vld [vmem:[#allocation8 + $0xb0] sm:$0xff]  ;;  %v3052_v59 = vmul.f32 %v9896_v24, %v9896_v24 }
 0x4ff   :  { %v2472_v31 = vpop.f32.mrb[90].mxu0 }
 0x500   :  { %v10013_v37 = vadd.f32 %v9777_v44, %v2472_v31  ;;  %v2474_v45 = vpop.f32.mrb[91].mxu0  ;;  %v3112_v38 = vadd.f32 %v3111_v50, %v3049_v52  ;;  %7308 = vmatpush1.bf16.msra.mxu1 %v7307_v20  ;;  %v2980_v16 = vadd.f32 %v2979_v8, %v9881_v51  ;;  %v3053_v51 = vmul.f32 %v9905_v26, %v9905_v26 }
 0x501   :  { %7309 = vmatprep.subr.bf16.mxu1 %v13478_v21  ;;  %v4029_v45 = vld [vmem:[#allocation8 + $0xb8] sm:$0xff] }
 0x502   :  { %v3113_v35 = vadd.f32 %v3112_v38, %v3050_v53  ;;  %v7310_v48 = vpack.c.bf16 %v4029_v45, %v4028_v34  ;;  %v2981_v52 = vadd.f32 %v2980_v16, %v9884_v55  ;;  %v4030_v38 = vld [vmem:[#allocation8 + $0xc0] sm:$0xff]  ;;  %v4031_v34 = vld [vmem:[#allocation8 + $0xc8] sm:$0xff] }
 0x503   :  { %v2477_v29 = vpop.f32.mrb[92].mxu0 }
 0x504   :  { %v10022_v44 = vadd.f32 %v9790_v17, %v2477_v29  ;;  %v2479_v31 = vpop.f32.mrb[93].mxu0  ;;  %v4134_v17 = vld [vmem:[#allocation8 + $0x400] sm:$0xff]  ;;  %v4135_v29 = vld [vmem:[#allocation8 + $0x408] sm:$0xff]  ;;  %v3114_v8 = vadd.f32 %v3113_v35, %v3051_v57  ;;  %7311 = vmatpush1.bf16.msra.mxu1 %v7310_v48  ;;  %v2982_v53 = vadd.f32 %v2981_v52, %v9896_v24  ;;  %v4136_v57 = vld [vmem:[#allocation8 + $0x410] sm:$0xff] }
 0x505   :  { %v10034_v31 = vpack.c.bf16 %v4135_v29, %v4134_v17  ;;  %7312 = vmatprep.subr.bf16.mxu1 %v13478_v21  ;;  %v4137_v35 = vld [vmem:[#allocation8 + $0x418] sm:$0xff]  ;;  %v13506_v17 = vld [vmem:[#allocation81_spill] sm:$0xff] }
 0x506   :  { %v3115_v16 = vadd.f32 %v3114_v8, %v3052_v59  ;;  %v2983_v48 = vadd.f32 %v2982_v53, %v9905_v26  ;;  %v3055_v59 = vmul.f32 %v9923_v49, %v9923_v49 }
 0x507   :  { %v2482_v23 = vpop.f32.mrb[94].mxu0  ;;  %13505 = vst [vmem:[#allocation104_spill] sm:$0xff] %v10034_v31  ;;  %7469 = vmatprep.subr.bf16.mxu0 %v10034_v31 }
 0x508   :  { %v10032_v50 = vadd.f32 %v9788_v62, %v2482_v23  ;;  %v2484_v20 = vpop.f32.mrb[95].mxu0  ;;  %v3054_v62 = vmul.f32 %v9914_v6, %v9914_v6  ;;  %v7313_v23 = vpack.c.bf16 %v4031_v34, %v4030_v38  ;;  %7471 = vmatpush3.bf16.msra.mxu0 %v10034_v31  ;;  %v3116_v24 = vadd.f32 %v3115_v16, %v3053_v51  ;;  %v4032_v38 = vld [vmem:[#allocation8 + $0xd0] sm:$0xff]  ;;  %v4033_v34 = vld [vmem:[#allocation8 + $0xd8] sm:$0xff]  ;;  %v4138_v51 = vld [vmem:[#allocation8 + $0x420] sm:$0xff] }
 0x509   :  { %v10048_v20 = vpack.c.bf16 %v4137_v35, %v4136_v57  ;;  %v2984_v8 = vadd.f32 %v2983_v48, %v9914_v6  ;;  %v7316_v57 = vpack.c.bf16 %v4033_v34, %v4032_v38  ;;  %v4139_v16 = vld [vmem:[#allocation8 + $0x428] sm:$0xff]  ;;  %v13508_v35 = vld [vmem:[#allocation79_spill] sm:$0xff]  ;;  %v4034_v38 = vld [vmem:[#allocation8 + $0xe0] sm:$0xff] }
 0x50a   :  { %7314 = vmatpush1.bf16.msra.mxu1 %v7313_v23  ;;  %v3117_v53 = vadd.f32 %v3116_v24, %v3054_v62  ;;  %v10062_v31 = vpack.c.bf16 %v4139_v16, %v4138_v51  ;;  %v3057_v24 = vmul.f32 %v9941_v42, %v9941_v42  ;;  %v4035_v34 = vld [vmem:[#allocation8 + $0xe8] sm:$0xff]  ;;  %v13510_v16 = vld [vmem:[#allocation83_spill] sm:$0xff] }
 0x50b   :  { %v2487_v45 = vpop.f32.mrb[96].mxu0  ;;  %13507 = vst [vmem:[#allocation81_spill] sm:$0xff] %v10048_v20  ;;  %7315 = vmatprep.subr.bf16.mxu1 %v13478_v21  ;;  %7473 = vmatprep.subr.bf16.mxu0 %v10048_v20  ;;  %v2985_v23 = vadd.f32 %v2984_v8, %v9923_v49  ;;  %v7319_v51 = vpack.c.bf16 %v4035_v34, %v4034_v38  ;;  %v4036_v38 = vld [vmem:[#allocation8 + $0xf0] sm:$0xff]  ;;  %v4037_v34 = vld [vmem:[#allocation8 + $0xf8] sm:$0xff] }
 0x50c   :  { %v10046_v29 = vadd.f32 %v13506_v17, %v2487_v45  ;;  %v2489_v52 = vpop.f32.mrb[97].mxu0  ;;  %v3056_v45 = vmul.f32 %v9932_v46, %v9932_v46  ;;  %7475 = vmatpush3.bf16.msra.mxu0 %v10048_v20  ;;  %13509 = vst [vmem:[#allocation79_spill] sm:$0xff] %v10062_v31  ;;  %v3118_v6 = vadd.f32 %v3117_v53, %v3055_v59  ;;  %v4140_v59 = vld [vmem:[#allocation8 + $0x430] sm:$0xff]  ;;  %v4141_v53 = vld [vmem:[#allocation8 + $0x438] sm:$0xff] }
 0x50d   :  { %v2986_v62 = vadd.f32 %v2985_v23, %v9932_v46  ;;  %7477 = vmatprep.subr.bf16.mxu0 %v10062_v31  ;;  %v10076_v20 = vpack.c.bf16 %v4141_v53, %v4140_v59  ;;  %v7322_v59 = vpack.c.bf16 %v4037_v34, %v4036_v38  ;;  %v13513_v53 = vld [vmem:[#allocation82_spill] sm:$0xff] }
 0x50e   :  { %7317 = vmatpush1.bf16.msra.mxu1 %v7316_v57  ;;  %v3119_v8 = vadd.f32 %v3118_v6, %v3056_v45  ;;  %v3059_v6 = vmul.f32 %v9959_v10, %v9959_v10 }
 0x50f   :  { %v2492_v17 = vpop.f32.mrb[98].mxu0  ;;  %7318 = vmatprep.subr.bf16.mxu1 %v13478_v21  ;;  %v2987_v57 = vadd.f32 %v2986_v62, %v9941_v42  ;;  %13512 = vst [vmem:[#allocation105_spill] sm:$0xff] %v10076_v20 }
 0x510   :  { %v10060_v48 = vadd.f32 %v13508_v35, %v2492_v17  ;;  %v2494_v52 = vpop.f32.mrb[99].mxu0  ;;  %v3058_v17 = vmul.f32 %v9950_v15, %v9950_v15  ;;  %7479 = vmatpush3.bf16.msra.mxu0 %v10062_v31  ;;  %v3120_v46 = vadd.f32 %v3119_v8, %v3057_v24  ;;  %v4142_v24 = vld [vmem:[#allocation8 + $0x440] sm:$0xff]  ;;  %v4143_v8 = vld [vmem:[#allocation8 + $0x448] sm:$0xff] }
 0x511   :  { %v2988_v45 = vadd.f32 %v2987_v57, %v9950_v15  ;;  %7481 = vmatprep.subr.bf16.mxu0 %v10076_v20  ;;  %v10090_v31 = vpack.c.bf16 %v4143_v8, %v4142_v24  ;;  %v13516_v24 = vld [vmem:[#allocation75_spill] sm:$0xff] }
 0x512   :  { %7320 = vmatpush1.bf16.msra.mxu1 %v7319_v51  ;;  %v3121_v62 = vadd.f32 %v3120_v46, %v3058_v17  ;;  %v3061_v46 = vmul.f32 %v9977_v36, %v9977_v36 }
 0x513   :  { %v2497_v35 = vpop.f32.mrb[100].mxu0  ;;  %7321 = vmatprep.subr.bf16.mxu1 %v13478_v21  ;;  %v2989_v51 = vadd.f32 %v2988_v45, %v9959_v10  ;;  %13515 = vst [vmem:[#allocation106_spill] sm:$0xff] %v10090_v31  ;;  %v3062_v45 = vmul.f32 %v9986_v19, %v9986_v19 }
 0x514   :  { %v10074_v23 = vadd.f32 %v13510_v16, %v2497_v35  ;;  %v2499_v52 = vpop.f32.mrb[101].mxu0  ;;  %v3060_v35 = vmul.f32 %v9968_v12, %v9968_v12  ;;  %7483 = vmatpush3.bf16.msra.mxu0 %v10076_v20  ;;  %v3122_v15 = vadd.f32 %v3121_v62, %v3059_v6  ;;  %v3494_v20 = vld [vmem:[#allocation2 + $0x1] sm:$0xff]  ;;  %v4145_v6 = vld [vmem:[#allocation8 + $0x458] sm:$0xff] }
 0x515   :  { %v2990_v17 = vadd.f32 %v2989_v51, %v9968_v12  ;;  %7485 = vmatprep.subr.bf16.mxu0 %v10090_v31  ;;  %4214 = vmatprep.mubr.f32.mxu1 %v3494_v20  ;;  %v4148_v12 = vld [vmem:[#allocation8 + $0x470] sm:$0xff] }
 0x516   :  { %13511 = vst [vmem:[#allocation83_spill] sm:$0xff] %v10074_v23  ;;  %7323 = vmatpush1.bf16.msra.mxu1 %v7322_v59  ;;  %v3123_v38 = vadd.f32 %v3122_v15, %v3060_v35  ;;  %v3063_v35 = vmul.f32 %v9995_v7, %v9995_v7 }
 0x517   :  { %v2502_v16 = vpop.f32.mrb[102].mxu0  ;;  %7324 = vmatprep.subr.bf16.mxu1 %v13478_v21  ;;  %v2991_v62 = vadd.f32 %v2990_v17, %v9977_v36  ;;  %v3064_v17 = vmul.f32 %v10004_v60, %v10004_v60  ;;  %v4039_v36 = vld [vmem:[#allocation8 + $0x108] sm:$0xff] }
 0x518   :  { %v10088_v57 = vadd.f32 %v13513_v53, %v2502_v16  ;;  %v2504_v52 = vpop.f32.mrb[103].mxu0  ;;  %7487 = vmatpush3.bf16.msra.mxu0 %v10090_v31  ;;  %v4144_v16 = vld [vmem:[#allocation8 + $0x450] sm:$0xff]  ;;  %v8297_v53 = vld [vmem:[#allocation2] sm:$0xff]  ;;  %v3124_v15 = vadd.f32 %v3123_v38, %v3061_v46  ;;  %v13519_v38 = vld [vmem:[#allocation84_spill] sm:$0xff] }
 0x519   :  { %v10104_v51 = vpack.c.bf16 %v4145_v6, %v4144_v16  ;;  %4215 = vmatmul.mubr.f32.vlgmr.msra.gmra.mrb[64].mxu1 %v8297_v53  ;;  %v2992_v52 = vadd.f32 %v2991_v62, %v9986_v19  ;;  %v3495_v31 = vld [vmem:[#allocation2 + $0x9] sm:$0xff]  ;;  %v4146_v16 = vld [vmem:[#allocation8 + $0x460] sm:$0xff] }
 0x51a   :  { %13514 = vst [vmem:[#allocation82_spill] sm:$0xff] %v10088_v57  ;;  %v3125_v20 = vadd.f32 %v3124_v15, %v3062_v45  ;;  %v4147_v6 = vld [vmem:[#allocation8 + $0x468] sm:$0xff]  ;;  %4219 = vmatprep.mubr.f32.mxu1 %v3495_v31  ;;  %v3065_v45 = vmul.f32 %v10013_v37, %v10013_v37  ;;  %v4038_v15 = vld [vmem:[#allocation8 + $0x100] sm:$0xff] }
 0x51b   :  { %v2507_v34 = vpop.f32.mrb[104].mxu0  ;;  %13518 = vst [vmem:[#allocation107_spill] sm:$0xff] %v10104_v51  ;;  %7489 = vmatprep.subr.bf16.mxu0 %v10104_v51  ;;  %v2993_v46 = vadd.f32 %v2992_v52, %v9995_v7  ;;  %v10117_v62 = vpack.c.bf16 %v4147_v6, %v4146_v16  ;;  %v7325_v31 = vpack.c.bf16 %v4039_v36, %v4038_v15  ;;  %v4149_v52 = vld [vmem:[#allocation8 + $0x478] sm:$0xff] }
 0x51c   :  { %v10102_v8 = vadd.f32 %v13516_v24, %v2507_v34  ;;  %v2509_v59 = vpop.f32.mrb[105].mxu0  ;;  %7491 = vmatpush3.bf16.msra.mxu0 %v10104_v51  ;;  %v3126_v19 = vadd.f32 %v3125_v20, %v3063_v35  ;;  %v4040_v35 = vld [vmem:[#allocation8 + $0x110] sm:$0xff]  ;;  %v4041_v20 = vld [vmem:[#allocation8 + $0x118] sm:$0xff] }
 0x51d   :  { %13521 = vst [vmem:[#allocation108_spill] sm:$0xff] %v10117_v62  ;;  %4220 = vmatmul.mubr.f32.gmra.mrb[66].mxu1 %v8297_v53  ;;  %v2994_v51 = vadd.f32 %v2993_v46, %v10004_v60  ;;  %7493 = vmatprep.subr.bf16.mxu0 %v10117_v62  ;;  %v10126_v53 = vpack.c.bf16 %v4149_v52, %v4148_v12 }
 0x51e   :  { %13517 = vst [vmem:[#allocation75_spill] sm:$0xff] %v10102_v8  ;;  %v3127_v7 = vadd.f32 %v3126_v19, %v3064_v17  ;;  %7326 = vmatpush1.bf16.msra.mxu1 %v7325_v31  ;;  %v7328_v36 = vpack.c.bf16 %v4041_v20, %v4040_v35  ;;  %v3067_v19 = vmul.f32 %v10032_v50, %v10032_v50 }
 0x51f   :  { %v2512_v34 = vpop.f32.mrb[106].mxu0  ;;  %13522 = vst [vmem:[#allocation109_spill] sm:$0xff] %v10126_v53  ;;  %v2995_v6 = vadd.f32 %v2994_v51, %v10013_v37  ;;  %7327 = vmatprep.subr.bf16.mxu1 %v13478_v21  ;;  %v3068_v51 = vmul.f32 %v10046_v29, %v10046_v29  ;;  %v3069_v20 = vmul.f32 %v10060_v48, %v10060_v48 }
 0x520   :  { %v10115_v24 = vadd.f32 %v13519_v38, %v2512_v34  ;;  %v2514_v59 = vpop.f32.mrb[107].mxu0  ;;  %v3066_v34 = vmul.f32 %v10022_v44, %v10022_v44  ;;  %7495 = vmatpush3.bf16.msra.mxu0 %v10117_v62  ;;  %v13523_v38 = vld [vmem:[#allocation85_spill] sm:$0xff]  ;;  %v3128_v15 = vadd.f32 %v3127_v7, %v3065_v45 }
 0x521   :  { %7497 = vmatprep.subr.bf16.mxu0 %v10126_v53  ;;  %v2996_v12 = vadd.f32 %v2995_v6, %v10022_v44 }
 0x522   :  { %13520 = vst [vmem:[#allocation84_spill] sm:$0xff] %v10115_v24  ;;  %v3129_v17 = vadd.f32 %v3128_v15, %v3066_v34  ;;  %7329 = vmatpush1.bf16.msra.mxu1 %v7328_v36 }
 0x523   :  { %v2517_v16 = vpop.f32.mrb[108].mxu0  ;;  %v2997_v31 = vadd.f32 %v2996_v12, %v10032_v50  ;;  %7330 = vmatprep.subr.bf16.mxu1 %v13478_v21  ;;  %v13527_v12 = vld [vmem:[#allocation87_spill] sm:$0xff] }
 0x524   :  { %v10130_v59 = vadd.f32 %v13523_v38, %v2517_v16  ;;  %v2519_v46 = vpop.f32.mrb[109].mxu0  ;;  %7499 = vmatpush3.bf16.msra.mxu0 %v10126_v53  ;;  %v13525_v16 = vld [vmem:[#allocation76_spill] sm:$0xff]  ;;  %v3130_v35 = vadd.f32 %v3129_v17, %v3067_v19  ;;  %v3070_v38 = vmul.f32 %v10074_v23, %v10074_v23  ;;  %v3071_v19 = vmul.f32 %v10088_v57, %v10088_v57  ;;  %v13529_v53 = vld [vmem:[#allocation86_spill] sm:$0xff] }
 0x525   :  { %v2998_v34 = vadd.f32 %v2997_v31, %v10046_v29 }
 0x526   :  { %13524 = vst [vmem:[#allocation85_spill] sm:$0xff] %v10130_v59  ;;  %v3131_v6 = vadd.f32 %v3130_v35, %v3068_v51  ;;  %v3072_v51 = vmul.f32 %v10102_v8, %v10102_v8 }
 0x527   :  { %v2522_v52 = vpop.f32.mrb[110].mxu0  ;;  %v2999_v15 = vadd.f32 %v2998_v34, %v10060_v48 }
 0x528   :  { %v10142_v7 = vadd.f32 %v13525_v16, %v2522_v52  ;;  %v2524_v45 = vpop.f32.mrb[111].mxu0  ;;  %v3132_v36 = vadd.f32 %v3131_v6, %v3069_v20  ;;  %v3073_v20 = vmul.f32 %v10115_v24, %v10115_v24 }
 0x529   :  { %v3000_v17 = vadd.f32 %v2999_v15, %v10074_v23  ;;  %v4042_v15 = vld [vmem:[#allocation8 + $0x120] sm:$0xff]  ;;  %v3074_v23 = vmul.f32 %v10130_v59, %v10130_v59 }
 0x52a   :  { %13526 = vst [vmem:[#allocation76_spill] sm:$0xff] %v10142_v7  ;;  %v3133_v45 = vadd.f32 %v3132_v36, %v3070_v38  ;;  %v4043_v38 = vld [vmem:[#allocation8 + $0x128] sm:$0xff] }
 0x52b   :  { %v2527_v46 = vpop.f32.mrb[112].mxu0  ;;  %v3001_v35 = vadd.f32 %v3000_v17, %v10088_v57  ;;  %v13531_v17 = vld [vmem:[#allocation89_spill] sm:$0xff] }
 0x52c   :  { %v10152_v52 = vadd.f32 %v13527_v12, %v2527_v46  ;;  %v2529_v16 = vpop.f32.mrb[113].mxu0  ;;  %v3134_v46 = vadd.f32 %v3133_v45, %v3071_v19 }
 0x52d   :  { %v3002_v12 = vadd.f32 %v3001_v35, %v10102_v8  ;;  %v3075_v35 = vmul.f32 %v10142_v7, %v10142_v7 }
 0x52e   :  { %13528 = vst [vmem:[#allocation87_spill] sm:$0xff] %v10152_v52  ;;  %v3135_v6 = vadd.f32 %v3134_v46, %v3072_v51 }
 0x52f   :  { %v2532_v31 = vpop.f32.mrb[114].mxu0  ;;  %v3003_v36 = vadd.f32 %v3002_v12, %v10115_v24  ;;  %v3076_v12 = vmul.f32 %v10152_v52, %v10152_v52 }
 0x530   :  { %v10161_v62 = vadd.f32 %v13529_v53, %v2532_v31  ;;  %v2534_v34 = vpop.f32.mrb[115].mxu0  ;;  %v7331_v31 = vpack.c.bf16 %v4043_v38, %v4042_v15  ;;  %v3136_v19 = vadd.f32 %v3135_v6, %v3073_v20 }
 0x531   :  { %v3004_v45 = vadd.f32 %v3003_v36, %v10130_v59 }
 0x532   :  { %13530 = vst [vmem:[#allocation86_spill] sm:$0xff] %v10161_v62  ;;  %7332 = vmatpush1.bf16.msra.mxu1 %v7331_v31  ;;  %v3137_v34 = vadd.f32 %v3136_v19, %v3074_v23  ;;  %v3077_v38 = vmul.f32 %v10161_v62, %v10161_v62  ;;  %v13535_v19 = vld [vmem:[#allocation92_spill] sm:$0xff] }
 0x533   :  { %v2537_v16 = vpop.f32.mrb[116].mxu0  ;;  %7333 = vmatprep.subr.bf16.mxu1 %v13478_v21  ;;  %v3005_v46 = vadd.f32 %v3004_v45, %v10142_v7 }
 0x534   :  { %v10170_v57 = vadd.f32 %v13531_v17, %v2537_v16  ;;  %v2539_v53 = vpop.f32.mrb[117].mxu0  ;;  %v13533_v16 = vld [vmem:[#allocation88_spill] sm:$0xff]  ;;  %v3138_v20 = vadd.f32 %v3137_v34, %v3075_v35 }
 0x535   :  { %v3006_v6 = vadd.f32 %v3005_v46, %v10152_v52 }
 0x536   :  { %13532 = vst [vmem:[#allocation89_spill] sm:$0xff] %v10170_v57  ;;  %v3139_v53 = vadd.f32 %v3138_v20, %v3076_v12  ;;  %v3078_v23 = vmul.f32 %v10170_v57, %v10170_v57  ;;  %v13537_v20 = vld [vmem:[#allocation91_spill] sm:$0xff] }
 0x537   :  { %v2542_v51 = vpop.f32.mrb[118].mxu0  ;;  %v3007_v31 = vadd.f32 %v3006_v6, %v10161_v62 }
 0x538   :  { %v10180_v17 = vadd.f32 %v13533_v16, %v2542_v51  ;;  %v2544_v15 = vpop.f32.mrb[119].mxu0  ;;  %v3140_v51 = vadd.f32 %v3139_v53, %v3077_v38 }
 0x539   :  { %v3008_v16 = vadd.f32 %v3007_v31, %v10170_v57  ;;  %v4044_v31 = vld [vmem:[#allocation8 + $0x130] sm:$0xff] }
 0x53a   :  { %13534 = vst [vmem:[#allocation88_spill] sm:$0xff] %v10180_v17  ;;  %v3079_v35 = vmul.f32 %v10180_v17, %v10180_v17  ;;  %v3141_v46 = vadd.f32 %v3140_v51, %v3078_v23  ;;  %v13539_v51 = vld [vmem:[#allocation94_spill] sm:$0xff] }
 0x53b   :  { %v2547_v36 = vpop.f32.mrb[120].mxu0  ;;  %v3009_v15 = vadd.f32 %v3008_v16, %v10180_v17 }
 0x53c   :  { %v10189_v45 = vadd.f32 %v13535_v19, %v2547_v36  ;;  %v2549_v7 = vpop.f32.mrb[121].mxu0  ;;  %v3142_v36 = vadd.f32 %v3141_v46, %v3079_v35  ;;  %v4045_v19 = vld [vmem:[#allocation8 + $0x138] sm:$0xff] }
 0x53d   :  { %v7334_v52 = vpack.c.bf16 %v4045_v19, %v4044_v31 }
 0x53e   :  { %13536 = vst [vmem:[#allocation92_spill] sm:$0xff] %v10189_v45  ;;  %v3080_v12 = vmul.f32 %v10189_v45, %v10189_v45  ;;  %v3010_v7 = vadd.f32 %v3009_v15, %v10189_v45  ;;  %v4046_v45 = vld [vmem:[#allocation8 + $0x140] sm:$0xff] }
 0x53f   :  { %v2552_v34 = vpop.f32.mrb[122].mxu0  ;;  %7335 = vmatpush1.bf16.msra.mxu1 %v7334_v52 }
 0x540   :  { %v10198_v6 = vadd.f32 %v13537_v20, %v2552_v34  ;;  %v2554_v62 = vpop.f32.mrb[123].mxu0  ;;  %v3143_v57 = vadd.f32 %v3142_v36, %v3080_v12  ;;  %7336 = vmatprep.subr.bf16.mxu1 %v13478_v21  ;;  %v13541_v20 = vld [vmem:[#allocation93_spill] sm:$0xff] }
 0x542   :  { %13538 = vst [vmem:[#allocation91_spill] sm:$0xff] %v10198_v6  ;;  %v3081_v38 = vmul.f32 %v10198_v6, %v10198_v6  ;;  %v3011_v23 = vadd.f32 %v3010_v7, %v10198_v6 }
 0x543   :  { %v2557_v53 = vpop.f32.mrb[124].mxu0 }
 0x544   :  { %v10205_v16 = vadd.f32 %v13539_v51, %v2557_v53  ;;  %v2559_v17 = vpop.f32.mrb[125].mxu0  ;;  %v3144_v34 = vadd.f32 %v3143_v57, %v3081_v38 }
 0x546   :  { %13540 = vst [vmem:[#allocation94_spill] sm:$0xff] %v10205_v16  ;;  %v3012_v62 = vadd.f32 %v3011_v23, %v10205_v16  ;;  %v3082_v35 = vmul.f32 %v10205_v16, %v10205_v16  ;;  %v4047_v16 = vld [vmem:[#allocation8 + $0x148] sm:$0xff] }
 0x547   :  { %v2562_v46 = vpop.f32.mrb[126].mxu0  ;;  %v7337_v24 = vpack.c.bf16 %v4047_v16, %v4046_v45  ;;  %v3161_v16 = vld [vmem:[%s13150_s3] sm:$0x1] }
 0x548   :  { %v3145_v15 = vadd.f32 %v3144_v34, %v3082_v35  ;;  %v2948_v12 = vadd.f32 %v13541_v20, %v2562_v46  ;;  %v2564_v36 = vpop.f32.mrb[127].mxu0 }
 0x549   :  { %7338 = vmatpush1.bf16.msra.mxu1 %v7337_v24  ;;  %v3164_v36 = vlaneseq  ;;  %v3159_v24 = vld [vmem:[%s13149_s2] sm:$0x1] }
 0x54a   :  { %v3013_v7 = vadd.f32 %v3012_v62, %v2948_v12  ;;  %v3083_v6 = vmul.f32 %v2948_v12, %v2948_v12  ;;  %7339 = vmatprep.subr.bf16.mxu1 %v13478_v21 }
 0x54c   :  { %v3014_v53 = vrot.slane %v3013_v7, 4  ;;  %v3146_v51 = vadd.f32 %v3145_v15, %v3083_v6 }
 0x54e   :  { %v3015_v17 = vadd.f32 %v3014_v53, %v3013_v7  ;;  %v3147_v31 = vrot.slane %v3146_v51, 4  ;;  %v4048_v7 = vld [vmem:[#allocation8 + $0x150] sm:$0xff]  ;;  %v4049_v53 = vld [vmem:[#allocation8 + $0x158] sm:$0xff] }
 0x550   :  { %v3016_v57 = vrot.slane %v3015_v17, 2  ;;  %v3148_v38 = vadd.f32 %v3147_v31, %v3146_v51  ;;  %v7340_v51 = vpack.c.bf16 %v4049_v53, %v4048_v7  ;;  %v13545_v7 = vld [vmem:[#allocation95_spill] sm:$0xff] }
 0x552   :  { %v3017_v19 = vadd.f32 %v3016_v57, %v3015_v17  ;;  %v3149_v23 = vrot.slane %v3148_v38, 2  ;;  %v3165_v17 = vshrl.u32 %v3164_v36, 7  ;;  %7341 = vmatpush1.bf16.msra.mxu1 %v7340_v51  ;;  %v13544_v36 = vld [vmem:[#allocation90_spill] sm:$0xff]  ;;  %v13546_v51 = vld [vmem:[#allocation96_spill] sm:$0xff] }
 0x553   :  { %7342 = vmatprep.subr.bf16.mxu1 %v13478_v21  ;;  %v13565_v21 = vld [vmem:[#allocation87_spill] sm:$0xff] }
 0x554   :  { %v3018_v52 = vrot.slane %v3017_v19, 1  ;;  %v3150_v59 = vadd.f32 %v3149_v23, %v3148_v38  ;;  %v10217_v45 = vsub.s32 0, %v3165_v17  ;;  %v13547_v17 = vld [vmem:[#allocation97_spill] sm:$0xff] }
 0x556   :  { %v3019_v8 = vadd.f32 %v3018_v52, %v3017_v19  ;;  %v3151_v34 = vrot.slane %v3150_v59, 1  ;;  %13542 = vst [vmem:[#allocation93_spill] sm:$0xff] %v10217_v45  ;;  %v13543_v52 = vld [vmem:[#allocation77_spill] sm:$0xff] }
 0x558   :  { %v3152_v62 = vadd.f32 %v3151_v34, %v3150_v59  ;;  %v3153_v35 = vmul.f32 0.001953125, %v3019_v8 }
 0x55a   :  { %v3154_v46 = vmul.f32 0.001953125, %v3152_v62  ;;  %v3155_v6 = vmul.f32 %v3153_v35, %v3153_v35 }
 0x55c   :  { %v3156_v15 = vsub.f32 %v3154_v46, %v3155_v6 }
 0x55e   :  { %v3157_v20 = vadd.f32 1e-05, %v3156_v15 }
 0x560   :  { %8292 = vrsqrt.f32 %v3157_v20 }
 0x56a   :  { %v8293_v8 = vpop.eup %8292 }
 0x56b   :  { %v3160_v59 = vmul.f32 %v8293_v8, %v3159_v24  ;;  %v13548_v8 = vld [vmem:[#allocation98_spill] sm:$0xff] }
 0x56d   :  { %v3162_v31 = vmul.f32 %v3160_v59, %v3153_v35  ;;  %v10223_v57 = vrot.slane %v3160_v59, %v10217_v45 }
 0x56f   :  { %v3163_v38 = vsub.f32 %v3161_v16, %v3162_v31  ;;  %v3231_v19 = vmul.f32 %v10223_v57, %v2948_v12  ;;  %v10228_v23 = vmul.f32 %v10223_v57, %v9714_v11  ;;  %v10232_v34 = vmul.f32 %v10223_v57, %v13543_v52  ;;  %v13549_v16 = vld [vmem:[#allocation99_spill] sm:$0xff] }
 0x570   :  { %v10236_v62 = vmul.f32 %v10223_v57, %v9726_v41  ;;  %v10240_v35 = vmul.f32 %v10223_v57, %v9730_v61  ;;  %v10244_v46 = vmul.f32 %v10223_v57, %v9738_v40  ;;  %v10248_v11 = vmul.f32 %v10223_v57, %v9742_v13 }
 0x571   :  { %v10251_v12 = vrot.slane %v3163_v38, %v10217_v45  ;;  %v10255_v6 = vmul.f32 %v10223_v57, %v9750_v0  ;;  %v10259_v41 = vmul.f32 %v10223_v57, %v9753_v63  ;;  %v10263_v61 = vmul.f32 %v10223_v57, %v9760_v39  ;;  %v13550_v38 = vld [vmem:[#allocation100_spill] sm:$0xff] }
 0x572   :  { %v10267_v40 = vmul.f32 %v10223_v57, %v9763_v18  ;;  %v10271_v13 = vmul.f32 %v10223_v57, %v9771_v5  ;;  %v10275_v0 = vmul.f32 %v10223_v57, %v9775_v4  ;;  %v10279_v63 = vmul.f32 %v10223_v57, %v9782_v32  ;;  %v13563_v45 = vld [vmem:[#allocation76_spill] sm:$0xff] }
 0x573   :  { %v3301_v15 = vadd.f32 %v10251_v12, %v3231_v19  ;;  %v10284_v39 = vmul.f32 %v10223_v57, %v9785_v1  ;;  %v10288_v18 = vmul.f32 %v10223_v57, %v9793_v30  ;;  %v10292_v5 = vmul.f32 %v10223_v57, %v9796_v33  ;;  %v13551_v19 = vld [vmem:[#allocation101_spill] sm:$0xff] }
 0x574   :  { %v10296_v4 = vmul.f32 %v10223_v57, %v9804_v3  ;;  %v10300_v32 = vmul.f32 %v10223_v57, %v9807_v58  ;;  %v10304_v1 = vmul.f32 %v10223_v57, %v9815_v25  ;;  %v10308_v30 = vmul.f32 %v10223_v57, %v9818_v56 }
 0x575   :  { %v3365_v20 = vmax.f32 %v3301_v15, 0.0  ;;  %v10312_v33 = vmul.f32 %v10223_v57, %v9826_v54  ;;  %v10316_v3 = vmul.f32 %v10223_v57, %v9829_v47  ;;  %v10320_v58 = vmul.f32 %v10223_v57, %v9837_v2  ;;  %v13552_v15 = vld [vmem:[#allocation102_spill] sm:$0xff] }
 0x576   :  { %v10324_v25 = vmul.f32 %v10223_v57, %v9840_v43  ;;  %v10328_v56 = vmul.f32 %v10223_v57, %v9848_v22  ;;  %v10332_v54 = vmul.f32 %v10223_v57, %v9851_v28  ;;  %v10336_v47 = vmul.f32 %v10223_v57, %v13544_v36 }
 0x577   :  { %v10340_v2 = vmul.f32 %v10223_v57, %v9862_v27  ;;  %v10344_v43 = vmul.f32 %v10223_v57, %v9870_v14  ;;  %v10348_v22 = vmul.f32 %v10223_v57, %v9873_v9  ;;  %v10352_v28 = vmul.f32 %v10223_v57, %v13545_v7  ;;  %3429 = vst [vmem:[#allocation2 + $0x339] sm:$0xff] %v3365_v20  ;;  %v13553_v20 = vld [vmem:[#allocation103_spill] sm:$0xff] }
 0x578   :  { %v10356_v53 = vmul.f32 %v10223_v57, %v9884_v55  ;;  %v10360_v27 = vmul.f32 %v10223_v57, %v13546_v51  ;;  %v10364_v14 = vmul.f32 %v10223_v57, %v9905_v26  ;;  %v10368_v9 = vmul.f32 %v10223_v57, %v13547_v17 }
 0x579   :  { %v10372_v24 = vmul.f32 %v10223_v57, %v9923_v49  ;;  %v10376_v55 = vmul.f32 %v10223_v57, %v13548_v8  ;;  %v10380_v59 = vmul.f32 %v10223_v57, %v9941_v42  ;;  %v10384_v26 = vmul.f32 %v10223_v57, %v13549_v16  ;;  %v13554_v16 = vld [vmem:[#allocation83_spill] sm:$0xff] }
 0x57a   :  { %v10388_v31 = vmul.f32 %v10223_v57, %v9959_v10  ;;  %v10392_v49 = vmul.f32 %v10223_v57, %v13550_v38  ;;  %v10396_v52 = vmul.f32 %v10223_v57, %v13551_v19  ;;  %v10400_v42 = vmul.f32 %v10223_v57, %v13552_v15  ;;  %v13555_v38 = vld [vmem:[#allocation82_spill] sm:$0xff]  ;;  %v13557_v19 = vld [vmem:[#allocation75_spill] sm:$0xff]  ;;  %v13559_v15 = vld [vmem:[#allocation84_spill] sm:$0xff] }
 0x57b   :  { %v10404_v36 = vmul.f32 %v10223_v57, %v13553_v20  ;;  %v10408_v10 = vmul.f32 %v10223_v57, %v10004_v60  ;;  %v10412_v7 = vmul.f32 %v10223_v57, %v10013_v37  ;;  %v10416_v51 = vmul.f32 %v10223_v57, %v10022_v44  ;;  %v13561_v20 = vld [vmem:[#allocation85_spill] sm:$0xff] }
 0x57c   :  { %v10420_v17 = vmul.f32 %v10223_v57, %v10032_v50  ;;  %v10424_v8 = vmul.f32 %v10223_v57, %v10046_v29  ;;  %v10428_v60 = vmul.f32 %v10223_v57, %v10060_v48  ;;  %v10432_v37 = vmul.f32 %v10223_v57, %v13554_v16 }
 0x57d   :  { %v10436_v44 = vmul.f32 %v10223_v57, %v13555_v38  ;;  %v10440_v50 = vmul.f32 %v10223_v57, %v13557_v19  ;;  %v10444_v29 = vmul.f32 %v10223_v57, %v13559_v15  ;;  %v10448_v48 = vmul.f32 %v10223_v57, %v13561_v20 }
 0x57e   :  { %v10452_v16 = vmul.f32 %v10223_v57, %v13563_v45  ;;  %v10456_v38 = vmul.f32 %v10223_v57, %v13565_v21 }
 0x57f   :  { %13556 = vst [vmem:[#allocation77_spill] sm:$0xff] %v10436_v44  ;;  %13558 = vst [vmem:[#allocation90_spill] sm:$0xff] %v10440_v50  ;;  %v13567_v44 = vld [vmem:[#allocation86_spill] sm:$0xff]  ;;  %v13568_v50 = vld [vmem:[#allocation89_spill] sm:$0xff] }
 0x580   :  { %13560 = vst [vmem:[#allocation95_spill] sm:$0xff] %v10444_v29  ;;  %13562 = vst [vmem:[#allocation96_spill] sm:$0xff] %v10448_v48  ;;  %v10460_v19 = vmul.f32 %v10223_v57, %v13567_v44  ;;  %v10464_v15 = vmul.f32 %v10223_v57, %v13568_v50  ;;  %v13569_v29 = vld [vmem:[#allocation88_spill] sm:$0xff]  ;;  %v10484_v50 = vadd.f32 %v10251_v12, %v10228_v23 }
 0x581   :  { %13564 = vst [vmem:[#allocation97_spill] sm:$0xff] %v10452_v16  ;;  %13566 = vst [vmem:[#allocation98_spill] sm:$0xff] %v10456_v38  ;;  %v10468_v20 = vmul.f32 %v10223_v57, %v13569_v29  ;;  %v13570_v48 = vld [vmem:[#allocation92_spill] sm:$0xff]  ;;  %v13571_v16 = vld [vmem:[#allocation91_spill] sm:$0xff]  ;;  %v10488_v29 = vadd.f32 %v10251_v12, %v10232_v34  ;;  %v10504_v23 = vadd.f32 %v10251_v12, %v10248_v11 }
 0x582   :  { %v10472_v45 = vmul.f32 %v10223_v57, %v13570_v48  ;;  %v10476_v21 = vmul.f32 %v10223_v57, %v13571_v16  ;;  %v13572_v38 = vld [vmem:[#allocation94_spill] sm:$0xff]  ;;  %v10492_v48 = vadd.f32 %v10251_v12, %v10236_v62  ;;  %v10496_v16 = vadd.f32 %v10251_v12, %v10240_v35 }
 0x583   :  { %v10480_v44 = vmul.f32 %v10223_v57, %v13572_v38  ;;  %v10500_v57 = vadd.f32 %v10251_v12, %v10244_v46  ;;  %v10508_v34 = vadd.f32 %v10251_v12, %v10255_v6  ;;  %v10512_v62 = vadd.f32 %v10251_v12, %v10259_v41 }
 0x584   :  { %v10516_v35 = vadd.f32 %v10251_v12, %v10263_v61  ;;  %v10520_v46 = vadd.f32 %v10251_v12, %v10267_v40  ;;  %v10524_v11 = vadd.f32 %v10251_v12, %v10271_v13  ;;  %v10528_v6 = vadd.f32 %v10251_v12, %v10275_v0 }
 0x585   :  { %v10532_v41 = vadd.f32 %v10251_v12, %v10279_v63  ;;  %v10536_v61 = vadd.f32 %v10251_v12, %v10284_v39  ;;  %v10540_v40 = vadd.f32 %v10251_v12, %v10288_v18  ;;  %v10544_v13 = vadd.f32 %v10251_v12, %v10292_v5 }
 0x586   :  { %v10548_v0 = vadd.f32 %v10251_v12, %v10296_v4  ;;  %v10552_v63 = vadd.f32 %v10251_v12, %v10300_v32  ;;  %v10556_v39 = vadd.f32 %v10251_v12, %v10304_v1  ;;  %v10560_v18 = vadd.f32 %v10251_v12, %v10308_v30  ;;  %v13583_v38 = vld [vmem:[#allocation77_spill] sm:$0xff] }
 0x587   :  { %v10564_v5 = vadd.f32 %v10251_v12, %v10312_v33  ;;  %v10568_v4 = vadd.f32 %v10251_v12, %v10316_v3  ;;  %v10572_v32 = vadd.f32 %v10251_v12, %v10320_v58  ;;  %v10576_v1 = vadd.f32 %v10251_v12, %v10324_v25 }
 0x588   :  { %v10580_v30 = vadd.f32 %v10251_v12, %v10328_v56  ;;  %v10584_v33 = vadd.f32 %v10251_v12, %v10332_v54  ;;  %v10588_v3 = vadd.f32 %v10251_v12, %v10336_v47  ;;  %v10592_v58 = vadd.f32 %v10251_v12, %v10340_v2 }
 0x589   :  { %v10596_v25 = vadd.f32 %v10251_v12, %v10344_v43  ;;  %v10600_v56 = vadd.f32 %v10251_v12, %v10348_v22  ;;  %v10604_v54 = vadd.f32 %v10251_v12, %v10352_v28  ;;  %v10608_v47 = vadd.f32 %v10251_v12, %v10356_v53 }
 0x58a   :  { %v10612_v2 = vadd.f32 %v10251_v12, %v10360_v27  ;;  %v10616_v43 = vadd.f32 %v10251_v12, %v10364_v14  ;;  %v10620_v22 = vadd.f32 %v10251_v12, %v10368_v9  ;;  %v10624_v28 = vadd.f32 %v10251_v12, %v10372_v24 }
 0x58b   :  { %v10628_v53 = vadd.f32 %v10251_v12, %v10376_v55  ;;  %v10632_v27 = vadd.f32 %v10251_v12, %v10380_v59  ;;  %v10636_v14 = vadd.f32 %v10251_v12, %v10384_v26  ;;  %v10640_v9 = vadd.f32 %v10251_v12, %v10388_v31 }
 0x58c   :  { %v10644_v24 = vadd.f32 %v10251_v12, %v10392_v49  ;;  %v10648_v55 = vadd.f32 %v10251_v12, %v10396_v52  ;;  %v10652_v59 = vadd.f32 %v10251_v12, %v10400_v42  ;;  %v10656_v26 = vadd.f32 %v10251_v12, %v10404_v36 }
 0x58d   :  { %v10660_v31 = vadd.f32 %v10251_v12, %v10408_v10  ;;  %v10664_v49 = vadd.f32 %v10251_v12, %v10412_v7  ;;  %v10668_v52 = vadd.f32 %v10251_v12, %v10416_v51  ;;  %v10672_v42 = vadd.f32 %v10251_v12, %v10420_v17 }
 0x58e   :  { %13573 = vst [vmem:[#allocation99_spill] sm:$0xff] %v10648_v55  ;;  %13574 = vst [vmem:[#allocation100_spill] sm:$0xff] %v10652_v59  ;;  %v10676_v36 = vadd.f32 %v10251_v12, %v10424_v8  ;;  %v10680_v10 = vadd.f32 %v10251_v12, %v10428_v60  ;;  %v10684_v7 = vadd.f32 %v10251_v12, %v10432_v37 }
 0x58f   :  { %13575 = vst [vmem:[#allocation101_spill] sm:$0xff] %v10656_v26  ;;  %13576 = vst [vmem:[#allocation102_spill] sm:$0xff] %v10660_v31  ;;  %v10688_v51 = vadd.f32 %v10251_v12, %v13583_v38 }
 0x590   :  { %13577 = vst [vmem:[#allocation103_spill] sm:$0xff] %v10664_v49  ;;  %13578 = vst [vmem:[#allocation83_spill] sm:$0xff] %v10668_v52  ;;  %v13584_v52 = vld [vmem:[#allocation90_spill] sm:$0xff] }
 0x591   :  { %13579 = vst [vmem:[#allocation82_spill] sm:$0xff] %v10672_v42  ;;  %13580 = vst [vmem:[#allocation75_spill] sm:$0xff] %v10676_v36  ;;  %v10692_v17 = vadd.f32 %v10251_v12, %v13584_v52  ;;  %v13586_v42 = vld [vmem:[#allocation95_spill] sm:$0xff]  ;;  %v13587_v36 = vld [vmem:[#allocation96_spill] sm:$0xff]  ;;  %v10712_v52 = vadd.f32 %v10251_v12, %v10460_v19  ;;  %v10732_v19 = vadd.f32 %v10251_v12, %v10480_v44  ;;  %v13304_v44 = vmax.f32 %v10540_v40, 0.0 }
 0x592   :  { %13581 = vst [vmem:[#allocation84_spill] sm:$0xff] %v10680_v10  ;;  %13582 = vst [vmem:[#allocation85_spill] sm:$0xff] %v10684_v7  ;;  %v10696_v8 = vadd.f32 %v10251_v12, %v13586_v42  ;;  %v10700_v60 = vadd.f32 %v10251_v12, %v13587_v36  ;;  %v13588_v10 = vld [vmem:[#allocation97_spill] sm:$0xff]  ;;  %v13589_v7 = vld [vmem:[#allocation98_spill] sm:$0xff]  ;;  %v10716_v42 = vadd.f32 %v10251_v12, %v10464_v15  ;;  %v13298_v15 = vmax.f32 %v10488_v29, 0.0 }
 0x593   :  { %13585 = vst [vmem:[#allocation76_spill] sm:$0xff] %v10692_v17  ;;  %v10704_v37 = vadd.f32 %v10251_v12, %v13588_v10  ;;  %v10708_v38 = vadd.f32 %v10251_v12, %v13589_v7  ;;  %13590 = vst [vmem:[#allocation87_spill] sm:$0xff] %v10712_v52  ;;  %v10720_v36 = vadd.f32 %v10251_v12, %v10468_v20  ;;  %v3302_v52 = vmax.f32 %v10484_v50, 0.0 }
 0x594   :  { %13591 = vst [vmem:[#allocation86_spill] sm:$0xff] %v10716_v42  ;;  %v10724_v10 = vadd.f32 %v10251_v12, %v10472_v45  ;;  %v10728_v7 = vadd.f32 %v10251_v12, %v10476_v21  ;;  %v13296_v42 = vmax.f32 %v10492_v48, 0.0  ;;  %v13299_v45 = vmax.f32 %v10504_v23, 0.0  ;;  %3367 = vst [vmem:[#allocation2 + $0x21] sm:$0xff] %v13298_v15 }
 0x595   :  { %13592 = vst [vmem:[#allocation89_spill] sm:$0xff] %v10720_v36  ;;  %v13297_v36 = vmax.f32 %v10500_v57, 0.0  ;;  %3366 = vst [vmem:[#allocation2 + $0x19] sm:$0xff] %v3302_v52  ;;  %4224 = vmatprep.mubr.f32.mxu1 %v3302_v52  ;;  %v13302_v12 = vmax.f32 %v10520_v46, 0.0  ;;  %v13595_v21 = vmax.f32 %v10496_v16, 0.0  ;;  %v13303_v52 = vmax.f32 %v10536_v61, 0.0 }
 0x596   :  { %13593 = vst [vmem:[#allocation88_spill] sm:$0xff] %v10724_v10  ;;  %13594 = vst [vmem:[#allocation92_spill] sm:$0xff] %v10728_v7  ;;  %v13300_v10 = vmax.f32 %v10508_v34, 0.0  ;;  %v13301_v7 = vmax.f32 %v10516_v35, 0.0  ;;  %v13305_v50 = vmax.f32 %v10544_v13, 0.0  ;;  %v13308_v15 = vmax.f32 %v10576_v1, 0.0 }
 0x597   :  { %3368 = vst [vmem:[#allocation2 + $0x31] sm:$0xff] %v13296_v42  ;;  %3369 = vst [vmem:[#allocation2 + $0x39] sm:$0xff] %v13595_v21  ;;  %v13596_v42 = vmax.f32 %v10512_v62, 0.0  ;;  %v13309_v21 = vmax.f32 %v10552_v63, 0.0  ;;  %v13311_v20 = vmax.f32 %v10612_v2, 0.0 }
 0x598   :  { %3370 = vst [vmem:[#allocation2 + $0x49] sm:$0xff] %v13297_v36  ;;  %3371 = vst [vmem:[#allocation2 + $0x51] sm:$0xff] %v13299_v45  ;;  %v13597_v45 = vmax.f32 %v10524_v11, 0.0  ;;  %v13307_v36 = vmax.f32 %v10572_v32, 0.0 }
 0x599   :  { %3372 = vst [vmem:[#allocation2 + $0x61] sm:$0xff] %v13300_v10  ;;  %3373 = vst [vmem:[#allocation2 + $0x69] sm:$0xff] %v13596_v42  ;;  %v13598_v10 = vmax.f32 %v10528_v6, 0.0  ;;  %v13599_v42 = vmax.f32 %v10532_v41, 0.0 }
 0x59a   :  { %3374 = vst [vmem:[#allocation2 + $0x79] sm:$0xff] %v13301_v7  ;;  %3375 = vst [vmem:[#allocation2 + $0x81] sm:$0xff] %v13302_v12  ;;  %v13306_v7 = vmax.f32 %v10568_v4, 0.0  ;;  %v3333_v12 = vmax.f32 %v10608_v47, 0.0  ;;  %v13617_v47 = vld [vmem:[#allocation75_spill] sm:$0xff] }
 0x59b   :  { %3376 = vst [vmem:[#allocation2 + $0x91] sm:$0xff] %v13597_v45  ;;  %3377 = vst [vmem:[#allocation2 + $0x99] sm:$0xff] %v13598_v10  ;;  %v13600_v10 = vmax.f32 %v10548_v0, 0.0  ;;  %v13310_v45 = vmax.f32 %v10584_v33, 0.0 }
 0x59c   :  { %3378 = vst [vmem:[#allocation2 + $0xa9] sm:$0xff] %v13599_v42  ;;  %3379 = vst [vmem:[#allocation2 + $0xb1] sm:$0xff] %v13303_v52  ;;  %v13601_v52 = vmax.f32 %v10556_v39, 0.0  ;;  %v3332_v42 = vmax.f32 %v10604_v54, 0.0  ;;  %v10885_v54 = vld [vmem:[#allocation2 + $0x20] sm:$0xff] }
 0x59d   :  { %3380 = vst [vmem:[#allocation2 + $0xc1] sm:$0xff] %v13304_v44  ;;  %3381 = vst [vmem:[#allocation2 + $0xc9] sm:$0xff] %v13305_v50  ;;  %v13602_v44 = vmax.f32 %v10560_v18, 0.0  ;;  %v13603_v50 = vmax.f32 %v10564_v5, 0.0 }
 0x59e   :  { %3382 = vst [vmem:[#allocation2 + $0xd9] sm:$0xff] %v13600_v10  ;;  %3383 = vst [vmem:[#allocation2 + $0xe1] sm:$0xff] %v13309_v21  ;;  %v13312_v10 = vmax.f32 %v10600_v56, 0.0  ;;  %v13624_v21 = vld [vmem:[#allocation85_spill] sm:$0xff] }
 0x59f   :  { %3384 = vst [vmem:[#allocation2 + $0xf1] sm:$0xff] %v13601_v52  ;;  %3385 = vst [vmem:[#allocation2 + $0xf9] sm:$0xff] %v13602_v44  ;;  %v13604_v44 = vmax.f32 %v10580_v30, 0.0  ;;  %v13615_v52 = vld [vmem:[#allocation83_spill] sm:$0xff] }
 0x5a0   :  { %3386 = vst [vmem:[#allocation2 + $0x109] sm:$0xff] %v13603_v50  ;;  %3387 = vst [vmem:[#allocation2 + $0x111] sm:$0xff] %v13306_v7  ;;  %v13313_v50 = vmax.f32 %v10616_v43, 0.0  ;;  %v13605_v7 = vmax.f32 %v10588_v3, 0.0 }
 0x5a1   :  { %3388 = vst [vmem:[#allocation2 + $0x121] sm:$0xff] %v13307_v36  ;;  %3389 = vst [vmem:[#allocation2 + $0x129] sm:$0xff] %v13308_v15  ;;  %v13606_v36 = vmax.f32 %v10592_v58, 0.0  ;;  %v13607_v15 = vmax.f32 %v10596_v25, 0.0 }
 0x5a2   :  { %3390 = vst [vmem:[#allocation2 + $0x139] sm:$0xff] %v13604_v44  ;;  %3391 = vst [vmem:[#allocation2 + $0x141] sm:$0xff] %v13310_v45  ;;  %v10827_v44 = vld [vmem:[#allocation2 + $0x18] sm:$0xff]  ;;  %v4050_v45 = vld [vmem:[#allocation8 + $0x160] sm:$0xff] }
 0x5a3   :  { %3392 = vst [vmem:[#allocation2 + $0x151] sm:$0xff] %v13605_v7  ;;  %3393 = vst [vmem:[#allocation2 + $0x159] sm:$0xff] %v13606_v36  ;;  %v10837_v36 = vld [vmem:[#allocation2 + $0x32] sm:$0xff]  ;;  %4225 = vmatmul.mubr.f32.gmra.mrb[68].mxu1 %v10827_v44  ;;  %v10840_v7 = vld [vmem:[#allocation2 + $0x3a] sm:$0xff] }
 0x5a4   :  { %3394 = vst [vmem:[#allocation2 + $0x169] sm:$0xff] %v13607_v15  ;;  %13608 = vst [vmem:[#allocation91_spill] sm:$0xff] %v10827_v44  ;;  %6956 = vmatprep.mubr.f32.mxu0 %v10837_v36  ;;  %v13616_v15 = vld [vmem:[#allocation82_spill] sm:$0xff] }
 0x5a5   :  { %3395 = vst [vmem:[#allocation2 + $0x171] sm:$0xff] %v13312_v10  ;;  %3396 = vst [vmem:[#allocation2 + $0x181] sm:$0xff] %v3332_v42  ;;  %v13612_v42 = vmax.f32 %v10624_v28, 0.0  ;;  %v13614_v10 = vmax.f32 %v10488_v29, 0.0  ;;  %v13621_v29 = vmax.f32 %v10644_v24, 0.0  ;;  %6957 = vmatmul.mubr.f32.vlgmr.msra.gmra.mrb[128].mxu0 %v10840_v7 }
 0x5a6   :  { %3397 = vst [vmem:[#allocation2 + $0x189] sm:$0xff] %v3333_v12  ;;  %3398 = vst [vmem:[#allocation2 + $0x1c9] sm:$0xff] %v13311_v20  ;;  %v13611_v12 = vmax.f32 %v10620_v22, 0.0  ;;  %v13613_v20 = vmax.f32 %v10628_v53, 0.0 }
 0x5a7   :  { %13609 = vst [vmem:[#allocation94_spill] sm:$0xff] %v10837_v36  ;;  %13610 = vst [vmem:[#allocation77_spill] sm:$0xff] %v10840_v7  ;;  %4229 = vmatprep.mubr.f32.mxu1 %v13614_v10  ;;  %v10870_v10 = vld [vmem:[#allocation2 + $0x4a] sm:$0xff]  ;;  %v13628_v7 = vmax.f32 %v10660_v31, 0.0 }
 0x5a8   :  { %3399 = vst [vmem:[#allocation2 + $0x1d1] sm:$0xff] %v13313_v50  ;;  %3400 = vst [vmem:[#allocation2 + $0x1e1] sm:$0xff] %v13611_v12  ;;  %v13618_v12 = vmax.f32 %v10632_v27, 0.0  ;;  %v13623_v50 = vld [vmem:[#allocation84_spill] sm:$0xff]  ;;  %6959 = vmatprep.mubr.f32.mxu0 %v10870_v10  ;;  %v4051_v36 = vld [vmem:[#allocation8 + $0x168] sm:$0xff]  ;;  %4230 = vmatmul.mubr.f32.gmra.mrb[70].mxu1 %v10885_v54 }
 0x5a9   :  { %3401 = vst [vmem:[#allocation2 + $0x1e9] sm:$0xff] %v13612_v42  ;;  %3402 = vst [vmem:[#allocation2 + $0x1f9] sm:$0xff] %v13613_v20  ;;  %v13619_v42 = vmax.f32 %v10636_v14, 0.0  ;;  %v13620_v20 = vmax.f32 %v10640_v9, 0.0  ;;  %v13635_v31 = vld [vmem:[#allocation86_spill] sm:$0xff] }
 0x5aa   :  { %3403 = vst [vmem:[#allocation2 + $0x201] sm:$0xff] %v13618_v12  ;;  %3406 = vst [vmem:[#allocation2 + $0x229] sm:$0xff] %v13621_v29  ;;  %v13627_v29 = vmax.f32 %v10656_v26, 0.0  ;;  %v13634_v12 = vld [vmem:[#allocation87_spill] sm:$0xff]  ;;  %v13636_v26 = vld [vmem:[#allocation89_spill] sm:$0xff] }
 0x5ab   :  { %3404 = vst [vmem:[#allocation2 + $0x211] sm:$0xff] %v13619_v42  ;;  %3405 = vst [vmem:[#allocation2 + $0x219] sm:$0xff] %v13620_v20  ;;  %v13625_v42 = vmax.f32 %v10648_v55, 0.0  ;;  %v13626_v20 = vmax.f32 %v10652_v59, 0.0  ;;  %v3361_v59 = vmax.f32 %v13636_v26, 0.0  ;;  %v13637_v55 = vld [vmem:[#allocation88_spill] sm:$0xff] }
 0x5ac   :  { %13622 = vst [vmem:[#allocation90_spill] sm:$0xff] %v10870_v10  ;;  %3409 = vst [vmem:[#allocation2 + $0x249] sm:$0xff] %v13627_v29  ;;  %v13631_v29 = vmax.f32 %v13615_v52, 0.0  ;;  %v13633_v10 = vmax.f32 %v13617_v47, 0.0  ;;  %v13643_v26 = vld [vmem:[#allocation92_spill] sm:$0xff] }
 0x5ad   :  { %3407 = vst [vmem:[#allocation2 + $0x231] sm:$0xff] %v13625_v42  ;;  %3408 = vst [vmem:[#allocation2 + $0x241] sm:$0xff] %v13626_v20  ;;  %v13630_v20 = vmax.f32 %v10664_v49, 0.0  ;;  %v3362_v49 = vmax.f32 %v13637_v55, 0.0  ;;  %v13642_v42 = vmax.f32 %v10492_v48, 0.0  ;;  %v3363_v44 = vmax.f32 %v13643_v26, 0.0 }
 0x5ae   :  { %3410 = vst [vmem:[#allocation2 + $0x259] sm:$0xff] %v13628_v7  ;;  %13629 = vst [vmem:[#allocation95_spill] sm:$0xff] %v10885_v54  ;;  %v13632_v7 = vmax.f32 %v13616_v15, 0.0  ;;  %v10912_v54 = vld [vmem:[#allocation2 + $0x52] sm:$0xff]  ;;  %v3364_v55 = vmax.f32 %v10732_v19, 0.0  ;;  %v10927_v48 = vld [vmem:[#allocation2 + $0x62] sm:$0xff] }
 0x5af   :  { %3411 = vst [vmem:[#allocation2 + $0x261] sm:$0xff] %v13630_v20  ;;  %3412 = vst [vmem:[#allocation2 + $0x271] sm:$0xff] %v13631_v29  ;;  %v13638_v20 = vmax.f32 %v13623_v50, 0.0  ;;  %v13639_v29 = vmax.f32 %v13624_v21, 0.0  ;;  %4234 = vmatprep.mubr.f32.mxu1 %v13642_v42  ;;  %6960 = vmatmul.mubr.f32.gmra.mrb[130].mxu0 %v10912_v54  ;;  %v7343_v42 = vpack.c.bf16 %v4051_v36, %v4050_v45  ;;  %v4052_v26 = vld [vmem:[#allocation8 + $0x170] sm:$0xff]  ;;  %v13648_v19 = vmax.f32 %v13634_v12, 0.0 }
 0x5b0   :  { %3413 = vst [vmem:[#allocation2 + $0x279] sm:$0xff] %v13632_v7  ;;  %3414 = vst [vmem:[#allocation2 + $0x289] sm:$0xff] %v13633_v10  ;;  %v13640_v7 = vmax.f32 %v10688_v51, 0.0  ;;  %v13641_v10 = vmax.f32 %v10692_v17, 0.0  ;;  %v4053_v17 = vld [vmem:[#allocation8 + $0x178] sm:$0xff]  ;;  %6962 = vmatprep.mubr.f32.mxu0 %v10927_v48  ;;  %v13651_v45 = vmax.f32 %v10496_v16, 0.0 }
 0x5b1   :  { %3415 = vst [vmem:[#allocation2 + $0x291] sm:$0xff] %v13638_v20  ;;  %3416 = vst [vmem:[#allocation2 + $0x2a1] sm:$0xff] %v13639_v29  ;;  %v13644_v20 = vmax.f32 %v10696_v8, 0.0  ;;  %v13645_v29 = vmax.f32 %v10700_v60, 0.0  ;;  %7344 = vmatpush1.bf16.msra.mxu1 %v7343_v42  ;;  %v7346_v36 = vpack.c.bf16 %v4053_v17, %v4052_v26  ;;  %v13655_v16 = vmax.f32 %v10500_v57, 0.0  ;;  %v10954_v42 = vld [vmem:[#allocation2 + $0x92] sm:$0xff] }
 0x5b2   :  { %3417 = vst [vmem:[#allocation2 + $0x2a9] sm:$0xff] %v13640_v7  ;;  %3418 = vst [vmem:[#allocation2 + $0x2b9] sm:$0xff] %v13641_v10  ;;  %v13646_v7 = vmax.f32 %v10704_v37, 0.0  ;;  %v13647_v10 = vmax.f32 %v10708_v38, 0.0  ;;  %v10958_v26 = vld [vmem:[#allocation2 + $0x48] sm:$0xff] }
 0x5b3   :  { %3419 = vst [vmem:[#allocation2 + $0x2c1] sm:$0xff] %v13644_v20  ;;  %3420 = vst [vmem:[#allocation2 + $0x2d1] sm:$0xff] %v13645_v29  ;;  %v13649_v20 = vmax.f32 %v13635_v31, 0.0  ;;  %v10934_v29 = vld [vmem:[#allocation2 + $0x30] sm:$0xff] }
 0x5b4   :  { %3421 = vst [vmem:[#allocation2 + $0x2d9] sm:$0xff] %v13646_v7  ;;  %3422 = vst [vmem:[#allocation2 + $0x2e9] sm:$0xff] %v13647_v10  ;;  %4235 = vmatmul.mubr.f32.gmra.mrb[72].mxu1 %v10934_v29  ;;  %v10937_v7 = vld [vmem:[#allocation2 + $0x6a] sm:$0xff]  ;;  %v10942_v10 = vld [vmem:[#allocation2 + $0x7a] sm:$0xff] }
 0x5b5   :  { %3423 = vst [vmem:[#allocation2 + $0x2f1] sm:$0xff] %v13648_v19  ;;  %3424 = vst [vmem:[#allocation2 + $0x301] sm:$0xff] %v13649_v20  ;;  %4239 = vmatprep.mubr.f32.mxu1 %v13651_v45  ;;  %6963 = vmatmul.mubr.f32.gmra.mrb[132].mxu0 %v10937_v7  ;;  %v4055_v19 = vld [vmem:[#allocation8 + $0x188] sm:$0xff]  ;;  %v10961_v20 = vld [vmem:[#allocation2 + $0x9a] sm:$0xff]  ;;  %v13658_v45 = vmax.f32 %v10504_v23, 0.0 }
 0x5b6   :  { %3425 = vst [vmem:[#allocation2 + $0x309] sm:$0xff] %v3361_v59  ;;  %3426 = vst [vmem:[#allocation2 + $0x319] sm:$0xff] %v3362_v49  ;;  %v13653_v59 = vmov 0.0|0.0   ;;  %v4054_v49 = vld [vmem:[#allocation8 + $0x180] sm:$0xff]  ;;  %6965 = vmatprep.mubr.f32.mxu0 %v10942_v10  ;;  %v3952_v57 = vld [vmem:[#allocation2 + $0xaa] sm:$0xff] }
 0x5b7   :  { %3427 = vst [vmem:[#allocation2 + $0x321] sm:$0xff] %v3363_v44  ;;  %3428 = vst [vmem:[#allocation2 + $0x331] sm:$0xff] %v3364_v55  ;;  %7345 = vmatprep.subr.bf16.mxu1 %v13653_v59  ;;  %v10946_v44 = vld [vmem:[#allocation2 + $0x38] sm:$0xff]  ;;  %v10949_v55 = vld [vmem:[#allocation2 + $0x82] sm:$0xff]  ;;  %v7349_v17 = vpack.c.bf16 %v4055_v19, %v4054_v49  ;;  %v13659_v19 = vmax.f32 %v10508_v34, 0.0 }
 0x5b8   :  { %13650 = vst [vmem:[#allocation96_spill] sm:$0xff] %v10937_v7  ;;  %13652 = vst [vmem:[#allocation97_spill] sm:$0xff] %v10942_v10  ;;  %4240 = vmatmul.mubr.f32.gmra.mrb[74].mxu1 %v10946_v44  ;;  %v3953_v49 = vld [vmem:[#allocation2 + $0xb2] sm:$0xff]  ;;  %v10972_v23 = vld [vmem:[#allocation2 + $0x60] sm:$0xff] }
 0x5b9   :  { %13654 = vst [vmem:[#allocation98_spill] sm:$0xff] %v10949_v55  ;;  %4244 = vmatprep.mubr.f32.mxu1 %v13655_v16  ;;  %7347 = vmatpush1.bf16.msra.mxu1 %v7346_v36  ;;  %13656 = vst [vmem:[#allocation83_spill] sm:$0xff] %v10954_v42  ;;  %v10967_v36 = vld [vmem:[#allocation2 + $0x50] sm:$0xff]  ;;  %v3954_v16 = vld [vmem:[#allocation2 + $0xc2] sm:$0xff] }
 0x5ba   :  { %6966 = vmatmul.mubr.f32.gmra.mrb[134].mxu0 %v10949_v55  ;;  %7348 = vmatprep.subr.bf16.mxu1 %v13653_v59  ;;  %13657 = vst [vmem:[#allocation82_spill] sm:$0xff] %v10961_v20  ;;  %v3957_v34 = vld [vmem:[#allocation2 + $0xe2] sm:$0xff]  ;;  %v4057_v55 = vld [vmem:[#allocation8 + $0x198] sm:$0xff]  ;;  %v3960_v7 = vld [vmem:[#allocation2 + $0x10a] sm:$0xff] }
 0x5bb   :  { %6968 = vmatprep.mubr.f32.mxu0 %v10954_v42  ;;  %v10982_v42 = vld [vmem:[#allocation2 + $0x78] sm:$0xff]  ;;  %v4059_v10 = vld [vmem:[#allocation8 + $0x1a8] sm:$0xff] }
 0x5bc   :  { %4245 = vmatmul.mubr.f32.gmra.mrb[76].mxu1 %v10958_v26 }
 0x5bd   :  { %4249 = vmatprep.mubr.f32.mxu1 %v13658_v45  ;;  %7350 = vmatpush1.bf16.msra.mxu1 %v7349_v17  ;;  %v3955_v17 = vld [vmem:[#allocation2 + $0xca] sm:$0xff]  ;;  %v13660_v45 = vmax.f32 %v10512_v62, 0.0 }
 0x5be   :  { %6969 = vmatmul.mubr.f32.gmra.mrb[136].mxu0 %v10961_v20  ;;  %7351 = vmatprep.subr.bf16.mxu1 %v13653_v59  ;;  %v10977_v20 = vld [vmem:[#allocation2 + $0x68] sm:$0xff] }
 0x5bf   :  { %6971 = vmatprep.mubr.f32.mxu0 %v3952_v57  ;;  %v3956_v57 = vld [vmem:[#allocation2 + $0xda] sm:$0xff] }
 0x5c0   :  { %4250 = vmatmul.mubr.f32.gmra.mrb[78].mxu1 %v10967_v36 }
 0x5c1   :  { %4254 = vmatprep.mubr.f32.mxu1 %v13659_v19  ;;  %v3958_v19 = vld [vmem:[#allocation2 + $0xf2] sm:$0xff] }
 0x5c2   :  { %6972 = vmatmul.mubr.f32.gmra.mrb[138].mxu0 %v3953_v49  ;;  %v13661_v49 = vmax.f32 %v10516_v35, 0.0 }
 0x5c3   :  { %6974 = vmatprep.mubr.f32.mxu0 %v3954_v16  ;;  %v4056_v16 = vld [vmem:[#allocation8 + $0x190] sm:$0xff] }
 0x5c4   :  { %4255 = vmatmul.mubr.f32.gmra.mrb[80].mxu1 %v10972_v23  ;;  %v7352_v62 = vpack.c.bf16 %v4057_v55, %v4056_v16  ;;  %v13663_v55 = vmax.f32 %v10524_v11, 0.0  ;;  %v4060_v16 = vld [vmem:[#allocation8 + $0x1b0] sm:$0xff] }
 0x5c5   :  { %4259 = vmatprep.mubr.f32.mxu1 %v13660_v45  ;;  %v3959_v45 = vld [vmem:[#allocation2 + $0xfa] sm:$0xff] }
 0x5c6   :  { %6975 = vmatmul.mubr.f32.gmra.mrb[140].mxu0 %v3955_v17  ;;  %v4058_v17 = vld [vmem:[#allocation8 + $0x1a0] sm:$0xff]  ;;  %7353 = vmatpush1.bf16.msra.mxu1 %v7352_v62  ;;  %v4061_v62 = vld [vmem:[#allocation8 + $0x1b8] sm:$0xff] }
 0x5c7   :  { %6977 = vmatprep.mubr.f32.mxu0 %v3956_v57  ;;  %v13662_v57 = vmax.f32 %v10520_v46, 0.0  ;;  %v7355_v35 = vpack.c.bf16 %v4059_v10, %v4058_v17  ;;  %7354 = vmatprep.subr.bf16.mxu1 %v13653_v59  ;;  %v10993_v46 = vld [vmem:[#allocation2 + $0x90] sm:$0xff]  ;;  %v13664_v10 = vmax.f32 %v10528_v6, 0.0  ;;  %v3964_v17 = vld [vmem:[#allocation2 + $0x13a] sm:$0xff]  ;;  %v7358_v11 = vpack.c.bf16 %v4061_v62, %v4060_v16  ;;  %v11005_v6 = vld [vmem:[#allocation2 + $0xa8] sm:$0xff] }
 0x5c8   :  { %4260 = vmatmul.mubr.f32.gmra.mrb[82].mxu1 %v10977_v20  ;;  %v13667_v16 = vmax.f32 %v10540_v40, 0.0  ;;  %v3970_v62 = vld [vmem:[#allocation2 + $0x182] sm:$0xff] }
 0x5c9   :  { %4264 = vmatprep.mubr.f32.mxu1 %v13661_v49  ;;  %v3961_v49 = vld [vmem:[#allocation2 + $0x112] sm:$0xff]  ;;  %v3973_v40 = vld [vmem:[#allocation2 + $0x1a2] sm:$0xff] }
 0x5ca   :  { %6978 = vmatmul.mubr.f32.gmra.mrb[142].mxu0 %v3957_v34  ;;  %v10987_v34 = vld [vmem:[#allocation2 + $0x80] sm:$0xff]  ;;  %7356 = vmatpush1.bf16.msra.mxu1 %v7355_v35  ;;  %v13665_v35 = vmax.f32 %v10532_v41, 0.0  ;;  %v3969_v41 = vld [vmem:[#allocation2 + $0x172] sm:$0xff] }
 0x5cb   :  { %6980 = vmatprep.mubr.f32.mxu0 %v3958_v19  ;;  %v3962_v19 = vld [vmem:[#allocation2 + $0x122] sm:$0xff]  ;;  %7357 = vmatprep.subr.bf16.mxu1 %v13653_v59 }
 0x5cc   :  { %4265 = vmatmul.mubr.f32.gmra.mrb[84].mxu1 %v10982_v42 }
 0x5cd   :  { %4269 = vmatprep.mubr.f32.mxu1 %v13662_v57  ;;  %v3965_v57 = vld [vmem:[#allocation2 + $0x142] sm:$0xff] }
 0x5ce   :  { %6981 = vmatmul.mubr.f32.gmra.mrb[144].mxu0 %v3959_v45  ;;  %v10999_v45 = vld [vmem:[#allocation2 + $0x98] sm:$0xff]  ;;  %7359 = vmatpush1.bf16.msra.mxu1 %v7358_v11  ;;  %v3971_v11 = vld [vmem:[#allocation2 + $0x18a] sm:$0xff] }
 0x5cf   :  { %6983 = vmatprep.mubr.f32.mxu0 %v3960_v7  ;;  %v3963_v7 = vld [vmem:[#allocation2 + $0x12a] sm:$0xff]  ;;  %7360 = vmatprep.subr.bf16.mxu1 %v13653_v59 }
 0x5d0   :  { %4270 = vmatmul.mubr.f32.gmra.mrb[86].mxu1 %v10987_v34 }
 0x5d1   :  { %4274 = vmatprep.mubr.f32.mxu1 %v13663_v55  ;;  %v3967_v55 = vld [vmem:[#allocation2 + $0x15a] sm:$0xff] }
 0x5d2   :  { %6984 = vmatmul.mubr.f32.gmra.mrb[146].mxu0 %v3961_v49  ;;  %v3966_v49 = vld [vmem:[#allocation2 + $0x152] sm:$0xff] }
 0x5d3   :  { %6986 = vmatprep.mubr.f32.mxu0 %v3962_v19  ;;  %v13666_v19 = vmax.f32 %v10536_v61, 0.0  ;;  %v3972_v61 = vld [vmem:[#allocation2 + $0x19a] sm:$0xff] }
 0x5d4   :  { %4275 = vmatmul.mubr.f32.gmra.mrb[88].mxu1 %v10993_v46 }
 0x5d5   :  { %4279 = vmatprep.mubr.f32.mxu1 %v13664_v10  ;;  %v11010_v10 = vld [vmem:[#allocation2 + $0xb0] sm:$0xff] }
 0x5d6   :  { %6987 = vmatmul.mubr.f32.gmra.mrb[148].mxu0 %v3963_v7  ;;  %v3968_v7 = vld [vmem:[#allocation2 + $0x16a] sm:$0xff] }
 0x5d7   :  { %6989 = vmatprep.mubr.f32.mxu0 %v3964_v17  ;;  %v11015_v17 = vld [vmem:[#allocation2 + $0xc0] sm:$0xff] }
 0x5d8   :  { %4280 = vmatmul.mubr.f32.gmra.mrb[90].mxu1 %v10999_v45 }
 0x5d9   :  { %4284 = vmatprep.mubr.f32.mxu1 %v13665_v35  ;;  %v4062_v35 = vld [vmem:[#allocation8 + $0x1c0] sm:$0xff] }
 0x5da   :  { %6990 = vmatmul.mubr.f32.gmra.mrb[150].mxu0 %v3965_v57  ;;  %v13668_v57 = vmax.f32 %v10544_v13, 0.0  ;;  %v11026_v13 = vld [vmem:[#allocation2 + $0xd8] sm:$0xff] }
 0x5db   :  { %6992 = vmatprep.mubr.f32.mxu0 %v3966_v49  ;;  %v4063_v49 = vld [vmem:[#allocation8 + $0x1c8] sm:$0xff] }
 0x5dc   :  { %4285 = vmatmul.mubr.f32.gmra.mrb[92].mxu1 %v11005_v6 }
 0x5dd   :  { %4289 = vmatprep.mubr.f32.mxu1 %v13666_v19  ;;  %v11020_v19 = vld [vmem:[#allocation2 + $0xc8] sm:$0xff] }
 0x5de   :  { %6993 = vmatmul.mubr.f32.gmra.mrb[152].mxu0 %v3967_v55  ;;  %v7361_v55 = vpack.c.bf16 %v4063_v49, %v4062_v35  ;;  %v3978_v35 = vld [vmem:[#allocation2 + $0x212] sm:$0xff] }
 0x5df   :  { %6995 = vmatprep.mubr.f32.mxu0 %v3968_v7  ;;  %v13669_v7 = vmax.f32 %v10548_v0, 0.0  ;;  %v3977_v0 = vld [vmem:[#allocation2 + $0x202] sm:$0xff]  ;;  %v11036_v49 = vld [vmem:[#allocation2 + $0xf0] sm:$0xff] }
 0x5e0   :  { %4290 = vmatmul.mubr.f32.gmra.mrb[94].mxu1 %v11010_v10 }
 0x5e1   :  { %4294 = vmatprep.mubr.f32.mxu1 %v13667_v16  ;;  %7362 = vmatpush1.bf16.msra.mxu1 %v7361_v55  ;;  %v3975_v16 = vld [vmem:[#allocation2 + $0x1ea] sm:$0xff]  ;;  %v13672_v55 = vmax.f32 %v10560_v18, 0.0 }
 0x5e2   :  { %6996 = vmatmul.mubr.f32.gmra.mrb[154].mxu0 %v3969_v41  ;;  %v3974_v41 = vld [vmem:[#allocation2 + $0x1e2] sm:$0xff]  ;;  %7363 = vmatprep.subr.bf16.mxu1 %v13653_v59 }
 0x5e3   :  { %6998 = vmatprep.mubr.f32.mxu0 %v3970_v62  ;;  %v13670_v62 = vmax.f32 %v10552_v63, 0.0  ;;  %v3979_v63 = vld [vmem:[#allocation2 + $0x21a] sm:$0xff]  ;;  %v11047_v18 = vld [vmem:[#allocation2 + $0x108] sm:$0xff] }
 0x5e4   :  { %4295 = vmatmul.mubr.f32.gmra.mrb[96].mxu1 %v11015_v17 }
 0x5e5   :  { %4299 = vmatprep.mubr.f32.mxu1 %v13668_v57  ;;  %v13671_v57 = vmax.f32 %v10556_v39, 0.0  ;;  %v3981_v39 = vld [vmem:[#allocation2 + $0x232] sm:$0xff] }
 0x5e6   :  { %6999 = vmatmul.mubr.f32.gmra.mrb[156].mxu0 %v3971_v11  ;;  %v11031_v11 = vld [vmem:[#allocation2 + $0xe0] sm:$0xff] }
 0x5e7   :  { %7001 = vmatprep.mubr.f32.mxu0 %v3972_v61  ;;  %v3976_v61 = vld [vmem:[#allocation2 + $0x1fa] sm:$0xff] }
 0x5e8   :  { %4300 = vmatmul.mubr.f32.gmra.mrb[98].mxu1 %v11020_v19 }
 0x5e9   :  { %4304 = vmatprep.mubr.f32.mxu1 %v13669_v7  ;;  %v4065_v7 = vld [vmem:[#allocation8 + $0x1d8] sm:$0xff] }
 0x5ea   :  { %7002 = vmatmul.mubr.f32.gmra.mrb[158].mxu0 %v3973_v40  ;;  %v4064_v40 = vld [vmem:[#allocation8 + $0x1d0] sm:$0xff] }
 0x5eb   :  { %7004 = vmatprep.mubr.f32.mxu0 %v3974_v41  ;;  %v3980_v41 = vld [vmem:[#allocation2 + $0x22a] sm:$0xff] }
 0x5ec   :  { %4305 = vmatmul.mubr.f32.gmra.mrb[100].mxu1 %v11026_v13 }
 0x5ed   :  { %4309 = vmatprep.mubr.f32.mxu1 %v13670_v62  ;;  %v11041_v62 = vld [vmem:[#allocation2 + $0xf8] sm:$0xff] }
 0x5ee   :  { %7005 = vmatmul.mubr.f32.gmra.mrb[160].mxu0 %v3975_v16  ;;  %v7364_v16 = vpack.c.bf16 %v4065_v7, %v4064_v40  ;;  %v13675_v40 = vmax.f32 %v10572_v32, 0.0  ;;  %v3986_v7 = vld [vmem:[#allocation2 + $0x272] sm:$0xff] }
 0x5ef   :  { %7007 = vmatprep.mubr.f32.mxu0 %v3976_v61  ;;  %v13673_v61 = vmax.f32 %v10564_v5, 0.0  ;;  %v3985_v5 = vld [vmem:[#allocation2 + $0x262] sm:$0xff] }
 0x5f0   :  { %4310 = vmatmul.mubr.f32.gmra.mrb[102].mxu1 %v11031_v11 }
 0x5f1   :  { %4314 = vmatprep.mubr.f32.mxu1 %v13671_v57  ;;  %7365 = vmatpush1.bf16.msra.mxu1 %v7364_v16  ;;  %v3983_v57 = vld [vmem:[#allocation2 + $0x24a] sm:$0xff]  ;;  %v13676_v16 = vmax.f32 %v10576_v1, 0.0  ;;  %v11068_v1 = vld [vmem:[#allocation2 + $0x138] sm:$0xff] }
 0x5f2   :  { %7008 = vmatmul.mubr.f32.gmra.mrb[162].mxu0 %v3977_v0  ;;  %v3982_v0 = vld [vmem:[#allocation2 + $0x242] sm:$0xff]  ;;  %7366 = vmatprep.subr.bf16.mxu1 %v13653_v59 }
 0x5f3   :  { %7010 = vmatprep.mubr.f32.mxu0 %v3978_v35  ;;  %v13674_v35 = vmax.f32 %v10568_v4, 0.0  ;;  %v3987_v4 = vld [vmem:[#allocation2 + $0x27a] sm:$0xff] }
 0x5f4   :  { %4315 = vmatmul.mubr.f32.gmra.mrb[104].mxu1 %v11036_v49 }
 0x5f5   :  { %4319 = vmatprep.mubr.f32.mxu1 %v13672_v55  ;;  %v11052_v55 = vld [vmem:[#allocation2 + $0x110] sm:$0xff] }
 0x5f6   :  { %7011 = vmatmul.mubr.f32.gmra.mrb[164].mxu0 %v3979_v63  ;;  %v3984_v63 = vld [vmem:[#allocation2 + $0x25a] sm:$0xff] }
 0x5f7   :  { %7013 = vmatprep.mubr.f32.mxu0 %v3980_v41  ;;  %v11057_v41 = vld [vmem:[#allocation2 + $0x120] sm:$0xff] }
 0x5f8   :  { %4320 = vmatmul.mubr.f32.gmra.mrb[106].mxu1 %v11041_v62 }
 0x5f9   :  { %4324 = vmatprep.mubr.f32.mxu1 %v13673_v61  ;;  %v4066_v61 = vld [vmem:[#allocation8 + $0x1e0] sm:$0xff] }
 0x5fa   :  { %7014 = vmatmul.mubr.f32.gmra.mrb[166].mxu0 %v3981_v39  ;;  %v3988_v39 = vld [vmem:[#allocation2 + $0x28a] sm:$0xff] }
 0x5fb   :  { %7016 = vmatprep.mubr.f32.mxu0 %v3982_v0  ;;  %v4067_v0 = vld [vmem:[#allocation8 + $0x1e8] sm:$0xff] }
 0x5fc   :  { %4325 = vmatmul.mubr.f32.gmra.mrb[108].mxu1 %v11047_v18  ;;  %v7367_v32 = vpack.c.bf16 %v4067_v0, %v4066_v61  ;;  %v3994_v61 = vld [vmem:[#allocation2 + $0x2d2] sm:$0xff] }
 0x5fd   :  { %4329 = vmatprep.mubr.f32.mxu1 %v13674_v35  ;;  %v3989_v35 = vld [vmem:[#allocation2 + $0x292] sm:$0xff] }
 0x5fe   :  { %7017 = vmatmul.mubr.f32.gmra.mrb[168].mxu0 %v3983_v57  ;;  %v11062_v57 = vld [vmem:[#allocation2 + $0x128] sm:$0xff]  ;;  %7368 = vmatpush1.bf16.msra.mxu1 %v7367_v32  ;;  %v11078_v0 = vld [vmem:[#allocation2 + $0x150] sm:$0xff]  ;;  %v13680_v32 = vmax.f32 %v10592_v58, 0.0 }
 0x5ff   :  { %7019 = vmatprep.mubr.f32.mxu0 %v3984_v63  ;;  %v13677_v63 = vmax.f32 %v10580_v30, 0.0  ;;  %7369 = vmatprep.subr.bf16.mxu1 %v13653_v59  ;;  %v3993_v30 = vld [vmem:[#allocation2 + $0x2c2] sm:$0xff] }
 0x600   :  { %4330 = vmatmul.mubr.f32.gmra.mrb[110].mxu1 %v11052_v55  ;;  %v11089_v58 = vld [vmem:[#allocation2 + $0x168] sm:$0xff] }
 0x601   :  { %4334 = vmatprep.mubr.f32.mxu1 %v13675_v40  ;;  %v3991_v40 = vld [vmem:[#allocation2 + $0x2aa] sm:$0xff] }
 0x602   :  { %7020 = vmatmul.mubr.f32.gmra.mrb[170].mxu0 %v3985_v5  ;;  %v3990_v5 = vld [vmem:[#allocation2 + $0x2a2] sm:$0xff] }
 0x603   :  { %7022 = vmatprep.mubr.f32.mxu0 %v3986_v7  ;;  %v13678_v7 = vmax.f32 %v10584_v33, 0.0  ;;  %v3995_v33 = vld [vmem:[#allocation2 + $0x2da] sm:$0xff] }
 0x604   :  { %4335 = vmatmul.mubr.f32.gmra.mrb[112].mxu1 %v11057_v41 }
 0x605   :  { %4339 = vmatprep.mubr.f32.mxu1 %v13676_v16  ;;  %v11073_v16 = vld [vmem:[#allocation2 + $0x140] sm:$0xff] }
 0x606   :  { %7023 = vmatmul.mubr.f32.gmra.mrb[172].mxu0 %v3987_v4  ;;  %v3992_v4 = vld [vmem:[#allocation2 + $0x2ba] sm:$0xff] }
 0x607   :  { %7025 = vmatprep.mubr.f32.mxu0 %v3988_v39  ;;  %v13679_v39 = vmax.f32 %v10588_v3, 0.0 }
 0x608   :  { %4340 = vmatmul.mubr.f32.gmra.mrb[114].mxu1 %v11062_v57 }
 0x609   :  { %4344 = vmatprep.mubr.f32.mxu1 %v13677_v63  ;;  %v4068_v63 = vld [vmem:[#allocation8 + $0x1f0] sm:$0xff] }
 0x60a   :  { %7026 = vmatmul.mubr.f32.gmra.mrb[174].mxu0 %v3989_v35  ;;  %v3996_v35 = vld [vmem:[#allocation2 + $0x2ea] sm:$0xff] }
 0x60b   :  { %7028 = vmatprep.mubr.f32.mxu0 %v3990_v5  ;;  %v4069_v5 = vld [vmem:[#allocation8 + $0x1f8] sm:$0xff] }
 0x60c   :  { %4345 = vmatmul.mubr.f32.gmra.mrb[116].mxu1 %v11068_v1  ;;  %v7370_v3 = vpack.c.bf16 %v4069_v5, %v4068_v63  ;;  %v11104_v63 = vld [vmem:[#allocation2 + $0x1d0] sm:$0xff]  ;;  %v13685_v5 = vmax.f32 %v10620_v22, 0.0  ;;  %v13688_v22 = vmax.f32 %v10632_v27, 0.0  ;;  %v13691_v27 = vmax.f32 %v10644_v24, 0.0  ;;  %v13696_v24 = vld [vmem:[#allocation101_spill] sm:$0xff] }
 0x60d   :  { %4349 = vmatprep.mubr.f32.mxu1 %v13678_v7  ;;  %v3997_v7 = vld [vmem:[#allocation2 + $0x2f2] sm:$0xff] }
 0x60e   :  { %7029 = vmatmul.mubr.f32.gmra.mrb[176].mxu0 %v3991_v40  ;;  %v11083_v40 = vld [vmem:[#allocation2 + $0x158] sm:$0xff]  ;;  %7371 = vmatpush1.bf16.msra.mxu1 %v7370_v3  ;;  %v11109_v3 = vld [vmem:[#allocation2 + $0x1e0] sm:$0xff] }
 0x60f   :  { %7031 = vmatprep.mubr.f32.mxu0 %v3992_v4  ;;  %v13681_v4 = vmax.f32 %v10596_v25, 0.0  ;;  %7372 = vmatprep.subr.bf16.mxu1 %v13653_v59  ;;  %v8298_v25 = vld [vmem:[#allocation2] sm:$0xff] }
 0x610   :  { %4350 = vmatmul.mubr.f32.gmra.mrb[118].mxu1 %v11073_v16 }
 0x611   :  { %4354 = vmatprep.mubr.f32.mxu1 %v13679_v39  ;;  %v3526_v39 = vld [vmem:[#allocation2 + $0x1b1] sm:$0xff] }
 0x612   :  { %7032 = vmatmul.mubr.f32.gmra.mrb[178].mxu0 %v3993_v30  ;;  %v13682_v30 = vmax.f32 %v10600_v56, 0.0  ;;  %v13684_v56 = vmax.f32 %v10616_v43, 0.0  ;;  %v13687_v43 = vmax.f32 %v10628_v53, 0.0  ;;  %v13690_v53 = vmax.f32 %v10640_v9, 0.0  ;;  %v13694_v9 = vld [vmem:[#allocation100_spill] sm:$0xff] }
 0x613   :  { %7034 = vmatprep.mubr.f32.mxu0 %v3994_v61  ;;  %v11094_v61 = vld [vmem:[#allocation2 + $0x170] sm:$0xff] }
 0x614   :  { %4355 = vmatmul.mubr.f32.gmra.mrb[120].mxu1 %v11078_v0 }
 0x615   :  { %4359 = vmatprep.mubr.f32.mxu1 %v13680_v32  ;;  %v13683_v32 = vmax.f32 %v10612_v2, 0.0  ;;  %v13686_v2 = vmax.f32 %v10624_v28, 0.0  ;;  %v13689_v28 = vmax.f32 %v10636_v14, 0.0  ;;  %v13692_v14 = vld [vmem:[#allocation99_spill] sm:$0xff] }
 0x616   :  { %7035 = vmatmul.mubr.f32.gmra.mrb[180].mxu0 %v3995_v33  ;;  %v3527_v33 = vld [vmem:[#allocation2 + $0x1b9] sm:$0xff] }
 0x617   :  { %7037 = vmatprep.mubr.f32.mxu0 %v3996_v35  ;;  %v11099_v35 = vld [vmem:[#allocation2 + $0x1c8] sm:$0xff] }
 0x618   :  { %4360 = vmatmul.mubr.f32.gmra.mrb[122].mxu1 %v11083_v40 }
 0x619   :  { %4364 = vmatprep.mubr.f32.mxu1 %v13681_v4  ;;  %v11119_v4 = vld [vmem:[#allocation2 + $0x1f8] sm:$0xff] }
 0x61a   :  { %7038 = vmatmul.mubr.f32.gmra.mrb[182].mxu0 %v3997_v7  ;;  %v11114_v7 = vld [vmem:[#allocation2 + $0x1e8] sm:$0xff] }
 0x61c   :  { %4365 = vmatmul.mubr.f32.gmra.mrb[124].mxu1 %v11089_v58 }
 0x61d   :  { %4369 = vmatprep.mubr.f32.mxu1 %v13682_v30  ;;  %v11124_v30 = vld [vmem:[#allocation2 + $0x200] sm:$0xff] }
 0x620   :  { %4370 = vmatmul.mubr.f32.gmra.mrb[126].mxu1 %v11094_v61 }
 0x621   :  { %4374 = vmatprep.mubr.f32.mxu1 %v3526_v39  ;;  %v11129_v39 = vld [vmem:[#allocation2 + $0x210] sm:$0xff] }
 0x624   :  { %4375 = vmatmul.mubr.f32.gmra.mrb[128].mxu1 %v8298_v25 }
 0x625   :  { %4379 = vmatprep.mubr.f32.mxu1 %v3527_v33  ;;  %v11134_v33 = vld [vmem:[#allocation2 + $0x218] sm:$0xff] }
 0x628   :  { %4380 = vmatmul.mubr.f32.gmra.mrb[130].mxu1 %v8298_v25  ;;  %v11139_v25 = vld [vmem:[#allocation2 + $0x228] sm:$0xff] }
 0x629   :  { %4384 = vmatprep.mubr.f32.mxu1 %v13683_v32  ;;  %v13693_v32 = vmax.f32 %v13692_v14, 0.0  ;;  %v13700_v14 = vld [vmem:[#allocation103_spill] sm:$0xff] }
 0x62c   :  { %4385 = vmatmul.mubr.f32.gmra.mrb[132].mxu1 %v11099_v35 }
 0x62d   :  { %4389 = vmatprep.mubr.f32.mxu1 %v13684_v56  ;;  %v11144_v56 = vld [vmem:[#allocation2 + $0x230] sm:$0xff] }
 0x630   :  { %4390 = vmatmul.mubr.f32.gmra.mrb[134].mxu1 %v11104_v63 }
 0x631   :  { %4394 = vmatprep.mubr.f32.mxu1 %v13685_v5  ;;  %v13695_v5 = vmax.f32 %v13694_v9, 0.0  ;;  %v11164_v9 = vld [vmem:[#allocation2 + $0x260] sm:$0xff] }
 0x634   :  { %4395 = vmatmul.mubr.f32.gmra.mrb[136].mxu1 %v11109_v3 }
 0x635   :  { %4399 = vmatprep.mubr.f32.mxu1 %v13686_v2  ;;  %v11149_v2 = vld [vmem:[#allocation2 + $0x240] sm:$0xff] }
 0x638   :  { %4400 = vmatmul.mubr.f32.gmra.mrb[138].mxu1 %v11114_v7 }
 0x639   :  { %4404 = vmatprep.mubr.f32.mxu1 %v13687_v43  ;;  %v13697_v43 = vmax.f32 %v13696_v24, 0.0  ;;  %v11169_v24 = vld [vmem:[#allocation2 + $0x270] sm:$0xff] }
 0x63c   :  { %4405 = vmatmul.mubr.f32.gmra.mrb[140].mxu1 %v11119_v4 }
 0x63d   :  { %4409 = vmatprep.mubr.f32.mxu1 %v13688_v22  ;;  %v11154_v22 = vld [vmem:[#allocation2 + $0x248] sm:$0xff] }
 0x640   :  { %4410 = vmatmul.mubr.f32.gmra.mrb[142].mxu1 %v11124_v30 }
 0x641   :  { %4414 = vmatprep.mubr.f32.mxu1 %v13689_v28  ;;  %v13698_v28 = vld [vmem:[#allocation102_spill] sm:$0xff] }
 0x644   :  { %4415 = vmatmul.mubr.f32.gmra.mrb[144].mxu1 %v11129_v39 }
 0x645   :  { %4419 = vmatprep.mubr.f32.mxu1 %v13690_v53  ;;  %v13699_v53 = vmax.f32 %v13698_v28, 0.0  ;;  %v11174_v28 = vld [vmem:[#allocation2 + $0x278] sm:$0xff] }
 0x648   :  { %4420 = vmatmul.mubr.f32.gmra.mrb[146].mxu1 %v11134_v33 }
 0x649   :  { %4424 = vmatprep.mubr.f32.mxu1 %v13691_v27  ;;  %v11159_v27 = vld [vmem:[#allocation2 + $0x258] sm:$0xff] }
 0x64c   :  { %4425 = vmatmul.mubr.f32.gmra.mrb[148].mxu1 %v11139_v25 }
 0x64d   :  { %4429 = vmatprep.mubr.f32.mxu1 %v13693_v32  ;;  %v13701_v32 = vmax.f32 %v13700_v14, 0.0  ;;  %v11179_v14 = vld [vmem:[#allocation2 + $0x288] sm:$0xff] }
 0x650   :  { %4430 = vmatmul.mubr.f32.gmra.mrb[150].mxu1 %v11144_v56 }
 0x651   :  { %4434 = vmatprep.mubr.f32.mxu1 %v13695_v5  ;;  %v13702_v5 = vmax.f32 %v13615_v52, 0.0  ;;  %v13705_v52 = vmax.f32 %v13623_v50, 0.0  ;;  %v13710_v50 = vld [vmem:[#allocation76_spill] sm:$0xff] }
 0x654   :  { %4435 = vmatmul.mubr.f32.gmra.mrb[152].mxu1 %v11149_v2 }
 0x655   :  { %4439 = vmatprep.mubr.f32.mxu1 %v13697_v43  ;;  %v13703_v43 = vmax.f32 %v13616_v15, 0.0  ;;  %v13706_v15 = vmax.f32 %v13624_v21, 0.0  ;;  %v13713_v21 = vmax.f32 %v10696_v8, 0.0  ;;  %v13720_v8 = vmax.f32 %v10704_v37, 0.0 }
 0x656   :  { %v13728_v37 = vmax.f32 %v13634_v12, 0.0 }
 0x658   :  { %4440 = vmatmul.mubr.f32.gmra.mrb[154].mxu1 %v11154_v22 }
 0x659   :  { %4444 = vmatprep.mubr.f32.mxu1 %v13699_v53  ;;  %v13704_v53 = vmax.f32 %v13617_v47, 0.0  ;;  %v13708_v47 = vmax.f32 %v10688_v51, 0.0 }
 0x65c   :  { %4445 = vmatmul.mubr.f32.gmra.mrb[156].mxu1 %v11159_v27 }
 0x65d   :  { %4449 = vmatprep.mubr.f32.mxu1 %v13701_v32  ;;  %v11184_v32 = vld [vmem:[#allocation2 + $0x290] sm:$0xff] }
 0x660   :  { %4450 = vmatmul.mubr.f32.gmra.mrb[158].mxu1 %v11164_v9 }
 0x661   :  { %4454 = vmatprep.mubr.f32.mxu1 %v13702_v5  ;;  %v11189_v5 = vld [vmem:[#allocation2 + $0x2a0] sm:$0xff] }
 0x662   :  { %13707 = vst [vmem:[#allocation75_spill] sm:$0xff] %v11189_v5 }
 0x664   :  { %4455 = vmatmul.mubr.f32.gmra.mrb[160].mxu1 %v11169_v24 }
 0x665   :  { %4459 = vmatprep.mubr.f32.mxu1 %v13703_v43  ;;  %v11194_v43 = vld [vmem:[#allocation2 + $0x2a8] sm:$0xff] }
 0x666   :  { %13709 = vst [vmem:[#allocation84_spill] sm:$0xff] %v11194_v43 }
 0x668   :  { %4460 = vmatmul.mubr.f32.gmra.mrb[162].mxu1 %v11174_v28 }
 0x669   :  { %4464 = vmatprep.mubr.f32.mxu1 %v13704_v53  ;;  %v13711_v53 = vmax.f32 %v13710_v50, 0.0  ;;  %v11213_v50 = vld [vmem:[#allocation2 + $0x2d0] sm:$0xff] }
 0x66a   :  { %13718 = vst [vmem:[#allocation88_spill] sm:$0xff] %v11213_v50 }
 0x66c   :  { %4465 = vmatmul.mubr.f32.gmra.mrb[164].mxu1 %v11179_v14 }
 0x66d   :  { %4469 = vmatprep.mubr.f32.mxu1 %v13705_v52  ;;  %v11199_v52 = vld [vmem:[#allocation2 + $0x2b8] sm:$0xff] }
 0x66e   :  { %13712 = vst [vmem:[#allocation85_spill] sm:$0xff] %v11199_v52 }
 0x670   :  { %4470 = vmatmul.mubr.f32.gmra.mrb[166].mxu1 %v11184_v32 }
 0x671   :  { %4474 = vmatprep.mubr.f32.mxu1 %v13706_v15  ;;  %v11204_v15 = vld [vmem:[#allocation2 + $0x2c0] sm:$0xff] }
 0x672   :  { %13714 = vst [vmem:[#allocation87_spill] sm:$0xff] %v11204_v15 }
 0x674   :  { %4475 = vmatmul.mubr.f32.gmra.mrb[168].mxu1 %v11189_v5 }
 0x675   :  { %4479 = vmatprep.mubr.f32.mxu1 %v13708_v47  ;;  %v13716_v47 = vmax.f32 %v10700_v60, 0.0  ;;  %v13724_v60 = vmax.f32 %v10708_v38, 0.0  ;;  %v13732_v38 = vmax.f32 %v13635_v31, 0.0 }
 0x678   :  { %4480 = vmatmul.mubr.f32.gmra.mrb[170].mxu1 %v11194_v43  ;;  %v11207_v51 = vpop.f32.mrb[128].mxu0 }
 0x679   :  { %4484 = vmatprep.mubr.f32.mxu1 %v13711_v53  ;;  %13715 = vst [vmem:[#allocation86_spill] sm:$0xff] %v11207_v51  ;;  %v11211_v43 = vpop.f32.mrb[129].mxu0 }
 0x67a   :  { %13717 = vst [vmem:[#allocation89_spill] sm:$0xff] %v11211_v43  ;;  %v11231_v43 = vld [vmem:[#allocation2 + $0x2e8] sm:$0xff] }
 0x67b   :  { %13726 = vst [vmem:[#allocation103_spill] sm:$0xff] %v11231_v43 }
 0x67c   :  { %4485 = vmatmul.mubr.f32.gmra.mrb[172].mxu1 %v11199_v52  ;;  %v11222_v52 = vld [vmem:[#allocation2 + $0x2d8] sm:$0xff] }
 0x67d   :  { %4489 = vmatprep.mubr.f32.mxu1 %v13713_v21  ;;  %13722 = vst [vmem:[#allocation100_spill] sm:$0xff] %v11222_v52 }
 0x680   :  { %4490 = vmatmul.mubr.f32.gmra.mrb[174].mxu1 %v11204_v15 }
 0x681   :  { %4494 = vmatprep.mubr.f32.mxu1 %v13716_v47 }
 0x682   :  { %v11216_v53 = vpop.f32.mrb[130].mxu0 }
 0x683   :  { %13719 = vst [vmem:[#allocation92_spill] sm:$0xff] %v11216_v53  ;;  %v11220_v21 = vpop.f32.mrb[131].mxu0 }
 0x684   :  { %4495 = vmatmul.mubr.f32.gmra.mrb[176].mxu1 %v11213_v50  ;;  %13721 = vst [vmem:[#allocation99_spill] sm:$0xff] %v11220_v21  ;;  %v11240_v21 = vld [vmem:[#allocation2 + $0x2f0] sm:$0xff]  ;;  %v4073_v50 = vld [vmem:[#allocation8 + $0x218] sm:$0xff] }
 0x685   :  { %4499 = vmatprep.mubr.f32.mxu1 %v13720_v8  ;;  %13730 = vst [vmem:[#allocation111_spill] sm:$0xff] %v11240_v21 }
 0x688   :  { %4500 = vmatmul.mubr.f32.gmra.mrb[178].mxu1 %v11222_v52  ;;  %v11225_v51 = vpop.f32.mrb[132].mxu0 }
 0x689   :  { %13723 = vst [vmem:[#allocation101_spill] sm:$0xff] %v11225_v51  ;;  %4504 = vmatprep.mubr.f32.mxu1 %v13724_v60  ;;  %v11229_v47 = vpop.f32.mrb[133].mxu0 }
 0x68a   :  { %13725 = vst [vmem:[#allocation102_spill] sm:$0xff] %v11229_v47  ;;  %v11249_v47 = vld [vmem:[#allocation2 + $0x300] sm:$0xff] }
 0x68b   :  { %13734 = vst [vmem:[#allocation114_spill] sm:$0xff] %v11249_v47 }
 0x68c   :  { %4505 = vmatmul.mubr.f32.gmra.mrb[180].mxu1 %v11231_v43  ;;  %v11270_v43 = vld [vmem:[#allocation2 + $0x320] sm:$0xff] }
 0x68d   :  { %v11234_v53 = vpop.f32.mrb[134].mxu0  ;;  %4509 = vmatprep.mubr.f32.mxu1 %v13728_v37 }
 0x68e   :  { %13727 = vst [vmem:[#allocation76_spill] sm:$0xff] %v11234_v53  ;;  %v11238_v8 = vpop.f32.mrb[135].mxu0  ;;  %v3555_v53 = vld [vmem:[#allocation2 + $0x309] sm:$0xff] }
 0x68f   :  { %13729 = vst [vmem:[#allocation110_spill] sm:$0xff] %v11238_v8  ;;  %v11256_v8 = vld [vmem:[#allocation2 + $0x308] sm:$0xff] }
 0x690   :  { %4510 = vmatmul.mubr.f32.gmra.mrb[182].mxu1 %v11240_v21  ;;  %13737 = vst [vmem:[#allocation117_spill] sm:$0xff] %v11256_v8 }
 0x691   :  { %v11243_v51 = vpop.f32.mrb[136].mxu0  ;;  %4514 = vmatprep.mubr.f32.mxu1 %v13732_v38  ;;  %v11263_v38 = vld [vmem:[#allocation2 + $0x318] sm:$0xff] }
 0x692   :  { %13731 = vst [vmem:[#allocation112_spill] sm:$0xff] %v11243_v51  ;;  %v11247_v60 = vpop.f32.mrb[137].mxu0  ;;  %v3556_v51 = vld [vmem:[#allocation2 + $0x319] sm:$0xff]  ;;  %13740 = vst [vmem:[#allocation120_spill] sm:$0xff] %v11263_v38 }
 0x693   :  { %13733 = vst [vmem:[#allocation113_spill] sm:$0xff] %v11247_v60  ;;  %v3557_v60 = vld [vmem:[#allocation2 + $0x321] sm:$0xff] }
 0x694   :  { %4515 = vmatmul.mubr.f32.gmra.mrb[184].mxu1 %v11249_v47 }
 0x695   :  { %v11252_v12 = vpop.f32.mrb[138].mxu0  ;;  %4519 = vmatprep.mubr.f32.mxu1 %v3555_v53 }
 0x696   :  { %13735 = vst [vmem:[#allocation115_spill] sm:$0xff] %v11252_v12  ;;  %v11254_v37 = vpop.f32.mrb[139].mxu0  ;;  %v4070_v12 = vld [vmem:[#allocation8 + $0x200] sm:$0xff] }
 0x697   :  { %13736 = vst [vmem:[#allocation116_spill] sm:$0xff] %v11254_v37  ;;  %v4071_v37 = vld [vmem:[#allocation8 + $0x208] sm:$0xff] }
 0x698   :  { %4520 = vmatmul.mubr.f32.gmra.mrb[186].mxu1 %v11256_v8  ;;  %v7373_v8 = vpack.c.bf16 %v4071_v37, %v4070_v12 }
 0x699   :  { %v11259_v21 = vpop.f32.mrb[140].mxu0  ;;  %4524 = vmatprep.mubr.f32.mxu1 %v3556_v51  ;;  %v13744_v51 = vld [vmem:[#allocation91_spill] sm:$0xff] }
 0x69a   :  { %13738 = vst [vmem:[#allocation118_spill] sm:$0xff] %v11259_v21  ;;  %v11261_v31 = vpop.f32.mrb[141].mxu0 }
 0x69b   :  { %13739 = vst [vmem:[#allocation119_spill] sm:$0xff] %v11261_v31  ;;  %v3558_v31 = vld [vmem:[#allocation2 + $0x2] sm:$0xff] }
 0x69c   :  { %4525 = vmatmul.mubr.f32.gmra.mrb[188].mxu1 %v11263_v38  ;;  %v4072_v38 = vld [vmem:[#allocation8 + $0x210] sm:$0xff] }
 0x69d   :  { %v11266_v47 = vpop.f32.mrb[142].mxu0  ;;  %4529 = vmatprep.mubr.f32.mxu1 %v3557_v60  ;;  %v7376_v15 = vpack.c.bf16 %v4073_v50, %v4072_v38  ;;  %v11290_v50 = vld [vmem:[#allocation2 + $0x1a] sm:$0xff] }
 0x69e   :  { %13741 = vst [vmem:[#allocation121_spill] sm:$0xff] %v11266_v47  ;;  %v11268_v53 = vpop.f32.mrb[143].mxu0  ;;  %v13747_v47 = vld [vmem:[#allocation95_spill] sm:$0xff] }
 0x69f   :  { %13742 = vst [vmem:[#allocation122_spill] sm:$0xff] %v11268_v53  ;;  %v3559_v53 = vld [vmem:[#allocation2 + $0xa] sm:$0xff] }
 0x6a0   :  { %4530 = vmatmul.mubr.f32.gmra.mrb[190].mxu1 %v11270_v43 }
 0x6a1   :  { %v11273_v21 = vpop.f32.mrb[144].mxu0  ;;  %4599 = vmatprep.mubr.f32.mxu1 %v13744_v51  ;;  %v4075_v51 = vld [vmem:[#allocation8 + $0x228] sm:$0xff] }
 0x6a2   :  { %13743 = vst [vmem:[#allocation123_spill] sm:$0xff] %v11273_v21  ;;  %v11276_v52 = vpop.f32.mrb[145].mxu0  ;;  %v4074_v21 = vld [vmem:[#allocation8 + $0x220] sm:$0xff] }
 0x6a3   :  { %13745 = vst [vmem:[#allocation91_spill] sm:$0xff] %v11276_v52  ;;  %v7379_v37 = vpack.c.bf16 %v4075_v51, %v4074_v21  ;;  %v11299_v21 = vld [vmem:[#allocation2 + $0x22] sm:$0xff]  ;;  %v11605_v52 = vld [vmem:[#allocation2 + $0x51] sm:$0xff] }
 0x6a4   :  { %4600 = vmatmul.mubr.f32.vlgmr.msra.gmra.mrb[64].mxu1 %v3558_v31 }
 0x6a5   :  { %v11278_v60 = vpop.f32.mrb[146].mxu0  ;;  %4604 = vmatprep.mubr.f32.mxu1 %v13747_v47  ;;  %7374 = vmatpush1.bf16.msra.mxu1 %v7373_v8  ;;  %v4076_v47 = vld [vmem:[#allocation8 + $0x230] sm:$0xff]  ;;  %v4077_v8 = vld [vmem:[#allocation8 + $0x238] sm:$0xff] }
 0x6a6   :  { %13746 = vst [vmem:[#allocation124_spill] sm:$0xff] %v11278_v60  ;;  %v11281_v5 = vpop.f32.mrb[147].mxu0  ;;  %7375 = vmatprep.subr.bf16.mxu1 %v13653_v59 }
 0x6a7   :  { %13748 = vst [vmem:[#allocation95_spill] sm:$0xff] %v11281_v5 }
 0x6a8   :  { %4605 = vmatmul.mubr.f32.gmra.mrb[66].mxu1 %v3559_v53  ;;  %v7382_v53 = vpack.c.bf16 %v4077_v8, %v4076_v47  ;;  %v13755_v47 = vld [vmem:[#allocation94_spill] sm:$0xff] }
 0x6a9   :  { %v11284_v12 = vpop.f32.mrb[148].mxu0  ;;  %4609 = vmatprep.mubr.f32.mxu1 %v10934_v29  ;;  %7377 = vmatpush1.bf16.msra.mxu1 %v7376_v15  ;;  %v4078_v29 = vld [vmem:[#allocation8 + $0x240] sm:$0xff]  ;;  %v4079_v15 = vld [vmem:[#allocation8 + $0x248] sm:$0xff] }
 0x6aa   :  { %13749 = vst [vmem:[#allocation125_spill] sm:$0xff] %v11284_v12  ;;  %v11287_v31 = vpop.f32.mrb[149].mxu0  ;;  %7378 = vmatprep.subr.bf16.mxu1 %v13653_v59 }
 0x6ab   :  { %13750 = vst [vmem:[#allocation126_spill] sm:$0xff] %v11287_v31 }
 0x6ac   :  { %4610 = vmatmul.mubr.f32.gmra.mrb[68].mxu1 %v11290_v50 }
 0x6ad   :  { %v11293_v38 = vpop.f32.mrb[150].mxu0  ;;  %4614 = vmatprep.mubr.f32.mxu1 %v10946_v44  ;;  %7380 = vmatpush1.bf16.msra.mxu1 %v7379_v37  ;;  %v4080_v44 = vld [vmem:[#allocation8 + $0x250] sm:$0xff]  ;;  %v4081_v37 = vld [vmem:[#allocation8 + $0x258] sm:$0xff] }
 0x6ae   :  { %13751 = vst [vmem:[#allocation127_spill] sm:$0xff] %v11293_v38  ;;  %v11296_v12 = vpop.f32.mrb[151].mxu0  ;;  %7381 = vmatprep.subr.bf16.mxu1 %v13653_v59  ;;  %v7385_v38 = vpack.c.bf16 %v4079_v15, %v4078_v29  ;;  %v13758_v29 = vld [vmem:[#allocation77_spill] sm:$0xff] }
 0x6af   :  { %13752 = vst [vmem:[#allocation128_spill] sm:$0xff] %v11296_v12  ;;  %v7388_v12 = vpack.c.bf16 %v4081_v37, %v4080_v44  ;;  %v13761_v44 = vld [vmem:[#allocation90_spill] sm:$0xff] }
 0x6b0   :  { %4615 = vmatmul.mubr.f32.gmra.mrb[70].mxu1 %v11299_v21 }
 0x6b1   :  { %v11302_v51 = vpop.f32.mrb[152].mxu0  ;;  %4619 = vmatprep.mubr.f32.mxu1 %v10958_v26  ;;  %7383 = vmatpush1.bf16.msra.mxu1 %v7382_v53  ;;  %v4082_v26 = vld [vmem:[#allocation8 + $0x260] sm:$0xff]  ;;  %v4083_v53 = vld [vmem:[#allocation8 + $0x268] sm:$0xff] }
 0x6b2   :  { %13753 = vst [vmem:[#allocation129_spill] sm:$0xff] %v11302_v51  ;;  %v11305_v31 = vpop.f32.mrb[153].mxu0  ;;  %7384 = vmatprep.subr.bf16.mxu1 %v13653_v59 }
 0x6b3   :  { %13754 = vst [vmem:[#allocation130_spill] sm:$0xff] %v11305_v31  ;;  %v3752_v31 = vld [vmem:[#allocation2 + $0x32] sm:$0xff] }
 0x6b4   :  { %4620 = vmatmul.mubr.f32.gmra.mrb[72].mxu1 %v13755_v47  ;;  %v7391_v47 = vpack.c.bf16 %v4083_v53, %v4082_v26 }
 0x6b5   :  { %v11309_v8 = vpop.f32.mrb[154].mxu0  ;;  %4624 = vmatprep.mubr.f32.mxu1 %v10967_v36  ;;  %7386 = vmatpush1.bf16.msra.mxu1 %v7385_v38  ;;  %v4084_v36 = vld [vmem:[#allocation8 + $0x270] sm:$0xff]  ;;  %v4085_v38 = vld [vmem:[#allocation8 + $0x278] sm:$0xff] }
 0x6b6   :  { %13756 = vst [vmem:[#allocation94_spill] sm:$0xff] %v11309_v8  ;;  %v11312_v60 = vpop.f32.mrb[155].mxu0  ;;  %7387 = vmatprep.subr.bf16.mxu1 %v13653_v59 }
 0x6b7   :  { %13757 = vst [vmem:[#allocation131_spill] sm:$0xff] %v11312_v60  ;;  %v3687_v60 = vld [vmem:[#allocation2 + $0x21] sm:$0xff] }
 0x6b8   :  { %4625 = vmatmul.mubr.f32.gmra.mrb[74].mxu1 %v13758_v29  ;;  %v7394_v29 = vpack.c.bf16 %v4085_v38, %v4084_v36 }
 0x6b9   :  { %v11316_v15 = vpop.f32.mrb[156].mxu0  ;;  %4629 = vmatprep.mubr.f32.mxu1 %v10972_v23  ;;  %7389 = vmatpush1.bf16.msra.mxu1 %v7388_v12  ;;  %v4086_v23 = vld [vmem:[#allocation8 + $0x280] sm:$0xff]  ;;  %v4087_v12 = vld [vmem:[#allocation8 + $0x288] sm:$0xff] }
 0x6ba   :  { %13759 = vst [vmem:[#allocation77_spill] sm:$0xff] %v11316_v15  ;;  %v11319_v51 = vpop.f32.mrb[157].mxu0  ;;  %7390 = vmatprep.subr.bf16.mxu1 %v13653_v59  ;;  %v7397_v53 = vpack.c.bf16 %v4087_v12, %v4086_v23  ;;  %v13768_v23 = vld [vmem:[#allocation96_spill] sm:$0xff] }
 0x6bb   :  { %13760 = vst [vmem:[#allocation132_spill] sm:$0xff] %v11319_v51  ;;  %v3686_v15 = vld [vmem:[#allocation2 + $0x19] sm:$0xff]  ;;  %v4107_v51 = vld [vmem:[#allocation8 + $0x328] sm:$0xff] }
 0x6bc   :  { %4630 = vmatmul.mubr.f32.gmra.mrb[76].mxu1 %v13761_v44 }
 0x6bd   :  { %4634 = vmatprep.mubr.f32.mxu1 %v10977_v20  ;;  %v11324_v37 = vpop.f32.mrb[158].mxu0  ;;  %7392 = vmatpush1.bf16.msra.mxu1 %v7391_v47  ;;  %v4088_v20 = vld [vmem:[#allocation8 + $0x290] sm:$0xff]  ;;  %v4089_v47 = vld [vmem:[#allocation8 + $0x298] sm:$0xff] }
 0x6be   :  { %13762 = vst [vmem:[#allocation90_spill] sm:$0xff] %v11324_v37  ;;  %v11326_v8 = vpop.f32.mrb[159].mxu0  ;;  %7393 = vmatprep.subr.bf16.mxu1 %v13653_v59  ;;  %v4104_v37 = vld [vmem:[#allocation8 + $0x310] sm:$0xff] }
 0x6bf   :  { %13763 = vst [vmem:[#allocation133_spill] sm:$0xff] %v11326_v8  ;;  %v4105_v8 = vld [vmem:[#allocation8 + $0x318] sm:$0xff] }
 0x6c0   :  { %4635 = vmatmul.mubr.f32.gmra.mrb[78].mxu1 %v10912_v54  ;;  %v7400_v54 = vpack.c.bf16 %v4089_v47, %v4088_v20  ;;  %v13774_v47 = vld [vmem:[#allocation98_spill] sm:$0xff] }
 0x6c1   :  { %v11330_v26 = vpop.f32.mrb[160].mxu0  ;;  %4639 = vmatprep.mubr.f32.mxu1 %v10982_v42  ;;  %7395 = vmatpush1.bf16.msra.mxu1 %v7394_v29  ;;  %v4090_v42 = vld [vmem:[#allocation8 + $0x2a0] sm:$0xff]  ;;  %v4091_v29 = vld [vmem:[#allocation8 + $0x2a8] sm:$0xff] }
 0x6c2   :  { %13764 = vst [vmem:[#allocation134_spill] sm:$0xff] %v11330_v26  ;;  %v11333_v44 = vpop.f32.mrb[161].mxu0  ;;  %7396 = vmatprep.subr.bf16.mxu1 %v13653_v59 }
 0x6c3   :  { %13765 = vst [vmem:[#allocation135_spill] sm:$0xff] %v11333_v44  ;;  %v11586_v44 = vld [vmem:[#allocation2 + $0x322] sm:$0xff] }
 0x6c4   :  { %4640 = vmatmul.mubr.f32.gmra.mrb[80].mxu1 %v10927_v48  ;;  %v7403_v48 = vpack.c.bf16 %v4091_v29, %v4090_v42  ;;  %v13777_v42 = vld [vmem:[#allocation83_spill] sm:$0xff] }
 0x6c5   :  { %v11337_v36 = vpop.f32.mrb[162].mxu0  ;;  %4644 = vmatprep.mubr.f32.mxu1 %v10987_v34  ;;  %7398 = vmatpush1.bf16.msra.mxu1 %v7397_v53  ;;  %v13771_v34 = vld [vmem:[#allocation97_spill] sm:$0xff] }
 0x6c6   :  { %13766 = vst [vmem:[#allocation136_spill] sm:$0xff] %v11337_v36  ;;  %v11340_v38 = vpop.f32.mrb[163].mxu0  ;;  %7399 = vmatprep.subr.bf16.mxu1 %v13653_v59  ;;  %v11583_v36 = vld [vmem:[#allocation2 + $0x31a] sm:$0xff] }
 0x6c7   :  { %13767 = vst [vmem:[#allocation137_spill] sm:$0xff] %v11340_v38  ;;  %v4102_v38 = vld [vmem:[#allocation8 + $0x300] sm:$0xff] }
 0x6c8   :  { %4645 = vmatmul.mubr.f32.gmra.mrb[82].mxu1 %v13768_v23  ;;  %v4093_v23 = vld [vmem:[#allocation8 + $0x2b8] sm:$0xff] }
 0x6c9   :  { %v11344_v12 = vpop.f32.mrb[164].mxu0  ;;  %4649 = vmatprep.mubr.f32.mxu1 %v10993_v46  ;;  %7401 = vmatpush1.bf16.msra.mxu1 %v7400_v54 }
 0x6ca   :  { %13769 = vst [vmem:[#allocation96_spill] sm:$0xff] %v11344_v12  ;;  %v11347_v26 = vpop.f32.mrb[165].mxu0  ;;  %7402 = vmatprep.subr.bf16.mxu1 %v13653_v59  ;;  %v11572_v12 = vld [vmem:[#allocation2 + $0x2f2] sm:$0xff] }
 0x6cb   :  { %13770 = vst [vmem:[#allocation138_spill] sm:$0xff] %v11347_v26  ;;  %v11576_v26 = vld [vmem:[#allocation2 + $0x302] sm:$0xff] }
 0x6cc   :  { %4650 = vmatmul.mubr.f32.gmra.mrb[84].mxu1 %v13771_v34 }
 0x6cd   :  { %v11351_v53 = vpop.f32.mrb[166].mxu0  ;;  %4654 = vmatprep.mubr.f32.mxu1 %v10999_v45  ;;  %7404 = vmatpush1.bf16.msra.mxu1 %v7403_v48  ;;  %v4092_v45 = vld [vmem:[#allocation8 + $0x2b0] sm:$0xff] }
 0x6ce   :  { %13772 = vst [vmem:[#allocation97_spill] sm:$0xff] %v11351_v53  ;;  %v11354_v20 = vpop.f32.mrb[167].mxu0  ;;  %7405 = vmatprep.subr.bf16.mxu1 %v13653_v59  ;;  %v7406_v34 = vpack.c.bf16 %v4093_v23, %v4092_v45  ;;  %v13780_v53 = vld [vmem:[#allocation82_spill] sm:$0xff] }
 0x6cf   :  { %13773 = vst [vmem:[#allocation139_spill] sm:$0xff] %v11354_v20  ;;  %v11568_v20 = vld [vmem:[#allocation2 + $0x2ea] sm:$0xff] }
 0x6d0   :  { %4655 = vmatmul.mubr.f32.gmra.mrb[86].mxu1 %v13774_v47 }
 0x6d1   :  { %v11358_v46 = vpop.f32.mrb[168].mxu0  ;;  %4659 = vmatprep.mubr.f32.mxu1 %v11005_v6  ;;  %7407 = vmatpush1.bf16.msra.mxu1 %v7406_v34  ;;  %v11392_v34 = vld [vmem:[#allocation2 + $0xc2] sm:$0xff] }
 0x6d2   :  { %13775 = vst [vmem:[#allocation98_spill] sm:$0xff] %v11358_v46  ;;  %v11361_v54 = vpop.f32.mrb[169].mxu0  ;;  %7408 = vmatprep.subr.bf16.mxu1 %v13653_v59  ;;  %v11560_v46 = vld [vmem:[#allocation2 + $0x2d2] sm:$0xff] }
 0x6d3   :  { %13776 = vst [vmem:[#allocation140_spill] sm:$0xff] %v11361_v54  ;;  %v11564_v54 = vld [vmem:[#allocation2 + $0x2da] sm:$0xff] }
 0x6d4   :  { %4660 = vmatmul.mubr.f32.gmra.mrb[88].mxu1 %v13777_v42  ;;  %v11376_v42 = vld [vmem:[#allocation2 + $0xaa] sm:$0xff] }
 0x6d5   :  { %v11364_v29 = vpop.f32.mrb[170].mxu0  ;;  %4664 = vmatprep.mubr.f32.mxu1 %v11010_v10 }
 0x6d6   :  { %13778 = vst [vmem:[#allocation83_spill] sm:$0xff] %v11364_v29  ;;  %v11367_v48 = vpop.f32.mrb[171].mxu0  ;;  %v11400_v29 = vld [vmem:[#allocation2 + $0xca] sm:$0xff] }
 0x6d7   :  { %13779 = vst [vmem:[#allocation141_spill] sm:$0xff] %v11367_v48  ;;  %v11556_v48 = vld [vmem:[#allocation2 + $0x2c2] sm:$0xff] }
 0x6d8   :  { %4665 = vmatmul.mubr.f32.gmra.mrb[90].mxu1 %v13780_v53  ;;  %v11384_v53 = vld [vmem:[#allocation2 + $0xb2] sm:$0xff] }
 0x6d9   :  { %v11370_v47 = vpop.f32.mrb[172].mxu0  ;;  %4669 = vmatprep.mubr.f32.mxu1 %v11015_v17 }
 0x6da   :  { %13781 = vst [vmem:[#allocation82_spill] sm:$0xff] %v11370_v47  ;;  %v11373_v6 = vpop.f32.mrb[173].mxu0 }
 0x6db   :  { %13782 = vst [vmem:[#allocation142_spill] sm:$0xff] %v11373_v6 }
 0x6dc   :  { %4670 = vmatmul.mubr.f32.gmra.mrb[92].mxu1 %v11376_v42 }
 0x6dd   :  { %v11379_v10 = vpop.f32.mrb[174].mxu0  ;;  %4674 = vmatprep.mubr.f32.mxu1 %v11020_v19  ;;  %v4094_v19 = vld [vmem:[#allocation8 + $0x2c0] sm:$0xff] }
 0x6de   :  { %13783 = vst [vmem:[#allocation143_spill] sm:$0xff] %v11379_v10  ;;  %v11382_v45 = vpop.f32.mrb[175].mxu0  ;;  %v4095_v10 = vld [vmem:[#allocation8 + $0x2c8] sm:$0xff] }
 0x6df   :  { %13784 = vst [vmem:[#allocation144_spill] sm:$0xff] %v11382_v45  ;;  %v7409_v6 = vpack.c.bf16 %v4095_v10, %v4094_v19  ;;  %v11417_v19 = vld [vmem:[#allocation2 + $0xe2] sm:$0xff] }
 0x6e0   :  { %4675 = vmatmul.mubr.f32.gmra.mrb[94].mxu1 %v11384_v53 }
 0x6e1   :  { %v11387_v17 = vpop.f32.mrb[176].mxu0  ;;  %4679 = vmatprep.mubr.f32.mxu1 %v11026_v13  ;;  %7410 = vmatpush1.bf16.msra.mxu1 %v7409_v6  ;;  %v4096_v6 = vld [vmem:[#allocation8 + $0x2d0] sm:$0xff] }
 0x6e2   :  { %13785 = vst [vmem:[#allocation145_spill] sm:$0xff] %v11387_v17  ;;  %v11390_v23 = vpop.f32.mrb[177].mxu0  ;;  %7411 = vmatprep.subr.bf16.mxu1 %v13653_v59 }
 0x6e3   :  { %13786 = vst [vmem:[#allocation146_spill] sm:$0xff] %v11390_v23  ;;  %v11552_v23 = vld [vmem:[#allocation2 + $0x2ba] sm:$0xff] }
 0x6e4   :  { %4680 = vmatmul.mubr.f32.gmra.mrb[96].mxu1 %v11392_v34 }
 0x6e5   :  { %v11395_v47 = vpop.f32.mrb[178].mxu0  ;;  %4684 = vmatprep.mubr.f32.mxu1 %v11031_v11 }
 0x6e6   :  { %13787 = vst [vmem:[#allocation147_spill] sm:$0xff] %v11395_v47  ;;  %v11398_v45 = vpop.f32.mrb[179].mxu0  ;;  %v11409_v47 = vld [vmem:[#allocation2 + $0xda] sm:$0xff] }
 0x6e7   :  { %13788 = vst [vmem:[#allocation148_spill] sm:$0xff] %v11398_v45  ;;  %v11466_v45 = vld [vmem:[#allocation2 + $0x172] sm:$0xff] }
 0x6e8   :  { %4685 = vmatmul.mubr.f32.gmra.mrb[98].mxu1 %v11400_v29 }
 0x6e9   :  { %v11403_v13 = vpop.f32.mrb[180].mxu0  ;;  %4689 = vmatprep.mubr.f32.mxu1 %v11036_v49  ;;  %v11421_v49 = vld [vmem:[#allocation2 + $0xf2] sm:$0xff] }
 0x6ea   :  { %13789 = vst [vmem:[#allocation149_spill] sm:$0xff] %v11403_v13  ;;  %v11406_v17 = vpop.f32.mrb[181].mxu0  ;;  %v4097_v13 = vld [vmem:[#allocation8 + $0x2d8] sm:$0xff] }
 0x6eb   :  { %13790 = vst [vmem:[#allocation150_spill] sm:$0xff] %v11406_v17  ;;  %v7412_v17 = vpack.c.bf16 %v4097_v13, %v4096_v6  ;;  %v11442_v6 = vld [vmem:[#allocation2 + $0x12a] sm:$0xff] }
 0x6ec   :  { %4690 = vmatmul.mubr.f32.gmra.mrb[100].mxu1 %v11409_v47 }
 0x6ed   :  { %v11412_v11 = vpop.f32.mrb[182].mxu0  ;;  %4694 = vmatprep.mubr.f32.mxu1 %v11041_v62  ;;  %7413 = vmatpush1.bf16.msra.mxu1 %v7412_v17  ;;  %v11430_v62 = vld [vmem:[#allocation2 + $0x10a] sm:$0xff] }
 0x6ee   :  { %13791 = vst [vmem:[#allocation151_spill] sm:$0xff] %v11412_v11  ;;  %v11415_v10 = vpop.f32.mrb[183].mxu0  ;;  %v11425_v11 = vld [vmem:[#allocation2 + $0xfa] sm:$0xff]  ;;  %7414 = vmatprep.subr.bf16.mxu1 %v13653_v59  ;;  %v4099_v17 = vld [vmem:[#allocation8 + $0x2e8] sm:$0xff] }
 0x6ef   :  { %13792 = vst [vmem:[#allocation152_spill] sm:$0xff] %v11415_v10  ;;  %v11463_v10 = vld [vmem:[#allocation2 + $0x16a] sm:$0xff] }
 0x6f0   :  { %4695 = vmatmul.mubr.f32.gmra.mrb[102].mxu1 %v11417_v19 }
 0x6f1   :  { %4699 = vmatprep.mubr.f32.mxu1 %v11047_v18  ;;  %v11434_v18 = vld [vmem:[#allocation2 + $0x112] sm:$0xff] }
 0x6f4   :  { %4700 = vmatmul.mubr.f32.gmra.mrb[104].mxu1 %v11421_v49 }
 0x6f5   :  { %4704 = vmatprep.mubr.f32.mxu1 %v11052_v55  ;;  %v11438_v55 = vld [vmem:[#allocation2 + $0x122] sm:$0xff] }
 0x6f8   :  { %4705 = vmatmul.mubr.f32.gmra.mrb[106].mxu1 %v11425_v11 }
 0x6f9   :  { %4709 = vmatprep.mubr.f32.mxu1 %v11057_v41  ;;  %v4098_v41 = vld [vmem:[#allocation8 + $0x2e0] sm:$0xff] }
 0x6fa   :  { %v7415_v13 = vpack.c.bf16 %v4099_v17, %v4098_v41  ;;  %v4101_v41 = vld [vmem:[#allocation8 + $0x2f8] sm:$0xff] }
 0x6fc   :  { %4710 = vmatmul.mubr.f32.gmra.mrb[108].mxu1 %v11430_v62 }
 0x6fd   :  { %4714 = vmatprep.mubr.f32.mxu1 %v11062_v57  ;;  %7416 = vmatpush1.bf16.msra.mxu1 %v7415_v13  ;;  %v11447_v57 = vld [vmem:[#allocation2 + $0x13a] sm:$0xff] }
 0x6fe   :  { %7417 = vmatprep.subr.bf16.mxu1 %v13653_v59  ;;  %v11459_v13 = vld [vmem:[#allocation2 + $0x15a] sm:$0xff] }
 0x700   :  { %4715 = vmatmul.mubr.f32.gmra.mrb[110].mxu1 %v11434_v18 }
 0x701   :  { %4719 = vmatprep.mubr.f32.mxu1 %v11068_v1  ;;  %v11451_v1 = vld [vmem:[#allocation2 + $0x142] sm:$0xff] }
 0x704   :  { %4720 = vmatmul.mubr.f32.gmra.mrb[112].mxu1 %v11438_v55 }
 0x705   :  { %4724 = vmatprep.mubr.f32.mxu1 %v11073_v16  ;;  %v11455_v16 = vld [vmem:[#allocation2 + $0x152] sm:$0xff] }
 0x708   :  { %4725 = vmatmul.mubr.f32.gmra.mrb[114].mxu1 %v11442_v6 }
 0x709   :  { %4729 = vmatprep.mubr.f32.mxu1 %v11078_v0  ;;  %v4100_v0 = vld [vmem:[#allocation8 + $0x2f0] sm:$0xff] }
 0x70a   :  { %v7418_v17 = vpack.c.bf16 %v4101_v41, %v4100_v0  ;;  %v3591_v0 = vld [vmem:[#allocation2 + $0x1ba] sm:$0xff]  ;;  %v11472_v41 = vld [vmem:[#allocation2 + $0x1ca] sm:$0xff] }
 0x70c   :  { %4730 = vmatmul.mubr.f32.gmra.mrb[116].mxu1 %v11447_v57 }
 0x70d   :  { %4734 = vmatprep.mubr.f32.mxu1 %v11083_v40  ;;  %v3652_v40 = vld [vmem:[#allocation2 + $0x180] sm:$0xff]  ;;  %7419 = vmatpush1.bf16.msra.mxu1 %v7418_v17  ;;  %v11476_v17 = vld [vmem:[#allocation2 + $0x1d2] sm:$0xff] }
 0x70e   :  { %7420 = vmatprep.subr.bf16.mxu1 %v13653_v59 }
 0x710   :  { %4735 = vmatmul.mubr.f32.gmra.mrb[118].mxu1 %v11451_v1 }
 0x711   :  { %4739 = vmatprep.mubr.f32.mxu1 %v11089_v58  ;;  %v3653_v58 = vld [vmem:[#allocation2 + $0x188] sm:$0xff] }
 0x714   :  { %4740 = vmatmul.mubr.f32.gmra.mrb[120].mxu1 %v11455_v16 }
 0x715   :  { %4744 = vmatprep.mubr.f32.mxu1 %v11094_v61  ;;  %v3590_v61 = vld [vmem:[#allocation2 + $0x1b2] sm:$0xff] }
 0x718   :  { %4745 = vmatmul.mubr.f32.gmra.mrb[122].mxu1 %v11459_v13 }
 0x719   :  { %4749 = vmatprep.mubr.f32.mxu1 %v3652_v40  ;;  %v11536_v40 = vld [vmem:[#allocation2 + $0x28a] sm:$0xff] }
 0x71c   :  { %4750 = vmatmul.mubr.f32.gmra.mrb[124].mxu1 %v11463_v10 }
 0x71d   :  { %4754 = vmatprep.mubr.f32.mxu1 %v3653_v58  ;;  %v11540_v58 = vld [vmem:[#allocation2 + $0x292] sm:$0xff] }
 0x720   :  { %4755 = vmatmul.mubr.f32.gmra.mrb[126].mxu1 %v11466_v45 }
 0x721   :  { %4759 = vmatprep.mubr.f32.mxu1 %v11099_v35  ;;  %v11480_v35 = vld [vmem:[#allocation2 + $0x1e2] sm:$0xff] }
 0x724   :  { %4760 = vmatmul.mubr.f32.gmra.mrb[128].mxu1 %v3590_v61  ;;  %v11544_v61 = vld [vmem:[#allocation2 + $0x2a2] sm:$0xff] }
 0x725   :  { %4764 = vmatprep.mubr.f32.mxu1 %v11104_v63  ;;  %v11484_v63 = vld [vmem:[#allocation2 + $0x1ea] sm:$0xff] }
 0x728   :  { %4765 = vmatmul.mubr.f32.gmra.mrb[130].mxu1 %v3591_v0  ;;  %v11548_v0 = vld [vmem:[#allocation2 + $0x2aa] sm:$0xff] }
 0x729   :  { %4769 = vmatprep.mubr.f32.mxu1 %v11109_v3  ;;  %v11488_v3 = vld [vmem:[#allocation2 + $0x1fa] sm:$0xff] }
 0x72c   :  { %4770 = vmatmul.mubr.f32.gmra.mrb[132].mxu1 %v11472_v41 }
 0x72d   :  { %4774 = vmatprep.mubr.f32.mxu1 %v11114_v7  ;;  %v11492_v7 = vld [vmem:[#allocation2 + $0x202] sm:$0xff] }
 0x730   :  { %4775 = vmatmul.mubr.f32.gmra.mrb[134].mxu1 %v11476_v17 }
 0x731   :  { %4779 = vmatprep.mubr.f32.mxu1 %v11119_v4  ;;  %v11496_v4 = vld [vmem:[#allocation2 + $0x212] sm:$0xff] }
 0x734   :  { %4780 = vmatmul.mubr.f32.gmra.mrb[136].mxu1 %v11480_v35 }
 0x735   :  { %4784 = vmatprep.mubr.f32.mxu1 %v11124_v30  ;;  %v11500_v30 = vld [vmem:[#allocation2 + $0x21a] sm:$0xff] }
 0x738   :  { %4785 = vmatmul.mubr.f32.gmra.mrb[138].mxu1 %v11484_v63 }
 0x739   :  { %4789 = vmatprep.mubr.f32.mxu1 %v11129_v39  ;;  %v11504_v39 = vld [vmem:[#allocation2 + $0x22a] sm:$0xff] }
 0x73c   :  { %4790 = vmatmul.mubr.f32.gmra.mrb[140].mxu1 %v11488_v3 }
 0x73d   :  { %4794 = vmatprep.mubr.f32.mxu1 %v11134_v33  ;;  %v11508_v33 = vld [vmem:[#allocation2 + $0x232] sm:$0xff] }
 0x740   :  { %4795 = vmatmul.mubr.f32.gmra.mrb[142].mxu1 %v11492_v7 }
 0x741   :  { %4799 = vmatprep.mubr.f32.mxu1 %v11139_v25  ;;  %v11512_v25 = vld [vmem:[#allocation2 + $0x242] sm:$0xff] }
 0x744   :  { %4800 = vmatmul.mubr.f32.gmra.mrb[144].mxu1 %v11496_v4 }
 0x745   :  { %4804 = vmatprep.mubr.f32.mxu1 %v11144_v56  ;;  %v11516_v56 = vld [vmem:[#allocation2 + $0x24a] sm:$0xff] }
 0x748   :  { %4805 = vmatmul.mubr.f32.gmra.mrb[146].mxu1 %v11500_v30 }
 0x749   :  { %4809 = vmatprep.mubr.f32.mxu1 %v11149_v2  ;;  %v11520_v2 = vld [vmem:[#allocation2 + $0x25a] sm:$0xff] }
 0x74c   :  { %4810 = vmatmul.mubr.f32.gmra.mrb[148].mxu1 %v11504_v39 }
 0x74d   :  { %4814 = vmatprep.mubr.f32.mxu1 %v11154_v22  ;;  %v11524_v22 = vld [vmem:[#allocation2 + $0x262] sm:$0xff] }
 0x750   :  { %4815 = vmatmul.mubr.f32.gmra.mrb[150].mxu1 %v11508_v33 }
 0x751   :  { %4819 = vmatprep.mubr.f32.mxu1 %v11159_v27  ;;  %v11528_v27 = vld [vmem:[#allocation2 + $0x272] sm:$0xff] }
 0x754   :  { %4820 = vmatmul.mubr.f32.gmra.mrb[152].mxu1 %v11512_v25 }
 0x755   :  { %4824 = vmatprep.mubr.f32.mxu1 %v11164_v9  ;;  %v11532_v9 = vld [vmem:[#allocation2 + $0x27a] sm:$0xff] }
 0x758   :  { %4825 = vmatmul.mubr.f32.gmra.mrb[154].mxu1 %v11516_v56 }
 0x759   :  { %4829 = vmatprep.mubr.f32.mxu1 %v11169_v24  ;;  %v13793_v24 = vld [vmem:[#allocation75_spill] sm:$0xff] }
 0x75c   :  { %4830 = vmatmul.mubr.f32.gmra.mrb[156].mxu1 %v11520_v2 }
 0x75d   :  { %4834 = vmatprep.mubr.f32.mxu1 %v11174_v28  ;;  %v13794_v28 = vld [vmem:[#allocation84_spill] sm:$0xff] }
 0x75e   :  { %13805 = vst [vmem:[#allocation84_spill] sm:$0xff] %v11605_v52 }
 0x760   :  { %4835 = vmatmul.mubr.f32.gmra.mrb[158].mxu1 %v11524_v22 }
 0x761   :  { %4839 = vmatprep.mubr.f32.mxu1 %v11179_v14  ;;  %v13795_v14 = vld [vmem:[#allocation85_spill] sm:$0xff] }
 0x764   :  { %4840 = vmatmul.mubr.f32.gmra.mrb[160].mxu1 %v11528_v27 }
 0x765   :  { %4844 = vmatprep.mubr.f32.mxu1 %v11184_v32  ;;  %v13796_v32 = vld [vmem:[#allocation87_spill] sm:$0xff] }
 0x768   :  { %4845 = vmatmul.mubr.f32.gmra.mrb[162].mxu1 %v11532_v9 }
 0x769   :  { %4849 = vmatprep.mubr.f32.mxu1 %v13793_v24  ;;  %v13797_v24 = vld [vmem:[#allocation88_spill] sm:$0xff] }
 0x76c   :  { %4850 = vmatmul.mubr.f32.gmra.mrb[164].mxu1 %v11536_v40 }
 0x76d   :  { %4854 = vmatprep.mubr.f32.mxu1 %v13794_v28  ;;  %v13798_v28 = vld [vmem:[#allocation100_spill] sm:$0xff] }
 0x770   :  { %4855 = vmatmul.mubr.f32.gmra.mrb[166].mxu1 %v11540_v58 }
 0x771   :  { %4859 = vmatprep.mubr.f32.mxu1 %v13795_v14  ;;  %v13799_v14 = vld [vmem:[#allocation103_spill] sm:$0xff] }
 0x774   :  { %4860 = vmatmul.mubr.f32.gmra.mrb[168].mxu1 %v11544_v61 }
 0x775   :  { %4864 = vmatprep.mubr.f32.mxu1 %v13796_v32  ;;  %v13800_v32 = vld [vmem:[#allocation111_spill] sm:$0xff] }
 0x778   :  { %4865 = vmatmul.mubr.f32.gmra.mrb[170].mxu1 %v11548_v0 }
 0x779   :  { %4869 = vmatprep.mubr.f32.mxu1 %v13797_v24  ;;  %v13801_v24 = vld [vmem:[#allocation114_spill] sm:$0xff] }
 0x77c   :  { %4870 = vmatmul.mubr.f32.gmra.mrb[172].mxu1 %v11552_v23 }
 0x77d   :  { %4874 = vmatprep.mubr.f32.mxu1 %v13798_v28  ;;  %v13802_v28 = vld [vmem:[#allocation117_spill] sm:$0xff] }
 0x780   :  { %4875 = vmatmul.mubr.f32.gmra.mrb[174].mxu1 %v11556_v48 }
 0x781   :  { %4879 = vmatprep.mubr.f32.mxu1 %v13799_v14  ;;  %v13803_v14 = vld [vmem:[#allocation120_spill] sm:$0xff] }
 0x784   :  { %4880 = vmatmul.mubr.f32.gmra.mrb[176].mxu1 %v11560_v46 }
 0x785   :  { %4884 = vmatprep.mubr.f32.mxu1 %v13800_v32  ;;  %v11580_v32 = vld [vmem:[#allocation2 + $0x30a] sm:$0xff] }
 0x788   :  { %4885 = vmatmul.mubr.f32.gmra.mrb[178].mxu1 %v11564_v54 }
 0x789   :  { %4889 = vmatprep.mubr.f32.mxu1 %v13801_v24  ;;  %v3684_v24 = vld [vmem:[#allocation2 + $0x330] sm:$0xff] }
 0x78c   :  { %4890 = vmatmul.mubr.f32.gmra.mrb[180].mxu1 %v11568_v20 }
 0x78d   :  { %4894 = vmatprep.mubr.f32.mxu1 %v13802_v28  ;;  %v3685_v28 = vld [vmem:[#allocation2 + $0x338] sm:$0xff] }
 0x790   :  { %4895 = vmatmul.mubr.f32.gmra.mrb[182].mxu1 %v11572_v12 }
 0x791   :  { %4899 = vmatprep.mubr.f32.mxu1 %v13803_v14  ;;  %v4103_v14 = vld [vmem:[#allocation8 + $0x308] sm:$0xff] }
 0x794   :  { %4900 = vmatmul.mubr.f32.gmra.mrb[184].mxu1 %v11576_v26 }
 0x795   :  { %4904 = vmatprep.mubr.f32.mxu1 %v11270_v43  ;;  %v7421_v43 = vpack.c.bf16 %v4103_v14, %v4102_v38  ;;  %v4109_v38 = vld [vmem:[#allocation8 + $0x338] sm:$0xff] }
 0x796   :  { %v11593_v14 = vld [vmem:[#allocation2 + $0x31] sm:$0xff] }
 0x798   :  { %4905 = vmatmul.mubr.f32.gmra.mrb[186].mxu1 %v11580_v32 }
 0x799   :  { %4909 = vmatprep.mubr.f32.mxu1 %v3684_v24  ;;  %v7424_v24 = vpack.c.bf16 %v4105_v8, %v4104_v37  ;;  %v11597_v37 = vld [vmem:[#allocation2 + $0x39] sm:$0xff] }
 0x79c   :  { %4910 = vmatmul.mubr.f32.gmra.mrb[188].mxu1 %v11583_v36 }
 0x79d   :  { %4914 = vmatprep.mubr.f32.mxu1 %v3685_v28  ;;  %v4106_v28 = vld [vmem:[#allocation8 + $0x320] sm:$0xff] }
 0x79e   :  { %v7427_v5 = vpack.c.bf16 %v4107_v51, %v4106_v28  ;;  %v11601_v28 = vld [vmem:[#allocation2 + $0x49] sm:$0xff] }
 0x79f   :  { %13804 = vst [vmem:[#allocation75_spill] sm:$0xff] %v11601_v28 }
 0x7a0   :  { %4915 = vmatmul.mubr.f32.gmra.mrb[190].mxu1 %v11586_v44 }
 0x7a1   :  { %4984 = vmatprep.mubr.f32.mxu1 %v11290_v50  ;;  %v4108_v50 = vld [vmem:[#allocation8 + $0x330] sm:$0xff] }
 0x7a2   :  { %v7430_v8 = vpack.c.bf16 %v4109_v38, %v4108_v50  ;;  %v4114_v38 = vld [vmem:[#allocation8 + $0x360] sm:$0xff] }
 0x7a4   :  { %4985 = vmatmul.mubr.f32.vlgmr.msra.gmra.mrb[64].mxu1 %v3686_v15  ;;  %v4110_v15 = vld [vmem:[#allocation8 + $0x340] sm:$0xff] }
 0x7a5   :  { %4989 = vmatprep.mubr.f32.mxu1 %v11299_v21  ;;  %7422 = vmatpush1.bf16.msra.mxu1 %v7421_v43  ;;  %v3753_v21 = vld [vmem:[#allocation2 + $0x3a] sm:$0xff]  ;;  %v4112_v43 = vld [vmem:[#allocation8 + $0x350] sm:$0xff] }
 0x7a6   :  { %7423 = vmatprep.subr.bf16.mxu1 %v13653_v59 }
 0x7a8   :  { %4990 = vmatmul.mubr.f32.gmra.mrb[66].mxu1 %v3687_v60  ;;  %v4111_v60 = vld [vmem:[#allocation8 + $0x348] sm:$0xff] }
 0x7a9   :  { %4994 = vmatprep.mubr.f32.mxu1 %v3752_v31  ;;  %7425 = vmatpush1.bf16.msra.mxu1 %v7424_v24  ;;  %v3754_v31 = vld [vmem:[#allocation2 + $0x4a] sm:$0xff]  ;;  %v7433_v51 = vpack.c.bf16 %v4111_v60, %v4110_v15  ;;  %v4113_v24 = vld [vmem:[#allocation8 + $0x358] sm:$0xff] }
 0x7aa   :  { %7426 = vmatprep.subr.bf16.mxu1 %v13653_v59  ;;  %v7436_v50 = vpack.c.bf16 %v4113_v24, %v4112_v43  ;;  %v4116_v60 = vld [vmem:[#allocation8 + $0x370] sm:$0xff]  ;;  %v4118_v24 = vld [vmem:[#allocation8 + $0x380] sm:$0xff] }
 0x7ac   :  { %4995 = vmatmul.mubr.f32.gmra.mrb[68].mxu1 %v11593_v14 }
 0x7ad   :  { %4999 = vmatprep.mubr.f32.mxu1 %v3753_v21  ;;  %7428 = vmatpush1.bf16.msra.mxu1 %v7427_v5  ;;  %v3755_v5 = vld [vmem:[#allocation2 + $0x52] sm:$0xff]  ;;  %v4115_v21 = vld [vmem:[#allocation8 + $0x368] sm:$0xff] }
 0x7ae   :  { %7429 = vmatprep.subr.bf16.mxu1 %v13653_v59  ;;  %v7439_v15 = vpack.c.bf16 %v4115_v21, %v4114_v38  ;;  %v4120_v21 = vld [vmem:[#allocation8 + $0x390] sm:$0xff] }
 0x7b0   :  { %5000 = vmatmul.mubr.f32.gmra.mrb[70].mxu1 %v11597_v37 }
 0x7b1   :  { %5004 = vmatprep.mubr.f32.mxu1 %v3754_v31  ;;  %7431 = vmatpush1.bf16.msra.mxu1 %v7430_v8  ;;  %v3756_v8 = vld [vmem:[#allocation2 + $0x62] sm:$0xff]  ;;  %v4117_v31 = vld [vmem:[#allocation8 + $0x378] sm:$0xff] }
 0x7b2   :  { %7432 = vmatprep.subr.bf16.mxu1 %v13653_v59  ;;  %v7442_v43 = vpack.c.bf16 %v4117_v31, %v4116_v60  ;;  %v4122_v31 = vld [vmem:[#allocation8 + $0x3a0] sm:$0xff] }
 0x7b4   :  { %5005 = vmatmul.mubr.f32.gmra.mrb[72].mxu1 %v11601_v28  ;;  %v11609_v28 = vld [vmem:[#allocation2 + $0x61] sm:$0xff] }
 0x7b5   :  { %5009 = vmatprep.mubr.f32.mxu1 %v3755_v5  ;;  %7434 = vmatpush1.bf16.msra.mxu1 %v7433_v51  ;;  %13806 = vst [vmem:[#allocation85_spill] sm:$0xff] %v11609_v28  ;;  %v3757_v51 = vld [vmem:[#allocation2 + $0x6a] sm:$0xff] }
 0x7b6   :  { %7435 = vmatprep.subr.bf16.mxu1 %v13653_v59  ;;  %v4119_v5 = vld [vmem:[#allocation8 + $0x388] sm:$0xff] }
 0x7b7   :  { %v7445_v38 = vpack.c.bf16 %v4119_v5, %v4118_v24  ;;  %v11625_v5 = vld [vmem:[#allocation2 + $0x91] sm:$0xff] }
 0x7b8   :  { %5010 = vmatmul.mubr.f32.gmra.mrb[74].mxu1 %v11605_v52  ;;  %v11613_v52 = vld [vmem:[#allocation2 + $0x69] sm:$0xff] }
 0x7b9   :  { %5014 = vmatprep.mubr.f32.mxu1 %v3756_v8  ;;  %7437 = vmatpush1.bf16.msra.mxu1 %v7436_v50  ;;  %13807 = vst [vmem:[#allocation87_spill] sm:$0xff] %v11613_v52  ;;  %v3758_v50 = vld [vmem:[#allocation2 + $0x7a] sm:$0xff] }
 0x7ba   :  { %7438 = vmatprep.subr.bf16.mxu1 %v13653_v59  ;;  %v4121_v8 = vld [vmem:[#allocation8 + $0x398] sm:$0xff] }
 0x7bb   :  { %v7448_v60 = vpack.c.bf16 %v4121_v8, %v4120_v21  ;;  %v11633_v21 = vld [vmem:[#allocation2 + $0xa9] sm:$0xff] }
 0x7bc   :  { %5015 = vmatmul.mubr.f32.gmra.mrb[76].mxu1 %v11609_v28  ;;  %v11617_v28 = vld [vmem:[#allocation2 + $0x79] sm:$0xff]  ;;  %v4124_v8 = vld [vmem:[#allocation8 + $0x3b0] sm:$0xff] }
 0x7bd   :  { %5019 = vmatprep.mubr.f32.mxu1 %v3757_v51  ;;  %7440 = vmatpush1.bf16.msra.mxu1 %v7439_v15  ;;  %v3759_v15 = vld [vmem:[#allocation2 + $0x82] sm:$0xff] }
 0x7be   :  { %7441 = vmatprep.subr.bf16.mxu1 %v13653_v59  ;;  %v4123_v51 = vld [vmem:[#allocation8 + $0x3a8] sm:$0xff] }
 0x7bf   :  { %v7451_v24 = vpack.c.bf16 %v4123_v51, %v4122_v31  ;;  %v11637_v31 = vld [vmem:[#allocation2 + $0xb1] sm:$0xff]  ;;  %v11642_v51 = vld [vmem:[#allocation2 + $0xc1] sm:$0xff] }
 0x7c0   :  { %5020 = vmatmul.mubr.f32.gmra.mrb[78].mxu1 %v11613_v52  ;;  %v11621_v52 = vld [vmem:[#allocation2 + $0x81] sm:$0xff] }
 0x7c1   :  { %5024 = vmatprep.mubr.f32.mxu1 %v3758_v50  ;;  %7443 = vmatpush1.bf16.msra.mxu1 %v7442_v43  ;;  %v3760_v43 = vld [vmem:[#allocation2 + $0x92] sm:$0xff]  ;;  %v3761_v50 = vld [vmem:[#allocation2 + $0x9a] sm:$0xff] }
 0x7c2   :  { %7444 = vmatprep.subr.bf16.mxu1 %v13653_v59 }
 0x7c4   :  { %5025 = vmatmul.mubr.f32.gmra.mrb[80].mxu1 %v11617_v28 }
 0x7c5   :  { %5029 = vmatprep.mubr.f32.mxu1 %v3759_v15  ;;  %7446 = vmatpush1.bf16.msra.mxu1 %v7445_v38  ;;  %v11629_v38 = vld [vmem:[#allocation2 + $0x99] sm:$0xff] }
 0x7c6   :  { %7447 = vmatprep.subr.bf16.mxu1 %v13653_v59  ;;  %v4125_v15 = vld [vmem:[#allocation8 + $0x3b8] sm:$0xff] }
 0x7c8   :  { %5030 = vmatmul.mubr.f32.gmra.mrb[82].mxu1 %v11621_v52 }
 0x7c9   :  { %5034 = vmatprep.mubr.f32.mxu1 %v3760_v43  ;;  %7449 = vmatpush1.bf16.msra.mxu1 %v7448_v60  ;;  %v7454_v60 = vpack.c.bf16 %v4125_v15, %v4124_v8  ;;  %v4127_v43 = vld [vmem:[#allocation8 + $0x3c8] sm:$0xff]  ;;  %v4129_v8 = vld [vmem:[#allocation8 + $0x3d8] sm:$0xff] }
 0x7ca   :  { %7450 = vmatprep.subr.bf16.mxu1 %v13653_v59 }
 0x7cc   :  { %5035 = vmatmul.mubr.f32.gmra.mrb[84].mxu1 %v11625_v5 }
 0x7cd   :  { %5039 = vmatprep.mubr.f32.mxu1 %v3761_v50  ;;  %7452 = vmatpush1.bf16.msra.mxu1 %v7451_v24  ;;  %v11654_v50 = vld [vmem:[#allocation2 + $0xe1] sm:$0xff] }
 0x7ce   :  { %7453 = vmatprep.subr.bf16.mxu1 %v13653_v59 }
 0x7d0   :  { %5040 = vmatmul.mubr.f32.gmra.mrb[86].mxu1 %v11629_v38 }
 0x7d1   :  { %5044 = vmatprep.mubr.f32.mxu1 %v11376_v42  ;;  %7455 = vmatpush1.bf16.msra.mxu1 %v7454_v60  ;;  %v11646_v42 = vld [vmem:[#allocation2 + $0xc9] sm:$0xff]  ;;  %v11671_v60 = vld [vmem:[#allocation2 + $0x111] sm:$0xff] }
 0x7d2   :  { %7456 = vmatprep.subr.bf16.mxu1 %v13653_v59 }
 0x7d4   :  { %5045 = vmatmul.mubr.f32.gmra.mrb[88].mxu1 %v11633_v21 }
 0x7d5   :  { %5049 = vmatprep.mubr.f32.mxu1 %v11384_v53  ;;  %v11650_v53 = vld [vmem:[#allocation2 + $0xd9] sm:$0xff] }
 0x7d8   :  { %5050 = vmatmul.mubr.f32.gmra.mrb[90].mxu1 %v11637_v31 }
 0x7d9   :  { %5054 = vmatprep.mubr.f32.mxu1 %v11392_v34  ;;  %v4126_v34 = vld [vmem:[#allocation8 + $0x3c0] sm:$0xff] }
 0x7da   :  { %v7457_v24 = vpack.c.bf16 %v4127_v43, %v4126_v34  ;;  %v4131_v34 = vld [vmem:[#allocation8 + $0x3e8] sm:$0xff] }
 0x7dc   :  { %5055 = vmatmul.mubr.f32.gmra.mrb[92].mxu1 %v11642_v51 }
 0x7dd   :  { %5059 = vmatprep.mubr.f32.mxu1 %v11400_v29  ;;  %7458 = vmatpush1.bf16.msra.mxu1 %v7457_v24  ;;  %v11659_v29 = vld [vmem:[#allocation2 + $0xf1] sm:$0xff]  ;;  %v11688_v24 = vld [vmem:[#allocation2 + $0x141] sm:$0xff] }
 0x7de   :  { %7459 = vmatprep.subr.bf16.mxu1 %v13653_v59 }
 0x7e0   :  { %5060 = vmatmul.mubr.f32.gmra.mrb[94].mxu1 %v11646_v42 }
 0x7e1   :  { %5064 = vmatprep.mubr.f32.mxu1 %v11409_v47  ;;  %v11663_v47 = vld [vmem:[#allocation2 + $0xf9] sm:$0xff] }
 0x7e4   :  { %5065 = vmatmul.mubr.f32.gmra.mrb[96].mxu1 %v11650_v53 }
 0x7e5   :  { %5069 = vmatprep.mubr.f32.mxu1 %v11417_v19  ;;  %v11667_v19 = vld [vmem:[#allocation2 + $0x109] sm:$0xff] }
 0x7e8   :  { %5070 = vmatmul.mubr.f32.gmra.mrb[98].mxu1 %v11654_v50 }
 0x7e9   :  { %5074 = vmatprep.mubr.f32.mxu1 %v11421_v49  ;;  %v4128_v49 = vld [vmem:[#allocation8 + $0x3d0] sm:$0xff] }
 0x7ea   :  { %v7460_v15 = vpack.c.bf16 %v4129_v8, %v4128_v49  ;;  %v11705_v8 = vld [vmem:[#allocation2 + $0x171] sm:$0xff] }
 0x7ec   :  { %5075 = vmatmul.mubr.f32.gmra.mrb[100].mxu1 %v11659_v29 }
 0x7ed   :  { %5079 = vmatprep.mubr.f32.mxu1 %v11425_v11  ;;  %7461 = vmatpush1.bf16.msra.mxu1 %v7460_v15  ;;  %v11676_v11 = vld [vmem:[#allocation2 + $0x121] sm:$0xff]  ;;  %v13808_v15 = vld [vmem:[#allocation104_spill] sm:$0xff] }
 0x7ee   :  { %7462 = vmatprep.subr.bf16.mxu1 %v13653_v59 }
 0x7f0   :  { %5080 = vmatmul.mubr.f32.gmra.mrb[102].mxu1 %v11663_v47 }
 0x7f1   :  { %5084 = vmatprep.mubr.f32.mxu1 %v11430_v62  ;;  %v11680_v62 = vld [vmem:[#allocation2 + $0x129] sm:$0xff] }
 0x7f4   :  { %5085 = vmatmul.mubr.f32.gmra.mrb[104].mxu1 %v11667_v19 }
 0x7f5   :  { %5089 = vmatprep.mubr.f32.mxu1 %v11434_v18  ;;  %v11684_v18 = vld [vmem:[#allocation2 + $0x139] sm:$0xff] }
 0x7f8   :  { %5090 = vmatmul.mubr.f32.gmra.mrb[106].mxu1 %v11671_v60 }
 0x7f9   :  { %5094 = vmatprep.mubr.f32.mxu1 %v11438_v55  ;;  %v4130_v55 = vld [vmem:[#allocation8 + $0x3e0] sm:$0xff] }
 0x7fa   :  { %v7463_v43 = vpack.c.bf16 %v4131_v34, %v4130_v55  ;;  %v11709_v55 = vld [vmem:[#allocation2 + $0x181] sm:$0xff]  ;;  %v11712_v34 = vld [vmem:[#allocation2 + $0x189] sm:$0xff] }
 0x7fc   :  { %5095 = vmatmul.mubr.f32.gmra.mrb[108].mxu1 %v11676_v11 }
 0x7fd   :  { %5099 = vmatprep.mubr.f32.mxu1 %v11442_v6  ;;  %7464 = vmatpush1.bf16.msra.mxu1 %v7463_v43  ;;  %v11693_v6 = vld [vmem:[#allocation2 + $0x151] sm:$0xff] }
 0x7fe   :  { %7465 = vmatprep.subr.bf16.mxu1 %v13653_v59  ;;  %v4133_v59 = vld [vmem:[#allocation8 + $0x3f8] sm:$0xff] }
 0x7ff   :  { %v3719_v43 = vld [vmem:[#allocation2 + $0x1d1] sm:$0xff] }
 0x800   :  { %5100 = vmatmul.mubr.f32.gmra.mrb[110].mxu1 %v11680_v62 }
 0x801   :  { %5104 = vmatprep.mubr.f32.mxu1 %v11447_v57  ;;  %v11697_v57 = vld [vmem:[#allocation2 + $0x159] sm:$0xff] }
 0x804   :  { %5105 = vmatmul.mubr.f32.gmra.mrb[112].mxu1 %v11684_v18 }
 0x805   :  { %5109 = vmatprep.mubr.f32.mxu1 %v11451_v1  ;;  %v11701_v1 = vld [vmem:[#allocation2 + $0x169] sm:$0xff] }
 0x808   :  { %5110 = vmatmul.mubr.f32.gmra.mrb[114].mxu1 %v11688_v24 }
 0x809   :  { %5114 = vmatprep.mubr.f32.mxu1 %v11455_v16  ;;  %v4132_v16 = vld [vmem:[#allocation8 + $0x3f0] sm:$0xff] }
 0x80a   :  { %v7466_v49 = vpack.c.bf16 %v4133_v59, %v4132_v16  ;;  %v11718_v16 = vld [vmem:[#allocation2 + $0x1e1] sm:$0xff]  ;;  %v11722_v59 = vld [vmem:[#allocation2 + $0x1e9] sm:$0xff] }
 0x80c   :  { %5115 = vmatmul.mubr.f32.gmra.mrb[116].mxu1 %v11693_v6 }
 0x80d   :  { %5119 = vmatprep.mubr.f32.mxu1 %v11459_v13  ;;  %v3780_v13 = vld [vmem:[#allocation2 + $0x182] sm:$0xff]  ;;  %7467 = vmatpush1.bf16.msra.mxu1 %v7466_v49  ;;  %v11835_v49 = vld [vmem:[#allocation2 + $0x33a] sm:$0xff] }
 0x80e   :  { %7500 = vmatprep.subr.bf16.mxu1 %v13808_v15  ;;  %13810 = vst [vmem:[#allocation100_spill] sm:$0xff] %v11835_v49 }
 0x810   :  { %5120 = vmatmul.mubr.f32.gmra.mrb[118].mxu1 %v11697_v57 }
 0x811   :  { %5124 = vmatprep.mubr.f32.mxu1 %v11463_v10  ;;  %v3781_v10 = vld [vmem:[#allocation2 + $0x18a] sm:$0xff] }
 0x814   :  { %5125 = vmatmul.mubr.f32.gmra.mrb[120].mxu1 %v11701_v1 }
 0x815   :  { %5129 = vmatprep.mubr.f32.mxu1 %v11466_v45  ;;  %v3718_v45 = vld [vmem:[#allocation2 + $0x1c9] sm:$0xff] }
 0x818   :  { %5130 = vmatmul.mubr.f32.gmra.mrb[122].mxu1 %v11705_v8 }
 0x819   :  { %5134 = vmatprep.mubr.f32.mxu1 %v3780_v13  ;;  %v13811_v13 = vld [vmem:[#allocation81_spill] sm:$0xff] }
 0x81c   :  { %5135 = vmatmul.mubr.f32.gmra.mrb[124].mxu1 %v11709_v55 }
 0x81d   :  { %5139 = vmatprep.mubr.f32.mxu1 %v3781_v10  ;;  %v3815_v10 = vld [vmem:[#allocation2 + $0x38] sm:$0xff] }
 0x820   :  { %5140 = vmatmul.mubr.f32.gmra.mrb[126].mxu1 %v11712_v34 }
 0x821   :  { %5144 = vmatprep.mubr.f32.mxu1 %v11472_v41  ;;  %v11726_v41 = vld [vmem:[#allocation2 + $0x1f9] sm:$0xff] }
 0x824   :  { %5145 = vmatmul.mubr.f32.gmra.mrb[128].mxu1 %v3718_v45  ;;  %v13812_v45 = vld [vmem:[#allocation75_spill] sm:$0xff] }
 0x825   :  { %5149 = vmatprep.mubr.f32.mxu1 %v11476_v17  ;;  %v11730_v17 = vld [vmem:[#allocation2 + $0x201] sm:$0xff] }
 0x828   :  { %5150 = vmatmul.mubr.f32.gmra.mrb[130].mxu1 %v3719_v43  ;;  %v13813_v43 = vld [vmem:[#allocation79_spill] sm:$0xff] }
 0x829   :  { %5154 = vmatprep.mubr.f32.mxu1 %v11480_v35  ;;  %v11734_v35 = vld [vmem:[#allocation2 + $0x211] sm:$0xff] }
 0x82c   :  { %5155 = vmatmul.mubr.f32.gmra.mrb[132].mxu1 %v11718_v16 }
 0x82d   :  { %5159 = vmatprep.mubr.f32.mxu1 %v11484_v63  ;;  %v11738_v63 = vld [vmem:[#allocation2 + $0x219] sm:$0xff] }
 0x830   :  { %5160 = vmatmul.mubr.f32.gmra.mrb[134].mxu1 %v11722_v59 }
 0x831   :  { %5164 = vmatprep.mubr.f32.mxu1 %v11488_v3  ;;  %v11742_v3 = vld [vmem:[#allocation2 + $0x229] sm:$0xff] }
 0x834   :  { %5165 = vmatmul.mubr.f32.gmra.mrb[136].mxu1 %v11726_v41 }
 0x835   :  { %5169 = vmatprep.mubr.f32.mxu1 %v11492_v7  ;;  %v11746_v7 = vld [vmem:[#allocation2 + $0x231] sm:$0xff] }
 0x838   :  { %5170 = vmatmul.mubr.f32.gmra.mrb[138].mxu1 %v11730_v17 }
 0x839   :  { %5174 = vmatprep.mubr.f32.mxu1 %v11496_v4  ;;  %v11750_v4 = vld [vmem:[#allocation2 + $0x241] sm:$0xff] }
 0x83c   :  { %5175 = vmatmul.mubr.f32.gmra.mrb[140].mxu1 %v11734_v35 }
 0x83d   :  { %5179 = vmatprep.mubr.f32.mxu1 %v11500_v30  ;;  %v11754_v30 = vld [vmem:[#allocation2 + $0x249] sm:$0xff] }
 0x840   :  { %5180 = vmatmul.mubr.f32.gmra.mrb[142].mxu1 %v11738_v63 }
 0x841   :  { %5184 = vmatprep.mubr.f32.mxu1 %v11504_v39  ;;  %v11758_v39 = vld [vmem:[#allocation2 + $0x259] sm:$0xff] }
 0x844   :  { %5185 = vmatmul.mubr.f32.gmra.mrb[144].mxu1 %v11742_v3 }
 0x845   :  { %5189 = vmatprep.mubr.f32.mxu1 %v11508_v33  ;;  %v11762_v33 = vld [vmem:[#allocation2 + $0x261] sm:$0xff] }
 0x848   :  { %5190 = vmatmul.mubr.f32.gmra.mrb[146].mxu1 %v11746_v7 }
 0x849   :  { %5194 = vmatprep.mubr.f32.mxu1 %v11512_v25  ;;  %v11766_v25 = vld [vmem:[#allocation2 + $0x271] sm:$0xff] }
 0x84c   :  { %5195 = vmatmul.mubr.f32.gmra.mrb[148].mxu1 %v11750_v4 }
 0x84d   :  { %5199 = vmatprep.mubr.f32.mxu1 %v11516_v56  ;;  %v11770_v56 = vld [vmem:[#allocation2 + $0x279] sm:$0xff] }
 0x850   :  { %5200 = vmatmul.mubr.f32.gmra.mrb[150].mxu1 %v11754_v30 }
 0x851   :  { %5204 = vmatprep.mubr.f32.mxu1 %v11520_v2  ;;  %v11774_v2 = vld [vmem:[#allocation2 + $0x289] sm:$0xff] }
 0x854   :  { %5205 = vmatmul.mubr.f32.gmra.mrb[152].mxu1 %v11758_v39 }
 0x855   :  { %5209 = vmatprep.mubr.f32.mxu1 %v11524_v22  ;;  %v11778_v22 = vld [vmem:[#allocation2 + $0x291] sm:$0xff] }
 0x858   :  { %5210 = vmatmul.mubr.f32.gmra.mrb[154].mxu1 %v11762_v33 }
 0x859   :  { %5214 = vmatprep.mubr.f32.mxu1 %v11528_v27  ;;  %v11782_v27 = vld [vmem:[#allocation2 + $0x2a1] sm:$0xff] }
 0x85c   :  { %5215 = vmatmul.mubr.f32.gmra.mrb[156].mxu1 %v11766_v25 }
 0x85d   :  { %5219 = vmatprep.mubr.f32.mxu1 %v11532_v9  ;;  %v11786_v9 = vld [vmem:[#allocation2 + $0x2a9] sm:$0xff] }
 0x860   :  { %5220 = vmatmul.mubr.f32.gmra.mrb[158].mxu1 %v11770_v56 }
 0x861   :  { %5224 = vmatprep.mubr.f32.mxu1 %v11536_v40  ;;  %v11790_v40 = vld [vmem:[#allocation2 + $0x2b9] sm:$0xff] }
 0x864   :  { %5225 = vmatmul.mubr.f32.gmra.mrb[160].mxu1 %v11774_v2 }
 0x865   :  { %5229 = vmatprep.mubr.f32.mxu1 %v11540_v58  ;;  %v11794_v58 = vld [vmem:[#allocation2 + $0x2c1] sm:$0xff] }
 0x868   :  { %5230 = vmatmul.mubr.f32.gmra.mrb[162].mxu1 %v11778_v22 }
 0x869   :  { %5234 = vmatprep.mubr.f32.mxu1 %v11544_v61  ;;  %v11798_v61 = vld [vmem:[#allocation2 + $0x2d1] sm:$0xff] }
 0x86c   :  { %5235 = vmatmul.mubr.f32.gmra.mrb[164].mxu1 %v11782_v27 }
 0x86d   :  { %5239 = vmatprep.mubr.f32.mxu1 %v11548_v0  ;;  %v11802_v0 = vld [vmem:[#allocation2 + $0x2d9] sm:$0xff] }
 0x870   :  { %5240 = vmatmul.mubr.f32.gmra.mrb[166].mxu1 %v11786_v9 }
 0x871   :  { %5244 = vmatprep.mubr.f32.mxu1 %v11552_v23  ;;  %v11806_v23 = vld [vmem:[#allocation2 + $0x2e9] sm:$0xff] }
 0x874   :  { %5245 = vmatmul.mubr.f32.gmra.mrb[168].mxu1 %v11790_v40 }
 0x875   :  { %5249 = vmatprep.mubr.f32.mxu1 %v11556_v48  ;;  %v11810_v48 = vld [vmem:[#allocation2 + $0x2f1] sm:$0xff] }
 0x878   :  { %5250 = vmatmul.mubr.f32.gmra.mrb[170].mxu1 %v11794_v58 }
 0x879   :  { %5254 = vmatprep.mubr.f32.mxu1 %v11560_v46  ;;  %v11814_v46 = vld [vmem:[#allocation2 + $0x301] sm:$0xff] }
 0x87c   :  { %5255 = vmatmul.mubr.f32.gmra.mrb[172].mxu1 %v11798_v61 }
 0x87d   :  { %5259 = vmatprep.mubr.f32.mxu1 %v11564_v54  ;;  %v11818_v54 = vld [vmem:[#allocation2 + $0x309] sm:$0xff] }
 0x880   :  { %5260 = vmatmul.mubr.f32.gmra.mrb[174].mxu1 %v11802_v0 }
 0x881   :  { %5264 = vmatprep.mubr.f32.mxu1 %v11568_v20  ;;  %v11822_v20 = vld [vmem:[#allocation2 + $0x319] sm:$0xff] }
 0x884   :  { %5265 = vmatmul.mubr.f32.gmra.mrb[176].mxu1 %v11806_v23 }
 0x885   :  { %5269 = vmatprep.mubr.f32.mxu1 %v11572_v12  ;;  %v11826_v12 = vld [vmem:[#allocation2 + $0x321] sm:$0xff] }
 0x888   :  { %5270 = vmatmul.mubr.f32.gmra.mrb[178].mxu1 %v11810_v48 }
 0x889   :  { %5274 = vmatprep.mubr.f32.mxu1 %v11576_v26  ;;  %v11829_v26 = vld [vmem:[#allocation2 + $0x332] sm:$0xff] }
 0x88a   :  { %13809 = vst [vmem:[#allocation88_spill] sm:$0xff] %v11829_v26 }
 0x88c   :  { %5275 = vmatmul.mubr.f32.gmra.mrb[180].mxu1 %v11814_v46 }
 0x88d   :  { %5279 = vmatprep.mubr.f32.mxu1 %v11580_v32  ;;  %v11832_v32 = vld [vmem:[#allocation2 + $0x331] sm:$0xff] }
 0x890   :  { %5280 = vmatmul.mubr.f32.gmra.mrb[182].mxu1 %v11818_v54 }
 0x891   :  { %5284 = vmatprep.mubr.f32.mxu1 %v11583_v36  ;;  %v11838_v36 = vld [vmem:[#allocation2 + $0x339] sm:$0xff] }
 0x894   :  { %5285 = vmatmul.mubr.f32.gmra.mrb[184].mxu1 %v11822_v20 }
 0x895   :  { %5289 = vmatprep.mubr.f32.mxu1 %v11586_v44  ;;  %v3814_v44 = vld [vmem:[#allocation2 + $0x30] sm:$0xff] }
 0x898   :  { %5290 = vmatmul.mubr.f32.gmra.mrb[186].mxu1 %v11826_v12 }
 0x899   :  { %5294 = vmatprep.mubr.f32.mxu1 %v11829_v26  ;;  %v13814_v26 = vld [vmem:[#allocation84_spill] sm:$0xff] }
 0x89c   :  { %5295 = vmatmul.mubr.f32.gmra.mrb[188].mxu1 %v11832_v32 }
 0x89d   :  { %5299 = vmatprep.mubr.f32.mxu1 %v11835_v49  ;;  %v3816_v49 = vld [vmem:[#allocation2 + $0x48] sm:$0xff] }
 0x8a0   :  { %5300 = vmatmul.mubr.f32.gmra.mrb[190].mxu1 %v11838_v36 }
 0x8a1   :  { %5369 = vmatprep.mubr.f32.mxu1 %v11593_v14  ;;  %v13815_v14 = vld [vmem:[#allocation105_spill] sm:$0xff] }
 0x8a4   :  { %5370 = vmatmul.mubr.f32.vlgmr.msra.gmra.mrb[64].mxu1 %v3814_v44  ;;  %v13817_v44 = vld [vmem:[#allocation106_spill] sm:$0xff] }
 0x8a5   :  { %5374 = vmatprep.mubr.f32.mxu1 %v11597_v37  ;;  %7508 = vmatpush3.bf16.msra.mxu1 %v13808_v15  ;;  %v3817_v37 = vld [vmem:[#allocation2 + $0x50] sm:$0xff]  ;;  %v13816_v15 = vld [vmem:[#allocation85_spill] sm:$0xff] }
 0x8a6   :  { %7501 = vmatprep.subr.bf16.mxu1 %v13811_v13 }
 0x8a8   :  { %5375 = vmatmul.mubr.f32.gmra.mrb[66].mxu1 %v3815_v10  ;;  %v3818_v10 = vld [vmem:[#allocation2 + $0x60] sm:$0xff] }
 0x8a9   :  { %5379 = vmatprep.mubr.f32.mxu1 %v13812_v45  ;;  %7509 = vmatpush3.bf16.msra.mxu1 %v13811_v13  ;;  %v13818_v13 = vld [vmem:[#allocation87_spill] sm:$0xff]  ;;  %v13820_v45 = vld [vmem:[#allocation108_spill] sm:$0xff] }
 0x8aa   :  { %7502 = vmatprep.subr.bf16.mxu1 %v13813_v43 }
 0x8ac   :  { %5380 = vmatmul.mubr.f32.gmra.mrb[68].mxu1 %v3816_v49  ;;  %v13819_v49 = vld [vmem:[#allocation107_spill] sm:$0xff] }
 0x8ad   :  { %5384 = vmatprep.mubr.f32.mxu1 %v13814_v26  ;;  %7510 = vmatpush3.bf16.msra.mxu1 %v13813_v43  ;;  %v3819_v26 = vld [vmem:[#allocation2 + $0x68] sm:$0xff]  ;;  %v3820_v43 = vld [vmem:[#allocation2 + $0x78] sm:$0xff] }
 0x8ae   :  { %7503 = vmatprep.subr.bf16.mxu1 %v13815_v14 }
 0x8b0   :  { %5385 = vmatmul.mubr.f32.gmra.mrb[70].mxu1 %v3817_v37  ;;  %v3821_v37 = vld [vmem:[#allocation2 + $0x80] sm:$0xff] }
 0x8b1   :  { %5389 = vmatprep.mubr.f32.mxu1 %v13816_v15  ;;  %7511 = vmatpush3.bf16.msra.mxu1 %v13815_v14  ;;  %v13821_v14 = vld [vmem:[#allocation109_spill] sm:$0xff]  ;;  %v3822_v15 = vld [vmem:[#allocation2 + $0x90] sm:$0xff] }
 0x8b2   :  { %7504 = vmatprep.subr.bf16.mxu1 %v13817_v44 }
 0x8b4   :  { %5390 = vmatmul.mubr.f32.gmra.mrb[72].mxu1 %v3818_v10  ;;  %v3826_v10 = vld [vmem:[#allocation2 + $0xc0] sm:$0xff] }
 0x8b5   :  { %5394 = vmatprep.mubr.f32.mxu1 %v13818_v13  ;;  %7512 = vmatpush3.bf16.msra.mxu1 %v13817_v44  ;;  %v3824_v44 = vld [vmem:[#allocation2 + $0xa8] sm:$0xff] }
 0x8b6   :  { %7505 = vmatprep.subr.bf16.mxu1 %v13819_v49  ;;  %v3843_v13 = vld [vmem:[#allocation2 + $0x188] sm:$0xff] }
 0x8b8   :  { %5395 = vmatmul.mubr.f32.gmra.mrb[74].mxu1 %v3819_v26  ;;  %v3850_v26 = vld [vmem:[#allocation2 + $0x210] sm:$0xff] }
 0x8b9   :  { %5399 = vmatprep.mubr.f32.mxu1 %v11617_v28  ;;  %7513 = vmatpush3.bf16.msra.mxu1 %v13819_v49  ;;  %v3823_v28 = vld [vmem:[#allocation2 + $0x98] sm:$0xff]  ;;  %v11886_v49 = vld [vmem:[#allocation2] sm:$0xff] }
 0x8ba   :  { %7506 = vmatprep.subr.bf16.mxu1 %v13820_v45 }
 0x8bc   :  { %5400 = vmatmul.mubr.f32.gmra.mrb[76].mxu1 %v3820_v43  ;;  %v13822_v43 = vld [vmem:[#allocation89_spill] sm:$0xff] }
 0x8bd   :  { %5404 = vmatprep.mubr.f32.mxu1 %v11621_v52  ;;  %7514 = vmatpush3.bf16.msra.mxu1 %v13820_v45  ;;  %v3825_v52 = vld [vmem:[#allocation2 + $0xb0] sm:$0xff]  ;;  %v3867_v45 = vld [vmem:[#allocation2 + $0x2d8] sm:$0xff] }
 0x8be   :  { %7507 = vmatprep.subr.bf16.mxu1 %v13821_v14 }
 0x8c0   :  { %5405 = vmatmul.mubr.f32.gmra.mrb[78].mxu1 %v3821_v37  ;;  %v3868_v37 = vld [vmem:[#allocation2 + $0x2e8] sm:$0xff] }
 0x8c1   :  { %5409 = vmatprep.mubr.f32.mxu1 %v11625_v5  ;;  %7515 = vmatpush3.bf16.msra.mxu1 %v13821_v14  ;;  %v3827_v5 = vld [vmem:[#allocation2 + $0xc8] sm:$0xff] }
 0x8c4   :  { %5410 = vmatmul.mubr.f32.gmra.mrb[80].mxu1 %v3822_v15 }
 0x8c5   :  { %5414 = vmatprep.mubr.f32.mxu1 %v11629_v38  ;;  %v3828_v38 = vld [vmem:[#allocation2 + $0xd8] sm:$0xff] }
 0x8c8   :  { %5415 = vmatmul.mubr.f32.gmra.mrb[82].mxu1 %v3823_v28 }
 0x8c9   :  { %5419 = vmatprep.mubr.f32.mxu1 %v11633_v21  ;;  %v3829_v21 = vld [vmem:[#allocation2 + $0xe0] sm:$0xff] }
 0x8cc   :  { %5420 = vmatmul.mubr.f32.gmra.mrb[84].mxu1 %v3824_v44  ;;  %v13824_v44 = vld [vmem:[#allocation99_spill] sm:$0xff] }
 0x8cd   :  { %5424 = vmatprep.mubr.f32.mxu1 %v11637_v31  ;;  %v3830_v31 = vld [vmem:[#allocation2 + $0xf0] sm:$0xff] }
 0x8d0   :  { %5425 = vmatmul.mubr.f32.gmra.mrb[86].mxu1 %v3825_v52 }
 0x8d1   :  { %5429 = vmatprep.mubr.f32.mxu1 %v11642_v51  ;;  %v3831_v51 = vld [vmem:[#allocation2 + $0xf8] sm:$0xff] }
 0x8d4   :  { %5430 = vmatmul.mubr.f32.gmra.mrb[88].mxu1 %v3826_v10 }
 0x8d5   :  { %5434 = vmatprep.mubr.f32.mxu1 %v11646_v42  ;;  %v3832_v42 = vld [vmem:[#allocation2 + $0x108] sm:$0xff] }
 0x8d8   :  { %5435 = vmatmul.mubr.f32.gmra.mrb[90].mxu1 %v3827_v5 }
 0x8d9   :  { %5439 = vmatprep.mubr.f32.mxu1 %v11650_v53  ;;  %v3833_v53 = vld [vmem:[#allocation2 + $0x110] sm:$0xff] }
 0x8dc   :  { %5440 = vmatmul.mubr.f32.gmra.mrb[92].mxu1 %v3828_v38  ;;  %v13825_v38 = vld [vmem:[#allocation92_spill] sm:$0xff] }
 0x8dd   :  { %5444 = vmatprep.mubr.f32.mxu1 %v11654_v50  ;;  %v3834_v50 = vld [vmem:[#allocation2 + $0x120] sm:$0xff] }
 0x8e0   :  { %5445 = vmatmul.mubr.f32.gmra.mrb[94].mxu1 %v3829_v21 }
 0x8e1   :  { %5449 = vmatprep.mubr.f32.mxu1 %v11659_v29  ;;  %v3835_v29 = vld [vmem:[#allocation2 + $0x128] sm:$0xff] }
 0x8e4   :  { %5450 = vmatmul.mubr.f32.gmra.mrb[96].mxu1 %v3830_v31 }
 0x8e5   :  { %5454 = vmatprep.mubr.f32.mxu1 %v11663_v47  ;;  %v3836_v47 = vld [vmem:[#allocation2 + $0x138] sm:$0xff] }
 0x8e8   :  { %5455 = vmatmul.mubr.f32.gmra.mrb[98].mxu1 %v3831_v51 }
 0x8e9   :  { %5459 = vmatprep.mubr.f32.mxu1 %v11667_v19  ;;  %v3837_v19 = vld [vmem:[#allocation2 + $0x140] sm:$0xff] }
 0x8ec   :  { %5460 = vmatmul.mubr.f32.gmra.mrb[100].mxu1 %v3832_v42  ;;  %v13826_v42 = vld [vmem:[#allocation102_spill] sm:$0xff] }
 0x8ed   :  { %5464 = vmatprep.mubr.f32.mxu1 %v11671_v60  ;;  %v3838_v60 = vld [vmem:[#allocation2 + $0x150] sm:$0xff] }
 0x8f0   :  { %5465 = vmatmul.mubr.f32.gmra.mrb[102].mxu1 %v3833_v53 }
 0x8f1   :  { %5469 = vmatprep.mubr.f32.mxu1 %v11676_v11  ;;  %v3839_v11 = vld [vmem:[#allocation2 + $0x158] sm:$0xff] }
 0x8f4   :  { %5470 = vmatmul.mubr.f32.gmra.mrb[104].mxu1 %v3834_v50 }
 0x8f5   :  { %5474 = vmatprep.mubr.f32.mxu1 %v11680_v62  ;;  %v3840_v62 = vld [vmem:[#allocation2 + $0x168] sm:$0xff] }
 0x8f8   :  { %5475 = vmatmul.mubr.f32.gmra.mrb[106].mxu1 %v3835_v29 }
 0x8f9   :  { %5479 = vmatprep.mubr.f32.mxu1 %v11684_v18  ;;  %v3841_v18 = vld [vmem:[#allocation2 + $0x170] sm:$0xff] }
 0x8fc   :  { %5480 = vmatmul.mubr.f32.gmra.mrb[108].mxu1 %v3836_v47  ;;  %v13827_v47 = vld [vmem:[#allocation101_spill] sm:$0xff] }
 0x8fd   :  { %5484 = vmatprep.mubr.f32.mxu1 %v11688_v24  ;;  %v3842_v24 = vld [vmem:[#allocation2 + $0x180] sm:$0xff] }
 0x900   :  { %5485 = vmatmul.mubr.f32.gmra.mrb[110].mxu1 %v3837_v19 }
 0x901   :  { %5489 = vmatprep.mubr.f32.mxu1 %v11693_v6  ;;  %v3908_v6 = vld [vmem:[#allocation2 + $0x199] sm:$0xff] }
 0x904   :  { %5490 = vmatmul.mubr.f32.gmra.mrb[112].mxu1 %v3838_v60 }
 0x905   :  { %5494 = vmatprep.mubr.f32.mxu1 %v11697_v57  ;;  %v3909_v57 = vld [vmem:[#allocation2 + $0x1a1] sm:$0xff] }
 0x908   :  { %5495 = vmatmul.mubr.f32.gmra.mrb[114].mxu1 %v3839_v11 }
 0x909   :  { %5499 = vmatprep.mubr.f32.mxu1 %v11701_v1  ;;  %v3846_v1 = vld [vmem:[#allocation2 + $0x1e0] sm:$0xff] }
 0x90c   :  { %5500 = vmatmul.mubr.f32.gmra.mrb[116].mxu1 %v3840_v62  ;;  %v13828_v62 = vld [vmem:[#allocation110_spill] sm:$0xff] }
 0x90d   :  { %5504 = vmatprep.mubr.f32.mxu1 %v11705_v8  ;;  %v3847_v8 = vld [vmem:[#allocation2 + $0x1e8] sm:$0xff] }
 0x910   :  { %5505 = vmatmul.mubr.f32.gmra.mrb[118].mxu1 %v3841_v18 }
 0x911   :  { %5509 = vmatprep.mubr.f32.mxu1 %v11709_v55  ;;  %v3848_v55 = vld [vmem:[#allocation2 + $0x1f8] sm:$0xff] }
 0x914   :  { %5510 = vmatmul.mubr.f32.gmra.mrb[120].mxu1 %v3842_v24 }
 0x915   :  { %5514 = vmatprep.mubr.f32.mxu1 %v11712_v34  ;;  %v3849_v34 = vld [vmem:[#allocation2 + $0x200] sm:$0xff] }
 0x918   :  { %5515 = vmatmul.mubr.f32.gmra.mrb[122].mxu1 %v3843_v13  ;;  %v13829_v13 = vld [vmem:[#allocation76_spill] sm:$0xff] }
 0x919   :  { %5519 = vmatprep.mubr.f32.mxu1 %v3908_v6 }
 0x91c   :  { %5520 = vmatmul.mubr.f32.gmra.mrb[124].mxu1 %v11886_v49 }
 0x91d   :  { %5524 = vmatprep.mubr.f32.mxu1 %v3909_v57 }
 0x920   :  { %5525 = vmatmul.mubr.f32.gmra.mrb[126].mxu1 %v11886_v49 }
 0x921   :  { %5529 = vmatprep.mubr.f32.mxu1 %v11718_v16  ;;  %v3851_v16 = vld [vmem:[#allocation2 + $0x218] sm:$0xff] }
 0x924   :  { %5530 = vmatmul.mubr.f32.gmra.mrb[128].mxu1 %v3846_v1 }
 0x925   :  { %5534 = vmatprep.mubr.f32.mxu1 %v11722_v59  ;;  %v3852_v59 = vld [vmem:[#allocation2 + $0x228] sm:$0xff] }
 0x928   :  { %5535 = vmatmul.mubr.f32.gmra.mrb[130].mxu1 %v3847_v8  ;;  %v3940_v8 = vld [vmem:[#allocation2 + $0x349] sm:$0xff] }
 0x929   :  { %5539 = vmatprep.mubr.f32.mxu1 %v11726_v41  ;;  %v3853_v41 = vld [vmem:[#allocation2 + $0x230] sm:$0xff] }
 0x92c   :  { %5540 = vmatmul.mubr.f32.gmra.mrb[132].mxu1 %v3848_v55  ;;  %v3875_v55 = vld [vmem:[#allocation2 + $0x338] sm:$0xff] }
 0x92d   :  { %5544 = vmatprep.mubr.f32.mxu1 %v11730_v17  ;;  %v3854_v17 = vld [vmem:[#allocation2 + $0x240] sm:$0xff] }
 0x930   :  { %5545 = vmatmul.mubr.f32.gmra.mrb[134].mxu1 %v3849_v34  ;;  %v13830_v34 = vld [vmem:[#allocation113_spill] sm:$0xff] }
 0x931   :  { %5549 = vmatprep.mubr.f32.mxu1 %v11734_v35  ;;  %v3855_v35 = vld [vmem:[#allocation2 + $0x248] sm:$0xff] }
 0x934   :  { %5550 = vmatmul.mubr.f32.gmra.mrb[136].mxu1 %v3850_v26 }
 0x935   :  { %5554 = vmatprep.mubr.f32.mxu1 %v11738_v63  ;;  %v3856_v63 = vld [vmem:[#allocation2 + $0x258] sm:$0xff] }
 0x938   :  { %5555 = vmatmul.mubr.f32.gmra.mrb[138].mxu1 %v3851_v16 }
 0x939   :  { %5559 = vmatprep.mubr.f32.mxu1 %v11742_v3  ;;  %v3857_v3 = vld [vmem:[#allocation2 + $0x260] sm:$0xff] }
 0x93c   :  { %5560 = vmatmul.mubr.f32.gmra.mrb[140].mxu1 %v3852_v59  ;;  %v3941_v59 = vld [vmem:[#allocation2 + $0x351] sm:$0xff] }
 0x93d   :  { %5564 = vmatprep.mubr.f32.mxu1 %v11746_v7  ;;  %v3858_v7 = vld [vmem:[#allocation2 + $0x270] sm:$0xff] }
 0x940   :  { %5565 = vmatmul.mubr.f32.gmra.mrb[142].mxu1 %v3853_v41  ;;  %v13831_v41 = vld [vmem:[#allocation112_spill] sm:$0xff] }
 0x941   :  { %5569 = vmatprep.mubr.f32.mxu1 %v11750_v4  ;;  %v3859_v4 = vld [vmem:[#allocation2 + $0x278] sm:$0xff] }
 0x944   :  { %5570 = vmatmul.mubr.f32.gmra.mrb[144].mxu1 %v3854_v17 }
 0x945   :  { %5574 = vmatprep.mubr.f32.mxu1 %v11754_v30  ;;  %v3860_v30 = vld [vmem:[#allocation2 + $0x288] sm:$0xff] }
 0x948   :  { %5575 = vmatmul.mubr.f32.gmra.mrb[146].mxu1 %v3855_v35 }
 0x949   :  { %5579 = vmatprep.mubr.f32.mxu1 %v11758_v39  ;;  %v3861_v39 = vld [vmem:[#allocation2 + $0x290] sm:$0xff] }
 0x94c   :  { %5580 = vmatmul.mubr.f32.gmra.mrb[148].mxu1 %v3856_v63 }
 0x94d   :  { %5584 = vmatprep.mubr.f32.mxu1 %v11762_v33  ;;  %v3862_v33 = vld [vmem:[#allocation2 + $0x2a0] sm:$0xff] }
 0x950   :  { %5585 = vmatmul.mubr.f32.gmra.mrb[150].mxu1 %v3857_v3 }
 0x951   :  { %5589 = vmatprep.mubr.f32.mxu1 %v11766_v25  ;;  %v3863_v25 = vld [vmem:[#allocation2 + $0x2a8] sm:$0xff] }
 0x954   :  { %5590 = vmatmul.mubr.f32.gmra.mrb[152].mxu1 %v3858_v7 }
 0x955   :  { %5594 = vmatprep.mubr.f32.mxu1 %v11770_v56  ;;  %v3864_v56 = vld [vmem:[#allocation2 + $0x2b8] sm:$0xff] }
 0x958   :  { %5595 = vmatmul.mubr.f32.gmra.mrb[154].mxu1 %v3859_v4  ;;  %v3998_v4 = vld [vmem:[#allocation2 + $0x302] sm:$0xff] }
 0x959   :  { %5599 = vmatprep.mubr.f32.mxu1 %v11774_v2  ;;  %v3865_v2 = vld [vmem:[#allocation2 + $0x2c0] sm:$0xff] }
 0x95c   :  { %5600 = vmatmul.mubr.f32.gmra.mrb[156].mxu1 %v3860_v30 }
 0x95d   :  { %5604 = vmatprep.mubr.f32.mxu1 %v11778_v22  ;;  %v3866_v22 = vld [vmem:[#allocation2 + $0x2d0] sm:$0xff] }
 0x960   :  { %5605 = vmatmul.mubr.f32.gmra.mrb[158].mxu1 %v3861_v39  ;;  %v3999_v39 = vld [vmem:[#allocation2 + $0x30a] sm:$0xff] }
 0x961   :  { %5609 = vmatprep.mubr.f32.mxu1 %v11782_v27 }
 0x964   :  { %5610 = vmatmul.mubr.f32.gmra.mrb[160].mxu1 %v3862_v33  ;;  %v13833_v33 = vld [vmem:[#allocation115_spill] sm:$0xff] }
 0x965   :  { %5614 = vmatprep.mubr.f32.mxu1 %v11786_v9 }
 0x968   :  { %5615 = vmatmul.mubr.f32.gmra.mrb[162].mxu1 %v3863_v25 }
 0x969   :  { %5619 = vmatprep.mubr.f32.mxu1 %v11790_v40 }
 0x96c   :  { %5620 = vmatmul.mubr.f32.gmra.mrb[164].mxu1 %v3864_v56 }
 0x96d   :  { %5624 = vmatprep.mubr.f32.mxu1 %v11794_v58  ;;  %v13823_v58 = vld [vmem:[#allocation86_spill] sm:$0xff] }
 0x970   :  { %5625 = vmatmul.mubr.f32.gmra.mrb[166].mxu1 %v3865_v2  ;;  %v4000_v2 = vld [vmem:[#allocation2 + $0x31a] sm:$0xff] }
 0x971   :  { %5629 = vmatprep.mubr.f32.mxu1 %v11798_v61 }
 0x974   :  { %5630 = vmatmul.mubr.f32.gmra.mrb[168].mxu1 %v3866_v22 }
 0x975   :  { %5634 = vmatprep.mubr.f32.mxu1 %v11802_v0  ;;  %v3869_v0 = vld [vmem:[#allocation2 + $0x2f0] sm:$0xff] }
 0x977   :  { %v5371_v27 = vpop.f32.mrb[64].mxu1 }
 0x978   :  { %v11913_v9 = vadd.f32 %v13822_v43, %v5371_v27  ;;  %v5373_v14 = vpop.f32.mrb[65].mxu1  ;;  %5635 = vmatmul.mubr.f32.gmra.mrb[170].mxu1 %v3867_v45  ;;  %v4001_v27 = vld [vmem:[#allocation2 + $0x322] sm:$0xff]  ;;  %v13834_v45 = vld [vmem:[#allocation119_spill] sm:$0xff] }
 0x979   :  { %5639 = vmatprep.mubr.f32.mxu1 %v11806_v23  ;;  %v3870_v23 = vld [vmem:[#allocation2 + $0x300] sm:$0xff] }
 0x97b   :  { %v5376_v40 = vpop.f32.mrb[66].mxu1 }
 0x97c   :  { %v11917_v15 = vadd.f32 %v13823_v58, %v5376_v40  ;;  %v5378_v28 = vpop.f32.mrb[67].mxu1  ;;  %5640 = vmatmul.mubr.f32.gmra.mrb[172].mxu1 %v3868_v37  ;;  %v13835_v40 = vld [vmem:[#allocation88_spill] sm:$0xff]  ;;  %v13836_v58 = vld [vmem:[#allocation118_spill] sm:$0xff] }
 0x97d   :  { %5644 = vmatprep.mubr.f32.mxu1 %v11810_v48  ;;  %v3871_v48 = vld [vmem:[#allocation2 + $0x308] sm:$0xff] }
 0x97f   :  { %v5381_v61 = vpop.f32.mrb[68].mxu1 }
 0x980   :  { %v11921_v52 = vadd.f32 %v13824_v44, %v5381_v61  ;;  %v5383_v10 = vpop.f32.mrb[69].mxu1  ;;  %5645 = vmatmul.mubr.f32.gmra.mrb[174].mxu1 %v3869_v0  ;;  %v13837_v0 = vld [vmem:[#allocation100_spill] sm:$0xff] }
 0x981   :  { %5649 = vmatprep.mubr.f32.mxu1 %v11814_v46  ;;  %v3872_v46 = vld [vmem:[#allocation2 + $0x318] sm:$0xff] }
 0x982   :  { %v4005_v44 = vld [vmem:[#allocation2 + $0x352] sm:$0xff] }
 0x983   :  { %v5386_v5 = vpop.f32.mrb[70].mxu1 }
 0x984   :  { %v11925_v21 = vadd.f32 %v13825_v38, %v5386_v5  ;;  %v5388_v31 = vpop.f32.mrb[71].mxu1  ;;  %5650 = vmatmul.mubr.f32.gmra.mrb[176].mxu1 %v3870_v23  ;;  %v13838_v5 = vld [vmem:[#allocation122_spill] sm:$0xff] }
 0x985   :  { %5654 = vmatprep.mubr.f32.mxu1 %v11818_v54  ;;  %v3873_v54 = vld [vmem:[#allocation2 + $0x320] sm:$0xff] }
 0x987   :  { %v5391_v51 = vpop.f32.mrb[72].mxu1 }
 0x988   :  { %v11929_v53 = vadd.f32 %v13826_v42, %v5391_v51  ;;  %v5393_v50 = vpop.f32.mrb[73].mxu1  ;;  %5655 = vmatmul.mubr.f32.gmra.mrb[178].mxu1 %v3871_v48  ;;  %v13839_v51 = vld [vmem:[#allocation121_spill] sm:$0xff] }
 0x989   :  { %5659 = vmatprep.mubr.f32.mxu1 %v11822_v20  ;;  %v3874_v20 = vld [vmem:[#allocation2 + $0x330] sm:$0xff] }
 0x98b   :  { %v5396_v29 = vpop.f32.mrb[74].mxu1 }
 0x98c   :  { %v11933_v19 = vadd.f32 %v13827_v47, %v5396_v29  ;;  %v5398_v60 = vpop.f32.mrb[75].mxu1  ;;  %5660 = vmatmul.mubr.f32.gmra.mrb[180].mxu1 %v3872_v46  ;;  %v13840_v29 = vld [vmem:[#allocation91_spill] sm:$0xff] }
 0x98d   :  { %5664 = vmatprep.mubr.f32.mxu1 %v11826_v12 }
 0x98f   :  { %v5401_v11 = vpop.f32.mrb[76].mxu1 }
 0x990   :  { %v11937_v18 = vadd.f32 %v13828_v62, %v5401_v11  ;;  %v5403_v24 = vpop.f32.mrb[77].mxu1  ;;  %5665 = vmatmul.mubr.f32.gmra.mrb[182].mxu1 %v3873_v54  ;;  %v13841_v11 = vld [vmem:[#allocation123_spill] sm:$0xff] }
 0x991   :  { %5669 = vmatprep.mubr.f32.mxu1 %v11832_v32 }
 0x993   :  { %v5406_v6 = vpop.f32.mrb[78].mxu1 }
 0x994   :  { %v11941_v57 = vadd.f32 %v13829_v13, %v5406_v6  ;;  %v5408_v1 = vpop.f32.mrb[79].mxu1  ;;  %5670 = vmatmul.mubr.f32.gmra.mrb[184].mxu1 %v3874_v20  ;;  %v13842_v6 = vld [vmem:[#allocation95_spill] sm:$0xff] }
 0x995   :  { %5674 = vmatprep.mubr.f32.mxu1 %v11838_v36  ;;  %v13832_v36 = vld [vmem:[#allocation116_spill] sm:$0xff] }
 0x997   :  { %v5411_v12 = vpop.f32.mrb[80].mxu1 }
 0x998   :  { %v11945_v26 = vadd.f32 %v13830_v34, %v5411_v12  ;;  %v5413_v16 = vpop.f32.mrb[81].mxu1  ;;  %5675 = vmatmul.mubr.f32.gmra.mrb[186].mxu1 %v3875_v55 }
 0x999   :  { %5679 = vmatprep.mubr.f32.mxu1 %v3940_v8  ;;  %v13843_v8 = vld [vmem:[#allocation124_spill] sm:$0xff]  ;;  %v13844_v16 = vld [vmem:[#allocation126_spill] sm:$0xff] }
 0x99b   :  { %v5416_v32 = vpop.f32.mrb[82].mxu1 }
 0x99c   :  { %v11948_v17 = vadd.f32 %v13831_v41, %v5416_v32  ;;  %v5418_v35 = vpop.f32.mrb[83].mxu1  ;;  %5680 = vmatmul.mubr.f32.gmra.mrb[188].mxu1 %v11886_v49 }
 0x99d   :  { %5684 = vmatprep.mubr.f32.mxu1 %v3941_v59  ;;  %v13846_v35 = vld [vmem:[#allocation125_spill] sm:$0xff] }
 0x99f   :  { %v5421_v63 = vpop.f32.mrb[84].mxu1 }
 0x9a0   :  { %v11952_v3 = vadd.f32 %v13832_v36, %v5421_v63  ;;  %v5423_v7 = vpop.f32.mrb[85].mxu1  ;;  %5685 = vmatmul.mubr.f32.gmra.mrb[190].mxu1 %v11886_v49  ;;  %v4004_v49 = vld [vmem:[#allocation2 + $0x34a] sm:$0xff] }
 0x9a1   :  { %7040 = vmatprep.mubr.f32.mxu1 %v3998_v4  ;;  %v13847_v4 = vld [vmem:[#allocation128_spill] sm:$0xff] }
 0x9a3   :  { %v5426_v30 = vpop.f32.mrb[86].mxu1 }
 0x9a4   :  { %v11956_v25 = vadd.f32 %v13833_v33, %v5426_v30  ;;  %v5428_v56 = vpop.f32.mrb[87].mxu1  ;;  %7041 = vmatmul.mubr.f32.vlgmr.msra.gmra.mrb[192].mxu1 %v3999_v39 }
 0x9a5   :  { %7043 = vmatprep.mubr.f32.mxu1 %v4000_v2  ;;  %v13849_v56 = vld [vmem:[#allocation127_spill] sm:$0xff] }
 0x9a7   :  { %v5431_v22 = vpop.f32.mrb[88].mxu1 }
 0x9a8   :  { %v11959_v43 = vadd.f32 %v13834_v45, %v5431_v22  ;;  %v5433_v14 = vpop.f32.mrb[89].mxu1  ;;  %7044 = vmatmul.mubr.f32.gmra.mrb[194].mxu1 %v4001_v27  ;;  %v13850_v45 = vld [vmem:[#allocation130_spill] sm:$0xff] }
 0x9a9   :  { %7046 = vmatprep.mubr.f32.mxu1 %v13835_v40 }
 0x9ab   :  { %v5436_v37 = vpop.f32.mrb[90].mxu1 }
 0x9ac   :  { %v11963_v28 = vadd.f32 %v13836_v58, %v5436_v37  ;;  %v5438_v61 = vpop.f32.mrb[91].mxu1  ;;  %7047 = vmatmul.mubr.f32.gmra.mrb[196].mxu1 %v13837_v0  ;;  %v13852_v37 = vld [vmem:[#allocation129_spill] sm:$0xff] }
 0x9ad   :  { %7049 = vmatprep.mubr.f32.mxu1 %v4004_v49 }
 0x9af   :  { %v5441_v10 = vpop.f32.mrb[92].mxu1 }
 0x9b0   :  { %v11967_v23 = vadd.f32 %v13838_v5, %v5441_v10  ;;  %v5443_v38 = vpop.f32.mrb[93].mxu1  ;;  %7050 = vmatmul.mubr.f32.gmra.mrb[198].mxu1 %v4005_v44  ;;  %v13853_v44 = vld [vmem:[#allocation131_spill] sm:$0xff] }
 0x9b3   :  { %v5446_v31 = vpop.f32.mrb[94].mxu1 }
 0x9b4   :  { %v11970_v48 = vadd.f32 %v13839_v51, %v5446_v31  ;;  %v5448_v42 = vpop.f32.mrb[95].mxu1  ;;  %v13855_v31 = vld [vmem:[#allocation94_spill] sm:$0xff] }
 0x9b7   :  { %v5451_v50 = vpop.f32.mrb[96].mxu1 }
 0x9b8   :  { %v11973_v46 = vadd.f32 %v13840_v29, %v5451_v50  ;;  %v5453_v47 = vpop.f32.mrb[97].mxu1  ;;  %v13856_v29 = vld [vmem:[#allocation132_spill] sm:$0xff] }
 0x9bb   :  { %v5456_v60 = vpop.f32.mrb[98].mxu1 }
 0x9bc   :  { %v11976_v54 = vadd.f32 %v13841_v11, %v5456_v60  ;;  %v5458_v62 = vpop.f32.mrb[99].mxu1 }
 0x9bd   :  { %v13858_v62 = vld [vmem:[#allocation77_spill] sm:$0xff] }
 0x9bf   :  { %v5461_v24 = vpop.f32.mrb[100].mxu1 }
 0x9c0   :  { %v11979_v20 = vadd.f32 %v13842_v6, %v5461_v24  ;;  %v5463_v13 = vpop.f32.mrb[101].mxu1 }
 0x9c3   :  { %v5466_v1 = vpop.f32.mrb[102].mxu1 }
 0x9c4   :  { %v11982_v12 = vadd.f32 %v13843_v8, %v5466_v1  ;;  %v5468_v55 = vpop.f32.mrb[103].mxu1  ;;  %v13859_v1 = vld [vmem:[#allocation133_spill] sm:$0xff] }
 0x9c7   :  { %v5471_v34 = vpop.f32.mrb[104].mxu1 }
 0x9c8   :  { %v11985_v59 = vadd.f32 %v13844_v16, %v5471_v34  ;;  %v5473_v32 = vpop.f32.mrb[105].mxu1  ;;  %v13861_v16 = vld [vmem:[#allocation90_spill] sm:$0xff] }
 0x9ca   :  { %13845 = vst [vmem:[#allocation103_spill] sm:$0xff] %v11985_v59 }
 0x9cb   :  { %v5476_v41 = vpop.f32.mrb[106].mxu1 }
 0x9cc   :  { %v11988_v63 = vadd.f32 %v13846_v35, %v5476_v41  ;;  %v5478_v36 = vpop.f32.mrb[107].mxu1 }
 0x9cd   :  { %v13862_v36 = vld [vmem:[#allocation135_spill] sm:$0xff] }
 0x9cf   :  { %v5481_v7 = vpop.f32.mrb[108].mxu1 }
 0x9d0   :  { %v11991_v30 = vadd.f32 %v13847_v4, %v5481_v7  ;;  %v5483_v39 = vpop.f32.mrb[109].mxu1 }
 0x9d2   :  { %13848 = vst [vmem:[#allocation111_spill] sm:$0xff] %v11991_v30 }
 0x9d3   :  { %v5486_v33 = vpop.f32.mrb[110].mxu1 }
 0x9d4   :  { %v11994_v2 = vadd.f32 %v13849_v56, %v5486_v33  ;;  %v5488_v22 = vpop.f32.mrb[111].mxu1  ;;  %v13864_v33 = vld [vmem:[#allocation134_spill] sm:$0xff] }
 0x9d7   :  { %v5491_v27 = vpop.f32.mrb[112].mxu1 }
 0x9d8   :  { %v11997_v14 = vadd.f32 %v13850_v45, %v5491_v27  ;;  %v5493_v40 = vpop.f32.mrb[113].mxu1  ;;  %v13865_v45 = vld [vmem:[#allocation137_spill] sm:$0xff] }
 0x9da   :  { %13851 = vst [vmem:[#allocation114_spill] sm:$0xff] %v11997_v14 }
 0x9db   :  { %v5496_v49 = vpop.f32.mrb[114].mxu1 }
 0x9dc   :  { %v12000_v58 = vadd.f32 %v13852_v37, %v5496_v49  ;;  %v5498_v61 = vpop.f32.mrb[115].mxu1 }
 0x9dd   :  { %v13867_v61 = vld [vmem:[#allocation136_spill] sm:$0xff] }
 0x9df   :  { %v5501_v0 = vpop.f32.mrb[116].mxu1 }
 0x9e0   :  { %v12003_v10 = vadd.f32 %v13853_v44, %v5501_v0  ;;  %v5503_v5 = vpop.f32.mrb[117].mxu1 }
 0x9e2   :  { %13854 = vst [vmem:[#allocation117_spill] sm:$0xff] %v12003_v10 }
 0x9e3   :  { %v5506_v38 = vpop.f32.mrb[118].mxu1 }
 0x9e4   :  { %v12006_v51 = vadd.f32 %v13855_v31, %v5506_v38  ;;  %v5508_v42 = vpop.f32.mrb[119].mxu1  ;;  %v13868_v38 = vld [vmem:[#allocation138_spill] sm:$0xff] }
 0x9e7   :  { %v5511_v50 = vpop.f32.mrb[120].mxu1 }
 0x9e8   :  { %v12009_v47 = vadd.f32 %v13856_v29, %v5511_v50  ;;  %v5513_v60 = vpop.f32.mrb[121].mxu1  ;;  %v6145_v50 = vmul.f32 %v11917_v15, %v11917_v15 }
 0x9e9   :  { %v13869_v60 = vld [vmem:[#allocation96_spill] sm:$0xff] }
 0x9ea   :  { %13857 = vst [vmem:[#allocation120_spill] sm:$0xff] %v12009_v47 }
 0x9eb   :  { %v5516_v11 = vpop.f32.mrb[122].mxu1 }
 0x9ec   :  { %v12012_v24 = vadd.f32 %v13858_v62, %v5516_v11  ;;  %v5518_v6 = vpop.f32.mrb[123].mxu1 }
 0x9ed   :  { %v6144_v6 = vmul.f32 %v11913_v9, %v11913_v9 }
 0x9ef   :  { %v5521_v13 = vpop.f32.mrb[124].mxu1 }
 0x9f0   :  { %v12015_v8 = vadd.f32 %v13859_v1, %v5521_v13  ;;  %v5523_v55 = vpop.f32.mrb[125].mxu1  ;;  %v6075_v13 = vadd.f32 %v11917_v15, %v11913_v9  ;;  %v6146_v1 = vmul.f32 %v11921_v52, %v11921_v52 }
 0x9f1   :  { %v6208_v55 = vadd.f32 %v6145_v50, %v6144_v6  ;;  %v6150_v50 = vmul.f32 %v11937_v18, %v11937_v18 }
 0x9f2   :  { %13860 = vst [vmem:[#allocation104_spill] sm:$0xff] %v12015_v8 }
 0x9f3   :  { %v5526_v34 = vpop.f32.mrb[126].mxu1 }
 0x9f4   :  { %v12018_v32 = vadd.f32 %v13861_v16, %v5526_v34  ;;  %v5528_v41 = vpop.f32.mrb[127].mxu1  ;;  %v6076_v34 = vadd.f32 %v6075_v13, %v11921_v52  ;;  %v6147_v16 = vmul.f32 %v11925_v21, %v11925_v21  ;;  %v13872_v13 = vld [vmem:[#allocation140_spill] sm:$0xff] }
 0x9f7   :  { %v5531_v35 = vpop.f32.mrb[128].mxu1 }
 0x9f8   :  { %v12021_v7 = vadd.f32 %v13862_v36, %v5531_v35  ;;  %v5533_v4 = vpop.f32.mrb[129].mxu1  ;;  %v13870_v35 = vld [vmem:[#allocation139_spill] sm:$0xff] }
 0x9fa   :  { %13863 = vst [vmem:[#allocation81_spill] sm:$0xff] %v12021_v7 }
 0x9fb   :  { %v5536_v39 = vpop.f32.mrb[130].mxu1 }
 0x9fc   :  { %v12024_v56 = vadd.f32 %v13864_v33, %v5536_v39  ;;  %v5538_v22 = vpop.f32.mrb[131].mxu1  ;;  %v6209_v39 = vadd.f32 %v6208_v55, %v6146_v1  ;;  %v6077_v33 = vadd.f32 %v6076_v34, %v11925_v21 }
 0x9fd   :  { %v6148_v22 = vmul.f32 %v11929_v53, %v11929_v53 }
 0x9ff   :  { %v5541_v27 = vpop.f32.mrb[132].mxu1 }
 0xa00   :  { %v12027_v40 = vadd.f32 %v13865_v45, %v5541_v27  ;;  %v5543_v49 = vpop.f32.mrb[133].mxu1  ;;  %v6210_v27 = vadd.f32 %v6209_v39, %v6147_v16  ;;  %v6078_v45 = vadd.f32 %v6077_v33, %v11929_v53  ;;  %v6153_v39 = vmul.f32 %v11948_v17, %v11948_v17 }
 0xa01   :  { %v6149_v49 = vmul.f32 %v11933_v19, %v11933_v19 }
 0xa02   :  { %13866 = vst [vmem:[#allocation75_spill] sm:$0xff] %v12027_v40 }
 0xa03   :  { %v5546_v37 = vpop.f32.mrb[134].mxu1 }
 0xa04   :  { %v12030_v0 = vadd.f32 %v13867_v61, %v5546_v37  ;;  %v5548_v44 = vpop.f32.mrb[135].mxu1  ;;  %v13871_v61 = vld [vmem:[#allocation97_spill] sm:$0xff] }
 0xa07   :  { %v5551_v5 = vpop.f32.mrb[136].mxu1 }
 0xa08   :  { %v12033_v31 = vadd.f32 %v13868_v38, %v5551_v5  ;;  %v5553_v42 = vpop.f32.mrb[137].mxu1  ;;  %v6211_v38 = vadd.f32 %v6210_v27, %v6148_v22  ;;  %v13874_v22 = vld [vmem:[#allocation98_spill] sm:$0xff] }
 0xa09   :  { %v6079_v42 = vadd.f32 %v6078_v45, %v11933_v19 }
 0xa0b   :  { %v5556_v29 = vpop.f32.mrb[138].mxu1 }
 0xa0c   :  { %v12038_v11 = vadd.f32 %v13869_v60, %v5556_v29  ;;  %v5558_v62 = vpop.f32.mrb[139].mxu1  ;;  %v6212_v29 = vadd.f32 %v6211_v38, %v6149_v49  ;;  %v6080_v60 = vadd.f32 %v6079_v42, %v11937_v18  ;;  %v6155_v42 = vmul.f32 %v11956_v25, %v11956_v25 }
 0xa0d   :  { %v6151_v62 = vmul.f32 %v11941_v57, %v11941_v57 }
 0xa0e   :  { %v6213_v34 = vadd.f32 %v6212_v29, %v6150_v50  ;;  %v6081_v16 = vadd.f32 %v6080_v60, %v11941_v57  ;;  %v13875_v29 = vld [vmem:[#allocation141_spill] sm:$0xff] }
 0xa0f   :  { %v5561_v41 = vpop.f32.mrb[140].mxu1 }
 0xa10   :  { %v12050_v36 = vadd.f32 %v13870_v35, %v5561_v41  ;;  %v5563_v4 = vpop.f32.mrb[141].mxu1  ;;  %v6152_v41 = vmul.f32 %v11945_v26, %v11945_v26  ;;  %v6214_v35 = vadd.f32 %v6213_v34, %v6151_v62 }
 0xa11   :  { %v6082_v4 = vadd.f32 %v6081_v16, %v11945_v26 }
 0xa12   :  { %v6215_v49 = vadd.f32 %v6214_v35, %v6152_v41  ;;  %v6157_v41 = vmul.f32 %v11963_v28, %v11963_v28 }
 0xa13   :  { %v5566_v37 = vpop.f32.mrb[142].mxu1 }
 0xa14   :  { %v12059_v44 = vadd.f32 %v13871_v61, %v5566_v37  ;;  %v5568_v5 = vpop.f32.mrb[143].mxu1  ;;  %v6083_v37 = vadd.f32 %v6082_v4, %v11948_v17  ;;  %v6154_v61 = vmul.f32 %v11952_v3, %v11952_v3  ;;  %v13877_v4 = vld [vmem:[#allocation83_spill] sm:$0xff] }
 0xa15   :  { %v6216_v5 = vadd.f32 %v6215_v49, %v6153_v39  ;;  %v6158_v49 = vmul.f32 %v11967_v23, %v11967_v23 }
 0xa16   :  { %v6084_v38 = vadd.f32 %v6083_v37, %v11952_v3 }
 0xa17   :  { %v5571_v6 = vpop.f32.mrb[144].mxu1 }
 0xa18   :  { %v12068_v1 = vadd.f32 %v13872_v13, %v5571_v6  ;;  %v5573_v55 = vpop.f32.mrb[145].mxu1  ;;  %v6217_v6 = vadd.f32 %v6216_v5, %v6154_v61  ;;  %v6085_v13 = vadd.f32 %v6084_v38, %v11956_v25  ;;  %v6159_v5 = vmul.f32 %v11970_v48, %v11970_v48 }
 0xa19   :  { %v6156_v55 = vmul.f32 %v11959_v43, %v11959_v43 }
 0xa1a   :  { %13873 = vst [vmem:[#allocation79_spill] sm:$0xff] %v12068_v1  ;;  %v6218_v34 = vadd.f32 %v6217_v6, %v6155_v42  ;;  %v6086_v16 = vadd.f32 %v6085_v13, %v11959_v43  ;;  %v13878_v42 = vld [vmem:[#allocation142_spill] sm:$0xff]  ;;  %v6160_v13 = vmul.f32 %v11973_v46, %v11973_v46 }
 0xa1b   :  { %v5576_v33 = vpop.f32.mrb[146].mxu1 }
 0xa1c   :  { %v12077_v27 = vadd.f32 %v13874_v22, %v5576_v33  ;;  %v5578_v45 = vpop.f32.mrb[147].mxu1  ;;  %v6219_v22 = vadd.f32 %v6218_v34, %v6156_v55 }
 0xa1d   :  { %v6087_v45 = vadd.f32 %v6086_v16, %v11963_v28  ;;  %v6161_v16 = vmul.f32 %v11976_v54, %v11976_v54 }
 0xa1e   :  { %v6220_v37 = vadd.f32 %v6219_v22, %v6157_v41 }
 0xa1f   :  { %v5581_v50 = vpop.f32.mrb[148].mxu1  ;;  %v6088_v61 = vadd.f32 %v6087_v45, %v11967_v23 }
 0xa20   :  { %v12086_v60 = vadd.f32 %v13875_v29, %v5581_v50  ;;  %v5583_v62 = vpop.f32.mrb[149].mxu1 }
 0xa21   :  { %v6221_v62 = vadd.f32 %v6220_v37, %v6158_v49  ;;  %v6089_v6 = vadd.f32 %v6088_v61, %v11970_v48  ;;  %v6162_v49 = vmul.f32 %v11979_v20, %v11979_v20 }
 0xa22   :  { %13876 = vst [vmem:[#allocation84_spill] sm:$0xff] %v12086_v60 }
 0xa23   :  { %v5586_v35 = vpop.f32.mrb[150].mxu1  ;;  %v6222_v55 = vadd.f32 %v6221_v62, %v6159_v5  ;;  %v6090_v34 = vadd.f32 %v6089_v6, %v11973_v46  ;;  %v6163_v5 = vmul.f32 %v11982_v12, %v11982_v12 }
 0xa24   :  { %v12095_v39 = vadd.f32 %v13877_v4, %v5586_v35  ;;  %v5588_v33 = vpop.f32.mrb[151].mxu1  ;;  %v13880_v35 = vld [vmem:[#allocation82_spill] sm:$0xff] }
 0xa25   :  { %v6223_v22 = vadd.f32 %v6222_v55, %v6160_v13  ;;  %v6091_v45 = vadd.f32 %v6090_v34, %v11976_v54  ;;  %v6164_v13 = vmul.f32 %v11985_v59, %v11985_v59 }
 0xa27   :  { %v5591_v38 = vpop.f32.mrb[152].mxu1  ;;  %v6224_v37 = vadd.f32 %v6223_v22, %v6161_v16  ;;  %v6092_v61 = vadd.f32 %v6091_v45, %v11979_v20  ;;  %v6165_v16 = vmul.f32 %v11988_v63, %v11988_v63 }
 0xa28   :  { %v12104_v50 = vadd.f32 %v13878_v42, %v5591_v38  ;;  %v5593_v29 = vpop.f32.mrb[153].mxu1  ;;  %v13881_v42 = vld [vmem:[#allocation144_spill] sm:$0xff] }
 0xa29   :  { %v6225_v6 = vadd.f32 %v6224_v37, %v6162_v49  ;;  %v6166_v49 = vmul.f32 %v11991_v30, %v11991_v30 }
 0xa2a   :  { %13879 = vst [vmem:[#allocation105_spill] sm:$0xff] %v12104_v50 }
 0xa2b   :  { %v5596_v41 = vpop.f32.mrb[154].mxu1  ;;  %v6226_v55 = vadd.f32 %v6225_v6, %v6163_v5  ;;  %v6167_v5 = vmul.f32 %v11994_v2, %v11994_v2  ;;  %v13884_v6 = vld [vmem:[#allocation146_spill] sm:$0xff] }
 0xa2c   :  { %v12113_v4 = vadd.f32 %v13880_v35, %v5596_v41  ;;  %v5598_v33 = vpop.f32.mrb[155].mxu1  ;;  %v6093_v41 = vadd.f32 %v6092_v61, %v11982_v12 }
 0xa2d   :  { %v13883_v33 = vld [vmem:[#allocation143_spill] sm:$0xff] }
 0xa2e   :  { %v6094_v34 = vadd.f32 %v6093_v41, %v11985_v59 }
 0xa2f   :  { %v5601_v38 = vpop.f32.mrb[156].mxu1 }
 0xa30   :  { %v12122_v29 = vadd.f32 %v13881_v42, %v5601_v38  ;;  %v5603_v62 = vpop.f32.mrb[157].mxu1  ;;  %v6227_v38 = vadd.f32 %v6226_v55, %v6164_v13  ;;  %v6095_v42 = vadd.f32 %v6094_v34, %v11988_v63  ;;  %v6168_v13 = vmul.f32 %v11997_v14, %v11997_v14 }
 0xa32   :  { %13882 = vst [vmem:[#allocation85_spill] sm:$0xff] %v12122_v29  ;;  %v6228_v37 = vadd.f32 %v6227_v38, %v6165_v16  ;;  %v6096_v61 = vadd.f32 %v6095_v42, %v11991_v30  ;;  %v6169_v16 = vmul.f32 %v12000_v58, %v12000_v58  ;;  %v13886_v38 = vld [vmem:[#allocation145_spill] sm:$0xff] }
 0xa33   :  { %v5606_v35 = vpop.f32.mrb[158].mxu1 }
 0xa34   :  { %v12131_v22 = vadd.f32 %v13883_v33, %v5606_v35  ;;  %v5608_v45 = vpop.f32.mrb[159].mxu1  ;;  %v6229_v35 = vadd.f32 %v6228_v37, %v6166_v49  ;;  %v6097_v33 = vadd.f32 %v6096_v61, %v11994_v2  ;;  %v6170_v49 = vmul.f32 %v12003_v10, %v12003_v10 }
 0xa36   :  { %v6230_v55 = vadd.f32 %v6229_v35, %v6167_v5  ;;  %v6098_v34 = vadd.f32 %v6097_v33, %v11997_v14  ;;  %v6171_v5 = vmul.f32 %v12006_v51, %v12006_v51  ;;  %v13887_v35 = vld [vmem:[#allocation148_spill] sm:$0xff] }
 0xa37   :  { %v5611_v62 = vpop.f32.mrb[160].mxu1 }
 0xa38   :  { %v12140_v41 = vadd.f32 %v13884_v6, %v5611_v62  ;;  %v5613_v59 = vpop.f32.mrb[161].mxu1  ;;  %v6231_v62 = vadd.f32 %v6230_v55, %v6168_v13  ;;  %v6172_v13 = vmul.f32 %v12009_v47, %v12009_v47 }
 0xa39   :  { %v6099_v59 = vadd.f32 %v6098_v34, %v12000_v58 }
 0xa3a   :  { %13885 = vst [vmem:[#allocation106_spill] sm:$0xff] %v12140_v41  ;;  %v6232_v37 = vadd.f32 %v6231_v62, %v6169_v16  ;;  %v6173_v16 = vmul.f32 %v12012_v24, %v12012_v24  ;;  %v13889_v62 = vld [vmem:[#allocation147_spill] sm:$0xff] }
 0xa3b   :  { %v5616_v45 = vpop.f32.mrb[162].mxu1  ;;  %v6100_v61 = vadd.f32 %v6099_v59, %v12003_v10 }
 0xa3c   :  { %v12149_v42 = vadd.f32 %v13886_v38, %v5616_v45  ;;  %v5618_v30 = vpop.f32.mrb[163].mxu1  ;;  %v6233_v45 = vadd.f32 %v6232_v37, %v6170_v49  ;;  %v6174_v49 = vmul.f32 %v12015_v8, %v12015_v8 }
 0xa3d   :  { %v6101_v30 = vadd.f32 %v6100_v61, %v12006_v51 }
 0xa3e   :  { %v6234_v55 = vadd.f32 %v6233_v45, %v6171_v5  ;;  %v6175_v5 = vmul.f32 %v12018_v32, %v12018_v32  ;;  %v13891_v45 = vld [vmem:[#allocation150_spill] sm:$0xff] }
 0xa3f   :  { %v5621_v6 = vpop.f32.mrb[164].mxu1  ;;  %v6102_v34 = vadd.f32 %v6101_v30, %v12009_v47 }
 0xa40   :  { %v12158_v33 = vadd.f32 %v13887_v35, %v5621_v6  ;;  %v5623_v14 = vpop.f32.mrb[165].mxu1  ;;  %v6235_v6 = vadd.f32 %v6234_v55, %v6172_v13  ;;  %v6176_v13 = vmul.f32 %v12021_v7, %v12021_v7 }
 0xa41   :  { %v6103_v14 = vadd.f32 %v6102_v34, %v12012_v24 }
 0xa42   :  { %13888 = vst [vmem:[#allocation87_spill] sm:$0xff] %v12158_v33  ;;  %v6236_v37 = vadd.f32 %v6235_v6, %v6173_v16  ;;  %v6177_v16 = vmul.f32 %v12024_v56, %v12024_v56  ;;  %v13893_v6 = vld [vmem:[#allocation149_spill] sm:$0xff] }
 0xa43   :  { %v5626_v38 = vpop.f32.mrb[166].mxu1  ;;  %v6104_v61 = vadd.f32 %v6103_v14, %v12015_v8 }
 0xa44   :  { %v12167_v59 = vadd.f32 %v13889_v62, %v5626_v38  ;;  %v5628_v10 = vpop.f32.mrb[167].mxu1  ;;  %v6237_v38 = vadd.f32 %v6236_v37, %v6174_v49  ;;  %v6178_v49 = vmul.f32 %v12027_v40, %v12027_v40 }
 0xa45   :  { %v6105_v10 = vadd.f32 %v6104_v61, %v12018_v32 }
 0xa46   :  { %13890 = vst [vmem:[#allocation107_spill] sm:$0xff] %v12167_v59  ;;  %v6238_v55 = vadd.f32 %v6237_v38, %v6175_v5  ;;  %v6179_v5 = vmul.f32 %v12030_v0, %v12030_v0  ;;  %v13894_v38 = vld [vmem:[#allocation152_spill] sm:$0xff] }
 0xa47   :  { %v5631_v35 = vpop.f32.mrb[168].mxu1  ;;  %v6106_v34 = vadd.f32 %v6105_v10, %v12021_v7 }
 0xa48   :  { %v12176_v30 = vadd.f32 %v13891_v45, %v5631_v35  ;;  %v5633_v47 = vpop.f32.mrb[169].mxu1  ;;  %v6239_v35 = vadd.f32 %v6238_v55, %v6176_v13  ;;  %v6180_v13 = vmul.f32 %v12033_v31, %v12033_v31 }
 0xa49   :  { %v6107_v47 = vadd.f32 %v6106_v34, %v12024_v56 }
 0xa4a   :  { %13892 = vst [vmem:[#allocation108_spill] sm:$0xff] %v12176_v30  ;;  %v6240_v37 = vadd.f32 %v6239_v35, %v6177_v16  ;;  %v6181_v16 = vmul.f32 %v12038_v11, %v12038_v11  ;;  %v13896_v35 = vld [vmem:[#allocation151_spill] sm:$0xff] }
 0xa4b   :  { %v5636_v62 = vpop.f32.mrb[170].mxu1  ;;  %v6108_v61 = vadd.f32 %v6107_v47, %v12027_v40 }
 0xa4c   :  { %v12185_v14 = vadd.f32 %v13893_v6, %v5636_v62  ;;  %v5638_v8 = vpop.f32.mrb[171].mxu1  ;;  %v6241_v62 = vadd.f32 %v6240_v37, %v6178_v49  ;;  %v6182_v49 = vmul.f32 %v12050_v36, %v12050_v36 }
 0xa4d   :  { %v6109_v8 = vadd.f32 %v6108_v61, %v12030_v0 }
 0xa4e   :  { %v6242_v55 = vadd.f32 %v6241_v62, %v6179_v5  ;;  %v6183_v5 = vmul.f32 %v12059_v44, %v12059_v44 }
 0xa4f   :  { %v5641_v45 = vpop.f32.mrb[172].mxu1  ;;  %v6110_v34 = vadd.f32 %v6109_v8, %v12033_v31 }
 0xa50   :  { %v12194_v10 = vadd.f32 %v13894_v38, %v5641_v45  ;;  %v5643_v7 = vpop.f32.mrb[173].mxu1  ;;  %v6243_v45 = vadd.f32 %v6242_v55, %v6180_v13 }
 0xa51   :  { %v6111_v7 = vadd.f32 %v6110_v34, %v12038_v11  ;;  %v6185_v34 = vmul.f32 %v12077_v27, %v12077_v27 }
 0xa52   :  { %13895 = vst [vmem:[#allocation109_spill] sm:$0xff] %v12194_v10  ;;  %v6244_v37 = vadd.f32 %v6243_v45, %v6181_v16 }
 0xa53   :  { %v5646_v6 = vpop.f32.mrb[174].mxu1  ;;  %v6112_v61 = vadd.f32 %v6111_v7, %v12050_v36 }
 0xa54   :  { %v12203_v47 = vadd.f32 %v13896_v35, %v5646_v6  ;;  %v5648_v40 = vpop.f32.mrb[175].mxu1  ;;  %v6245_v8 = vadd.f32 %v6244_v37, %v6182_v49 }
 0xa55   :  { %v6113_v6 = vadd.f32 %v6112_v61, %v12059_v44  ;;  %v6184_v40 = vmul.f32 %v12068_v1, %v12068_v1  ;;  %v6187_v61 = vmul.f32 %v12095_v39, %v12095_v39 }
 0xa56   :  { %13897 = vst [vmem:[#allocation89_spill] sm:$0xff] %v12203_v47  ;;  %v6246_v13 = vadd.f32 %v6245_v8, %v6183_v5 }
 0xa57   :  { %v12211_v38 = vpop.f32.mrb[176].mxu1  ;;  %v6114_v55 = vadd.f32 %v6113_v6, %v12068_v1 }
 0xa58   :  { %v5653_v62 = vpop.f32.mrb[177].mxu1  ;;  %v6247_v45 = vadd.f32 %v6246_v13, %v6184_v40 }
 0xa59   :  { %v6115_v7 = vadd.f32 %v6114_v55, %v12077_v27  ;;  %v6186_v62 = vmul.f32 %v12086_v60, %v12086_v60  ;;  %v6189_v55 = vmul.f32 %v12113_v4, %v12113_v4 }
 0xa5a   :  { %v6248_v49 = vadd.f32 %v6247_v45, %v6185_v34 }
 0xa5b   :  { %v5656_v16 = vpop.f32.mrb[178].mxu1  ;;  %v6116_v37 = vadd.f32 %v6115_v7, %v12086_v60 }
 0xa5c   :  { %v5658_v35 = vpop.f32.mrb[179].mxu1  ;;  %v6249_v6 = vadd.f32 %v6248_v49, %v6186_v62 }
 0xa5d   :  { %v6117_v1 = vadd.f32 %v6116_v37, %v12095_v39  ;;  %v6188_v35 = vmul.f32 %v12104_v50, %v12104_v50  ;;  %v6191_v37 = vmul.f32 %v12131_v22, %v12131_v22 }
 0xa5e   :  { %v6250_v40 = vadd.f32 %v6249_v6, %v6187_v61 }
 0xa5f   :  { %v5661_v5 = vpop.f32.mrb[180].mxu1  ;;  %v6118_v13 = vadd.f32 %v6117_v1, %v12104_v50 }
 0xa60   :  { %v5663_v8 = vpop.f32.mrb[181].mxu1  ;;  %v6251_v7 = vadd.f32 %v6250_v40, %v6188_v35 }
 0xa61   :  { %v6119_v60 = vadd.f32 %v6118_v13, %v12113_v4  ;;  %v6190_v8 = vmul.f32 %v12122_v29, %v12122_v29  ;;  %v6193_v13 = vmul.f32 %v12149_v42, %v12149_v42 }
 0xa62   :  { %v6252_v62 = vadd.f32 %v6251_v7, %v6189_v55 }
 0xa63   :  { %v5666_v34 = vpop.f32.mrb[182].mxu1  ;;  %v6120_v49 = vadd.f32 %v6119_v60, %v12122_v29 }
 0xa64   :  { %v5668_v45 = vpop.f32.mrb[183].mxu1  ;;  %v6253_v1 = vadd.f32 %v6252_v62, %v6190_v8 }
 0xa65   :  { %v6121_v50 = vadd.f32 %v6120_v49, %v12131_v22  ;;  %v6192_v45 = vmul.f32 %v12140_v41, %v12140_v41  ;;  %v6195_v49 = vmul.f32 %v12167_v59, %v12167_v59 }
 0xa66   :  { %v6254_v35 = vadd.f32 %v6253_v1, %v6191_v37 }
 0xa67   :  { %v5671_v61 = vpop.f32.mrb[184].mxu1  ;;  %v6122_v40 = vadd.f32 %v6121_v50, %v12140_v41 }
 0xa68   :  { %v5673_v6 = vpop.f32.mrb[185].mxu1  ;;  %v6255_v60 = vadd.f32 %v6254_v35, %v6192_v45 }
 0xa69   :  { %v6123_v29 = vadd.f32 %v6122_v40, %v12149_v42  ;;  %v6194_v6 = vmul.f32 %v12158_v33, %v12158_v33  ;;  %v6197_v40 = vmul.f32 %v12185_v14, %v12185_v14 }
 0xa6a   :  { %v6256_v8 = vadd.f32 %v6255_v60, %v6193_v13 }
 0xa6b   :  { %v5676_v55 = vpop.f32.mrb[186].mxu1  ;;  %v6124_v62 = vadd.f32 %v6123_v29, %v12158_v33 }
 0xa6c   :  { %v5678_v7 = vpop.f32.mrb[187].mxu1  ;;  %v6257_v50 = vadd.f32 %v6256_v8, %v6194_v6 }
 0xa6d   :  { %v6125_v41 = vadd.f32 %v6124_v62, %v12167_v59  ;;  %v6196_v7 = vmul.f32 %v12176_v30, %v12176_v30  ;;  %v6199_v62 = vmul.f32 %v12203_v47, %v12203_v47 }
 0xa6e   :  { %v6258_v45 = vadd.f32 %v6257_v50, %v6195_v49 }
 0xa6f   :  { %v5681_v37 = vpop.f32.mrb[188].mxu1  ;;  %v6126_v35 = vadd.f32 %v6125_v41, %v12176_v30 }
 0xa70   :  { %v5683_v1 = vpop.f32.mrb[189].mxu1  ;;  %v6259_v29 = vadd.f32 %v6258_v45, %v6196_v7 }
 0xa71   :  { %v6127_v33 = vadd.f32 %v6126_v35, %v12185_v14  ;;  %v6198_v1 = vmul.f32 %v12194_v10, %v12194_v10 }
 0xa72   :  { %v6260_v6 = vadd.f32 %v6259_v29, %v6197_v40 }
 0xa73   :  { %v5686_v13 = vpop.f32.mrb[190].mxu1  ;;  %v6128_v8 = vadd.f32 %v6127_v33, %v12194_v10 }
 0xa74   :  { %v5688_v60 = vpop.f32.mrb[191].mxu1  ;;  %v6261_v30 = vadd.f32 %v6260_v6, %v6198_v1 }
 0xa75   :  { %v6129_v59 = vadd.f32 %v6128_v8, %v12203_v47 }
 0xa76   :  { %v6262_v45 = vadd.f32 %v6261_v30, %v6199_v62 }
 0xa77   :  { %v7042_v49 = vpop.f32.mrb[192].mxu1 }
 0xa78   :  { %v12261_v50 = vadd.f32 %v7042_v49, %v5656_v16  ;;  %v6036_v41 = vpop.f32.mrb[193].mxu1 }
 0xa79   :  { %v12265_v7 = vadd.f32 %v6036_v41, %v12211_v38 }
 0xa7a   :  { %13898 = vst [vmem:[#allocation86_spill] sm:$0xff] %v12261_v50  ;;  %v6201_v16 = vmul.f32 %v12261_v50, %v12261_v50 }
 0xa7b   :  { %13899 = vst [vmem:[#allocation99_spill] sm:$0xff] %v12265_v7  ;;  %v6130_v35 = vadd.f32 %v6129_v59, %v12265_v7  ;;  %v6200_v40 = vmul.f32 %v12265_v7, %v12265_v7  ;;  %v7045_v33 = vpop.f32.mrb[194].mxu1 }
 0xa7c   :  { %v12270_v60 = vadd.f32 %v7045_v33, %v5666_v34  ;;  %v6046_v29 = vpop.f32.mrb[195].mxu1 }
 0xa7d   :  { %v6263_v49 = vadd.f32 %v6262_v45, %v6200_v40  ;;  %v12274_v1 = vadd.f32 %v6046_v29, %v5661_v5  ;;  %v6131_v6 = vadd.f32 %v6130_v35, %v12261_v50 }
 0xa7e   :  { %13900 = vst [vmem:[#allocation92_spill] sm:$0xff] %v12270_v60  ;;  %v6203_v41 = vmul.f32 %v12270_v60, %v12270_v60 }
 0xa7f   :  { %13901 = vst [vmem:[#allocation102_spill] sm:$0xff] %v12274_v1  ;;  %v6132_v38 = vadd.f32 %v6131_v6, %v12274_v1  ;;  %v6202_v59 = vmul.f32 %v12274_v1, %v12274_v1  ;;  %v6264_v30 = vadd.f32 %v6263_v49, %v6201_v16  ;;  %v7048_v8 = vpop.f32.mrb[196].mxu1 }
 0xa80   :  { %v12280_v62 = vadd.f32 %v7048_v8, %v5676_v55  ;;  %v6056_v34 = vpop.f32.mrb[197].mxu1 }
 0xa81   :  { %v6265_v33 = vadd.f32 %v6264_v30, %v6202_v59  ;;  %v12284_v7 = vadd.f32 %v6056_v34, %v5671_v61  ;;  %v6133_v5 = vadd.f32 %v6132_v38, %v12270_v60 }
 0xa82   :  { %13902 = vst [vmem:[#allocation101_spill] sm:$0xff] %v12280_v62  ;;  %v6205_v49 = vmul.f32 %v12280_v62, %v12280_v62 }
 0xa83   :  { %13903 = vst [vmem:[#allocation110_spill] sm:$0xff] %v12284_v7  ;;  %v6134_v45 = vadd.f32 %v6133_v5, %v12284_v7  ;;  %v6204_v35 = vmul.f32 %v12284_v7, %v12284_v7  ;;  %v6266_v40 = vadd.f32 %v6265_v33, %v6203_v41  ;;  %v7051_v29 = vpop.f32.mrb[198].mxu1 }
 0xa84   :  { %v12290_v16 = vadd.f32 %v7051_v29, %v5686_v13  ;;  %v6066_v55 = vpop.f32.mrb[199].mxu1 }
 0xa85   :  { %v6267_v6 = vadd.f32 %v6266_v40, %v6204_v35  ;;  %v6067_v8 = vadd.f32 %v6066_v55, %v5681_v37  ;;  %v6135_v61 = vadd.f32 %v6134_v45, %v12280_v62 }
 0xa86   :  { %v6207_v34 = vmul.f32 %v12290_v16, %v12290_v16 }
 0xa87   :  { %v6136_v59 = vadd.f32 %v6135_v61, %v6067_v8  ;;  %v6206_v30 = vmul.f32 %v6067_v8, %v6067_v8  ;;  %v6268_v38 = vadd.f32 %v6267_v6, %v6205_v49 }
 0xa89   :  { %v6137_v5 = vadd.f32 %v6136_v59, %v12290_v16  ;;  %v6269_v41 = vadd.f32 %v6268_v38, %v6206_v30  ;;  %v6283_v59 = vld [vmem:[%s13152_s5] sm:$0x1]  ;;  %s8401_s5 = smov [#allocation9]  }
 0xa8b   :  { %v6138_v33 = vrot.slane %v6137_v5, 4  ;;  %v6270_v13 = vadd.f32 %v6269_v41, %v6207_v34 }
 0xa8d   :  { %v6139_v29 = vadd.f32 %v6138_v33, %v6137_v5  ;;  %v6271_v7 = vrot.slane %v6270_v13, 4 }
 0xa8f   :  { %v6140_v60 = vrot.slane %v6139_v29, 2  ;;  %v6272_v1 = vadd.f32 %v6271_v7, %v6270_v13  ;;  %v6285_v7 = vld [vmem:[%s13153_s6] sm:$0x1]  ;;  %s6623_s6 = sshll.u32 %s8401_s5, 4  ;;  %s6624_s6 = int_to_ptr.vmem [resolvable:$true] %s6623_s6 }
 0xa90   :  { %s8366_s21 = scalar_lea.vmem %s6624_s6, 8192  ;;  %p8371_p11 = scmp.lt.s32.totalorder %s6624_s6, %s6624_s6 }
 0xa91   :  { %v6141_v50 = vadd.f32 %v6140_v60, %v6139_v29  ;;  %v6273_v35 = vrot.slane %v6272_v1, 2  ;;  %v13905_v29 = vld [vmem:[#allocation69_spill] sm:$0xff]  ;;  %p8367_p10 = scmp.ne.s32.totalorder %s6624_s6, %s8366_s21  ;;  %p8372_p12 = scmp.lt.s32.totalorder %s8366_s21, %s8366_s21 }
 0xa93   :  { %v6142_v37 = vrot.slane %v6141_v50, 1  ;;  %v6274_v40 = vadd.f32 %v6273_v35, %v6272_v1  ;;  %p8373_p13 = por %p8372_p12, %p8371_p11 }
 0xa95   :  { %v6143_v45 = vadd.f32 %v6142_v37, %v6141_v50  ;;  %v6275_v55 = vrot.slane %v6274_v40, 1  ;;  %v13904_v50 = vld [vmem:[#allocation93_spill] sm:$0xff]  ;;  %p8374_p0 = pnand %p8373_p13, %p8367_p10 }
 0xa97   :  { %v6276_v61 = vadd.f32 %v6275_v55, %v6274_v40  ;;  %v6277_v49 = vmul.f32 0.001953125, %v6143_v45 }
 0xa99   :  { %v6278_v6 = vmul.f32 0.001953125, %v6276_v61  ;;  %v6279_v62 = vmul.f32 %v6277_v49, %v6277_v49  ;;  %v13909_v61 = vld [vmem:[#allocation117_spill] sm:$0xff] }
 0xa9b   :  { %v6280_v47 = vsub.f32 %v6278_v6, %v6279_v62 }
 0xa9d   :  { %v6281_v10 = vadd.f32 1e-05, %v6280_v47 }
 0xa9f   :  { %8294 = vrsqrt.f32 %v6281_v10 }
 0xaa9   :  { %v8295_v30 = vpop.eup %8294 }
 0xaaa   :  { %v6284_v38 = vmul.f32 %v8295_v30, %v6283_v59  ;;  %v13910_v59 = vld [vmem:[#allocation120_spill] sm:$0xff] }
 0xaac   :  { %v6286_v60 = vmul.f32 %v6284_v38, %v6277_v49  ;;  %v12305_v1 = vrot.slane %v6284_v38, %v13904_v50  ;;  %v13911_v38 = vld [vmem:[#allocation104_spill] sm:$0xff] }
 0xaae   :  { %v6287_v34 = vsub.f32 %v6285_v7, %v6286_v60  ;;  %v6354_v5 = vmul.f32 %v12305_v1, %v6067_v8  ;;  %v12310_v10 = vmul.f32 %v12305_v1, %v11913_v9  ;;  %v12314_v47 = vmul.f32 %v12305_v1, %v11917_v15  ;;  %v13912_v60 = vld [vmem:[#allocation81_spill] sm:$0xff] }
 0xaaf   :  { %v12318_v62 = vmul.f32 %v12305_v1, %v11921_v52  ;;  %v12322_v41 = vmul.f32 %v12305_v1, %v11925_v21  ;;  %v12326_v33 = vmul.f32 %v12305_v1, %v11929_v53  ;;  %v12330_v9 = vmul.f32 %v12305_v1, %v11933_v19 }
 0xab0   :  { %v12333_v8 = vrot.slane %v6287_v34, %v13904_v50  ;;  %v12337_v15 = vmul.f32 %v12305_v1, %v11937_v18  ;;  %v12341_v52 = vmul.f32 %v12305_v1, %v11941_v57  ;;  %v12345_v21 = vmul.f32 %v12305_v1, %v11945_v26  ;;  %v13913_v34 = vld [vmem:[#allocation75_spill] sm:$0xff] }
 0xab1   :  { %v12349_v53 = vmul.f32 %v12305_v1, %v11948_v17  ;;  %v12353_v19 = vmul.f32 %v12305_v1, %v11952_v3  ;;  %v12357_v18 = vmul.f32 %v12305_v1, %v11956_v25  ;;  %v12361_v57 = vmul.f32 %v12305_v1, %v11959_v43 }
 0xab2   :  { %v6424_v13 = vadd.f32 %v12333_v8, %v6354_v5  ;;  %v12366_v26 = vmul.f32 %v12305_v1, %v11963_v28  ;;  %v12370_v17 = vmul.f32 %v12305_v1, %v11967_v23  ;;  %v12374_v3 = vmul.f32 %v12305_v1, %v11970_v48  ;;  %v13906_v48 = vld [vmem:[#allocation103_spill] sm:$0xff] }
 0xab3   :  { %v12378_v25 = vmul.f32 %v12305_v1, %v11973_v46  ;;  %v12382_v43 = vmul.f32 %v12305_v1, %v11976_v54  ;;  %v12386_v28 = vmul.f32 %v12305_v1, %v11979_v20  ;;  %v12390_v23 = vmul.f32 %v12305_v1, %v11982_v12  ;;  %v13907_v54 = vld [vmem:[#allocation111_spill] sm:$0xff]  ;;  %v13908_v12 = vld [vmem:[#allocation114_spill] sm:$0xff] }
 0xab4   :  { %v6488_v35 = vadd.f32 %v6424_v13, %v13905_v29  ;;  %v12395_v37 = vmul.f32 %v12305_v1, %v13906_v48  ;;  %v12399_v46 = vmul.f32 %v12305_v1, %v11988_v63  ;;  %v12403_v40 = vmul.f32 %v12305_v1, %v13907_v54  ;;  %v13915_v48 = vld [vmem:[#allocation84_spill] sm:$0xff]  ;;  %v13916_v54 = vld [vmem:[#allocation105_spill] sm:$0xff] }
 0xab5   :  { %v12407_v20 = vmul.f32 %v12305_v1, %v11994_v2  ;;  %v12411_v45 = vmul.f32 %v12305_v1, %v13908_v12  ;;  %v12415_v55 = vmul.f32 %v12305_v1, %v12000_v58  ;;  %v12419_v63 = vmul.f32 %v12305_v1, %v13909_v61  ;;  %v13917_v61 = vld [vmem:[#allocation85_spill] sm:$0xff] }
 0xab6   :  { %v6552_v49 = vmax.f32 %v6488_v35, 0.0  ;;  %v12423_v6 = vmul.f32 %v12305_v1, %v12006_v51  ;;  %v12427_v2 = vmul.f32 %v12305_v1, %v13910_v59  ;;  %v12431_v30 = vmul.f32 %v12305_v1, %v12012_v24  ;;  %v13914_v35 = vld [vmem:[#allocation79_spill] sm:$0xff]  ;;  %v13918_v59 = vld [vmem:[#allocation106_spill] sm:$0xff] }
 0xab7   :  { %v12435_v58 = vmul.f32 %v12305_v1, %v13911_v38  ;;  %v12439_v7 = vmul.f32 %v12305_v1, %v12018_v32  ;;  %v12443_v51 = vmul.f32 %v12305_v1, %v13912_v60  ;;  %v12447_v50 = vmul.f32 %v12305_v1, %v12024_v56  ;;  %v13919_v60 = vld [vmem:[#allocation87_spill] sm:$0xff] }
 0xab8   :  { %6616 = vst [vmem:[#allocation9 + $0x1f0] sm:$0xff] %v6552_v49  ;;  %v12451_v24 = vmul.f32 %v12305_v1, %v13913_v34  ;;  %v12455_v5 = vmul.f32 %v12305_v1, %v12030_v0  ;;  %v12459_v32 = vmul.f32 %v12305_v1, %v12033_v31  ;;  %v12463_v13 = vmul.f32 %v12305_v1, %v12038_v11  ;;  %v13921_v34 = vld [vmem:[#allocation107_spill] sm:$0xff] }
 0xab9   :  { %v12467_v56 = vmul.f32 %v12305_v1, %v12050_v36  ;;  %v12471_v29 = vmul.f32 %v12305_v1, %v12059_v44  ;;  %v12475_v0 = vmul.f32 %v12305_v1, %v13914_v35  ;;  %v12479_v31 = vmul.f32 %v12305_v1, %v12077_v27 }
 0xaba   :  { %v12483_v11 = vmul.f32 %v12305_v1, %v13915_v48  ;;  %v12487_v36 = vmul.f32 %v12305_v1, %v12095_v39  ;;  %v12491_v44 = vmul.f32 %v12305_v1, %v13916_v54  ;;  %v12495_v12 = vmul.f32 %v12305_v1, %v12113_v4  ;;  %v13923_v48 = vld [vmem:[#allocation108_spill] sm:$0xff] }
 0xabb   :  { %v12499_v27 = vmul.f32 %v12305_v1, %v13917_v61  ;;  %v12503_v49 = vmul.f32 %v12305_v1, %v12131_v22  ;;  %v12507_v39 = vmul.f32 %v12305_v1, %v13918_v59  ;;  %v12511_v38 = vmul.f32 %v12305_v1, %v12149_v42  ;;  %v13926_v61 = vld [vmem:[#allocation109_spill] sm:$0xff] }
 0xabc   :  { %v12515_v4 = vmul.f32 %v12305_v1, %v13919_v60  ;;  %v12519_v35 = vmul.f32 %v12305_v1, %v13921_v34  ;;  %v12523_v22 = vmul.f32 %v12305_v1, %v13923_v48  ;;  %v12527_v54 = vmul.f32 %v12305_v1, %v12185_v14  ;;  %v13928_v59 = vld [vmem:[#allocation89_spill] sm:$0xff] }
 0xabd   :  { %v12531_v42 = vmul.f32 %v12305_v1, %v13926_v61  ;;  %v12535_v60 = vmul.f32 %v12305_v1, %v13928_v59 }
 0xabe   :  { %13920 = vst [vmem:[#allocation76_spill] sm:$0xff] %v12515_v4  ;;  %13922 = vst [vmem:[#allocation113_spill] sm:$0xff] %v12519_v35  ;;  %v13930_v4 = vld [vmem:[#allocation99_spill] sm:$0xff]  ;;  %v13931_v35 = vld [vmem:[#allocation86_spill] sm:$0xff] }
 0xabf   :  { %13924 = vst [vmem:[#allocation112_spill] sm:$0xff] %v12523_v22  ;;  %13925 = vst [vmem:[#allocation116_spill] sm:$0xff] %v12527_v54  ;;  %v12539_v34 = vmul.f32 %v12305_v1, %v13930_v4  ;;  %v12543_v48 = vmul.f32 %v12305_v1, %v13931_v35  ;;  %v13932_v22 = vld [vmem:[#allocation102_spill] sm:$0xff]  ;;  %v13933_v54 = vld [vmem:[#allocation92_spill] sm:$0xff]  ;;  %v12563_v35 = vmul.f32 %v12305_v1, %v12290_v16 }
 0xac0   :  { %13927 = vst [vmem:[#allocation115_spill] sm:$0xff] %v12531_v42  ;;  %13929 = vst [vmem:[#allocation119_spill] sm:$0xff] %v12535_v60  ;;  %v12547_v14 = vmul.f32 %v12305_v1, %v13932_v22  ;;  %v12551_v61 = vmul.f32 %v12305_v1, %v13933_v54  ;;  %v13934_v42 = vld [vmem:[#allocation110_spill] sm:$0xff]  ;;  %v13935_v60 = vld [vmem:[#allocation101_spill] sm:$0xff]  ;;  %v12567_v22 = vadd.f32 %v12333_v8, %v12310_v10 }
 0xac1   :  { %v12555_v59 = vmul.f32 %v12305_v1, %v13934_v42  ;;  %v12559_v4 = vmul.f32 %v12305_v1, %v13935_v60  ;;  %v12571_v54 = vadd.f32 %v12333_v8, %v12314_v47  ;;  %v12575_v42 = vadd.f32 %v12333_v8, %v12318_v62 }
 0xac2   :  { %v12579_v60 = vadd.f32 %v12333_v8, %v12322_v41  ;;  %v12583_v16 = vadd.f32 %v12333_v8, %v12326_v33  ;;  %v12587_v1 = vadd.f32 %v12333_v8, %v12330_v9  ;;  %v12591_v10 = vadd.f32 %v12333_v8, %v12337_v15 }
 0xac3   :  { %v12595_v47 = vadd.f32 %v12333_v8, %v12341_v52  ;;  %v12599_v62 = vadd.f32 %v12333_v8, %v12345_v21  ;;  %v12603_v41 = vadd.f32 %v12333_v8, %v12349_v53  ;;  %v12607_v33 = vadd.f32 %v12333_v8, %v12353_v19 }
 0xac4   :  { %v12611_v9 = vadd.f32 %v12333_v8, %v12357_v18  ;;  %v12615_v15 = vadd.f32 %v12333_v8, %v12361_v57  ;;  %v12619_v52 = vadd.f32 %v12333_v8, %v12366_v26  ;;  %v12623_v21 = vadd.f32 %v12333_v8, %v12370_v17 }
 0xac5   :  { %v12627_v53 = vadd.f32 %v12333_v8, %v12374_v3  ;;  %v12631_v19 = vadd.f32 %v12333_v8, %v12378_v25  ;;  %v12635_v18 = vadd.f32 %v12333_v8, %v12382_v43  ;;  %v12639_v57 = vadd.f32 %v12333_v8, %v12386_v28 }
 0xac6   :  { %v12643_v26 = vadd.f32 %v12333_v8, %v12390_v23  ;;  %v12647_v17 = vadd.f32 %v12333_v8, %v12395_v37  ;;  %v12651_v3 = vadd.f32 %v12333_v8, %v12399_v46  ;;  %v12655_v25 = vadd.f32 %v12333_v8, %v12403_v40 }
 0xac7   :  { %v12659_v43 = vadd.f32 %v12333_v8, %v12407_v20  ;;  %v12663_v28 = vadd.f32 %v12333_v8, %v12411_v45  ;;  %v12667_v23 = vadd.f32 %v12333_v8, %v12415_v55  ;;  %v12671_v37 = vadd.f32 %v12333_v8, %v12419_v63 }
 0xac8   :  { %v12675_v46 = vadd.f32 %v12333_v8, %v12423_v6  ;;  %v12679_v40 = vadd.f32 %v12333_v8, %v12427_v2  ;;  %v12683_v20 = vadd.f32 %v12333_v8, %v12431_v30  ;;  %v12687_v45 = vadd.f32 %v12333_v8, %v12435_v58 }
 0xac9   :  { %v12691_v55 = vadd.f32 %v12333_v8, %v12439_v7  ;;  %v12695_v63 = vadd.f32 %v12333_v8, %v12443_v51  ;;  %v12699_v6 = vadd.f32 %v12333_v8, %v12447_v50  ;;  %v12703_v2 = vadd.f32 %v12333_v8, %v12451_v24 }
 0xaca   :  { %v12707_v30 = vadd.f32 %v12333_v8, %v12455_v5  ;;  %v12711_v58 = vadd.f32 %v12333_v8, %v12459_v32  ;;  %v12715_v7 = vadd.f32 %v12333_v8, %v12463_v13  ;;  %v12719_v51 = vadd.f32 %v12333_v8, %v12467_v56 }
 0xacb   :  { %v12723_v50 = vadd.f32 %v12333_v8, %v12471_v29  ;;  %v12727_v24 = vadd.f32 %v12333_v8, %v12475_v0  ;;  %v12731_v5 = vadd.f32 %v12333_v8, %v12479_v31  ;;  %v12735_v32 = vadd.f32 %v12333_v8, %v12483_v11 }
 0xacc   :  { %v12739_v13 = vadd.f32 %v12333_v8, %v12487_v36  ;;  %v12743_v56 = vadd.f32 %v12333_v8, %v12491_v44  ;;  %v12747_v29 = vadd.f32 %v12333_v8, %v12495_v12  ;;  %v12751_v0 = vadd.f32 %v12333_v8, %v12499_v27  ;;  %v13941_v44 = vld [vmem:[#allocation76_spill] sm:$0xff] }
 0xacd   :  { %v12755_v31 = vadd.f32 %v12333_v8, %v12503_v49  ;;  %v12759_v11 = vadd.f32 %v12333_v8, %v12507_v39  ;;  %v12763_v36 = vadd.f32 %v12333_v8, %v12511_v38  ;;  %v12767_v12 = vadd.f32 %v12333_v8, %v13941_v44 }
 0xace   :  { %13936 = vst [vmem:[#allocation88_spill] sm:$0xff] %v12747_v29  ;;  %13937 = vst [vmem:[#allocation118_spill] sm:$0xff] %v12751_v0  ;;  %v13942_v29 = vld [vmem:[#allocation113_spill] sm:$0xff]  ;;  %v13943_v0 = vld [vmem:[#allocation112_spill] sm:$0xff] }
 0xacf   :  { %13938 = vst [vmem:[#allocation100_spill] sm:$0xff] %v12755_v31  ;;  %13939 = vst [vmem:[#allocation122_spill] sm:$0xff] %v12759_v11  ;;  %v12771_v27 = vadd.f32 %v12333_v8, %v13942_v29  ;;  %v12775_v49 = vadd.f32 %v12333_v8, %v13943_v0  ;;  %v13944_v31 = vld [vmem:[#allocation116_spill] sm:$0xff]  ;;  %v13945_v11 = vld [vmem:[#allocation115_spill] sm:$0xff]  ;;  %v12791_v29 = vadd.f32 %v12333_v8, %v12539_v34 }
 0xad0   :  { %13940 = vst [vmem:[#allocation121_spill] sm:$0xff] %v12763_v36  ;;  %v12779_v39 = vadd.f32 %v12333_v8, %v13944_v31  ;;  %v12783_v38 = vadd.f32 %v12333_v8, %v13945_v11  ;;  %v13946_v36 = vld [vmem:[#allocation119_spill] sm:$0xff]  ;;  %v12795_v0 = vadd.f32 %v12333_v8, %v12543_v48  ;;  %v12799_v31 = vadd.f32 %v12333_v8, %v12547_v14 }
 0xad1   :  { %v12787_v44 = vadd.f32 %v12333_v8, %v13946_v36  ;;  %v12803_v11 = vadd.f32 %v12333_v8, %v12551_v61  ;;  %v12807_v36 = vadd.f32 %v12333_v8, %v12555_v59  ;;  %v12811_v34 = vadd.f32 %v12333_v8, %v12559_v4 }
 0xad2   :  { %13947 = vst [vmem:[#allocation91_spill] sm:$0xff] %v12795_v0  ;;  %13948 = vst [vmem:[#allocation123_spill] sm:$0xff] %v12799_v31  ;;  %v12815_v48 = vadd.f32 %v12333_v8, %v12563_v35  ;;  %v13952_v0 = vld [vmem:[#allocation13_spill] sm:$0xff]  ;;  %v13953_v31 = vld [vmem:[#allocation14_spill] sm:$0xff] }
 0xad3   :  { %13949 = vst [vmem:[#allocation95_spill] sm:$0xff] %v12803_v11  ;;  %13950 = vst [vmem:[#allocation124_spill] sm:$0xff] %v12807_v36  ;;  %v12819_v14 = vadd.f32 %v12567_v22, %v13952_v0  ;;  %v12823_v61 = vadd.f32 %v12571_v54, %v13953_v31  ;;  %v13954_v11 = vld [vmem:[#allocation15_spill] sm:$0xff]  ;;  %v13955_v36 = vld [vmem:[#allocation16_spill] sm:$0xff] }
 0xad4   :  { %13951 = vst [vmem:[#allocation126_spill] sm:$0xff] %v12811_v34  ;;  %v12827_v59 = vadd.f32 %v12575_v42, %v13954_v11  ;;  %v12831_v4 = vadd.f32 %v12579_v60, %v13955_v36  ;;  %v13956_v34 = vld [vmem:[#allocation17_spill] sm:$0xff]  ;;  %v13957_v35 = vld [vmem:[#allocation18_spill] sm:$0xff]  ;;  %v13958_v0 = vld [vmem:[#allocation19_spill] sm:$0xff] }
 0xad5   :  { %v12835_v8 = vadd.f32 %v12583_v16, %v13956_v34  ;;  %v12839_v22 = vadd.f32 %v12587_v1, %v13957_v35  ;;  %v12843_v54 = vadd.f32 %v12591_v10, %v13958_v0  ;;  %v13959_v31 = vld [vmem:[#allocation20_spill] sm:$0xff]  ;;  %v13960_v11 = vld [vmem:[#allocation21_spill] sm:$0xff]  ;;  %v13961_v36 = vld [vmem:[#allocation22_spill] sm:$0xff] }
 0xad6   :  { %v12847_v42 = vadd.f32 %v12595_v47, %v13959_v31  ;;  %v12851_v60 = vadd.f32 %v12599_v62, %v13960_v11  ;;  %v12855_v16 = vadd.f32 %v12603_v41, %v13961_v36  ;;  %v13962_v34 = vld [vmem:[#allocation23_spill] sm:$0xff]  ;;  %v13963_v35 = vld [vmem:[#allocation24_spill] sm:$0xff]  ;;  %v13964_v0 = vld [vmem:[#allocation25_spill] sm:$0xff] }
 0xad7   :  { %v12859_v1 = vadd.f32 %v12607_v33, %v13962_v34  ;;  %v12863_v10 = vadd.f32 %v12611_v9, %v13963_v35  ;;  %v12867_v47 = vadd.f32 %v12615_v15, %v13964_v0  ;;  %v13965_v31 = vld [vmem:[#allocation26_spill] sm:$0xff]  ;;  %v13966_v11 = vld [vmem:[#allocation27_spill] sm:$0xff]  ;;  %v13967_v36 = vld [vmem:[#allocation28_spill] sm:$0xff] }
 0xad8   :  { %v12871_v62 = vadd.f32 %v12619_v52, %v13965_v31  ;;  %v12875_v41 = vadd.f32 %v12623_v21, %v13966_v11  ;;  %v12879_v33 = vadd.f32 %v12627_v53, %v13967_v36  ;;  %v13968_v34 = vld [vmem:[#allocation29_spill] sm:$0xff]  ;;  %v13969_v35 = vld [vmem:[#allocation30_spill] sm:$0xff]  ;;  %v13970_v0 = vld [vmem:[#allocation31_spill] sm:$0xff] }
 0xad9   :  { %v12883_v9 = vadd.f32 %v12631_v19, %v13968_v34  ;;  %v12887_v15 = vadd.f32 %v12635_v18, %v13969_v35  ;;  %v12891_v52 = vadd.f32 %v12639_v57, %v13970_v0  ;;  %v13971_v31 = vld [vmem:[#allocation32_spill] sm:$0xff]  ;;  %v13972_v11 = vld [vmem:[#allocation33_spill] sm:$0xff]  ;;  %v13973_v36 = vld [vmem:[#allocation34_spill] sm:$0xff] }
 0xada   :  { %v12895_v21 = vadd.f32 %v12643_v26, %v13971_v31  ;;  %v12899_v53 = vadd.f32 %v12647_v17, %v13972_v11  ;;  %v12903_v19 = vadd.f32 %v12651_v3, %v13973_v36  ;;  %v13974_v34 = vld [vmem:[#allocation35_spill] sm:$0xff]  ;;  %v13975_v35 = vld [vmem:[#allocation36_spill] sm:$0xff]  ;;  %v13976_v0 = vld [vmem:[#allocation37_spill] sm:$0xff] }
 0xadb   :  { %v12907_v18 = vadd.f32 %v12655_v25, %v13974_v34  ;;  %v12911_v57 = vadd.f32 %v12659_v43, %v13975_v35  ;;  %v12915_v26 = vadd.f32 %v12663_v28, %v13976_v0  ;;  %v13977_v31 = vld [vmem:[#allocation38_spill] sm:$0xff]  ;;  %v13978_v11 = vld [vmem:[#allocation39_spill] sm:$0xff]  ;;  %v13979_v36 = vld [vmem:[#allocation40_spill] sm:$0xff] }
 0xadc   :  { %v12919_v17 = vadd.f32 %v12667_v23, %v13977_v31  ;;  %v12923_v3 = vadd.f32 %v12671_v37, %v13978_v11  ;;  %v12927_v25 = vadd.f32 %v12675_v46, %v13979_v36  ;;  %v13980_v34 = vld [vmem:[#allocation41_spill] sm:$0xff]  ;;  %v13981_v35 = vld [vmem:[#allocation42_spill] sm:$0xff]  ;;  %v13983_v31 = vld [vmem:[#allocation80_spill] sm:$0xff] }
 0xadd   :  { %v12931_v43 = vadd.f32 %v12679_v40, %v13980_v34  ;;  %v12935_v28 = vadd.f32 %v12683_v20, %v13981_v35  ;;  %v13982_v0 = vld [vmem:[#allocation78_spill] sm:$0xff]  ;;  %v12943_v37 = vadd.f32 %v12691_v55, %v13983_v31  ;;  %v13984_v11 = vld [vmem:[#allocation43_spill] sm:$0xff]  ;;  %v13985_v36 = vld [vmem:[#allocation44_spill] sm:$0xff] }
 0xade   :  { %v12939_v23 = vadd.f32 %v12687_v45, %v13982_v0  ;;  %v12947_v46 = vadd.f32 %v12695_v63, %v13984_v11  ;;  %v12951_v40 = vadd.f32 %v12699_v6, %v13985_v36  ;;  %v13986_v34 = vld [vmem:[#allocation45_spill] sm:$0xff]  ;;  %v13987_v35 = vld [vmem:[#allocation46_spill] sm:$0xff]  ;;  %v13988_v0 = vld [vmem:[#allocation47_spill] sm:$0xff] }
 0xadf   :  { %v12955_v20 = vadd.f32 %v12703_v2, %v13986_v34  ;;  %v12959_v45 = vadd.f32 %v12707_v30, %v13987_v35  ;;  %v12963_v55 = vadd.f32 %v12711_v58, %v13988_v0  ;;  %v13989_v31 = vld [vmem:[#allocation48_spill] sm:$0xff]  ;;  %v13990_v11 = vld [vmem:[#allocation49_spill] sm:$0xff]  ;;  %v13991_v36 = vld [vmem:[#allocation50_spill] sm:$0xff] }
 0xae0   :  { %v12967_v63 = vadd.f32 %v12715_v7, %v13989_v31  ;;  %v12971_v6 = vadd.f32 %v12719_v51, %v13990_v11  ;;  %v12975_v2 = vadd.f32 %v12723_v50, %v13991_v36  ;;  %v13993_v34 = vld [vmem:[#allocation51_spill] sm:$0xff]  ;;  %v13995_v35 = vld [vmem:[#allocation52_spill] sm:$0xff]  ;;  %v13997_v0 = vld [vmem:[#allocation53_spill] sm:$0xff] }
 0xae1   :  { %v12979_v30 = vadd.f32 %v12727_v24, %v13993_v34  ;;  %v12983_v58 = vadd.f32 %v12731_v5, %v13995_v35  ;;  %v12987_v7 = vadd.f32 %v12735_v32, %v13997_v0  ;;  %v13999_v31 = vld [vmem:[#allocation54_spill] sm:$0xff]  ;;  %v14001_v11 = vld [vmem:[#allocation55_spill] sm:$0xff]  ;;  %v14002_v36 = vld [vmem:[#allocation56_spill] sm:$0xff] }
 0xae2   :  { %13992 = vst [vmem:[#allocation125_spill] sm:$0xff] %v12975_v2  ;;  %v12991_v51 = vadd.f32 %v12739_v13, %v13999_v31  ;;  %v12995_v50 = vadd.f32 %v12743_v56, %v14001_v11  ;;  %v14003_v2 = vld [vmem:[#allocation88_spill] sm:$0xff]  ;;  %v14004_v34 = vld [vmem:[#allocation57_spill] sm:$0xff]  ;;  %v14006_v35 = vld [vmem:[#allocation58_spill] sm:$0xff] }
 0xae3   :  { %13994 = vst [vmem:[#allocation128_spill] sm:$0xff] %v12979_v30  ;;  %13996 = vst [vmem:[#allocation127_spill] sm:$0xff] %v12983_v58  ;;  %v12999_v24 = vadd.f32 %v14003_v2, %v14002_v36  ;;  %v14005_v30 = vld [vmem:[#allocation118_spill] sm:$0xff]  ;;  %v14007_v58 = vld [vmem:[#allocation100_spill] sm:$0xff] }
 0xae4   :  { %13998 = vst [vmem:[#allocation130_spill] sm:$0xff] %v12987_v7  ;;  %14000 = vst [vmem:[#allocation129_spill] sm:$0xff] %v12991_v51  ;;  %v13003_v5 = vadd.f32 %v14005_v30, %v14004_v34  ;;  %v13007_v32 = vadd.f32 %v14007_v58, %v14006_v35  ;;  %v14008_v0 = vld [vmem:[#allocation59_spill] sm:$0xff]  ;;  %v14009_v7 = vld [vmem:[#allocation122_spill] sm:$0xff] }
 0xae5   :  { %v13011_v13 = vadd.f32 %v14009_v7, %v14008_v0  ;;  %v14010_v31 = vld [vmem:[#allocation60_spill] sm:$0xff]  ;;  %v14011_v51 = vld [vmem:[#allocation121_spill] sm:$0xff]  ;;  %v14013_v36 = vld [vmem:[#allocation62_spill] sm:$0xff] }
 0xae6   :  { %v13015_v56 = vadd.f32 %v14011_v51, %v14010_v31  ;;  %v14012_v11 = vld [vmem:[#allocation61_spill] sm:$0xff]  ;;  %v13023_v30 = vadd.f32 %v12771_v27, %v14013_v36  ;;  %v14015_v34 = vld [vmem:[#allocation63_spill] sm:$0xff]  ;;  %v14017_v35 = vld [vmem:[#allocation64_spill] sm:$0xff] }
 0xae7   :  { %v13019_v2 = vadd.f32 %v12767_v12, %v14012_v11  ;;  %v13027_v58 = vadd.f32 %v12775_v49, %v14015_v34  ;;  %v13031_v7 = vadd.f32 %v12779_v39, %v14017_v35  ;;  %v14019_v0 = vld [vmem:[#allocation65_spill] sm:$0xff]  ;;  %v14021_v31 = vld [vmem:[#allocation66_spill] sm:$0xff]  ;;  %v14023_v11 = vld [vmem:[#allocation67_spill] sm:$0xff] }
 0xae8   :  { %14014 = vst [vmem:[#allocation131_spill] sm:$0xff] %v13023_v30  ;;  %v13035_v51 = vadd.f32 %v12783_v38, %v14019_v0  ;;  %v13039_v12 = vadd.f32 %v12787_v44, %v14021_v31  ;;  %v13043_v27 = vadd.f32 %v12791_v29, %v14023_v11  ;;  %v14024_v36 = vld [vmem:[#allocation68_spill] sm:$0xff]  ;;  %v14025_v30 = vld [vmem:[#allocation91_spill] sm:$0xff]  ;;  %v14026_v34 = vld [vmem:[#allocation70_spill] sm:$0xff] }
 0xae9   :  { %14016 = vst [vmem:[#allocation94_spill] sm:$0xff] %v13027_v58  ;;  %14018 = vst [vmem:[#allocation132_spill] sm:$0xff] %v13031_v7  ;;  %v13047_v49 = vadd.f32 %v14025_v30, %v14024_v36  ;;  %v14027_v58 = vld [vmem:[#allocation123_spill] sm:$0xff]  ;;  %v14028_v35 = vld [vmem:[#allocation72_spill] sm:$0xff]  ;;  %v6490_v36 = vmax.f32 %v12819_v14, 0.0  ;;  %v6500_v14 = vmax.f32 %v12859_v1, 0.0 }
 0xaea   :  { %14020 = vst [vmem:[#allocation77_spill] sm:$0xff] %v13035_v51  ;;  %14022 = vst [vmem:[#allocation133_spill] sm:$0xff] %v13039_v12  ;;  %v13051_v39 = vadd.f32 %v14027_v58, %v14026_v34  ;;  %v14029_v7 = vld [vmem:[#allocation95_spill] sm:$0xff]  ;;  %v14030_v0 = vld [vmem:[#allocation73_spill] sm:$0xff]  ;;  %v6491_v58 = vmax.f32 %v12823_v61, 0.0  ;;  %v6492_v34 = vmax.f32 %v12827_v59, 0.0 }
 0xaeb   :  { %v13055_v38 = vadd.f32 %v14029_v7, %v14028_v35  ;;  %v14031_v51 = vld [vmem:[#allocation124_spill] sm:$0xff]  ;;  %v14032_v31 = vld [vmem:[#allocation74_spill] sm:$0xff]  ;;  %v14034_v11 = vld [vmem:[#allocation71_spill] sm:$0xff]  ;;  %v6493_v7 = vmax.f32 %v12831_v4, 0.0  ;;  %v6494_v35 = vmax.f32 %v12835_v8, 0.0  ;;  %6554 = vst [vmem:[#allocation9] sm:$0xff] %v6490_v36 }
 0xaec   :  { %v13059_v44 = vadd.f32 %v14031_v51, %v14030_v0  ;;  %v14033_v12 = vld [vmem:[#allocation126_spill] sm:$0xff]  ;;  %v13067_v30 = vadd.f32 %v12815_v48, %v14034_v11  ;;  %v6495_v51 = vmax.f32 %v12839_v22, 0.0  ;;  %v6496_v0 = vmax.f32 %v12843_v54, 0.0  ;;  %6555 = vst [vmem:[#allocation9 + $0x8] sm:$0xff] %v6491_v58  ;;  %6556 = vst [vmem:[#allocation9 + $0x10] sm:$0xff] %v6492_v34  ;;  %v14039_v11 = vld [vmem:[#allocation129_spill] sm:$0xff] }
 0xaed   :  { %v13063_v29 = vadd.f32 %v14033_v12, %v14032_v31  ;;  %v6497_v12 = vmax.f32 %v12847_v42, 0.0  ;;  %v6498_v31 = vmax.f32 %v12851_v60, 0.0  ;;  %v6499_v48 = vmax.f32 %v12855_v16, 0.0  ;;  %6557 = vst [vmem:[#allocation9 + $0x18] sm:$0xff] %v6493_v7  ;;  %6558 = vst [vmem:[#allocation9 + $0x20] sm:$0xff] %v6494_v35 }
 0xaee   :  { %v6501_v61 = vmax.f32 %v12863_v10, 0.0  ;;  %v6502_v59 = vmax.f32 %v12867_v47, 0.0  ;;  %v6503_v4 = vmax.f32 %v12871_v62, 0.0  ;;  %v6504_v8 = vmax.f32 %v12875_v41, 0.0  ;;  %6559 = vst [vmem:[#allocation9 + $0x28] sm:$0xff] %v6495_v51  ;;  %6560 = vst [vmem:[#allocation9 + $0x30] sm:$0xff] %v6496_v0 }
 0xaef   :  { %v6505_v22 = vmax.f32 %v12879_v33, 0.0  ;;  %v6506_v54 = vmax.f32 %v12883_v9, 0.0  ;;  %6561 = vst [vmem:[#allocation9 + $0x38] sm:$0xff] %v6497_v12  ;;  %6562 = vst [vmem:[#allocation9 + $0x40] sm:$0xff] %v6498_v31  ;;  %v6507_v42 = vmax.f32 %v12887_v15, 0.0  ;;  %v6508_v60 = vmax.f32 %v12891_v52, 0.0 }
 0xaf0   :  { %v6509_v16 = vmax.f32 %v12895_v21, 0.0  ;;  %v6510_v1 = vmax.f32 %v12899_v53, 0.0  ;;  %6563 = vst [vmem:[#allocation9 + $0x48] sm:$0xff] %v6499_v48  ;;  %6564 = vst [vmem:[#allocation9 + $0x50] sm:$0xff] %v6500_v14  ;;  %v6511_v10 = vmax.f32 %v12903_v19, 0.0  ;;  %v6512_v47 = vmax.f32 %v12907_v18, 0.0 }
 0xaf1   :  { %6565 = vst [vmem:[#allocation9 + $0x58] sm:$0xff] %v6501_v61  ;;  %6566 = vst [vmem:[#allocation9 + $0x60] sm:$0xff] %v6502_v59  ;;  %v6513_v62 = vmax.f32 %v12911_v57, 0.0  ;;  %v6514_v41 = vmax.f32 %v12915_v26, 0.0  ;;  %v6515_v33 = vmax.f32 %v12919_v17, 0.0  ;;  %v6516_v9 = vmax.f32 %v12923_v3, 0.0 }
 0xaf2   :  { %6567 = vst [vmem:[#allocation9 + $0x68] sm:$0xff] %v6503_v4  ;;  %6568 = vst [vmem:[#allocation9 + $0x70] sm:$0xff] %v6504_v8  ;;  %v6517_v15 = vmax.f32 %v12927_v25, 0.0  ;;  %v6518_v52 = vmax.f32 %v12931_v43, 0.0  ;;  %v6519_v21 = vmax.f32 %v12935_v28, 0.0  ;;  %v6520_v53 = vmax.f32 %v12939_v23, 0.0 }
 0xaf3   :  { %6569 = vst [vmem:[#allocation9 + $0x78] sm:$0xff] %v6505_v22  ;;  %6570 = vst [vmem:[#allocation9 + $0x80] sm:$0xff] %v6506_v54  ;;  %v6521_v19 = vmax.f32 %v12943_v37, 0.0  ;;  %v6522_v18 = vmax.f32 %v12947_v46, 0.0  ;;  %v6523_v57 = vmax.f32 %v12951_v40, 0.0  ;;  %v6524_v26 = vmax.f32 %v12955_v20, 0.0 }
 0xaf4   :  { %6571 = vst [vmem:[#allocation9 + $0x88] sm:$0xff] %v6507_v42  ;;  %6572 = vst [vmem:[#allocation9 + $0x90] sm:$0xff] %v6508_v60  ;;  %v6525_v17 = vmax.f32 %v12959_v45, 0.0  ;;  %v6526_v3 = vmax.f32 %v12963_v55, 0.0  ;;  %v6527_v25 = vmax.f32 %v12967_v63, 0.0  ;;  %v6528_v43 = vmax.f32 %v12971_v6, 0.0 }
 0xaf5   :  { %6573 = vst [vmem:[#allocation9 + $0x98] sm:$0xff] %v6509_v16  ;;  %6574 = vst [vmem:[#allocation9 + $0xa0] sm:$0xff] %v6510_v1  ;;  %v14035_v28 = vld [vmem:[#allocation125_spill] sm:$0xff]  ;;  %v14036_v37 = vld [vmem:[#allocation128_spill] sm:$0xff]  ;;  %v6533_v36 = vmax.f32 %v14039_v11, 0.0  ;;  %v6534_v58 = vmax.f32 %v12995_v50, 0.0 }
 0xaf6   :  { %6575 = vst [vmem:[#allocation9 + $0xa8] sm:$0xff] %v6511_v10  ;;  %6576 = vst [vmem:[#allocation9 + $0xb0] sm:$0xff] %v6512_v47  ;;  %v6529_v23 = vmax.f32 %v14035_v28, 0.0  ;;  %v6530_v46 = vmax.f32 %v14036_v37, 0.0  ;;  %v14037_v40 = vld [vmem:[#allocation127_spill] sm:$0xff]  ;;  %v14038_v45 = vld [vmem:[#allocation130_spill] sm:$0xff] }
 0xaf7   :  { %6577 = vst [vmem:[#allocation9 + $0xb8] sm:$0xff] %v6513_v62  ;;  %6578 = vst [vmem:[#allocation9 + $0xc0] sm:$0xff] %v6514_v41  ;;  %v6531_v20 = vmax.f32 %v14037_v40, 0.0  ;;  %v6532_v55 = vmax.f32 %v14038_v45, 0.0  ;;  %v6535_v63 = vmax.f32 %v12999_v24, 0.0  ;;  %v6536_v6 = vmax.f32 %v13003_v5, 0.0 }
 0xaf8   :  { %6579 = vst [vmem:[#allocation9 + $0xc8] sm:$0xff] %v6515_v33  ;;  %6580 = vst [vmem:[#allocation9 + $0xd0] sm:$0xff] %v6516_v9  ;;  %v6537_v34 = vmax.f32 %v13007_v32, 0.0  ;;  %v6538_v7 = vmax.f32 %v13011_v13, 0.0  ;;  %v6539_v35 = vmax.f32 %v13015_v56, 0.0  ;;  %v6540_v50 = vmax.f32 %v13019_v2, 0.0 }
 0xaf9   :  { %6581 = vst [vmem:[#allocation9 + $0xd8] sm:$0xff] %v6517_v15  ;;  %6582 = vst [vmem:[#allocation9 + $0xe0] sm:$0xff] %v6518_v52  ;;  %v14040_v51 = vld [vmem:[#allocation131_spill] sm:$0xff]  ;;  %v14041_v12 = vld [vmem:[#allocation94_spill] sm:$0xff]  ;;  %v6546_v56 = vmax.f32 %v13043_v27, 0.0  ;;  %v6547_v2 = vmax.f32 %v13047_v49, 0.0 }
 0xafa   :  { %6583 = vst [vmem:[#allocation9 + $0xe8] sm:$0xff] %v6519_v21  ;;  %6584 = vst [vmem:[#allocation9 + $0xf0] sm:$0xff] %v6520_v53  ;;  %v6541_v0 = vmax.f32 %v14040_v51, 0.0  ;;  %v6542_v31 = vmax.f32 %v14041_v12, 0.0  ;;  %v14042_v24 = vld [vmem:[#allocation132_spill] sm:$0xff]  ;;  %v14043_v32 = vld [vmem:[#allocation77_spill] sm:$0xff] }
 0xafb   :  { %6585 = vst [vmem:[#allocation9 + $0xf8] sm:$0xff] %v6521_v19  ;;  %6586 = vst [vmem:[#allocation9 + $0x100] sm:$0xff] %v6522_v18  ;;  %v6543_v5 = vmax.f32 %v14042_v24, 0.0  ;;  %v6544_v13 = vmax.f32 %v14043_v32, 0.0  ;;  %v14044_v48 = vld [vmem:[#allocation133_spill] sm:$0xff]  ;;  %v6548_v61 = vmax.f32 %v13051_v39, 0.0 }
 0xafc   :  { %6587 = vst [vmem:[#allocation9 + $0x108] sm:$0xff] %v6523_v57  ;;  %6588 = vst [vmem:[#allocation9 + $0x110] sm:$0xff] %v6524_v26  ;;  %v6545_v14 = vmax.f32 %v14044_v48, 0.0  ;;  %v6549_v59 = vmax.f32 %v13055_v38, 0.0  ;;  %v6550_v4 = vmax.f32 %v13059_v44, 0.0  ;;  %v6551_v8 = vmax.f32 %v13063_v29, 0.0 }
 0xafd   :  { %6589 = vst [vmem:[#allocation9 + $0x118] sm:$0xff] %v6525_v17  ;;  %6590 = vst [vmem:[#allocation9 + $0x120] sm:$0xff] %v6526_v3  ;;  %v6553_v27 = vmax.f32 %v13067_v30, 0.0 }
 0xafe   :  { %6591 = vst [vmem:[#allocation9 + $0x128] sm:$0xff] %v6527_v25  ;;  %6592 = vst [vmem:[#allocation9 + $0x130] sm:$0xff] %v6528_v43 }
 0xaff   :  { %6593 = vst [vmem:[#allocation9 + $0x138] sm:$0xff] %v6529_v23  ;;  %6594 = vst [vmem:[#allocation9 + $0x140] sm:$0xff] %v6530_v46 }
 0xb00   :  { %6595 = vst [vmem:[#allocation9 + $0x148] sm:$0xff] %v6531_v20  ;;  %6596 = vst [vmem:[#allocation9 + $0x150] sm:$0xff] %v6532_v55 }
 0xb01   :  { %6597 = vst [vmem:[#allocation9 + $0x158] sm:$0xff] %v6533_v36  ;;  %6598 = vst [vmem:[#allocation9 + $0x160] sm:$0xff] %v6534_v58 }
 0xb02   :  { %6599 = vst [vmem:[#allocation9 + $0x168] sm:$0xff] %v6535_v63  ;;  %6600 = vst [vmem:[#allocation9 + $0x170] sm:$0xff] %v6536_v6 }
 0xb03   :  { %6601 = vst [vmem:[#allocation9 + $0x178] sm:$0xff] %v6537_v34  ;;  %6602 = vst [vmem:[#allocation9 + $0x180] sm:$0xff] %v6538_v7 }
 0xb04   :  { %6603 = vst [vmem:[#allocation9 + $0x188] sm:$0xff] %v6539_v35  ;;  %6604 = vst [vmem:[#allocation9 + $0x190] sm:$0xff] %v6540_v50 }
 0xb05   :  { %6605 = vst [vmem:[#allocation9 + $0x198] sm:$0xff] %v6541_v0  ;;  %6606 = vst [vmem:[#allocation9 + $0x1a0] sm:$0xff] %v6542_v31 }
 0xb06   :  { %6607 = vst [vmem:[#allocation9 + $0x1a8] sm:$0xff] %v6543_v5  ;;  %6608 = vst [vmem:[#allocation9 + $0x1b0] sm:$0xff] %v6544_v13 }
 0xb07   :  { %6609 = vst [vmem:[#allocation9 + $0x1b8] sm:$0xff] %v6545_v14  ;;  %6610 = vst [vmem:[#allocation9 + $0x1c0] sm:$0xff] %v6546_v56 }
 0xb08   :  { %6611 = vst [vmem:[#allocation9 + $0x1c8] sm:$0xff] %v6547_v2  ;;  %6612 = vst [vmem:[#allocation9 + $0x1d0] sm:$0xff] %v6548_v61 }
 0xb09   :  { %6613 = vst [vmem:[#allocation9 + $0x1d8] sm:$0xff] %v6549_v59  ;;  %6614 = vst [vmem:[#allocation9 + $0x1e0] sm:$0xff] %v6550_v4 }
 0xb0a   :  { %6615 = vst [vmem:[#allocation9 + $0x1e8] sm:$0xff] %v6551_v8  ;;  %6617 = vst [vmem:[#allocation9 + $0x1f8] sm:$0xff] %v6553_v27 }
 0xb0b   :  { %8377 = shalt.err (!%p8374_p0)
}
 0xb0c   :  { %s8378_s24 = scalar_lea.hbm %s13154_s7, 8192 }
 0xb0d   :  { %p8379_p1 = scmp.ne.s32.totalorder %s13154_s7, %s8378_s24  ;;  %p8382_p2 = scmp.lt.u32.totalorder %s8378_s24, %s13154_s7 }
 0xb0f   :  { %p8384_p3 = pnand %p8382_p2, %p8379_p1 }
 0xb11   :  { %8387 = shalt.err (!%p8384_p3)
}
 0xb12   :  { %6629 = dma.vmem_to_hbm [thread:$0]  %s6624_s6, 8192, %s13154_s7, [#allocation5], %s8396_s13, %s8396_s13, %s8397_s14  }
 0xb13   :  { %8392 = dma.done.wait [#allocation5], 8192  }
 0xb14   :  { %8393 = vsyncadd [#allocation5], 4294959104 }
 0xb15   :  { %6633 = vsyncpa [#allocation4], 1 }
 0xb16   :  { %6634 = vsyncpa [#allocation7], 1 }
 0xb17   :  { %6635 = vsyncpa [#allocation5], 1 }

</bundles_post_ra>
